<compile_context>
chip_gen: v7x
topology: tpu7x:2x2x1
jax: 0.10.0
libtpu: 0.0.40
codegen_flags: <defaults>
</compile_context>

<pallas_src>
import functools

import jax
import jax.numpy as jnp
from jax import lax
from jax.experimental import pallas as pl
from jax.experimental.pallas import tpu as pltpu


# ---------------------------------------------------------------------------
# Fused kernel: conv (im2col + one MXU matmul) + batch stats + BN + activation.
# ---------------------------------------------------------------------------
def _luconv_kernel(x_ref, lo_ref, hi_ref, w_ref, g_ref, beta_ref, pw_ref,
                   o_ref, col_ref, mean_ref, m2_ref, *,
                   act, eps, count, cin, td, hh, ww, n_d_tiles):
    # x_ref:   (TD, H+2, W+2, Cin)  main D-planes of this tile (H/W zero-padded)
    # lo_ref:  (H+2, W+2, Cin)      D-halo plane below (clamped; zeroed if t==0)
    # hi_ref:  (H+2, W+2, Cin)      D-halo plane above (clamped; zeroed if t==last)
    # w_ref:   (Cout, 27*Cin)       folded conv weights (tap-major, Cin minor)
    # g/beta/pw_ref: (Cout, 1)      BN gamma/beta, PReLU slope
    # o_ref:   (Cout, TD, H*W)      lane-dense, channels-first output block
    # col_ref: (TD*H*W, 27*Cin)     im2col VMEM scratch
    # mean_ref, m2_ref: (Cout, 1)   running batch-stat accumulators (Chan)
    p = pl.program_id(0)          # 0: statistics pass, 1: normalize/activate pass
    n = pl.program_id(1)
    t = pl.program_id(2)

    Cin, TD, H, W = cin, td, hh, ww
    HW = H * W
    S = TD * HW

    # D-halo planes; zero them when they lie outside the volume (the index_map
    # clamps, so the DMA'd data would otherwise be a wrong interior plane).
    lo = lo_ref[...] * (t > 0).astype(jnp.float32)
    hi = hi_ref[...] * (t < n_d_tiles - 1).astype(jnp.float32)

    # ---- im2col into VMEM scratch, then ONE matmul (K = 27*Cin) ------------
    # Window row wd in [0, TD+2): wd=0 -> lo, wd in [1,TD] -> x_ref[wd-1],
    # wd=TD+1 -> hi.  Output row dd uses window row dd+kd.
    for kd in range(3):
        for kh in range(3):
            for kw in range(3):
                tap = (kd * 3 + kh) * 3 + kw
                c0 = tap * Cin
                if kd == 1:
                    col_ref[:, c0:c0 + Cin] = (
                        x_ref[:, kh:kh + H, kw:kw + W, :].reshape(S, Cin))
                elif kd == 0:
                    col_ref[0:HW, c0:c0 + Cin] = (
                        lo[kh:kh + H, kw:kw + W, :].reshape(HW, Cin))
                    if TD > 1:
                        col_ref[HW:S, c0:c0 + Cin] = (
                            x_ref[0:TD - 1, kh:kh + H, kw:kw + W, :]
                            .reshape(S - HW, Cin))
                else:  # kd == 2
                    if TD > 1:
                        col_ref[0:S - HW, c0:c0 + Cin] = (
                            x_ref[1:TD, kh:kh + H, kw:kw + W, :]
                            .reshape(S - HW, Cin))
                    col_ref[S - HW:S, c0:c0 + Cin] = (
                        hi[kh:kh + H, kw:kw + W, :].reshape(HW, Cin))

    # y: (Cout, S) -- channels on sublanes, fused spatial on the lane axis.
    # The conv bias is intentionally omitted: a per-channel constant cancels
    # exactly under ContBatchNorm3d's always-batch-statistics normalization.
    y = lax.dot_general(w_ref[...], col_ref[...],
                        dimension_numbers=(((1,), (1,)), ((), ())),
                        preferred_element_type=jnp.float32)

    # ---- phase 0: accumulate batch statistics (Chan parallel variance) -----
    @pl.when((p == 0) & (n == 0) & (t == 0))
    def _init():
        mean_ref[...] = jnp.zeros_like(mean_ref)
        m2_ref[...] = jnp.zeros_like(m2_ref)

    @pl.when(p == 0)
    def _accumulate_stats():
        bs = float(S)
        bmean = jnp.sum(y, axis=1, keepdims=True) * (1.0 / bs)
        bm2 = jnp.sum((y - bmean) ** 2, axis=1, keepdims=True)
        prev = (n * n_d_tiles + t).astype(jnp.float32) * bs  # elems already seen
        tot = prev + bs
        delta = bmean - mean_ref[...]
        mean_ref[...] = mean_ref[...] + delta * (bs / tot)
        m2_ref[...] = m2_ref[...] + bm2 + delta * delta * (prev * bs / tot)

    # ---- phase 1: batch-norm affine + activation, lane-dense stores --------
    @pl.when(p == 1)
    def _normalize_activate():
        var = m2_ref[...] * (1.0 / count)            # biased variance (training)
        scale = g_ref[...] * lax.rsqrt(var + eps)
        shift = beta_ref[...] - mean_ref[...] * scale
        z = y * scale + shift
        if act == "relu":
            z = jnp.maximum(z, 0.0)
        elif act == "elu":
            z = jnp.where(z > 0, z, jnp.exp(jnp.minimum(z, 0.0)) - 1.0)  # alpha=1
        elif act == "prelu":
            z = jnp.where(z > 0, z, pw_ref[...] * z)
        else:
            raise ValueError(act)
        for d in range(TD):                          # static unroll, no relayout
            o_ref[:, d, :] = z[:, d * HW:(d + 1) * HW]


# ---------------------------------------------------------------------------
# D-tile selection: largest divisor of D whose padded VMEM working set fits.
# ---------------------------------------------------------------------------
def _round_up(v, m):
    return ((v + m - 1) // m) * m


def _pick_d_tile(D, H, W, Cin, Cout, d_tile_max, budget_bytes):
    HW, Hp, Wp = H * W, H + 2, W + 2
    plane = Hp * _round_up(Wp, 8) * _round_up(Cin, 128) * 4       # padded bytes
    best = 1
    for td in range(1, max(1, min(D, d_tile_max)) + 1):
        if D % td:
            continue
        S = td * HW
        est = (_round_up(S, 8) * _round_up(27 * Cin, 128) * 4      # im2col scratch
               + 2 * td * plane + 4 * plane                        # x main (2-buf) + halos
               + 2 * Cout * _round_up(td, 8) * _round_up(HW, 128) * 4  # out (2-buf)
               + 2 * _round_up(Cout, 8) * _round_up(S, 128) * 4)   # y/z live values
        if est <= budget_bytes:
            best = td
    return best


# ---------------------------------------------------------------------------
# Wrapper (PyTorch-compatible NCDHW interface).
# ---------------------------------------------------------------------------
def luconv_forward(x_ncdhw, params, *, act="relu", eps=1e-5, d_tile=4,
                   vmem_limit_bytes=48 * 1024 * 1024):
    N, Cin, D, H, W = x_ncdhw.shape
    w = params["conv_w"]                              # (Cout, Cin, 3, 3, 3)
    Cout = w.shape[0]
    HW = H * W

    TD = _pick_d_tile(D, H, W, Cin, Cout, d_tile, (vmem_limit_bytes * 2) // 3)
    nDT = D // TD
    Hp, Wp = H + 2, W + 2
    S = TD * HW

    # Single XLA prep op: NCDHW -> NDHWC (Cin on lanes) + H/W zero padding.
    # D halos are fetched by the kernel through clamped index_maps, so no
    # overlapping window copies are materialized in HBM.
    x = jnp.transpose(x_ncdhw, (0, 2, 3, 4, 1)).astype(jnp.float32)
    x_hw = jnp.pad(x, ((0, 0), (0, 0), (1, 1), (1, 1), (0, 0)))

    # (Cout, Cin, 3,3,3) -> (Cout, kd,kh,kw,Cin) -> (Cout, 27*Cin) to match the
    # im2col column order tap*Cin + ci with tap = (kd*3+kh)*3+kw.
    w2 = jnp.transpose(w.astype(jnp.float32), (0, 2, 3, 4, 1)).reshape(Cout, 27 * Cin)
    g2 = params["bn_w"].reshape(Cout, 1).astype(jnp.float32)
    be2 = params["bn_b"].reshape(Cout, 1).astype(jnp.float32)
    pw2 = params.get("prelu_w",
                     jnp.full((Cout,), 0.25, jnp.float32)).reshape(Cout, 1).astype(jnp.float32)
    # NOTE: params["conv_b"] is accepted but not passed to the kernel -- the
    # conv bias cancels exactly under training-mode batch norm.

    kernel = functools.partial(
        _luconv_kernel, act=act, eps=eps, count=float(N * D * H * W),
        cin=Cin, td=TD, hh=H, ww=W, n_d_tiles=nDT)

    main_spec = pl.BlockSpec((None, TD, Hp, Wp, Cin),
                             lambda p, n, t: (n, t, 0, 0, 0))
    lo_spec = pl.BlockSpec((None, None, Hp, Wp, Cin),
                           lambda p, n, t: (n, jnp.maximum(t * TD - 1, 0), 0, 0, 0))
    hi_spec = pl.BlockSpec((None, None, Hp, Wp, Cin),
                           lambda p, n, t: (n, jnp.minimum((t + 1) * TD, D - 1), 0, 0, 0))

    # out index map: during the statistics phase (p=0) the output block index is
    # pinned to (0,0,0,0,0) so no (garbage) writebacks happen; in phase 1 it
    # walks the real blocks, so every output block is written exactly once.
    out5 = pl.pallas_call(
        kernel,
        grid=(2, N, nDT),
        in_specs=[
            main_spec, lo_spec, hi_spec,
            pl.BlockSpec((Cout, 27 * Cin), lambda p, n, t: (0, 0)),
            pl.BlockSpec((Cout, 1), lambda p, n, t: (0, 0)),
            pl.BlockSpec((Cout, 1), lambda p, n, t: (0, 0)),
            pl.BlockSpec((Cout, 1), lambda p, n, t: (0, 0)),
        ],
        out_specs=pl.BlockSpec((None, Cout, None, TD, HW),
                               lambda p, n, t: (n * p, 0, t * p, 0, 0)),
        out_shape=jax.ShapeDtypeStruct((N, Cout, nDT, TD, HW), jnp.float32),
        scratch_shapes=[
            pltpu.VMEM((S, 27 * Cin), jnp.float32),   # im2col scratch
            pltpu.VMEM((Cout, 1), jnp.float32),       # running mean
            pltpu.VMEM((Cout, 1), jnp.float32),       # running M2
        ],
        compiler_params=pltpu.CompilerParams(
            dimension_semantics=("arbitrary", "arbitrary", "arbitrary"),
            vmem_limit_bytes=vmem_limit_bytes),
    )(x_hw, x_hw, x_hw, w2, g2, be2, pw2)

    # (N, Cout, nDT, TD, H*W) is already NCDHW memory order -> free reshape.
    # TODO(synk): running_mean / running_var momentum updates of ContBatchNorm3d
    # are not materialized (they do not affect the forward output).
    # TODO(synk): very large H*W volumes would additionally need H tiling of the
    # im2col scratch; tiling here is over D only (chosen adaptively).
    return out5.reshape(N, Cout, D, H, W)


# ---------------------------------------------------------------------------
# Pure-JAX reference (correctness check only; follows PyTorch literally).
# ---------------------------------------------------------------------------
def luconv_reference(x, params, *, act="relu", eps=1e-5):
    w, b = params["conv_w"], params["conv_b"]
    y = lax.conv_general_dilated(
        x.astype(jnp.float32), w.astype(jnp.float32),
        window_strides=(1, 1, 1), padding=((1, 1), (1, 1), (1, 1)),
        dimension_numbers=("NCDHW", "OIDHW", "NCDHW"))
    y = y + b.reshape(1, -1, 1, 1, 1)
    mean = jnp.mean(y, axis=(0, 2, 3, 4), keepdims=True)
    var = jnp.mean((y - mean) ** 2, axis=(0, 2, 3, 4), keepdims=True)
    z = (y - mean) * lax.rsqrt(var + eps)
    z = z * params["bn_w"].reshape(1, -1, 1, 1, 1) \
          + params["bn_b"].reshape(1, -1, 1, 1, 1)
    if act == "relu":
        z = jnp.maximum(z, 0.0)
    elif act == "elu":
        z = jnp.where(z > 0, z, jnp.expm1(z))
    elif act == "prelu":
        z = jnp.where(z > 0, z, params["prelu_w"].reshape(1, -1, 1, 1, 1) * z)
    return z


if __name__ == "__main__":
    # LUConv(in_chan=4, out_chan=8, act=...) on a small 5D input.
    N, Cin, Cout, D, H, W = 2, 4, 8, 8, 8, 8

    key = jax.random.PRNGKey(0)
    k1, k2, k3, k4, k5 = jax.random.split(key, 5)
    params = {
        "conv_w": 0.1 * jax.random.normal(k1, (Cout, Cin, 3, 3, 3), jnp.float32),
        "conv_b": 0.1 * jax.random.normal(k2, (Cout,), jnp.float32),
        "bn_w": 1.0 + 0.1 * jax.random.normal(k3, (Cout,), jnp.float32),
        "bn_b": 0.1 * jax.random.normal(k4, (Cout,), jnp.float32),
        "prelu_w": 0.25 * jnp.ones((Cout,), jnp.float32),  # PyTorch PReLU init
    }
    x = jax.random.normal(k5, (N, Cin, D, H, W), jnp.float32)

    for act in ("relu", "prelu", "elu"):
        out = jax.block_until_ready(luconv_forward(x, params, act=act))
        ref = jax.block_until_ready(luconv_reference(x, params, act=act))
        assert out.shape == (N, Cout, D, H, W)
        err = float(jnp.max(jnp.abs(out - ref)))
        assert jnp.allclose(out, ref, rtol=1e-4, atol=1e-4), (act, err)

    print("KERNEL_OK")
</pallas_src>

<mosaic_0001>
module attributes {stable_mosaic.version = 11 : i64} {
  func.func @_luconv_kernel(%arg0: i32, %arg1: i32, %arg2: i32, %arg3: memref<1x4x10x10x4xf32, #tpu.memory_space<vmem>>, %arg4: memref<1x1x10x10x4xf32, #tpu.memory_space<vmem>>, %arg5: memref<1x1x10x10x4xf32, #tpu.memory_space<vmem>>, %arg6: memref<8x108xf32, #tpu.memory_space<vmem>>, %arg7: memref<8x1xf32, #tpu.memory_space<vmem>>, %arg8: memref<8x1xf32, #tpu.memory_space<vmem>>, %arg9: memref<8x1xf32, #tpu.memory_space<vmem>>, %arg10: memref<1x8x1x4x64xf32, #tpu.memory_space<vmem>>, %arg11: memref<256x108xf32, #tpu.memory_space<vmem>>, %arg12: memref<8x1xf32, #tpu.memory_space<vmem>>, %arg13: memref<8x1xf32, #tpu.memory_space<vmem>>) attributes {dimension_semantics = [#tpu.dimension_semantics<arbitrary>, #tpu.dimension_semantics<arbitrary>, #tpu.dimension_semantics<arbitrary>], iteration_bounds = array<i64: 2, 2, 2>, scalar_prefetch = 0 : i64, scratch_operands = 3 : i64, tpu.core_type = #tpu.core_type<tc>, window_params = [{transform_indices = @transform_0, window_bounds = array<i64: 1, 4, 10, 10, 4>}, {transform_indices = @transform_1, window_bounds = array<i64: 1, 1, 10, 10, 4>}, {transform_indices = @transform_2, window_bounds = array<i64: 1, 1, 10, 10, 4>}, {pipeline_mode = #tpu.pipeline_mode<synchronous>, transform_indices = @transform_3, window_bounds = array<i64: 8, 108>}, {pipeline_mode = #tpu.pipeline_mode<synchronous>, transform_indices = @transform_4, window_bounds = array<i64: 8, 1>}, {pipeline_mode = #tpu.pipeline_mode<synchronous>, transform_indices = @transform_5, window_bounds = array<i64: 8, 1>}, {pipeline_mode = #tpu.pipeline_mode<synchronous>, transform_indices = @transform_6, window_bounds = array<i64: 8, 1>}, {transform_indices = @transform_7, window_bounds = array<i64: 1, 8, 1, 4, 64>}]} {
    %c0 = arith.constant 0 : index
    %c0_0 = arith.constant 0 : index
    %c0_1 = arith.constant 0 : index
    %c0_2 = arith.constant 0 : index
    %c0_3 = arith.constant 0 : index
    %0 = vector.load %arg4[%c0, %c0_0, %c0_1, %c0_2, %c0_3] : memref<1x1x10x10x4xf32, #tpu.memory_space<vmem>>, vector<1x1x10x10x4xf32>
    %1 = vector.shape_cast %0 : vector<1x1x10x10x4xf32> to vector<10x10x4xf32>
    %c0_i32 = arith.constant 0 : i32
    %2 = arith.cmpi sgt, %arg2, %c0_i32 : i32
    %3 = arith.extui %2 : i1 to i32
    %4 = arith.sitofp %3 : i32 to f32
    %5 = vector.broadcast %4 : f32 to vector<10x10x4xf32>
    %6 = arith.mulf %1, %5 : vector<10x10x4xf32>
    %c0_4 = arith.constant 0 : index
    %c0_5 = arith.constant 0 : index
    %c0_6 = arith.constant 0 : index
    %c0_7 = arith.constant 0 : index
    %c0_8 = arith.constant 0 : index
    %7 = vector.load %arg5[%c0_4, %c0_5, %c0_6, %c0_7, %c0_8] : memref<1x1x10x10x4xf32, #tpu.memory_space<vmem>>, vector<1x1x10x10x4xf32>
    %8 = vector.shape_cast %7 : vector<1x1x10x10x4xf32> to vector<10x10x4xf32>
    %c1_i32 = arith.constant 1 : i32
    %9 = arith.cmpi slt, %arg2, %c1_i32 : i32
    %10 = arith.extui %9 : i1 to i32
    %11 = arith.sitofp %10 : i32 to f32
    %12 = vector.broadcast %11 : f32 to vector<10x10x4xf32>
    %13 = arith.mulf %8, %12 : vector<10x10x4xf32>
    %14 = vector.extract_strided_slice %6 {offsets = [0, 0, 0], sizes = [8, 8, 4], strides = [1, 1, 1]} : vector<10x10x4xf32> to vector<8x8x4xf32>
    %15 = vector.shape_cast %14 : vector<8x8x4xf32> to vector<64x4xf32>
    %c0_9 = arith.constant 0 : index
    %c0_10 = arith.constant 0 : index
    %16 = vector.load %arg11[%c0_9, %c0_10] : memref<256x108xf32, #tpu.memory_space<vmem>>, vector<64x4xf32>
    tpu.vector_store %arg11[%c0_9, %c0_10], %15 {strides = array<i32>} : memref<256x108xf32, #tpu.memory_space<vmem>>, vector<64x4xf32>,
    %c0_11 = arith.constant 0 : index
    %c0_12 = arith.constant 0 : index
    %c0_13 = arith.constant 0 : index
    %c0_14 = arith.constant 0 : index
    %c0_15 = arith.constant 0 : index
    %17 = vector.load %arg3[%c0_11, %c0_12, %c0_13, %c0_14, %c0_15] : memref<1x4x10x10x4xf32, #tpu.memory_space<vmem>>, vector<1x3x8x8x4xf32>
    %18 = vector.shape_cast %17 : vector<1x3x8x8x4xf32> to vector<3x8x8x4xf32>
    %19 = vector.shape_cast %18 : vector<3x8x8x4xf32> to vector<192x4xf32>
    %c64 = arith.constant 64 : index
    %c0_16 = arith.constant 0 : index
    %20 = vector.load %arg11[%c64, %c0_16] : memref<256x108xf32, #tpu.memory_space<vmem>>, vector<192x4xf32>
    tpu.vector_store %arg11[%c64, %c0_16], %19 {strides = array<i32>} : memref<256x108xf32, #tpu.memory_space<vmem>>, vector<192x4xf32>,
    %21 = vector.extract_strided_slice %6 {offsets = [0, 1, 0], sizes = [8, 8, 4], strides = [1, 1, 1]} : vector<10x10x4xf32> to vector<8x8x4xf32>
    %22 = vector.shape_cast %21 : vector<8x8x4xf32> to vector<64x4xf32>
    %c0_17 = arith.constant 0 : index
    %c4 = arith.constant 4 : index
    %23 = vector.load %arg11[%c0_17, %c4] : memref<256x108xf32, #tpu.memory_space<vmem>>, vector<64x4xf32>
    tpu.vector_store %arg11[%c0_17, %c4], %22 {strides = array<i32>} : memref<256x108xf32, #tpu.memory_space<vmem>>, vector<64x4xf32>,
    %c0_18 = arith.constant 0 : index
    %c0_19 = arith.constant 0 : index
    %c0_20 = arith.constant 0 : index
    %c1 = arith.constant 1 : index
    %c0_21 = arith.constant 0 : index
    %24 = vector.load %arg3[%c0_18, %c0_19, %c0_20, %c1, %c0_21] : memref<1x4x10x10x4xf32, #tpu.memory_space<vmem>>, vector<1x3x8x8x4xf32>
    %25 = vector.shape_cast %24 : vector<1x3x8x8x4xf32> to vector<3x8x8x4xf32>
    %26 = vector.shape_cast %25 : vector<3x8x8x4xf32> to vector<192x4xf32>
    %c64_22 = arith.constant 64 : index
    %c4_23 = arith.constant 4 : index
    %27 = vector.load %arg11[%c64_22, %c4_23] : memref<256x108xf32, #tpu.memory_space<vmem>>, vector<192x4xf32>
    tpu.vector_store %arg11[%c64_22, %c4_23], %26 {strides = array<i32>} : memref<256x108xf32, #tpu.memory_space<vmem>>, vector<192x4xf32>,
    %28 = vector.extract_strided_slice %6 {offsets = [0, 2, 0], sizes = [8, 8, 4], strides = [1, 1, 1]} : vector<10x10x4xf32> to vector<8x8x4xf32>
    %29 = vector.shape_cast %28 : vector<8x8x4xf32> to vector<64x4xf32>
    %c0_24 = arith.constant 0 : index
    %c8 = arith.constant 8 : index
    %30 = vector.load %arg11[%c0_24, %c8] : memref<256x108xf32, #tpu.memory_space<vmem>>, vector<64x4xf32>
    tpu.vector_store %arg11[%c0_24, %c8], %29 {strides = array<i32>} : memref<256x108xf32, #tpu.memory_space<vmem>>, vector<64x4xf32>,
    %c0_25 = arith.constant 0 : index
    %c0_26 = arith.constant 0 : index
    %c0_27 = arith.constant 0 : index
    %c2 = arith.constant 2 : index
    %c0_28 = arith.constant 0 : index
    %31 = vector.load %arg3[%c0_25, %c0_26, %c0_27, %c2, %c0_28] : memref<1x4x10x10x4xf32, #tpu.memory_space<vmem>>, vector<1x3x8x8x4xf32>
    %32 = vector.shape_cast %31 : vector<1x3x8x8x4xf32> to vector<3x8x8x4xf32>
    %33 = vector.shape_cast %32 : vector<3x8x8x4xf32> to vector<192x4xf32>
    %c64_29 = arith.constant 64 : index
    %c8_30 = arith.constant 8 : index
    %34 = vector.load %arg11[%c64_29, %c8_30] : memref<256x108xf32, #tpu.memory_space<vmem>>, vector<192x4xf32>
    tpu.vector_store %arg11[%c64_29, %c8_30], %33 {strides = array<i32>} : memref<256x108xf32, #tpu.memory_space<vmem>>, vector<192x4xf32>,
    %35 = vector.extract_strided_slice %6 {offsets = [1, 0, 0], sizes = [8, 8, 4], strides = [1, 1, 1]} : vector<10x10x4xf32> to vector<8x8x4xf32>
    %36 = vector.shape_cast %35 : vector<8x8x4xf32> to vector<64x4xf32>
    %c0_31 = arith.constant 0 : index
    %c12 = arith.constant 12 : index
    %37 = vector.load %arg11[%c0_31, %c12] : memref<256x108xf32, #tpu.memory_space<vmem>>, vector<64x4xf32>
    tpu.vector_store %arg11[%c0_31, %c12], %36 {strides = array<i32>} : memref<256x108xf32, #tpu.memory_space<vmem>>, vector<64x4xf32>,
    %c0_32 = arith.constant 0 : index
    %c0_33 = arith.constant 0 : index
    %c1_34 = arith.constant 1 : index
    %c0_35 = arith.constant 0 : index
    %c0_36 = arith.constant 0 : index
    %38 = vector.load %arg3[%c0_32, %c0_33, %c1_34, %c0_35, %c0_36] : memref<1x4x10x10x4xf32, #tpu.memory_space<vmem>>, vector<1x3x8x8x4xf32>
    %39 = vector.shape_cast %38 : vector<1x3x8x8x4xf32> to vector<3x8x8x4xf32>
    %40 = vector.shape_cast %39 : vector<3x8x8x4xf32> to vector<192x4xf32>
    %c64_37 = arith.constant 64 : index
    %c12_38 = arith.constant 12 : index
    %41 = vector.load %arg11[%c64_37, %c12_38] : memref<256x108xf32, #tpu.memory_space<vmem>>, vector<192x4xf32>
    tpu.vector_store %arg11[%c64_37, %c12_38], %40 {strides = array<i32>} : memref<256x108xf32, #tpu.memory_space<vmem>>, vector<192x4xf32>,
    %42 = vector.extract_strided_slice %6 {offsets = [1, 1, 0], sizes = [8, 8, 4], strides = [1, 1, 1]} : vector<10x10x4xf32> to vector<8x8x4xf32>
    %43 = vector.shape_cast %42 : vector<8x8x4xf32> to vector<64x4xf32>
    %c0_39 = arith.constant 0 : index
    %c16 = arith.constant 16 : index
    %44 = vector.load %arg11[%c0_39, %c16] : memref<256x108xf32, #tpu.memory_space<vmem>>, vector<64x4xf32>
    tpu.vector_store %arg11[%c0_39, %c16], %43 {strides = array<i32>} : memref<256x108xf32, #tpu.memory_space<vmem>>, vector<64x4xf32>,
    %c0_40 = arith.constant 0 : index
    %c0_41 = arith.constant 0 : index
    %c1_42 = arith.constant 1 : index
    %c1_43 = arith.constant 1 : index
    %c0_44 = arith.constant 0 : index
    %45 = vector.load %arg3[%c0_40, %c0_41, %c1_42, %c1_43, %c0_44] : memref<1x4x10x10x4xf32, #tpu.memory_space<vmem>>, vector<1x3x8x8x4xf32>
    %46 = vector.shape_cast %45 : vector<1x3x8x8x4xf32> to vector<3x8x8x4xf32>
    %47 = vector.shape_cast %46 : vector<3x8x8x4xf32> to vector<192x4xf32>
    %c64_45 = arith.constant 64 : index
    %c16_46 = arith.constant 16 : index
    %48 = vector.load %arg11[%c64_45, %c16_46] : memref<256x108xf32, #tpu.memory_space<vmem>>, vector<192x4xf32>
    tpu.vector_store %arg11[%c64_45, %c16_46], %47 {strides = array<i32>} : memref<256x108xf32, #tpu.memory_space<vmem>>, vector<192x4xf32>,
    %49 = vector.extract_strided_slice %6 {offsets = [1, 2, 0], sizes = [8, 8, 4], strides = [1, 1, 1]} : vector<10x10x4xf32> to vector<8x8x4xf32>
    %50 = vector.shape_cast %49 : vector<8x8x4xf32> to vector<64x4xf32>
    %c0_47 = arith.constant 0 : index
    %c20 = arith.constant 20 : index
    %51 = vector.load %arg11[%c0_47, %c20] : memref<256x108xf32, #tpu.memory_space<vmem>>, vector<64x4xf32>
    tpu.vector_store %arg11[%c0_47, %c20], %50 {strides = array<i32>} : memref<256x108xf32, #tpu.memory_space<vmem>>, vector<64x4xf32>,
    %c0_48 = arith.constant 0 : index
    %c0_49 = arith.constant 0 : index
    %c1_50 = arith.constant 1 : index
    %c2_51 = arith.constant 2 : index
    %c0_52 = arith.constant 0 : index
    %52 = vector.load %arg3[%c0_48, %c0_49, %c1_50, %c2_51, %c0_52] : memref<1x4x10x10x4xf32, #tpu.memory_space<vmem>>, vector<1x3x8x8x4xf32>
    %53 = vector.shape_cast %52 : vector<1x3x8x8x4xf32> to vector<3x8x8x4xf32>
    %54 = vector.shape_cast %53 : vector<3x8x8x4xf32> to vector<192x4xf32>
    %c64_53 = arith.constant 64 : index
    %c20_54 = arith.constant 20 : index
    %55 = vector.load %arg11[%c64_53, %c20_54] : memref<256x108xf32, #tpu.memory_space<vmem>>, vector<192x4xf32>
    tpu.vector_store %arg11[%c64_53, %c20_54], %54 {strides = array<i32>} : memref<256x108xf32, #tpu.memory_space<vmem>>, vector<192x4xf32>,
    %56 = vector.extract_strided_slice %6 {offsets = [2, 0, 0], sizes = [8, 8, 4], strides = [1, 1, 1]} : vector<10x10x4xf32> to vector<8x8x4xf32>
    %57 = vector.shape_cast %56 : vector<8x8x4xf32> to vector<64x4xf32>
    %c0_55 = arith.constant 0 : index
    %c24 = arith.constant 24 : index
    %58 = vector.load %arg11[%c0_55, %c24] : memref<256x108xf32, #tpu.memory_space<vmem>>, vector<64x4xf32>
    tpu.vector_store %arg11[%c0_55, %c24], %57 {strides = array<i32>} : memref<256x108xf32, #tpu.memory_space<vmem>>, vector<64x4xf32>,
    %c0_56 = arith.constant 0 : index
    %c0_57 = arith.constant 0 : index
    %c2_58 = arith.constant 2 : index
    %c0_59 = arith.constant 0 : index
    %c0_60 = arith.constant 0 : index
    %59 = vector.load %arg3[%c0_56, %c0_57, %c2_58, %c0_59, %c0_60] : memref<1x4x10x10x4xf32, #tpu.memory_space<vmem>>, vector<1x3x8x8x4xf32>
    %60 = vector.shape_cast %59 : vector<1x3x8x8x4xf32> to vector<3x8x8x4xf32>
    %61 = vector.shape_cast %60 : vector<3x8x8x4xf32> to vector<192x4xf32>
    %c64_61 = arith.constant 64 : index
    %c24_62 = arith.constant 24 : index
    %62 = vector.load %arg11[%c64_61, %c24_62] : memref<256x108xf32, #tpu.memory_space<vmem>>, vector<192x4xf32>
    tpu.vector_store %arg11[%c64_61, %c24_62], %61 {strides = array<i32>} : memref<256x108xf32, #tpu.memory_space<vmem>>, vector<192x4xf32>,
    %63 = vector.extract_strided_slice %6 {offsets = [2, 1, 0], sizes = [8, 8, 4], strides = [1, 1, 1]} : vector<10x10x4xf32> to vector<8x8x4xf32>
    %64 = vector.shape_cast %63 : vector<8x8x4xf32> to vector<64x4xf32>
    %c0_63 = arith.constant 0 : index
    %c28 = arith.constant 28 : index
    %65 = vector.load %arg11[%c0_63, %c28] : memref<256x108xf32, #tpu.memory_space<vmem>>, vector<64x4xf32>
    tpu.vector_store %arg11[%c0_63, %c28], %64 {strides = array<i32>} : memref<256x108xf32, #tpu.memory_space<vmem>>, vector<64x4xf32>,
    %c0_64 = arith.constant 0 : index
    %c0_65 = arith.constant 0 : index
    %c2_66 = arith.constant 2 : index
    %c1_67 = arith.constant 1 : index
    %c0_68 = arith.constant 0 : index
    %66 = vector.load %arg3[%c0_64, %c0_65, %c2_66, %c1_67, %c0_68] : memref<1x4x10x10x4xf32, #tpu.memory_space<vmem>>, vector<1x3x8x8x4xf32>
    %67 = vector.shape_cast %66 : vector<1x3x8x8x4xf32> to vector<3x8x8x4xf32>
    %68 = vector.shape_cast %67 : vector<3x8x8x4xf32> to vector<192x4xf32>
    %c64_69 = arith.constant 64 : index
    %c28_70 = arith.constant 28 : index
    %69 = vector.load %arg11[%c64_69, %c28_70] : memref<256x108xf32, #tpu.memory_space<vmem>>, vector<192x4xf32>
    tpu.vector_store %arg11[%c64_69, %c28_70], %68 {strides = array<i32>} : memref<256x108xf32, #tpu.memory_space<vmem>>, vector<192x4xf32>,
    %70 = vector.extract_strided_slice %6 {offsets = [2, 2, 0], sizes = [8, 8, 4], strides = [1, 1, 1]} : vector<10x10x4xf32> to vector<8x8x4xf32>
    %71 = vector.shape_cast %70 : vector<8x8x4xf32> to vector<64x4xf32>
    %c0_71 = arith.constant 0 : index
    %c32 = arith.constant 32 : index
    %72 = vector.load %arg11[%c0_71, %c32] : memref<256x108xf32, #tpu.memory_space<vmem>>, vector<64x4xf32>
    tpu.vector_store %arg11[%c0_71, %c32], %71 {strides = array<i32>} : memref<256x108xf32, #tpu.memory_space<vmem>>, vector<64x4xf32>,
    %c0_72 = arith.constant 0 : index
    %c0_73 = arith.constant 0 : index
    %c2_74 = arith.constant 2 : index
    %c2_75 = arith.constant 2 : index
    %c0_76 = arith.constant 0 : index
    %73 = vector.load %arg3[%c0_72, %c0_73, %c2_74, %c2_75, %c0_76] : memref<1x4x10x10x4xf32, #tpu.memory_space<vmem>>, vector<1x3x8x8x4xf32>
    %74 = vector.shape_cast %73 : vector<1x3x8x8x4xf32> to vector<3x8x8x4xf32>
    %75 = vector.shape_cast %74 : vector<3x8x8x4xf32> to vector<192x4xf32>
    %c64_77 = arith.constant 64 : index
    %c32_78 = arith.constant 32 : index
    %76 = vector.load %arg11[%c64_77, %c32_78] : memref<256x108xf32, #tpu.memory_space<vmem>>, vector<192x4xf32>
    tpu.vector_store %arg11[%c64_77, %c32_78], %75 {strides = array<i32>} : memref<256x108xf32, #tpu.memory_space<vmem>>, vector<192x4xf32>,
    %c0_79 = arith.constant 0 : index
    %c0_80 = arith.constant 0 : index
    %c0_81 = arith.constant 0 : index
    %c0_82 = arith.constant 0 : index
    %c0_83 = arith.constant 0 : index
    %77 = vector.load %arg3[%c0_79, %c0_80, %c0_81, %c0_82, %c0_83] : memref<1x4x10x10x4xf32, #tpu.memory_space<vmem>>, vector<1x4x8x8x4xf32>
    %78 = vector.shape_cast %77 : vector<1x4x8x8x4xf32> to vector<4x8x8x4xf32>
    %79 = vector.shape_cast %78 : vector<4x8x8x4xf32> to vector<256x4xf32>
    %c0_84 = arith.constant 0 : index
    %c36 = arith.constant 36 : index
    %80 = vector.load %arg11[%c0_84, %c36] : memref<256x108xf32, #tpu.memory_space<vmem>>, vector<256x4xf32>
    tpu.vector_store %arg11[%c0_84, %c36], %79 {strides = array<i32>} : memref<256x108xf32, #tpu.memory_space<vmem>>, vector<256x4xf32>,
    %c0_85 = arith.constant 0 : index
    %c0_86 = arith.constant 0 : index
    %c0_87 = arith.constant 0 : index
    %c1_88 = arith.constant 1 : index
    %c0_89 = arith.constant 0 : index
    %81 = vector.load %arg3[%c0_85, %c0_86, %c0_87, %c1_88, %c0_89] : memref<1x4x10x10x4xf32, #tpu.memory_space<vmem>>, vector<1x4x8x8x4xf32>
    %82 = vector.shape_cast %81 : vector<1x4x8x8x4xf32> to vector<4x8x8x4xf32>
    %83 = vector.shape_cast %82 : vector<4x8x8x4xf32> to vector<256x4xf32>
    %c0_90 = arith.constant 0 : index
    %c40 = arith.constant 40 : index
    %84 = vector.load %arg11[%c0_90, %c40] : memref<256x108xf32, #tpu.memory_space<vmem>>, vector<256x4xf32>
    tpu.vector_store %arg11[%c0_90, %c40], %83 {strides = array<i32>} : memref<256x108xf32, #tpu.memory_space<vmem>>, vector<256x4xf32>,
    %c0_91 = arith.constant 0 : index
    %c0_92 = arith.constant 0 : index
    %c0_93 = arith.constant 0 : index
    %c2_94 = arith.constant 2 : index
    %c0_95 = arith.constant 0 : index
    %85 = vector.load %arg3[%c0_91, %c0_92, %c0_93, %c2_94, %c0_95] : memref<1x4x10x10x4xf32, #tpu.memory_space<vmem>>, vector<1x4x8x8x4xf32>
    %86 = vector.shape_cast %85 : vector<1x4x8x8x4xf32> to vector<4x8x8x4xf32>
    %87 = vector.shape_cast %86 : vector<4x8x8x4xf32> to vector<256x4xf32>
    %c0_96 = arith.constant 0 : index
    %c44 = arith.constant 44 : index
    %88 = vector.load %arg11[%c0_96, %c44] : memref<256x108xf32, #tpu.memory_space<vmem>>, vector<256x4xf32>
    tpu.vector_store %arg11[%c0_96, %c44], %87 {strides = array<i32>} : memref<256x108xf32, #tpu.memory_space<vmem>>, vector<256x4xf32>,
    %c0_97 = arith.constant 0 : index
    %c0_98 = arith.constant 0 : index
    %c1_99 = arith.constant 1 : index
    %c0_100 = arith.constant 0 : index
    %c0_101 = arith.constant 0 : index
    %89 = vector.load %arg3[%c0_97, %c0_98, %c1_99, %c0_100, %c0_101] : memref<1x4x10x10x4xf32, #tpu.memory_space<vmem>>, vector<1x4x8x8x4xf32>
    %90 = vector.shape_cast %89 : vector<1x4x8x8x4xf32> to vector<4x8x8x4xf32>
    %91 = vector.shape_cast %90 : vector<4x8x8x4xf32> to vector<256x4xf32>
    %c0_102 = arith.constant 0 : index
    %c48 = arith.constant 48 : index
    %92 = vector.load %arg11[%c0_102, %c48] : memref<256x108xf32, #tpu.memory_space<vmem>>, vector<256x4xf32>
    tpu.vector_store %arg11[%c0_102, %c48], %91 {strides = array<i32>} : memref<256x108xf32, #tpu.memory_space<vmem>>, vector<256x4xf32>,
    %c0_103 = arith.constant 0 : index
    %c0_104 = arith.constant 0 : index
    %c1_105 = arith.constant 1 : index
    %c1_106 = arith.constant 1 : index
    %c0_107 = arith.constant 0 : index
    %93 = vector.load %arg3[%c0_103, %c0_104, %c1_105, %c1_106, %c0_107] : memref<1x4x10x10x4xf32, #tpu.memory_space<vmem>>, vector<1x4x8x8x4xf32>
    %94 = vector.shape_cast %93 : vector<1x4x8x8x4xf32> to vector<4x8x8x4xf32>
    %95 = vector.shape_cast %94 : vector<4x8x8x4xf32> to vector<256x4xf32>
    %c0_108 = arith.constant 0 : index
    %c52 = arith.constant 52 : index
    %96 = vector.load %arg11[%c0_108, %c52] : memref<256x108xf32, #tpu.memory_space<vmem>>, vector<256x4xf32>
    tpu.vector_store %arg11[%c0_108, %c52], %95 {strides = array<i32>} : memref<256x108xf32, #tpu.memory_space<vmem>>, vector<256x4xf32>,
    %c0_109 = arith.constant 0 : index
    %c0_110 = arith.constant 0 : index
    %c1_111 = arith.constant 1 : index
    %c2_112 = arith.constant 2 : index
    %c0_113 = arith.constant 0 : index
    %97 = vector.load %arg3[%c0_109, %c0_110, %c1_111, %c2_112, %c0_113] : memref<1x4x10x10x4xf32, #tpu.memory_space<vmem>>, vector<1x4x8x8x4xf32>
    %98 = vector.shape_cast %97 : vector<1x4x8x8x4xf32> to vector<4x8x8x4xf32>
    %99 = vector.shape_cast %98 : vector<4x8x8x4xf32> to vector<256x4xf32>
    %c0_114 = arith.constant 0 : index
    %c56 = arith.constant 56 : index
    %100 = vector.load %arg11[%c0_114, %c56] : memref<256x108xf32, #tpu.memory_space<vmem>>, vector<256x4xf32>
    tpu.vector_store %arg11[%c0_114, %c56], %99 {strides = array<i32>} : memref<256x108xf32, #tpu.memory_space<vmem>>, vector<256x4xf32>,
    %c0_115 = arith.constant 0 : index
    %c0_116 = arith.constant 0 : index
    %c2_117 = arith.constant 2 : index
    %c0_118 = arith.constant 0 : index
    %c0_119 = arith.constant 0 : index
    %101 = vector.load %arg3[%c0_115, %c0_116, %c2_117, %c0_118, %c0_119] : memref<1x4x10x10x4xf32, #tpu.memory_space<vmem>>, vector<1x4x8x8x4xf32>
    %102 = vector.shape_cast %101 : vector<1x4x8x8x4xf32> to vector<4x8x8x4xf32>
    %103 = vector.shape_cast %102 : vector<4x8x8x4xf32> to vector<256x4xf32>
    %c0_120 = arith.constant 0 : index
    %c60 = arith.constant 60 : index
    %104 = vector.load %arg11[%c0_120, %c60] : memref<256x108xf32, #tpu.memory_space<vmem>>, vector<256x4xf32>
    tpu.vector_store %arg11[%c0_120, %c60], %103 {strides = array<i32>} : memref<256x108xf32, #tpu.memory_space<vmem>>, vector<256x4xf32>,
    %c0_121 = arith.constant 0 : index
    %c0_122 = arith.constant 0 : index
    %c2_123 = arith.constant 2 : index
    %c1_124 = arith.constant 1 : index
    %c0_125 = arith.constant 0 : index
    %105 = vector.load %arg3[%c0_121, %c0_122, %c2_123, %c1_124, %c0_125] : memref<1x4x10x10x4xf32, #tpu.memory_space<vmem>>, vector<1x4x8x8x4xf32>
    %106 = vector.shape_cast %105 : vector<1x4x8x8x4xf32> to vector<4x8x8x4xf32>
    %107 = vector.shape_cast %106 : vector<4x8x8x4xf32> to vector<256x4xf32>
    %c0_126 = arith.constant 0 : index
    %c64_127 = arith.constant 64 : index
    %108 = vector.load %arg11[%c0_126, %c64_127] : memref<256x108xf32, #tpu.memory_space<vmem>>, vector<256x4xf32>
    tpu.vector_store %arg11[%c0_126, %c64_127], %107 {strides = array<i32>} : memref<256x108xf32, #tpu.memory_space<vmem>>, vector<256x4xf32>,
    %c0_128 = arith.constant 0 : index
    %c0_129 = arith.constant 0 : index
    %c2_130 = arith.constant 2 : index
    %c2_131 = arith.constant 2 : index
    %c0_132 = arith.constant 0 : index
    %109 = vector.load %arg3[%c0_128, %c0_129, %c2_130, %c2_131, %c0_132] : memref<1x4x10x10x4xf32, #tpu.memory_space<vmem>>, vector<1x4x8x8x4xf32>
    %110 = vector.shape_cast %109 : vector<1x4x8x8x4xf32> to vector<4x8x8x4xf32>
    %111 = vector.shape_cast %110 : vector<4x8x8x4xf32> to vector<256x4xf32>
    %c0_133 = arith.constant 0 : index
    %c68 = arith.constant 68 : index
    %112 = vector.load %arg11[%c0_133, %c68] : memref<256x108xf32, #tpu.memory_space<vmem>>, vector<256x4xf32>
    tpu.vector_store %arg11[%c0_133, %c68], %111 {strides = array<i32>} : memref<256x108xf32, #tpu.memory_space<vmem>>, vector<256x4xf32>,
    %c0_134 = arith.constant 0 : index
    %c1_135 = arith.constant 1 : index
    %c0_136 = arith.constant 0 : index
    %c0_137 = arith.constant 0 : index
    %c0_138 = arith.constant 0 : index
    %113 = vector.load %arg3[%c0_134, %c1_135, %c0_136, %c0_137, %c0_138] : memref<1x4x10x10x4xf32, #tpu.memory_space<vmem>>, vector<1x3x8x8x4xf32>
    %114 = vector.shape_cast %113 : vector<1x3x8x8x4xf32> to vector<3x8x8x4xf32>
    %115 = vector.shape_cast %114 : vector<3x8x8x4xf32> to vector<192x4xf32>
    %c0_139 = arith.constant 0 : index
    %c72 = arith.constant 72 : index
    %116 = vector.load %arg11[%c0_139, %c72] : memref<256x108xf32, #tpu.memory_space<vmem>>, vector<192x4xf32>
    tpu.vector_store %arg11[%c0_139, %c72], %115 {strides = array<i32>} : memref<256x108xf32, #tpu.memory_space<vmem>>, vector<192x4xf32>,
    %117 = vector.extract_strided_slice %13 {offsets = [0, 0, 0], sizes = [8, 8, 4], strides = [1, 1, 1]} : vector<10x10x4xf32> to vector<8x8x4xf32>
    %118 = vector.shape_cast %117 : vector<8x8x4xf32> to vector<64x4xf32>
    %c192 = arith.constant 192 : index
    %c72_140 = arith.constant 72 : index
    %119 = vector.load %arg11[%c192, %c72_140] : memref<256x108xf32, #tpu.memory_space<vmem>>, vector<64x4xf32>
    tpu.vector_store %arg11[%c192, %c72_140], %118 {strides = array<i32>} : memref<256x108xf32, #tpu.memory_space<vmem>>, vector<64x4xf32>,
    %c0_141 = arith.constant 0 : index
    %c1_142 = arith.constant 1 : index
    %c0_143 = arith.constant 0 : index
    %c1_144 = arith.constant 1 : index
    %c0_145 = arith.constant 0 : index
    %120 = vector.load %arg3[%c0_141, %c1_142, %c0_143, %c1_144, %c0_145] : memref<1x4x10x10x4xf32, #tpu.memory_space<vmem>>, vector<1x3x8x8x4xf32>
    %121 = vector.shape_cast %120 : vector<1x3x8x8x4xf32> to vector<3x8x8x4xf32>
    %122 = vector.shape_cast %121 : vector<3x8x8x4xf32> to vector<192x4xf32>
    %c0_146 = arith.constant 0 : index
    %c76 = arith.constant 76 : index
    %123 = vector.load %arg11[%c0_146, %c76] : memref<256x108xf32, #tpu.memory_space<vmem>>, vector<192x4xf32>
    tpu.vector_store %arg11[%c0_146, %c76], %122 {strides = array<i32>} : memref<256x108xf32, #tpu.memory_space<vmem>>, vector<192x4xf32>,
    %124 = vector.extract_strided_slice %13 {offsets = [0, 1, 0], sizes = [8, 8, 4], strides = [1, 1, 1]} : vector<10x10x4xf32> to vector<8x8x4xf32>
    %125 = vector.shape_cast %124 : vector<8x8x4xf32> to vector<64x4xf32>
    %c192_147 = arith.constant 192 : index
    %c76_148 = arith.constant 76 : index
    %126 = vector.load %arg11[%c192_147, %c76_148] : memref<256x108xf32, #tpu.memory_space<vmem>>, vector<64x4xf32>
    tpu.vector_store %arg11[%c192_147, %c76_148], %125 {strides = array<i32>} : memref<256x108xf32, #tpu.memory_space<vmem>>, vector<64x4xf32>,
    %c0_149 = arith.constant 0 : index
    %c1_150 = arith.constant 1 : index
    %c0_151 = arith.constant 0 : index
    %c2_152 = arith.constant 2 : index
    %c0_153 = arith.constant 0 : index
    %127 = vector.load %arg3[%c0_149, %c1_150, %c0_151, %c2_152, %c0_153] : memref<1x4x10x10x4xf32, #tpu.memory_space<vmem>>, vector<1x3x8x8x4xf32>
    %128 = vector.shape_cast %127 : vector<1x3x8x8x4xf32> to vector<3x8x8x4xf32>
    %129 = vector.shape_cast %128 : vector<3x8x8x4xf32> to vector<192x4xf32>
    %c0_154 = arith.constant 0 : index
    %c80 = arith.constant 80 : index
    %130 = vector.load %arg11[%c0_154, %c80] : memref<256x108xf32, #tpu.memory_space<vmem>>, vector<192x4xf32>
    tpu.vector_store %arg11[%c0_154, %c80], %129 {strides = array<i32>} : memref<256x108xf32, #tpu.memory_space<vmem>>, vector<192x4xf32>,
    %131 = vector.extract_strided_slice %13 {offsets = [0, 2, 0], sizes = [8, 8, 4], strides = [1, 1, 1]} : vector<10x10x4xf32> to vector<8x8x4xf32>
    %132 = vector.shape_cast %131 : vector<8x8x4xf32> to vector<64x4xf32>
    %c192_155 = arith.constant 192 : index
    %c80_156 = arith.constant 80 : index
    %133 = vector.load %arg11[%c192_155, %c80_156] : memref<256x108xf32, #tpu.memory_space<vmem>>, vector<64x4xf32>
    tpu.vector_store %arg11[%c192_155, %c80_156], %132 {strides = array<i32>} : memref<256x108xf32, #tpu.memory_space<vmem>>, vector<64x4xf32>,
    %c0_157 = arith.constant 0 : index
    %c1_158 = arith.constant 1 : index
    %c1_159 = arith.constant 1 : index
    %c0_160 = arith.constant 0 : index
    %c0_161 = arith.constant 0 : index
    %134 = vector.load %arg3[%c0_157, %c1_158, %c1_159, %c0_160, %c0_161] : memref<1x4x10x10x4xf32, #tpu.memory_space<vmem>>, vector<1x3x8x8x4xf32>
    %135 = vector.shape_cast %134 : vector<1x3x8x8x4xf32> to vector<3x8x8x4xf32>
    %136 = vector.shape_cast %135 : vector<3x8x8x4xf32> to vector<192x4xf32>
    %c0_162 = arith.constant 0 : index
    %c84 = arith.constant 84 : index
    %137 = vector.load %arg11[%c0_162, %c84] : memref<256x108xf32, #tpu.memory_space<vmem>>, vector<192x4xf32>
    tpu.vector_store %arg11[%c0_162, %c84], %136 {strides = array<i32>} : memref<256x108xf32, #tpu.memory_space<vmem>>, vector<192x4xf32>,
    %138 = vector.extract_strided_slice %13 {offsets = [1, 0, 0], sizes = [8, 8, 4], strides = [1, 1, 1]} : vector<10x10x4xf32> to vector<8x8x4xf32>
    %139 = vector.shape_cast %138 : vector<8x8x4xf32> to vector<64x4xf32>
    %c192_163 = arith.constant 192 : index
    %c84_164 = arith.constant 84 : index
    %140 = vector.load %arg11[%c192_163, %c84_164] : memref<256x108xf32, #tpu.memory_space<vmem>>, vector<64x4xf32>
    tpu.vector_store %arg11[%c192_163, %c84_164], %139 {strides = array<i32>} : memref<256x108xf32, #tpu.memory_space<vmem>>, vector<64x4xf32>,
    %c0_165 = arith.constant 0 : index
    %c1_166 = arith.constant 1 : index
    %c1_167 = arith.constant 1 : index
    %c1_168 = arith.constant 1 : index
    %c0_169 = arith.constant 0 : index
    %141 = vector.load %arg3[%c0_165, %c1_166, %c1_167, %c1_168, %c0_169] : memref<1x4x10x10x4xf32, #tpu.memory_space<vmem>>, vector<1x3x8x8x4xf32>
    %142 = vector.shape_cast %141 : vector<1x3x8x8x4xf32> to vector<3x8x8x4xf32>
    %143 = vector.shape_cast %142 : vector<3x8x8x4xf32> to vector<192x4xf32>
    %c0_170 = arith.constant 0 : index
    %c88 = arith.constant 88 : index
    %144 = vector.load %arg11[%c0_170, %c88] : memref<256x108xf32, #tpu.memory_space<vmem>>, vector<192x4xf32>
    tpu.vector_store %arg11[%c0_170, %c88], %143 {strides = array<i32>} : memref<256x108xf32, #tpu.memory_space<vmem>>, vector<192x4xf32>,
    %145 = vector.extract_strided_slice %13 {offsets = [1, 1, 0], sizes = [8, 8, 4], strides = [1, 1, 1]} : vector<10x10x4xf32> to vector<8x8x4xf32>
    %146 = vector.shape_cast %145 : vector<8x8x4xf32> to vector<64x4xf32>
    %c192_171 = arith.constant 192 : index
    %c88_172 = arith.constant 88 : index
    %147 = vector.load %arg11[%c192_171, %c88_172] : memref<256x108xf32, #tpu.memory_space<vmem>>, vector<64x4xf32>
    tpu.vector_store %arg11[%c192_171, %c88_172], %146 {strides = array<i32>} : memref<256x108xf32, #tpu.memory_space<vmem>>, vector<64x4xf32>,
    %c0_173 = arith.constant 0 : index
    %c1_174 = arith.constant 1 : index
    %c1_175 = arith.constant 1 : index
    %c2_176 = arith.constant 2 : index
    %c0_177 = arith.constant 0 : index
    %148 = vector.load %arg3[%c0_173, %c1_174, %c1_175, %c2_176, %c0_177] : memref<1x4x10x10x4xf32, #tpu.memory_space<vmem>>, vector<1x3x8x8x4xf32>
    %149 = vector.shape_cast %148 : vector<1x3x8x8x4xf32> to vector<3x8x8x4xf32>
    %150 = vector.shape_cast %149 : vector<3x8x8x4xf32> to vector<192x4xf32>
    %c0_178 = arith.constant 0 : index
    %c92 = arith.constant 92 : index
    %151 = vector.load %arg11[%c0_178, %c92] : memref<256x108xf32, #tpu.memory_space<vmem>>, vector<192x4xf32>
    tpu.vector_store %arg11[%c0_178, %c92], %150 {strides = array<i32>} : memref<256x108xf32, #tpu.memory_space<vmem>>, vector<192x4xf32>,
    %152 = vector.extract_strided_slice %13 {offsets = [1, 2, 0], sizes = [8, 8, 4], strides = [1, 1, 1]} : vector<10x10x4xf32> to vector<8x8x4xf32>
    %153 = vector.shape_cast %152 : vector<8x8x4xf32> to vector<64x4xf32>
    %c192_179 = arith.constant 192 : index
    %c92_180 = arith.constant 92 : index
    %154 = vector.load %arg11[%c192_179, %c92_180] : memref<256x108xf32, #tpu.memory_space<vmem>>, vector<64x4xf32>
    tpu.vector_store %arg11[%c192_179, %c92_180], %153 {strides = array<i32>} : memref<256x108xf32, #tpu.memory_space<vmem>>, vector<64x4xf32>,
    %c0_181 = arith.constant 0 : index
    %c1_182 = arith.constant 1 : index
    %c2_183 = arith.constant 2 : index
    %c0_184 = arith.constant 0 : index
    %c0_185 = arith.constant 0 : index
    %155 = vector.load %arg3[%c0_181, %c1_182, %c2_183, %c0_184, %c0_185] : memref<1x4x10x10x4xf32, #tpu.memory_space<vmem>>, vector<1x3x8x8x4xf32>
    %156 = vector.shape_cast %155 : vector<1x3x8x8x4xf32> to vector<3x8x8x4xf32>
    %157 = vector.shape_cast %156 : vector<3x8x8x4xf32> to vector<192x4xf32>
    %c0_186 = arith.constant 0 : index
    %c96 = arith.constant 96 : index
    %158 = vector.load %arg11[%c0_186, %c96] : memref<256x108xf32, #tpu.memory_space<vmem>>, vector<192x4xf32>
    tpu.vector_store %arg11[%c0_186, %c96], %157 {strides = array<i32>} : memref<256x108xf32, #tpu.memory_space<vmem>>, vector<192x4xf32>,
    %159 = vector.extract_strided_slice %13 {offsets = [2, 0, 0], sizes = [8, 8, 4], strides = [1, 1, 1]} : vector<10x10x4xf32> to vector<8x8x4xf32>
    %160 = vector.shape_cast %159 : vector<8x8x4xf32> to vector<64x4xf32>
    %c192_187 = arith.constant 192 : index
    %c96_188 = arith.constant 96 : index
    %161 = vector.load %arg11[%c192_187, %c96_188] : memref<256x108xf32, #tpu.memory_space<vmem>>, vector<64x4xf32>
    tpu.vector_store %arg11[%c192_187, %c96_188], %160 {strides = array<i32>} : memref<256x108xf32, #tpu.memory_space<vmem>>, vector<64x4xf32>,
    %c0_189 = arith.constant 0 : index
    %c1_190 = arith.constant 1 : index
    %c2_191 = arith.constant 2 : index
    %c1_192 = arith.constant 1 : index
    %c0_193 = arith.constant 0 : index
    %162 = vector.load %arg3[%c0_189, %c1_190, %c2_191, %c1_192, %c0_193] : memref<1x4x10x10x4xf32, #tpu.memory_space<vmem>>, vector<1x3x8x8x4xf32>
    %163 = vector.shape_cast %162 : vector<1x3x8x8x4xf32> to vector<3x8x8x4xf32>
    %164 = vector.shape_cast %163 : vector<3x8x8x4xf32> to vector<192x4xf32>
    %c0_194 = arith.constant 0 : index
    %c100 = arith.constant 100 : index
    %165 = vector.load %arg11[%c0_194, %c100] : memref<256x108xf32, #tpu.memory_space<vmem>>, vector<192x4xf32>
    tpu.vector_store %arg11[%c0_194, %c100], %164 {strides = array<i32>} : memref<256x108xf32, #tpu.memory_space<vmem>>, vector<192x4xf32>,
    %166 = vector.extract_strided_slice %13 {offsets = [2, 1, 0], sizes = [8, 8, 4], strides = [1, 1, 1]} : vector<10x10x4xf32> to vector<8x8x4xf32>
    %167 = vector.shape_cast %166 : vector<8x8x4xf32> to vector<64x4xf32>
    %c192_195 = arith.constant 192 : index
    %c100_196 = arith.constant 100 : index
    %168 = vector.load %arg11[%c192_195, %c100_196] : memref<256x108xf32, #tpu.memory_space<vmem>>, vector<64x4xf32>
    tpu.vector_store %arg11[%c192_195, %c100_196], %167 {strides = array<i32>} : memref<256x108xf32, #tpu.memory_space<vmem>>, vector<64x4xf32>,
    %c0_197 = arith.constant 0 : index
    %c1_198 = arith.constant 1 : index
    %c2_199 = arith.constant 2 : index
    %c2_200 = arith.constant 2 : index
    %c0_201 = arith.constant 0 : index
    %169 = vector.load %arg3[%c0_197, %c1_198, %c2_199, %c2_200, %c0_201] : memref<1x4x10x10x4xf32, #tpu.memory_space<vmem>>, vector<1x3x8x8x4xf32>
    %170 = vector.shape_cast %169 : vector<1x3x8x8x4xf32> to vector<3x8x8x4xf32>
    %171 = vector.shape_cast %170 : vector<3x8x8x4xf32> to vector<192x4xf32>
    %c0_202 = arith.constant 0 : index
    %c104 = arith.constant 104 : index
    %172 = vector.load %arg11[%c0_202, %c104] : memref<256x108xf32, #tpu.memory_space<vmem>>, vector<192x4xf32>
    tpu.vector_store %arg11[%c0_202, %c104], %171 {strides = array<i32>} : memref<256x108xf32, #tpu.memory_space<vmem>>, vector<192x4xf32>,
    %173 = vector.extract_strided_slice %13 {offsets = [2, 2, 0], sizes = [8, 8, 4], strides = [1, 1, 1]} : vector<10x10x4xf32> to vector<8x8x4xf32>
    %174 = vector.shape_cast %173 : vector<8x8x4xf32> to vector<64x4xf32>
    %c192_203 = arith.constant 192 : index
    %c104_204 = arith.constant 104 : index
    %175 = vector.load %arg11[%c192_203, %c104_204] : memref<256x108xf32, #tpu.memory_space<vmem>>, vector<64x4xf32>
    tpu.vector_store %arg11[%c192_203, %c104_204], %174 {strides = array<i32>} : memref<256x108xf32, #tpu.memory_space<vmem>>, vector<64x4xf32>,
    %c0_205 = arith.constant 0 : index
    %c0_206 = arith.constant 0 : index
    %176 = vector.load %arg6[%c0_205, %c0_206] : memref<8x108xf32, #tpu.memory_space<vmem>>, vector<8x108xf32>
    %c0_207 = arith.constant 0 : index
    %c0_208 = arith.constant 0 : index
    %177 = vector.load %arg11[%c0_207, %c0_208] : memref<256x108xf32, #tpu.memory_space<vmem>>, vector<256x108xf32>
    %cst = arith.constant dense<0.000000e+00> : vector<8x256xf32>
    %178 = tpu.matmul %176, %177, %cst {dimension_numbers = #tpu.dot_dimension_numbers<[1], [1], [0], [0], [0, 0, 1, 0], [], []>} : vector<8x108xf32>, vector<256x108xf32>, vector<8x256xf32> -> vector<8x256xf32>
    %c0_i32_209 = arith.constant 0 : i32
    %179 = arith.cmpi eq, %arg0, %c0_i32_209 : i32
    %c0_i32_210 = arith.constant 0 : i32
    %180 = arith.cmpi eq, %arg1, %c0_i32_210 : i32
    %181 = arith.andi %179, %180 : i1
    %c0_i32_211 = arith.constant 0 : i32
    %182 = arith.cmpi eq, %arg2, %c0_i32_211 : i32
    %183 = arith.andi %181, %182 : i1
    %184 = arith.extui %183 : i1 to i32
    %c0_i32_212 = arith.constant 0 : i32
    %185 = arith.cmpi ne, %184, %c0_i32_212 : i32
    scf.if %185 {
      %cst_217 = arith.constant 0.000000e+00 : f32
      %192 = vector.broadcast %cst_217 : f32 to vector<8x1xf32>
      %c0_218 = arith.constant 0 : index
      %c0_219 = arith.constant 0 : index
      %193 = vector.load %arg12[%c0_218, %c0_219] : memref<8x1xf32, #tpu.memory_space<vmem>>, vector<8x1xf32>
      tpu.vector_store %arg12[%c0_218, %c0_219], %192 {strides = array<i32>} : memref<8x1xf32, #tpu.memory_space<vmem>>, vector<8x1xf32>,
      %cst_220 = arith.constant 0.000000e+00 : f32
      %194 = vector.broadcast %cst_220 : f32 to vector<8x1xf32>
      %c0_221 = arith.constant 0 : index
      %c0_222 = arith.constant 0 : index
      %195 = vector.load %arg13[%c0_221, %c0_222] : memref<8x1xf32, #tpu.memory_space<vmem>>, vector<8x1xf32>
      tpu.vector_store %arg13[%c0_221, %c0_222], %194 {strides = array<i32>} : memref<8x1xf32, #tpu.memory_space<vmem>>, vector<8x1xf32>,
    } else {
    }
    %c0_i32_213 = arith.constant 0 : i32
    %186 = arith.cmpi eq, %arg0, %c0_i32_213 : i32
    %187 = arith.extui %186 : i1 to i32
    %c0_i32_214 = arith.constant 0 : i32
    %188 = arith.cmpi ne, %187, %c0_i32_214 : i32
    scf.if %188 {
      %cst_217 = arith.constant dense<0.000000e+00> : vector<8xf32>
      %192 = vector.multi_reduction <add>, %178, %cst_217 [1] : vector<8x256xf32> to vector<8xf32>
      %193 = vector.shape_cast %192 : vector<8xf32> to vector<8x1xf32>
      %cst_218 = arith.constant 3.906250e-03 : f32
      %194 = vector.broadcast %cst_218 : f32 to vector<8x1xf32>
      %195 = arith.mulf %193, %194 : vector<8x1xf32>
      %196 = vector.broadcast %195 : vector<8x1xf32> to vector<8x256xf32>
      %197 = arith.subf %178, %196 : vector<8x256xf32>
      %198 = arith.mulf %197, %197 : vector<8x256xf32>
      %cst_219 = arith.constant dense<0.000000e+00> : vector<8xf32>
      %199 = vector.multi_reduction <add>, %198, %cst_219 [1] : vector<8x256xf32> to vector<8xf32>
      %200 = vector.shape_cast %199 : vector<8xf32> to vector<8x1xf32>
      %c2_i32 = arith.constant 2 : i32
      %201 = arith.muli %arg1, %c2_i32 : i32
      %202 = arith.addi %201, %arg2 : i32
      %203 = arith.sitofp %202 : i32 to f32
      %cst_220 = arith.constant 2.560000e+02 : f32
      %204 = arith.mulf %203, %cst_220 : f32
      %cst_221 = arith.constant 2.560000e+02 : f32
      %205 = arith.addf %204, %cst_221 : f32
      %c0_222 = arith.constant 0 : index
      %c0_223 = arith.constant 0 : index
      %206 = vector.load %arg12[%c0_222, %c0_223] : memref<8x1xf32, #tpu.memory_space<vmem>>, vector<8x1xf32>
      %207 = arith.subf %195, %206 : vector<8x1xf32>
      %c0_224 = arith.constant 0 : index
      %c0_225 = arith.constant 0 : index
      %208 = vector.load %arg12[%c0_224, %c0_225] : memref<8x1xf32, #tpu.memory_space<vmem>>, vector<8x1xf32>
      %cst_226 = arith.constant 2.560000e+02 : f32
      %209 = arith.divf %cst_226, %205 : f32
      %210 = vector.broadcast %209 : f32 to vector<8x1xf32>
      %211 = arith.mulf %207, %210 : vector<8x1xf32>
      %212 = arith.addf %208, %211 : vector<8x1xf32>
      %c0_227 = arith.constant 0 : index
      %c0_228 = arith.constant 0 : index
      %213 = vector.load %arg12[%c0_227, %c0_228] : memref<8x1xf32, #tpu.memory_space<vmem>>, vector<8x1xf32>
      tpu.vector_store %arg12[%c0_227, %c0_228], %212 {strides = array<i32>} : memref<8x1xf32, #tpu.memory_space<vmem>>, vector<8x1xf32>,
      %c0_229 = arith.constant 0 : index
      %c0_230 = arith.constant 0 : index
      %214 = vector.load %arg13[%c0_229, %c0_230] : memref<8x1xf32, #tpu.memory_space<vmem>>, vector<8x1xf32>
      %215 = arith.addf %214, %200 : vector<8x1xf32>
      %216 = arith.mulf %207, %207 : vector<8x1xf32>
      %cst_231 = arith.constant 2.560000e+02 : f32
      %217 = arith.mulf %204, %cst_231 : f32
      %218 = arith.divf %217, %205 : f32
      %219 = vector.broadcast %218 : f32 to vector<8x1xf32>
      %220 = arith.mulf %216, %219 : vector<8x1xf32>
      %221 = arith.addf %215, %220 : vector<8x1xf32>
      %c0_232 = arith.constant 0 : index
      %c0_233 = arith.constant 0 : index
      %222 = vector.load %arg13[%c0_232, %c0_233] : memref<8x1xf32, #tpu.memory_space<vmem>>, vector<8x1xf32>
      tpu.vector_store %arg13[%c0_232, %c0_233], %221 {strides = array<i32>} : memref<8x1xf32, #tpu.memory_space<vmem>>, vector<8x1xf32>,
    } else {
    }
    %c1_i32_215 = arith.constant 1 : i32
    %189 = arith.cmpi eq, %arg0, %c1_i32_215 : i32
    %190 = arith.extui %189 : i1 to i32
    %c0_i32_216 = arith.constant 0 : i32
    %191 = arith.cmpi ne, %190, %c0_i32_216 : i32
    scf.if %191 {
      %c0_217 = arith.constant 0 : index
      %c0_218 = arith.constant 0 : index
      %192 = vector.load %arg13[%c0_217, %c0_218] : memref<8x1xf32, #tpu.memory_space<vmem>>, vector<8x1xf32>
      %cst_219 = arith.constant 9.765625E-4 : f32
      %193 = vector.broadcast %cst_219 : f32 to vector<8x1xf32>
      %194 = arith.mulf %192, %193 : vector<8x1xf32>
      %c0_220 = arith.constant 0 : index
      %c0_221 = arith.constant 0 : index
      %195 = vector.load %arg7[%c0_220, %c0_221] : memref<8x1xf32, #tpu.memory_space<vmem>>, vector<8x1xf32>
      %cst_222 = arith.constant 9.99999974E-6 : f32
      %196 = vector.broadcast %cst_222 : f32 to vector<8x1xf32>
      %197 = arith.addf %194, %196 : vector<8x1xf32>
      %198 = math.rsqrt %197 : vector<8x1xf32>
      %199 = arith.mulf %195, %198 : vector<8x1xf32>
      %c0_223 = arith.constant 0 : index
      %c0_224 = arith.constant 0 : index
      %200 = vector.load %arg8[%c0_223, %c0_224] : memref<8x1xf32, #tpu.memory_space<vmem>>, vector<8x1xf32>
      %c0_225 = arith.constant 0 : index
      %c0_226 = arith.constant 0 : index
      %201 = vector.load %arg12[%c0_225, %c0_226] : memref<8x1xf32, #tpu.memory_space<vmem>>, vector<8x1xf32>
      %202 = arith.mulf %201, %199 : vector<8x1xf32>
      %203 = arith.subf %200, %202 : vector<8x1xf32>
      %204 = vector.broadcast %199 : vector<8x1xf32> to vector<8x256xf32>
      %205 = arith.mulf %178, %204 : vector<8x256xf32>
      %206 = vector.broadcast %203 : vector<8x1xf32> to vector<8x256xf32>
      %207 = arith.addf %205, %206 : vector<8x256xf32>
      %cst_227 = arith.constant 0.000000e+00 : f32
      %208 = vector.broadcast %cst_227 : f32 to vector<8x256xf32>
      %209 = arith.maximumf %207, %208 : vector<8x256xf32>
      %210 = vector.extract_strided_slice %209 {offsets = [0, 0], sizes = [8, 64], strides = [1, 1]} : vector<8x256xf32> to vector<8x64xf32>
      %c0_228 = arith.constant 0 : index
      %c0_229 = arith.constant 0 : index
      %c0_230 = arith.constant 0 : index
      %c0_231 = arith.constant 0 : index
      %c0_232 = arith.constant 0 : index
      %211 = vector.load %arg10[%c0_228, %c0_229, %c0_230, %c0_231, %c0_232] : memref<1x8x1x4x64xf32, #tpu.memory_space<vmem>>, vector<1x8x1x1x64xf32>
      %212 = vector.shape_cast %211 : vector<1x8x1x1x64xf32> to vector<8x64xf32>
      %213 = vector.shape_cast %210 : vector<8x64xf32> to vector<1x8x1x1x64xf32>
      tpu.vector_store %arg10[%c0_228, %c0_229, %c0_230, %c0_231, %c0_232], %213 {strides = array<i32>} : memref<1x8x1x4x64xf32, #tpu.memory_space<vmem>>, vector<1x8x1x1x64xf32>,
      %214 = vector.extract_strided_slice %209 {offsets = [0, 64], sizes = [8, 64], strides = [1, 1]} : vector<8x256xf32> to vector<8x64xf32>
      %c0_233 = arith.constant 0 : index
      %c0_234 = arith.constant 0 : index
      %c0_235 = arith.constant 0 : index
      %c1_236 = arith.constant 1 : index
      %c0_237 = arith.constant 0 : index
      %215 = vector.load %arg10[%c0_233, %c0_234, %c0_235, %c1_236, %c0_237] : memref<1x8x1x4x64xf32, #tpu.memory_space<vmem>>, vector<1x8x1x1x64xf32>
      %216 = vector.shape_cast %215 : vector<1x8x1x1x64xf32> to vector<8x64xf32>
      %217 = vector.shape_cast %214 : vector<8x64xf32> to vector<1x8x1x1x64xf32>
      tpu.vector_store %arg10[%c0_233, %c0_234, %c0_235, %c1_236, %c0_237], %217 {strides = array<i32>} : memref<1x8x1x4x64xf32, #tpu.memory_space<vmem>>, vector<1x8x1x1x64xf32>,
      %218 = vector.extract_strided_slice %209 {offsets = [0, 128], sizes = [8, 64], strides = [1, 1]} : vector<8x256xf32> to vector<8x64xf32>
      %c0_238 = arith.constant 0 : index
      %c0_239 = arith.constant 0 : index
      %c0_240 = arith.constant 0 : index
      %c2_241 = arith.constant 2 : index
      %c0_242 = arith.constant 0 : index
      %219 = vector.load %arg10[%c0_238, %c0_239, %c0_240, %c2_241, %c0_242] : memref<1x8x1x4x64xf32, #tpu.memory_space<vmem>>, vector<1x8x1x1x64xf32>
      %220 = vector.shape_cast %219 : vector<1x8x1x1x64xf32> to vector<8x64xf32>
      %221 = vector.shape_cast %218 : vector<8x64xf32> to vector<1x8x1x1x64xf32>
      tpu.vector_store %arg10[%c0_238, %c0_239, %c0_240, %c2_241, %c0_242], %221 {strides = array<i32>} : memref<1x8x1x4x64xf32, #tpu.memory_space<vmem>>, vector<1x8x1x1x64xf32>,
      %222 = vector.extract_strided_slice %209 {offsets = [0, 192], sizes = [8, 64], strides = [1, 1]} : vector<8x256xf32> to vector<8x64xf32>
      %c0_243 = arith.constant 0 : index
      %c0_244 = arith.constant 0 : index
      %c0_245 = arith.constant 0 : index
      %c3 = arith.constant 3 : index
      %c0_246 = arith.constant 0 : index
      %223 = vector.load %arg10[%c0_243, %c0_244, %c0_245, %c3, %c0_246] : memref<1x8x1x4x64xf32, #tpu.memory_space<vmem>>, vector<1x8x1x1x64xf32>
      %224 = vector.shape_cast %223 : vector<1x8x1x1x64xf32> to vector<8x64xf32>
      %225 = vector.shape_cast %222 : vector<8x64xf32> to vector<1x8x1x1x64xf32>
      tpu.vector_store %arg10[%c0_243, %c0_244, %c0_245, %c3, %c0_246], %225 {strides = array<i32>} : memref<1x8x1x4x64xf32, #tpu.memory_space<vmem>>, vector<1x8x1x1x64xf32>,
    } else {
    }
    return
  }
  func.func @transform_0(%arg0: i32, %arg1: i32, %arg2: i32) -> (i32, i32, i32, i32, i32) {
    %c0_i32 = arith.constant 0 : i32
    %c0_i32_0 = arith.constant 0 : i32
    %c0_i32_1 = arith.constant 0 : i32
    %c0_i32_2 = arith.constant 0 : i32
    return %arg1, %arg2, %c0_i32, %c0_i32_0, %c0_i32_1 : i32, i32, i32, i32, i32
  }
  func.func @transform_1(%arg0: i32, %arg1: i32, %arg2: i32) -> (i32, i32, i32, i32, i32) {
    %c4_i32 = arith.constant 4 : i32
    %0 = arith.muli %arg2, %c4_i32 : i32
    %c1_i32 = arith.constant 1 : i32
    %1 = arith.subi %0, %c1_i32 : i32
    %c0_i32 = arith.constant 0 : i32
    %2 = arith.maxsi %1, %c0_i32 : i32
    %c0_i32_0 = arith.constant 0 : i32
    %c0_i32_1 = arith.constant 0 : i32
    %c0_i32_2 = arith.constant 0 : i32
    %c0_i32_3 = arith.constant 0 : i32
    return %arg1, %2, %c0_i32_0, %c0_i32_1, %c0_i32_2 : i32, i32, i32, i32, i32
  }
  func.func @transform_2(%arg0: i32, %arg1: i32, %arg2: i32) -> (i32, i32, i32, i32, i32) {
    %c1_i32 = arith.constant 1 : i32
    %0 = arith.addi %arg2, %c1_i32 : i32
    %c4_i32 = arith.constant 4 : i32
    %1 = arith.muli %0, %c4_i32 : i32
    %c7_i32 = arith.constant 7 : i32
    %2 = arith.minsi %1, %c7_i32 : i32
    %c0_i32 = arith.constant 0 : i32
    %c0_i32_0 = arith.constant 0 : i32
    %c0_i32_1 = arith.constant 0 : i32
    %c0_i32_2 = arith.constant 0 : i32
    return %arg1, %2, %c0_i32, %c0_i32_0, %c0_i32_1 : i32, i32, i32, i32, i32
  }
  func.func @transform_3(%arg0: i32, %arg1: i32, %arg2: i32) -> (i32, i32) {
    %c0_i32 = arith.constant 0 : i32
    %c0_i32_0 = arith.constant 0 : i32
    %c0_i32_1 = arith.constant 0 : i32
    return %c0_i32, %c0_i32_0 : i32, i32
  }
  func.func @transform_4(%arg0: i32, %arg1: i32, %arg2: i32) -> (i32, i32) {
    %c0_i32 = arith.constant 0 : i32
    %c0_i32_0 = arith.constant 0 : i32
    %c0_i32_1 = arith.constant 0 : i32
    return %c0_i32, %c0_i32_0 : i32, i32
  }
  func.func @transform_5(%arg0: i32, %arg1: i32, %arg2: i32) -> (i32, i32) {
    %c0_i32 = arith.constant 0 : i32
    %c0_i32_0 = arith.constant 0 : i32
    %c0_i32_1 = arith.constant 0 : i32
    return %c0_i32, %c0_i32_0 : i32, i32
  }
  func.func @transform_6(%arg0: i32, %arg1: i32, %arg2: i32) -> (i32, i32) {
    %c0_i32 = arith.constant 0 : i32
    %c0_i32_0 = arith.constant 0 : i32
    %c0_i32_1 = arith.constant 0 : i32
    return %c0_i32, %c0_i32_0 : i32, i32
  }
  func.func @transform_7(%arg0: i32, %arg1: i32, %arg2: i32) -> (i32, i32, i32, i32, i32) {
    %0 = arith.muli %arg1, %arg0 : i32
    %1 = arith.muli %arg2, %arg0 : i32
    %c0_i32 = arith.constant 0 : i32
    %c0_i32_0 = arith.constant 0 : i32
    %c0_i32_1 = arith.constant 0 : i32
    %c0_i32_2 = arith.constant 0 : i32
    return %0, %c0_i32, %1, %c0_i32_0, %c0_i32_1 : i32, i32, i32, i32, i32
  }
}

</mosaic_0001>

<bundles_post_ra>
// kernel: tpu_custom_call.1
= control target key start
LH: loop header
LB: loop body
LE: loop exit
PB: predicated region body
PF: predicated region fallthrough
CT: control target
= control target key end

     0   :  { %s11226_s0 = inlined_call_operand.vmem [shape: f32[2,8,10,10,4], index: 0, kind: input, shape index: {}]   ;;  %s11227_s1 = inlined_call_operand.vmem [shape: f32[2,8,10,10,4], index: 1, kind: input, shape index: {}]   ;;  %s11228_s2 = inlined_call_operand.vmem [shape: f32[2,8,10,10,4], index: 2, kind: input, shape index: {}]   ;;  %s11229_s3 = inlined_call_operand.vmem [shape: f32[8,108], index: 3, kind: input, shape index: {}]   ;;  %s11230_s4 = inlined_call_operand.vmem [shape: f32[8,1], index: 4, kind: input, shape index: {}]   ;;  %s11231_s5 = inlined_call_operand.vmem [shape: f32[8,1], index: 5, kind: input, shape index: {}]   ;;  %s11232_s6 = inlined_call_operand.vmem [shape: f32[8,1], index: 6, kind: input, shape index: {}]   ;;  %s11233_s7 = inlined_call_operand.hbm [shape: f32[2,8,2,4,64], index: 7, kind: output, shape index: {}]  }
   0x1   :  { %11278 = sst [smem:[#allocation40_spill]] %s11226_s0 }
   0x2   :  { %12 = vsyncpa [#allocation6], 0 }
   0x3   :  { %14 = vsyncpa [#allocation6 + $0x1], 0  ;;  %s7226_s24 = smov 0   ;;  %s7228_s25 = smov 0  }
   0x4   :  { %s7230_s26 = smov 0   ;;  %s7232_s27 = smov 0  }
   0x5   :  { %s7234_s28 = smov 0   ;;  %s7236_s29 = smov 0  }
   0x6   :  { %s7238_s30 = smov 0   ;;  %s7240_s6 = smov 0  }
   0x7   :  { %s7242_s8 = smov 0   ;;  %s7244_s9 = smov 0  }
   0x8 LB: > { %11279 = sst [smem:[#allocation8_spill]] %s7144_s6  ;;  %s32_s10 = sadd.s32 1, %s7140_s30  ;;  %s7152_s9 = sphi %s7244_s9, %s20_s9   ;;  %s7148_s8 = sphi %s7242_s8, %s11377_s8   ;;  %s7144_s6 = sphi %s7240_s6, %s11369_s6   ;;  %s7140_s30 = sphi %s7238_s30, %s11376_s30   ;;  %s7136_s29 = sphi %s7236_s29, %s11375_s29   ;;  %s7132_s28 = sphi %s7234_s28, %s11367_s28   ;;  %s7128_s27 = sphi %s7232_s27, %s11374_s27   ;;  %s7124_s26 = sphi %s7230_s26, %s11373_s26   ;;  %s7120_s25 = sphi %s7228_s25, %s11372_s25   ;;  %s7116_s24 = sphi %s7226_s24, %s11371_s24  }
   0x9   : > { %p33_p0 = scmp.ge.s32.totalorder %s32_s10, 2  ;;  %s35_s11 = sadd.s32 1, %s7144_s6 }
   0xa   : > { %s6203_s12 = sadd.s32 4294967295, %s7152_s9   ;;  %s6204_s13 = sadd.s32 4294967294, %s7152_s9  }
   0xb   : > { %s11379_s10 = smov (%p33_p0, %s32_s10), 0  ;;  %s11381_s11 = smov (!%p33_p0, %s35_s11), %s7144_s6 }
   0xc   : > { %11280 = sst [smem:[#allocation9_spill]] %s11379_s10  ;;  %s39_s14 = sadd.s32 1, %s7148_s8 }
   0xd   : > { %p246_p1 = scmp.ne.s32.totalorder %s7124_s26, %s7120_s25  ;;  %p37_p2 = scmp.ge.s32.totalorder %s11381_s11, 2 }
   0xe   : > { %p247_p3 = scmp.eq.s32.totalorder %s6203_s12, 7  ;;  %p252_p4 = scmp.ne.s32.totalorder %s7120_s25, %s7116_s24 }
   0xf   : > { %p253_p5 = scmp.eq.s32.totalorder %s6204_s13, 7  ;;  %s11383_s11 = smov (%p37_p2, %s11381_s11), 0 }
  0x10   : > { %11281 = sst [smem:[#allocation10_spill]] %s11383_s11  ;;  %s11385_s14 = smov (!%p37_p2, %s39_s14), %s7148_s8 }
  0x11   : > { %p7291_p6 = por %p247_p3, %p246_p1  ;;  %p7295_p7 = por %p253_p5, %p252_p4 }
  0x12   : > { %p41_p8 = scmp.ge.s32.totalorder %s11385_s14, 2  ;;  %p6213_p9 = scmp.ge.s32.totalorder %s7152_s9, 1 }
  0x13   : > { %s227_s17 = smul.u32 %s7144_s6, %s7148_s8  ;;  %p337_p10 = scmp.lt.s32.totalorder %s7152_s9, 9 }
  0x14   : > { %s11387_s14 = smov (%p41_p8, %s11385_s14), 0  ;;  %s228_s18 = smul.u32 %s7140_s30, %s7148_s8 }
  0x15   : > { %11284 = sst [smem:[#allocation11_spill]] %s11387_s14  ;;  %p338_p11 = pnand %p6213_p9, %p337_p10 }
  0x16   : > { %s229_s19 = smul.u32 %s11387_s14, %s11383_s11  ;;  %s236_s12 = sadd.s32 1, %s7124_s26 }
  0x17   : > { %s230_s20 = smul.u32 %s11387_s14, %s11379_s10 }
  0x18   : > { %s231_s21 = ssub.s32 %s227_s17, %s229_s19  ;;  %341 = sbr.rel (%p338_p11) target bundleno = 2699 (0xa8b), region = 48 }
  0x19   : > { %s232_s22 = ssub.s32 %s228_s18, %s230_s20 }
  0x1a   : > { %s233_s23 = sor.u32 %s232_s22, %s231_s21 }
  0x1b   : > { %p234_p12 = scmp.eq.s32.totalorder %s233_s23, 0 }
  0x1d   : > { %s7313_s13 = scalar_select %p234_p12, %s7124_s26, %s236_s12  }
  0x1f   : > { %s7316_s6 = sshll.u32 %s7128_s27, 2  ;;  %p401_p13 = scmp.lt.s32.totalorder %s7132_s28, 1  ;;  %vm608_vm0 = vcmask 1046528   ;;  %vm535_vm1 = vcmask 31744   ;;  %vm810_vm2 = vcmask 1045504   ;;  %vm657_vm3 = vcmask 64544  }
  0x20   : > { %p403_p0 = scmp.lt.s32.totalorder %s7316_s6, 7  ;;  %s6218_s19 = sadd.s32 4294967295, %s7316_s6  ;;  %vm859_vm4 = vcmask 97344   ;;  %vm1037_vm5 = vcmask 130144   ;;  %vm1219_vm6 = vcmask 162944   ;;  %vm1399_vm7 = vcmask 195744  }
  0x21   : > { %s402_s14 = scalar_select %p401_p13, %s7132_s28, 1  ;;  %vm1577_vm8 = vcmask 228544   ;;  %vm1759_vm9 = vcmask 261344   ;;  %vm1939_vm10 = vcmask 294144   ;;  %vm2252_vm11 = vcmask 326944  }
  0x22   : > { %s404_s17 = scalar_select %p403_p0, %s7316_s6, 7  ;;  %vm2445_vm12 = vcmask 359744   ;;  %vm2638_vm13 = vcmask 392544   ;;  %vm2831_vm14 = vcmask 425344   ;;  %vm3024_vm15 = vcmask 458144  }
  0x23   : > { %s7322_s18 = smul.u32 160, %s402_s14  ;;  %p413_p1 = scmp.gt.s32.totalorder %s6218_s19, 0 }
  0x24   : > { %s6913_s20 = smul.u32 20, %s404_s17  ;;  %p467_p2 = scmp.gt.s32.totalorder %s7128_s27, 0 }
  0x25   : > { %p6219_p3 = scmp.lt.s32.totalorder %s6218_s19, 7  ;;  %s11285_s0 = sld [smem:[#allocation40_spill]] }
  0x26   : > { %s407_s21 = sadd.s32 %s7322_s18, %s6913_s20  ;;  %s11389_s19 = smov (!%p413_p1, %s6218_s19), 0 }
  0x27   : > { %s6216_s22 = sshll.u32 %s407_s21, 3  ;;  %s11277_s14 = smov 4  }
  0x28   : > { %s468_s17 = scalar_select %p467_p2, 1, 0 }
  0x29   : > { %s11391_s19 = smov (!%p6219_p3, %s11389_s19), 7  ;;  %s7163_s12 = smov 40  }
  0x2a   : > { %s469_s20 = scvt.s32.f32 %s468_s17  ;;  %s6915_s21 = smul.u32 20, %s11391_s19 }
  0x2b   : > { %s7330_s11 = scalar_lea.vmem %s11285_s0, %s6216_s22  ;;  %s7156_s19 = smov 12  }
  0x2c   : > { %v7333_v0 = vld [vmem:[%s7330_s11 + $0x11] sm:$0xff]  ;;  %v666_v1 = vld [vmem:[%s7330_s11 + $0x1] sm:$0xff]  ;;  %s421_s10 = sadd.s32 %s6915_s21, %s7322_s18  ;;  %v7340_v2 = vstv %s469_s20  ;;  %s7157_s17 = smov 16  }
  0x2d   : > { %716 = vrot.lane.b32.xlu1 %v7333_v0, %s11277_s14  ;;  %714 = vrot.lane.b32.xlu0 %v666_v1, %s11277_s14  ;;  %s6224_s23 = sshll.u32 %s421_s10, 3  ;;  %v7462_v54 = vld [vmem:[%s7330_s11 + $0x10] sm:$0xff]  ;;  %v544_v58 = vld [vmem:[%s7330_s11] sm:$0xff]  ;;  %s7155_s10 = smov 8  }
  0x2e   : > { %s7345_s0 = scalar_lea.vmem %s11227_s1, %s6224_s23  ;;  %569 = vst.msk [vmem:[#allocation2 + $0x48] sm:$0xff] %vm535_vm1, %v7462_v54  ;;  %568 = vst.msk [vmem:[#allocation2 + $0x40] sm:$0xff] %vm535_vm1, %v544_v58  ;;  %v7476_v59 = vld [vmem:[%s7330_s11 + $0x30] sm:$0xff]  ;;  %v7479_v60 = vld [vmem:[%s7330_s11 + $0x20] sm:$0xff]  ;;  %s7158_s20 = smov 20  }
  0x2f   : > { %v451_v3 = vld [vmem:[%s7345_s0 + $0x20] sm:$0xff]  ;;  %v452_v4 = vld [vmem:[%s7345_s0 + $0x28] sm:$0x3]  ;;  %v453_v10 = vld [vmem:[%s7345_s0 + $0x30] sm:$0xff]  ;;  %571 = vst.msk [vmem:[#allocation2 + $0x58] sm:$0xff] %vm535_vm1, %v7476_v59  ;;  %s7159_s21 = smov 24  }
  0x30   : > { %v447_v5 = vld [vmem:[%s7345_s0] sm:$0xff]  ;;  %v7351_v6 = vmul.f32 %v7340_v2, %v451_v3  ;;  %v7354_v7 = vmul.f32 %v7340_v2, %v452_v4  ;;  %v448_v8 = vld [vmem:[%s7345_s0 + $0x8] sm:$0x3]  ;;  %v454_v11 = vld [vmem:[%s7345_s0 + $0x38] sm:$0x3]  ;;  %v7366_v13 = vmul.f32 %v7340_v2, %v453_v10  ;;  %570 = vst.msk [vmem:[#allocation2 + $0x50] sm:$0xff] %vm535_vm1, %v7479_v60 }
  0x31   : > { %v7358_v9 = vmul.f32 %v7340_v2, %v447_v5  ;;  %v7363_v12 = vmul.f32 %v7340_v2, %v448_v8  ;;  %v7369_v14 = vmul.f32 %v7340_v2, %v454_v11  ;;  %v449_v15 = vld [vmem:[%s7345_s0 + $0x10] sm:$0xff]  ;;  %v450_v16 = vld [vmem:[%s7345_s0 + $0x18] sm:$0x3]  ;;  %v455_v23 = vld [vmem:[%s7345_s0 + $0x40] sm:$0xff]  ;;  %s7160_s23 = smov 28   ;;  %s7162_s22 = smov 36  }
  0x32   : > { %11286 = vst [vmem:[#allocation12_spill] sm:$0xff] %v7351_v6  ;;  %v457_v17 = vld [vmem:[%s7345_s0 + $0x50] sm:$0xff]  ;;  %v615_v18 = vrot.slane %v7351_v6, 1  ;;  %v616_v19 = vrot.slane %v7354_v7, 1  ;;  %v7378_v21 = vmul.f32 %v7340_v2, %v449_v15  ;;  %v458_v22 = vld [vmem:[%s7345_s0 + $0x58] sm:$0x3]  ;;  %v7390_v27 = vmul.f32 %v7340_v2, %v450_v16 }
  0x33   : > { %v609_v20 = vrot.slane %v7358_v9, 1  ;;  %536 = vst.msk [vmem:[#allocation2] sm:$0xff] %vm535_vm1, %v7358_v9  ;;  %538 = vst.msk [vmem:[#allocation2 + $0x10] sm:$0xff] %vm535_vm1, %v7351_v6  ;;  %v610_v24 = vrot.slane %v7363_v12, 1  ;;  %v618_v25 = vrot.slane %v7366_v13, 1  ;;  %v619_v26 = vrot.slane %v7369_v14, 1 }
  0x34   : > { %v456_v28 = vld [vmem:[%s7345_s0 + $0x48] sm:$0x3]  ;;  %v461_v29 = vld [vmem:[%s7345_s0 + $0x70] sm:$0xff]  ;;  %539 = vst.msk [vmem:[#allocation2 + $0x18] sm:$0xff] %vm535_vm1, %v7366_v13  ;;  %v7397_v30 = vsel %vm608_vm0, %v615_v18, %v616_v19  ;;  %v612_v31 = vrot.slane %v7378_v21, 1  ;;  %v7401_v32 = vmul.f32 %v7340_v2, %v457_v17  ;;  %v7404_v33 = vmul.f32 %v7340_v2, %v458_v22  ;;  %v459_v35 = vld [vmem:[%s7345_s0 + $0x60] sm:$0xff] }
  0x35   : > { %v462_v34 = vld [vmem:[%s7345_s0 + $0x78] sm:$0x3]  ;;  %537 = vst.msk [vmem:[#allocation2 + $0x8] sm:$0xff] %vm535_vm1, %v7378_v21  ;;  %637 = vrot.lane.b32.xlu1 %v7397_v30, %s11277_s14  ;;  %v611_v36 = vsel %vm608_vm0, %v609_v20, %v610_v24  ;;  %v7414_v37 = vsel %vm608_vm0, %v618_v25, %v619_v26  ;;  %v613_v38 = vrot.slane %v7390_v27, 1  ;;  %v7418_v39 = vmul.f32 %v7340_v2, %v455_v23  ;;  %v460_v40 = vld [vmem:[%s7345_s0 + $0x68] sm:$0x3] }
  0x36   : > { %633 = vrot.lane.b32.xlu0 %v611_v36, %s11277_s14  ;;  %v624_v41 = vrot.slane %v7401_v32, 1  ;;  %v625_v42 = vrot.slane %v7404_v33, 1  ;;  %v7425_v43 = vmul.f32 %v7340_v2, %v456_v28  ;;  %v7428_v44 = vmul.f32 %v7340_v2, %v461_v29  ;;  %541 = vst.msk [vmem:[#allocation2 + $0x28] sm:$0xff] %vm535_vm1, %v7401_v32  ;;  %v7491_v62 = vld [vmem:[%s7330_s11 + $0x50] sm:$0xff]  ;;  %v7494_v63 = vld [vmem:[%s7330_s11 + $0x40] sm:$0xff]  ;;  %p511_p5 = scmp.lt.s32.totalorder %s7128_s27, 1 }
  0x37   : > { %v7433_v45 = vsel %vm608_vm0, %v612_v31, %v613_v38  ;;  %v621_v46 = vrot.slane %v7418_v39, 1  ;;  %v7437_v47 = vmul.f32 %v7340_v2, %v462_v34  ;;  %v7440_v48 = vmul.f32 %v7340_v2, %v459_v35  ;;  %540 = vst.msk [vmem:[#allocation2 + $0x20] sm:$0xff] %vm535_vm1, %v7418_v39  ;;  %573 = vst.msk [vmem:[#allocation2 + $0x68] sm:$0xff] %vm535_vm1, %v7491_v62  ;;  %v7504_v3 = vld [vmem:[%s7330_s11 + $0x70] sm:$0xff]  ;;  %v7507_v4 = vld [vmem:[%s7330_s11 + $0x60] sm:$0xff]  ;;  %p5709_p8 = scmp.eq.s32.totalorder %s7136_s29, 0 }
  0x38   : > { %v622_v49 = vrot.slane %v7425_v43, 1  ;;  %v7446_v50 = vmul.f32 %v7340_v2, %v460_v40  ;;  %543 = vst.msk [vmem:[#allocation2 + $0x38] sm:$0xff] %vm535_vm1, %v7428_v44  ;;  %v7457_v51 = vsel %vm608_vm0, %v624_v41, %v625_v42  ;;  %v630_v52 = vrot.slane %v7428_v44, 1  ;;  %572 = vst.msk [vmem:[#allocation2 + $0x60] sm:$0xff] %vm535_vm1, %v7494_v63  ;;  %v7518_v5 = vld [vmem:[%s7330_s11 + $0x31] sm:$0xff]  ;;  %v7521_v8 = vld [vmem:[%s7330_s11 + $0x21] sm:$0xff] }
  0x39   : > { %639 = vrot.lane.b32.xlu1 %v7414_v37, %s11277_s14  ;;  %542 = vst.msk [vmem:[#allocation2 + $0x30] sm:$0xff] %vm535_vm1, %v7440_v48  ;;  %v631_v53 = vrot.slane %v7437_v47, 1  ;;  %v627_v56 = vrot.slane %v7440_v48, 1  ;;  %575 = vst.msk [vmem:[#allocation2 + $0x78] sm:$0xff] %vm535_vm1, %v7504_v3  ;;  %v7524_v10 = vld [vmem:[%s7330_s11 + $0xb0] sm:$0xff]  ;;  %v552_v11 = vld [vmem:[%s7330_s11 + $0xa0] sm:$0xff] }
  0x3a   : > { %635 = vrot.lane.b32.xlu0 %v7433_v45, %s11277_s14  ;;  %v7465_v55 = vsel %vm608_vm0, %v621_v46, %v622_v49  ;;  %v628_v57 = vrot.slane %v7446_v50, 1  ;;  %574 = vst.msk [vmem:[#allocation2 + $0x70] sm:$0xff] %vm535_vm1, %v7507_v4  ;;  %577 = vst.msk [vmem:[#allocation2 + $0x88] sm:$0xff] %vm535_vm1, %v7524_v10  ;;  %v7535_v15 = vld [vmem:[%s7330_s11 + $0x51] sm:$0xff]  ;;  %v7538_v16 = vld [vmem:[%s7330_s11 + $0x41] sm:$0xff]  ;;  %p5710_p9 = scmp.eq.s32.totalorder %s7132_s28, 0 }
  0x3b   : > { %11287 = vst [vmem:[#allocation13_spill] sm:$0xff] %v7465_v55  ;;  %v7484_v61 = vsel %vm608_vm0, %v630_v52, %v631_v53  ;;  %576 = vst.msk [vmem:[#allocation2 + $0x80] sm:$0xff] %vm535_vm1, %v552_v11  ;;  %v7541_v17 = vld [vmem:[%s7330_s11 + $0xd0] sm:$0xff]  ;;  %v7544_v18 = vld [vmem:[%s7330_s11 + $0xc0] sm:$0xff]  ;;  %p5713_p12 = scmp.eq.s32.totalorder %s7128_s27, 0 }
  0x3c   : > { %v7497_v1 = vsel %vm608_vm0, %v627_v56, %v628_v57  ;;  %579 = vst.msk [vmem:[#allocation2 + $0x98] sm:$0xff] %vm535_vm1, %v7541_v17  ;;  %578 = vst.msk [vmem:[#allocation2 + $0x90] sm:$0xff] %vm535_vm1, %v7544_v18  ;;  %v7555_v19 = vld [vmem:[%s7330_s11 + $0x71] sm:$0xff]  ;;  %v7558_v20 = vld [vmem:[%s7330_s11 + $0x61] sm:$0xff]  ;;  %p5711_p10 = pnand %p5710_p9, %p5709_p8 }
  0x3d   : > { %643 = vrot.lane.b32.xlu1 %v7457_v51, %s11277_s14  ;;  %v7561_v22 = vld [vmem:[%s7330_s11 + $0xf0] sm:$0xff]  ;;  %v7564_v23 = vld [vmem:[%s7330_s11 + $0xe0] sm:$0xff] }
  0x3e   : > { %641 = vrot.lane.b32.xlu0 %v7465_v55, %s11277_s14  ;;  %581 = vst.msk [vmem:[#allocation2 + $0xa8] sm:$0xff] %vm535_vm1, %v7561_v22  ;;  %580 = vst.msk [vmem:[#allocation2 + $0xa0] sm:$0xff] %vm535_vm1, %v7564_v23  ;;  %v7575_v24 = vld [vmem:[%s7330_s11 + $0xb1] sm:$0xff]  ;;  %v674_v25 = vld [vmem:[%s7330_s11 + $0xa1] sm:$0xff]  ;;  %p5712_p11 = pneg %p5711_p10 }
  0x3f   : > { %v7579_v26 = vld [vmem:[%s7330_s11 + $0x110] sm:$0xff]  ;;  %v7582_v28 = vld [vmem:[%s7330_s11 + $0x100] sm:$0xff] }
  0x40   : > { %583 = vst.msk [vmem:[#allocation2 + $0xb8] sm:$0xff] %vm535_vm1, %v7579_v26  ;;  %582 = vst.msk [vmem:[#allocation2 + $0xb0] sm:$0xff] %vm535_vm1, %v7582_v28  ;;  %v7592_v29 = vld [vmem:[%s7330_s11 + $0xd1] sm:$0xff]  ;;  %v7595_v31 = vld [vmem:[%s7330_s11 + $0xc1] sm:$0xff]  ;;  %p5714_p13 = pnand %p5713_p12, %p5712_p11 }
  0x41   : > { %647 = vrot.lane.b32.xlu1 %v7484_v61, %s11277_s14  ;;  %11288 = vst [vmem:[#allocation14_spill] sm:$0xff] %v7592_v29  ;;  %v7598_v34 = vld [vmem:[%s7330_s11 + $0x150] sm:$0xff]  ;;  %v560_v35 = vld [vmem:[%s7330_s11 + $0x140] sm:$0xff] }
  0x42   : > { %645 = vrot.lane.b32.xlu0 %v7497_v1, %s11277_s14  ;;  %585 = vst.msk [vmem:[#allocation2 + $0xc8] sm:$0xff] %vm535_vm1, %v7598_v34  ;;  %584 = vst.msk [vmem:[#allocation2 + $0xc0] sm:$0xff] %vm535_vm1, %v560_v35  ;;  %v7609_v36 = vld [vmem:[%s7330_s11 + $0xf1] sm:$0xff]  ;;  %v7612_v38 = vld [vmem:[%s7330_s11 + $0xe1] sm:$0xff] }
  0x43   : > { %11289 = vst [vmem:[#allocation15_spill] sm:$0xff] %v7609_v36  ;;  %11290 = vst [vmem:[#allocation16_spill] sm:$0xff] %v7612_v38  ;;  %v7615_v40 = vld [vmem:[%s7330_s11 + $0x170] sm:$0xff]  ;;  %v7618_v41 = vld [vmem:[%s7330_s11 + $0x160] sm:$0xff] }
  0x44   : > { %587 = vst.msk [vmem:[#allocation2 + $0xd8] sm:$0xff] %vm535_vm1, %v7615_v40  ;;  %586 = vst.msk [vmem:[#allocation2 + $0xd0] sm:$0xff] %vm535_vm1, %v7618_v41  ;;  %v7629_v42 = vld [vmem:[%s7330_s11 + $0x111] sm:$0xff]  ;;  %v7632_v46 = vld [vmem:[%s7330_s11 + $0x101] sm:$0xff] }
  0x45   : > { %720 = vrot.lane.b32.xlu1 %v7518_v5, %s11277_s14  ;;  %11291 = vst [vmem:[#allocation17_spill] sm:$0xff] %v7629_v42  ;;  %11292 = vst [vmem:[#allocation18_spill] sm:$0xff] %v7632_v46  ;;  %v7635_v49 = vld [vmem:[%s7330_s11 + $0x190] sm:$0xff]  ;;  %v7638_v52 = vld [vmem:[%s7330_s11 + $0x180] sm:$0xff] }
  0x46   : > { %718 = vrot.lane.b32.xlu0 %v7521_v8, %s11277_s14  ;;  %589 = vst.msk [vmem:[#allocation2 + $0xe8] sm:$0xff] %vm535_vm1, %v7635_v49  ;;  %588 = vst.msk [vmem:[#allocation2 + $0xe0] sm:$0xff] %vm535_vm1, %v7638_v52  ;;  %v7649_v53 = vld [vmem:[%s7330_s11 + $0x151] sm:$0xff]  ;;  %v682_v56 = vld [vmem:[%s7330_s11 + $0x141] sm:$0xff] }
  0x47   : > { %11293 = vst [vmem:[#allocation19_spill] sm:$0xff] %v7649_v53  ;;  %v7653_v57 = vld [vmem:[%s7330_s11 + $0x1b0] sm:$0xff]  ;;  %v7656_v58 = vld [vmem:[%s7330_s11 + $0x1a0] sm:$0xff] }
  0x48   : > { %591 = vst.msk [vmem:[#allocation2 + $0xf8] sm:$0xff] %vm535_vm1, %v7653_v57  ;;  %590 = vst.msk [vmem:[#allocation2 + $0xf0] sm:$0xff] %vm535_vm1, %v7656_v58  ;;  %v7666_v11 = vld [vmem:[%s7330_s11 + $0x171] sm:$0xff]  ;;  %vm3217_vm1 = vcmask 490944  }
  0x49   : > { %724 = vrot.lane.b32.xlu1 %v7535_v15, %s11277_s14  ;;  %11294 = vst [vmem:[#allocation20_spill] sm:$0xff] %v7666_v11  ;;  %v7676_v35 = vld [vmem:[%s7330_s11 + $0x191] sm:$0xff] }
  0x4a   : > { %722 = vrot.lane.b32.xlu0 %v7538_v16, %s11277_s14  ;;  %11296 = vst [vmem:[#allocation22_spill] sm:$0xff] %v7676_v35 }
  0x4d   : > { %728 = vrot.lane.b32.xlu1 %v7555_v19, %s11277_s14 }
  0x4e   : > { %726 = vrot.lane.b32.xlu0 %v7558_v20, %s11277_s14 }
  0x51   : > { %732 = vrot.lane.b32.xlu1 %v7575_v24, %s11277_s14 }
  0x52   : > { %730 = vrot.lane.b32.xlu0 %v674_v25, %s11277_s14  ;;  %v7669_v25 = vld [vmem:[%s7330_s11 + $0x161] sm:$0xff] }
  0x53   : > { %11295 = vst [vmem:[#allocation21_spill] sm:$0xff] %v7669_v25 }
  0x55   : > { %736 = vrot.lane.b32.xlu1 %v7592_v29, %s11277_s14 }
  0x56   : > { %734 = vrot.lane.b32.xlu0 %v7595_v31, %s11277_s14 }
  0x59   : > { %740 = vrot.lane.b32.xlu1 %v7609_v36, %s11277_s14  ;;  %v815_v36 = vrot.slane %v7390_v27, 2  ;;  %v821_v27 = vrot.slane %v7369_v14, 2 }
  0x5a   : > { %738 = vrot.lane.b32.xlu0 %v7612_v38, %s11277_s14  ;;  %v817_v38 = vrot.slane %v7351_v6, 2 }
  0x5d   : > { %744 = vrot.lane.b32.xlu1 %v7629_v42, %s11277_s14  ;;  %v7679_v42 = vld [vmem:[%s7330_s11 + $0x181] sm:$0xff] }
  0x5e   : > { %742 = vrot.lane.b32.xlu0 %v7632_v46, %s11277_s14  ;;  %11297 = vst [vmem:[#allocation23_spill] sm:$0xff] %v7679_v42  ;;  %v812_v46 = vrot.slane %v7363_v12, 2 }
  0x61   : > { %748 = vrot.lane.b32.xlu1 %v7649_v53, %s11277_s14  ;;  %v814_v53 = vrot.slane %v7378_v21, 2 }
  0x62   : > { %746 = vrot.lane.b32.xlu0 %v682_v56, %s11277_s14  ;;  %v7686_v56 = vld [vmem:[%s7330_s11 + $0x1b1] sm:$0xff] }
  0x65   : > { %752 = vrot.lane.b32.xlu1 %v7666_v11, %s11277_s14  ;;  %v7691_v11 = vld [vmem:[%s7330_s11 + $0x1a1] sm:$0xff] }
  0x66   : > { %750 = vrot.lane.b32.xlu0 %v7669_v25, %s11277_s14  ;;  %v811_v25 = vrot.slane %v7358_v9, 2  ;;  %v818_v9 = vrot.slane %v7354_v7, 2  ;;  %v824_v7 = vrot.slane %v7425_v43, 2  ;;  %v829_v43 = vrot.slane %v7440_v48, 2 }
  0x68   : > { %v813_v29 = vsel %vm810_vm2, %v811_v25, %v812_v46  ;;  %v7716_v14 = vsel %vm810_vm2, %v817_v38, %v818_v9  ;;  %v823_v46 = vrot.slane %v7418_v39, 2  ;;  %v833_v38 = vrot.slane %v7437_v47, 2  ;;  %v868_v9 = vld [vmem:[%s7330_s11 + $0x2] sm:$0xff] }
  0x69   : > { %756 = vrot.lane.b32.xlu1 %v7676_v35, %s11277_s14  ;;  %v7700_v35 = vsel %vm810_vm2, %v814_v53, %v815_v36  ;;  %v826_v36 = vrot.slane %v7401_v32, 2  ;;  %v827_v53 = vrot.slane %v7404_v33, 2  ;;  %v832_v33 = vrot.slane %v7428_v44, 2 }
  0x6a   : > { %754 = vrot.lane.b32.xlu0 %v7679_v42, %s11277_s14  ;;  %v820_v42 = vrot.slane %v7366_v13, 2  ;;  %v830_v25 = vrot.slane %v7446_v50, 2  ;;  %v7749_v50 = vld [vmem:[%s7330_s11 + $0x12] sm:$0xff] }
  0x6c   : > { %v7711_v12 = vsel %vm810_vm2, %v820_v42, %v821_v27  ;;  %v7730_v42 = vsel %vm810_vm2, %v823_v46, %v824_v7  ;;  %v7739_v27 = vsel %vm810_vm2, %v832_v33, %v833_v38  ;;  %v7742_v47 = vsel %vm810_vm2, %v829_v43, %v830_v25  ;;  %v7766_v46 = vld [vmem:[%s7330_s11 + $0x52] sm:$0xff]  ;;  %v7769_v7 = vld [vmem:[%s7330_s11 + $0x42] sm:$0xff] }
  0x6d   : > { %760 = vrot.lane.b32.xlu1 %v7686_v56, %s11277_s14  ;;  %11299 = vst [vmem:[#allocation25_spill] sm:$0xff] %v7766_v46  ;;  %11300 = vst [vmem:[#allocation26_spill] sm:$0xff] %v7769_v7  ;;  %v7776_v33 = vld [vmem:[%s7330_s11 + $0x72] sm:$0xff]  ;;  %v7779_v38 = vld [vmem:[%s7330_s11 + $0x62] sm:$0xff] }
  0x6e   : > { %758 = vrot.lane.b32.xlu0 %v7691_v11, %s11277_s14  ;;  %11301 = vst [vmem:[#allocation27_spill] sm:$0xff] %v7776_v33  ;;  %11302 = vst [vmem:[#allocation28_spill] sm:$0xff] %v7779_v38  ;;  %v7786_v43 = vld [vmem:[%s7330_s11 + $0xb2] sm:$0xff]  ;;  %v876_v25 = vld [vmem:[%s7330_s11 + $0xa2] sm:$0xff] }
  0x6f   : > { %11303 = vst [vmem:[#allocation29_spill] sm:$0xff] %v7786_v43 }
  0x71   : > { %837 = vrot.lane.b32.xlu1 %v7700_v35, %s7155_s10 }
  0x72   : > { %835 = vrot.lane.b32.xlu0 %v813_v29, %s7155_s10  ;;  %v7725_v29 = vsel %vm810_vm2, %v826_v36, %v827_v53  ;;  %v7756_v36 = vld [vmem:[%s7330_s11 + $0x32] sm:$0xff]  ;;  %v7759_v53 = vld [vmem:[%s7330_s11 + $0x22] sm:$0xff] }
  0x73   : > { %11298 = vst [vmem:[#allocation24_spill] sm:$0xff] %v7756_v36 }
  0x75   : > { %841 = vrot.lane.b32.xlu1 %v7711_v12, %s7155_s10 }
  0x76   : > { %839 = vrot.lane.b32.xlu0 %v7716_v14, %s7155_s10 }
  0x79   : > { %845 = vrot.lane.b32.xlu1 %v7725_v29, %s7155_s10 }
  0x7a   : > { %843 = vrot.lane.b32.xlu0 %v7730_v42, %s7155_s10 }
  0x7d   : > { %849 = vrot.lane.b32.xlu1 %v7739_v27, %s7155_s10 }
  0x7e   : > { %847 = vrot.lane.b32.xlu0 %v7742_v47, %s7155_s10 }
  0x81   : > { %918 = vrot.lane.b32.xlu1 %v7749_v50, %s7155_s10 }
  0x82   : > { %916 = vrot.lane.b32.xlu0 %v868_v9, %s7155_s10  ;;  %v7793_v9 = vld [vmem:[%s7330_s11 + $0xd2] sm:$0xff] }
  0x83   : > { %11304 = vst [vmem:[#allocation30_spill] sm:$0xff] %v7793_v9 }
  0x85   : > { %922 = vrot.lane.b32.xlu1 %v7756_v36, %s7155_s10  ;;  %v884_v36 = vld [vmem:[%s7330_s11 + $0x142] sm:$0xff] }
  0x86   : > { %920 = vrot.lane.b32.xlu0 %v7759_v53, %s7155_s10 }
  0x89   : > { %926 = vrot.lane.b32.xlu1 %v7766_v46, %s7155_s10  ;;  %v7796_v46 = vld [vmem:[%s7330_s11 + $0xc2] sm:$0xff] }
  0x8a   : > { %924 = vrot.lane.b32.xlu0 %v7769_v7, %s7155_s10  ;;  %11305 = vst [vmem:[#allocation31_spill] sm:$0xff] %v7796_v46 }
  0x8d   : > { %930 = vrot.lane.b32.xlu1 %v7776_v33, %s7155_s10  ;;  %v7803_v33 = vld [vmem:[%s7330_s11 + $0xf2] sm:$0xff] }
  0x8e   : > { %928 = vrot.lane.b32.xlu0 %v7779_v38, %s7155_s10  ;;  %11306 = vst [vmem:[#allocation32_spill] sm:$0xff] %v7803_v33  ;;  %v7806_v38 = vld [vmem:[%s7330_s11 + $0xe2] sm:$0xff] }
  0x8f   : > { %11307 = vst [vmem:[#allocation33_spill] sm:$0xff] %v7806_v38 }
  0x91   : > { %934 = vrot.lane.b32.xlu1 %v7786_v43, %s7155_s10 }
  0x92   : > { %932 = vrot.lane.b32.xlu0 %v876_v25, %s7155_s10 }
  0x95   : > { %938 = vrot.lane.b32.xlu1 %v7793_v9, %s7155_s10  ;;  %v7813_v9 = vld [vmem:[%s7330_s11 + $0x112] sm:$0xff] }
  0x96   : > { %936 = vrot.lane.b32.xlu0 %v7796_v46, %s7155_s10  ;;  %11308 = vst [vmem:[#allocation34_spill] sm:$0xff] %v7813_v9  ;;  %v7818_v46 = vld [vmem:[%s7330_s11 + $0x102] sm:$0xff] }
  0x97   : > { %11309 = vst [vmem:[#allocation35_spill] sm:$0xff] %v7818_v46 }
  0x99   : > { %942 = vrot.lane.b32.xlu1 %v7803_v33, %s7155_s10  ;;  %v7825_v33 = vld [vmem:[%s7330_s11 + $0x152] sm:$0xff] }
  0x9a   : > { %940 = vrot.lane.b32.xlu0 %v7806_v38, %s7155_s10  ;;  %11310 = vst [vmem:[#allocation36_spill] sm:$0xff] %v7825_v33  ;;  %v7845_v38 = vld [vmem:[%s7330_s11 + $0x182] sm:$0xff] }
  0x9d   : > { %946 = vrot.lane.b32.xlu1 %v7813_v9, %s7155_s10  ;;  %v7842_v9 = vld [vmem:[%s7330_s11 + $0x192] sm:$0xff] }
  0x9e   : > { %944 = vrot.lane.b32.xlu0 %v7818_v46, %s7155_s10 }
  0x9f   : > { %v717_v25 = vpop.permute.xlu1 %716  ;;  %v715_v43 = vpop.permute.xlu0 %714 }
  0xa0   : > { %787 = vst.msk [vmem:[#allocation2 + $0x48] sm:$0xff] %vm657_vm3, %v717_v25  ;;  %786 = vst.msk [vmem:[#allocation2 + $0x40] sm:$0xff] %vm657_vm3, %v715_v43  ;;  %v7832_v25 = vld [vmem:[%s7330_s11 + $0x172] sm:$0xff]  ;;  %v7835_v43 = vld [vmem:[%s7330_s11 + $0x162] sm:$0xff] }
  0xa1   : > { %950 = vrot.lane.b32.xlu1 %v7825_v33, %s7155_s10  ;;  %11311 = vst [vmem:[#allocation37_spill] sm:$0xff] %v7832_v25  ;;  %11312 = vst [vmem:[#allocation38_spill] sm:$0xff] %v7835_v43 }
  0xa2   : > { %948 = vrot.lane.b32.xlu0 %v884_v36, %s7155_s10  ;;  %v7854_v36 = vld [vmem:[%s7330_s11 + $0x1b2] sm:$0xff] }
  0xa5   : > { %954 = vrot.lane.b32.xlu1 %v7832_v25, %s7155_s10 }
  0xa6   : > { %952 = vrot.lane.b32.xlu0 %v7835_v43, %s7155_s10  ;;  %v7857_v43 = vld [vmem:[%s7330_s11 + $0x1a2] sm:$0xff] }
  0xa7   : > { %v638_v46 = vpop.permute.xlu1 %637 }
  0xa8   : > { %660 = vst.msk [vmem:[#allocation2 + $0x10] sm:$0xff] %vm657_vm3, %v638_v46  ;;  %v634_v33 = vpop.permute.xlu0 %633 }
  0xa9   : > { %658 = vst.msk [vmem:[#allocation2] sm:$0xff] %vm657_vm3, %v634_v33  ;;  %958 = vrot.lane.b32.xlu1 %v7842_v9, %s7155_s10 }
  0xaa   : > { %956 = vrot.lane.b32.xlu0 %v7845_v38, %s7155_s10 }
  0xab   : > { %v640_v25 = vpop.permute.xlu1 %639 }
  0xac   : > { %661 = vst.msk [vmem:[#allocation2 + $0x18] sm:$0xff] %vm657_vm3, %v640_v25  ;;  %v636_v7 = vpop.permute.xlu0 %635 }
  0xad   : > { %659 = vst.msk [vmem:[#allocation2 + $0x8] sm:$0xff] %vm657_vm3, %v636_v7  ;;  %962 = vrot.lane.b32.xlu1 %v7854_v36, %s7155_s10 }
  0xae   : > { %960 = vrot.lane.b32.xlu0 %v7857_v43, %s7155_s10  ;;  %s7164_s10 = smov 44  }
  0xaf   : > { %v644_v46 = vpop.permute.xlu1 %643 }
  0xb0   : > { %663 = vst.msk [vmem:[#allocation2 + $0x28] sm:$0xff] %vm657_vm3, %v644_v46  ;;  %v642_v33 = vpop.permute.xlu0 %641  ;;  %v463_v46 = vld [vmem:[%s7345_s0 + $0x80] sm:$0xff] }
  0xb1   : > { %662 = vst.msk [vmem:[#allocation2 + $0x20] sm:$0xff] %vm657_vm3, %v642_v33  ;;  %1015 = vrot.lane.b32.xlu1 %v7351_v6, %s7156_s19 }
  0xb2   : > { %1013 = vrot.lane.b32.xlu0 %v7378_v21, %s7156_s19  ;;  %v7883_v21 = vmul.f32 %v7340_v2, %v463_v46 }
  0xb3   : > { %v648_v7 = vpop.permute.xlu1 %647 }
  0xb4   : > { %665 = vst.msk [vmem:[#allocation2 + $0x38] sm:$0xff] %vm657_vm3, %v648_v7  ;;  %v646_v25 = vpop.permute.xlu0 %645 }
  0xb5   : > { %664 = vst.msk [vmem:[#allocation2 + $0x30] sm:$0xff] %vm657_vm3, %v646_v25  ;;  %1019 = vrot.lane.b32.xlu1 %v7418_v39, %s7156_s19 }
  0xb6   : > { %1017 = vrot.lane.b32.xlu0 %v7366_v13, %s7156_s19 }
  0xb7   : > { %v721_v33 = vpop.permute.xlu1 %720 }
  0xb8   : > { %789 = vst.msk [vmem:[#allocation2 + $0x58] sm:$0xff] %vm657_vm3, %v721_v33  ;;  %v719_v6 = vpop.permute.xlu0 %718 }
  0xb9   : > { %788 = vst.msk [vmem:[#allocation2 + $0x50] sm:$0xff] %vm657_vm3, %v719_v6  ;;  %1023 = vrot.lane.b32.xlu1 %v7440_v48, %s7156_s19 }
  0xba   : > { %1021 = vrot.lane.b32.xlu0 %v7401_v32, %s7156_s19 }
  0xbb   : > { %v725_v7 = vpop.permute.xlu1 %724 }
  0xbc   : > { %791 = vst.msk [vmem:[#allocation2 + $0x68] sm:$0xff] %vm657_vm3, %v725_v7  ;;  %v723_v25 = vpop.permute.xlu0 %722 }
  0xbd   : > { %790 = vst.msk [vmem:[#allocation2 + $0x60] sm:$0xff] %vm657_vm3, %v723_v25  ;;  %1027 = vrot.lane.b32.xlu1 %v7883_v21, %s7156_s19 }
  0xbe   : > { %1025 = vrot.lane.b32.xlu0 %v7428_v44, %s7156_s19 }
  0xbf   : > { %v729_v6 = vpop.permute.xlu1 %728 }
  0xc0   : > { %793 = vst.msk [vmem:[#allocation2 + $0x78] sm:$0xff] %vm657_vm3, %v729_v6  ;;  %v727_v46 = vpop.permute.xlu0 %726 }
  0xc1   : > { %792 = vst.msk [vmem:[#allocation2 + $0x70] sm:$0xff] %vm657_vm3, %v727_v46  ;;  %1097 = vrot.lane.b32.xlu1 %v7479_v60, %s7156_s19 }
  0xc2   : > { %1095 = vrot.lane.b32.xlu0 %v7462_v54, %s7156_s19  ;;  %v7912_v54 = vld [vmem:[%s7330_s11 + $0x80] sm:$0xff] }
  0xc3   : > { %v733_v33 = vpop.permute.xlu1 %732 }
  0xc4   : > { %795 = vst.msk [vmem:[#allocation2 + $0x88] sm:$0xff] %vm657_vm3, %v733_v33  ;;  %v731_v7 = vpop.permute.xlu0 %730 }
  0xc5   : > { %794 = vst.msk [vmem:[#allocation2 + $0x80] sm:$0xff] %vm657_vm3, %v731_v7  ;;  %1101 = vrot.lane.b32.xlu1 %v7494_v63, %s7156_s19 }
  0xc6   : > { %1099 = vrot.lane.b32.xlu0 %v7476_v59, %s7156_s19 }
  0xc7   : > { %v737_v25 = vpop.permute.xlu1 %736 }
  0xc8   : > { %797 = vst.msk [vmem:[#allocation2 + $0x98] sm:$0xff] %vm657_vm3, %v737_v25  ;;  %v735_v6 = vpop.permute.xlu0 %734 }
  0xc9   : > { %796 = vst.msk [vmem:[#allocation2 + $0x90] sm:$0xff] %vm657_vm3, %v735_v6  ;;  %1105 = vrot.lane.b32.xlu1 %v7507_v4, %s7156_s19 }
  0xca   : > { %1103 = vrot.lane.b32.xlu0 %v7491_v62, %s7156_s19 }
  0xcb   : > { %v741_v46 = vpop.permute.xlu1 %740 }
  0xcc   : > { %799 = vst.msk [vmem:[#allocation2 + $0xa8] sm:$0xff] %vm657_vm3, %v741_v46  ;;  %v739_v33 = vpop.permute.xlu0 %738 }
  0xcd   : > { %798 = vst.msk [vmem:[#allocation2 + $0xa0] sm:$0xff] %vm657_vm3, %v739_v33  ;;  %1109 = vrot.lane.b32.xlu1 %v7912_v54, %s7156_s19 }
  0xce   : > { %1107 = vrot.lane.b32.xlu0 %v7504_v3, %s7156_s19 }
  0xcf   : > { %v745_v7 = vpop.permute.xlu1 %744 }
  0xd0   : > { %801 = vst.msk [vmem:[#allocation2 + $0xb8] sm:$0xff] %vm657_vm3, %v745_v7  ;;  %v743_v25 = vpop.permute.xlu0 %742 }
  0xd1   : > { %800 = vst.msk [vmem:[#allocation2 + $0xb0] sm:$0xff] %vm657_vm3, %v743_v25  ;;  %1113 = vrot.lane.b32.xlu1 %v7544_v18, %s7156_s19 }
  0xd2   : > { %1111 = vrot.lane.b32.xlu0 %v7524_v10, %s7156_s19  ;;  %v7939_v10 = vld [vmem:[%s7330_s11 + $0x120] sm:$0xff] }
  0xd3   : > { %v749_v6 = vpop.permute.xlu1 %748 }
  0xd4   : > { %803 = vst.msk [vmem:[#allocation2 + $0xc8] sm:$0xff] %vm657_vm3, %v749_v6  ;;  %v747_v46 = vpop.permute.xlu0 %746 }
  0xd5   : > { %802 = vst.msk [vmem:[#allocation2 + $0xc0] sm:$0xff] %vm657_vm3, %v747_v46  ;;  %1117 = vrot.lane.b32.xlu1 %v7564_v23, %s7156_s19 }
  0xd6   : > { %1115 = vrot.lane.b32.xlu0 %v7541_v17, %s7156_s19 }
  0xd7   : > { %v753_v33 = vpop.permute.xlu1 %752 }
  0xd8   : > { %805 = vst.msk [vmem:[#allocation2 + $0xd8] sm:$0xff] %vm657_vm3, %v753_v33  ;;  %v751_v7 = vpop.permute.xlu0 %750 }
  0xd9   : > { %804 = vst.msk [vmem:[#allocation2 + $0xd0] sm:$0xff] %vm657_vm3, %v751_v7  ;;  %1121 = vrot.lane.b32.xlu1 %v7582_v28, %s7156_s19 }
  0xda   : > { %1119 = vrot.lane.b32.xlu0 %v7561_v22, %s7156_s19 }
  0xdb   : > { %v757_v25 = vpop.permute.xlu1 %756 }
  0xdc   : > { %807 = vst.msk [vmem:[#allocation2 + $0xe8] sm:$0xff] %vm657_vm3, %v757_v25  ;;  %v755_v6 = vpop.permute.xlu0 %754 }
  0xdd   : > { %806 = vst.msk [vmem:[#allocation2 + $0xe0] sm:$0xff] %vm657_vm3, %v755_v6  ;;  %1125 = vrot.lane.b32.xlu1 %v7939_v10, %s7156_s19 }
  0xde   : > { %1123 = vrot.lane.b32.xlu0 %v7579_v26, %s7156_s19 }
  0xdf   : > { %v761_v46 = vpop.permute.xlu1 %760 }
  0xe0   : > { %809 = vst.msk [vmem:[#allocation2 + $0xf8] sm:$0xff] %vm657_vm3, %v761_v46  ;;  %v759_v33 = vpop.permute.xlu0 %758 }
  0xe1   : > { %808 = vst.msk [vmem:[#allocation2 + $0xf0] sm:$0xff] %vm657_vm3, %v759_v33  ;;  %1129 = vrot.lane.b32.xlu1 %v7618_v41, %s7156_s19  ;;  %vm3410_vm3 = vcmask 523744  }
  0xe2   : > { %1127 = vrot.lane.b32.xlu0 %v7598_v34, %s7156_s19  ;;  %v7966_v34 = vld [vmem:[%s7330_s11 + $0x1c0] sm:$0xff] }
  0xe3   : > { %v838_v7 = vpop.permute.xlu1 %837  ;;  %11313 = vst [vmem:[#allocation39_spill] sm:$0xff] %v7966_v34 }
  0xe4   : > { %861 = vst.msk [vmem:[#allocation2 + $0x8] sm:$0xff] %vm859_vm4, %v838_v7  ;;  %v836_v25 = vpop.permute.xlu0 %835 }
  0xe5   : > { %860 = vst.msk [vmem:[#allocation2] sm:$0xff] %vm859_vm4, %v836_v25  ;;  %1133 = vrot.lane.b32.xlu1 %v7638_v52, %s7156_s19 }
  0xe6   : > { %1131 = vrot.lane.b32.xlu0 %v7615_v40, %s7156_s19 }
  0xe7   : > { %v842_v6 = vpop.permute.xlu1 %841 }
  0xe8   : > { %863 = vst.msk [vmem:[#allocation2 + $0x18] sm:$0xff] %vm859_vm4, %v842_v6  ;;  %v840_v46 = vpop.permute.xlu0 %839  ;;  %v464_v6 = vld [vmem:[%s7345_s0 + $0x88] sm:$0x3] }
  0xe9   : > { %862 = vst.msk [vmem:[#allocation2 + $0x10] sm:$0xff] %vm859_vm4, %v840_v46  ;;  %1137 = vrot.lane.b32.xlu1 %v7656_v58, %s7156_s19 }
  0xea   : > { %1135 = vrot.lane.b32.xlu0 %v7635_v49, %s7156_s19 }
  0xeb   : > { %v846_v33 = vpop.permute.xlu1 %845 }
  0xec   : > { %865 = vst.msk [vmem:[#allocation2 + $0x28] sm:$0xff] %vm859_vm4, %v846_v33  ;;  %v844_v7 = vpop.permute.xlu0 %843  ;;  %v7982_v33 = vmul.f32 %v7340_v2, %v464_v6 }
  0xed   : > { %864 = vst.msk [vmem:[#allocation2 + $0x20] sm:$0xff] %vm859_vm4, %v844_v7  ;;  %1141 = vrot.lane.b32.xlu1 %v7966_v34, %s7156_s19 }
  0xee   : > { %1139 = vrot.lane.b32.xlu0 %v7653_v57, %s7156_s19  ;;  %s7165_s19 = smov 48  }
  0xef   : > { %v850_v25 = vpop.permute.xlu1 %849 }
  0xf0   : > { %867 = vst.msk [vmem:[#allocation2 + $0x38] sm:$0xff] %vm859_vm4, %v850_v25  ;;  %v848_v46 = vpop.permute.xlu0 %847  ;;  %v1192_v25 = vrot.slane %v7883_v21, 1 }
  0xf1   : > { %866 = vst.msk [vmem:[#allocation2 + $0x30] sm:$0xff] %vm859_vm4, %v848_v46  ;;  %1197 = vrot.lane.b32.xlu1 %v7397_v30, %s7157_s17  ;;  %v1193_v46 = vrot.slane %v7982_v33, 1 }
  0xf2   : > { %1195 = vrot.lane.b32.xlu0 %v7433_v45, %s7157_s17 }
  0xf3   : > { %v919_v7 = vpop.permute.xlu1 %918 }
  0xf4   : > { %989 = vst.msk [vmem:[#allocation2 + $0x48] sm:$0xff] %vm859_vm4, %v919_v7  ;;  %v917_v34 = vpop.permute.xlu0 %916 }
  0xf5   : > { %988 = vst.msk [vmem:[#allocation2 + $0x40] sm:$0xff] %vm859_vm4, %v917_v34  ;;  %1201 = vrot.lane.b32.xlu1 %v7465_v55, %s7157_s17  ;;  %v7999_v34 = vsel %vm608_vm0, %v1192_v25, %v1193_v46 }
  0xf6   : > { %1199 = vrot.lane.b32.xlu0 %v7414_v37, %s7157_s17 }
  0xf7   : > { %v923_v45 = vpop.permute.xlu1 %922 }
  0xf8   : > { %991 = vst.msk [vmem:[#allocation2 + $0x58] sm:$0xff] %vm859_vm4, %v923_v45  ;;  %v921_v6 = vpop.permute.xlu0 %920 }
  0xf9   : > { %990 = vst.msk [vmem:[#allocation2 + $0x50] sm:$0xff] %vm859_vm4, %v921_v6  ;;  %1205 = vrot.lane.b32.xlu1 %v7497_v1, %s7157_s17 }
  0xfa   : > { %1203 = vrot.lane.b32.xlu0 %v7457_v51, %s7157_s17 }
  0xfb   : > { %v927_v7 = vpop.permute.xlu1 %926 }
  0xfc   : > { %993 = vst.msk [vmem:[#allocation2 + $0x68] sm:$0xff] %vm859_vm4, %v927_v7  ;;  %v925_v55 = vpop.permute.xlu0 %924 }
  0xfd   : > { %992 = vst.msk [vmem:[#allocation2 + $0x60] sm:$0xff] %vm859_vm4, %v925_v55  ;;  %1209 = vrot.lane.b32.xlu1 %v7999_v34, %s7157_s17 }
  0xfe   : > { %1207 = vrot.lane.b32.xlu0 %v7484_v61, %s7157_s17 }
  0xff   : > { %v931_v45 = vpop.permute.xlu1 %930 }
 0x100   : > { %995 = vst.msk [vmem:[#allocation2 + $0x78] sm:$0xff] %vm859_vm4, %v931_v45  ;;  %v929_v6 = vpop.permute.xlu0 %928 }
 0x101   : > { %994 = vst.msk [vmem:[#allocation2 + $0x70] sm:$0xff] %vm859_vm4, %v929_v6  ;;  %1278 = vrot.lane.b32.xlu1 %v7521_v8, %s7157_s17  ;;  %v11315_v6 = vld [vmem:[#allocation14_spill] sm:$0xff] }
 0x102   : > { %1276 = vrot.lane.b32.xlu0 %v7333_v0, %s7157_s17  ;;  %v8026_v0 = vld [vmem:[%s7330_s11 + $0x81] sm:$0xff] }
 0x103   : > { %v935_v55 = vpop.permute.xlu1 %934 }
 0x104   : > { %997 = vst.msk [vmem:[#allocation2 + $0x88] sm:$0xff] %vm859_vm4, %v935_v55  ;;  %v933_v25 = vpop.permute.xlu0 %932 }
 0x105   : > { %996 = vst.msk [vmem:[#allocation2 + $0x80] sm:$0xff] %vm859_vm4, %v933_v25  ;;  %1282 = vrot.lane.b32.xlu1 %v7538_v16, %s7157_s17 }
 0x106   : > { %1280 = vrot.lane.b32.xlu0 %v7518_v5, %s7157_s17 }
 0x107   : > { %v939_v46 = vpop.permute.xlu1 %938 }
 0x108   : > { %999 = vst.msk [vmem:[#allocation2 + $0x98] sm:$0xff] %vm859_vm4, %v939_v46  ;;  %v937_v7 = vpop.permute.xlu0 %936  ;;  %v8053_v46 = vld [vmem:[%s7330_s11 + $0x121] sm:$0xff] }
 0x109   : > { %998 = vst.msk [vmem:[#allocation2 + $0x90] sm:$0xff] %vm859_vm4, %v937_v7  ;;  %1286 = vrot.lane.b32.xlu1 %v7558_v20, %s7157_s17 }
 0x10a   : > { %1284 = vrot.lane.b32.xlu0 %v7535_v15, %s7157_s17 }
 0x10b   : > { %v943_v8 = vpop.permute.xlu1 %942 }
 0x10c   : > { %1001 = vst.msk [vmem:[#allocation2 + $0xa8] sm:$0xff] %vm859_vm4, %v943_v8  ;;  %v941_v16 = vpop.permute.xlu0 %940 }
 0x10d   : > { %1000 = vst.msk [vmem:[#allocation2 + $0xa0] sm:$0xff] %vm859_vm4, %v941_v16  ;;  %1290 = vrot.lane.b32.xlu1 %v8026_v0, %s7157_s17  ;;  %v11318_v16 = vld [vmem:[#allocation17_spill] sm:$0xff] }
 0x10e   : > { %1288 = vrot.lane.b32.xlu0 %v7555_v19, %s7157_s17  ;;  %v11314_v19 = vld [vmem:[#allocation16_spill] sm:$0xff] }
 0x10f   : > { %v947_v5 = vpop.permute.xlu1 %946 }
 0x110   : > { %1003 = vst.msk [vmem:[#allocation2 + $0xb8] sm:$0xff] %vm859_vm4, %v947_v5  ;;  %v945_v20 = vpop.permute.xlu0 %944 }
 0x111   : > { %1002 = vst.msk [vmem:[#allocation2 + $0xb0] sm:$0xff] %vm859_vm4, %v945_v20  ;;  %1294 = vrot.lane.b32.xlu1 %v7595_v31, %s7157_s17  ;;  %v11317_v31 = vld [vmem:[#allocation15_spill] sm:$0xff] }
 0x112   : > { %1292 = vrot.lane.b32.xlu0 %v7575_v24, %s7157_s17  ;;  %v11316_v24 = vld [vmem:[#allocation18_spill] sm:$0xff] }
 0x113   : > { %v951_v15 = vpop.permute.xlu1 %950 }
 0x114   : > { %1005 = vst.msk [vmem:[#allocation2 + $0xc8] sm:$0xff] %vm859_vm4, %v951_v15  ;;  %v949_v45 = vpop.permute.xlu0 %948  ;;  %v11319_v15 = vld [vmem:[#allocation21_spill] sm:$0xff] }
 0x115   : > { %1004 = vst.msk [vmem:[#allocation2 + $0xc0] sm:$0xff] %vm859_vm4, %v949_v45  ;;  %1298 = vrot.lane.b32.xlu1 %v11314_v19, %s7157_s17  ;;  %v11320_v45 = vld [vmem:[#allocation19_spill] sm:$0xff] }
 0x116   : > { %1296 = vrot.lane.b32.xlu0 %v11315_v6, %s7157_s17 }
 0x117   : > { %v955_v55 = vpop.permute.xlu1 %954 }
 0x118   : > { %1007 = vst.msk [vmem:[#allocation2 + $0xd8] sm:$0xff] %vm859_vm4, %v955_v55  ;;  %v953_v25 = vpop.permute.xlu0 %952  ;;  %v11321_v55 = vld [vmem:[#allocation23_spill] sm:$0xff] }
 0x119   : > { %1006 = vst.msk [vmem:[#allocation2 + $0xd0] sm:$0xff] %vm859_vm4, %v953_v25  ;;  %1302 = vrot.lane.b32.xlu1 %v11316_v24, %s7157_s17  ;;  %v11322_v25 = vld [vmem:[#allocation20_spill] sm:$0xff] }
 0x11a   : > { %1300 = vrot.lane.b32.xlu0 %v11317_v31, %s7157_s17 }
 0x11b   : > { %v959_v7 = vpop.permute.xlu1 %958 }
 0x11c   : > { %1009 = vst.msk [vmem:[#allocation2 + $0xe8] sm:$0xff] %vm859_vm4, %v959_v7  ;;  %v957_v8 = vpop.permute.xlu0 %956  ;;  %v11323_v7 = vld [vmem:[#allocation22_spill] sm:$0xff] }
 0x11d   : > { %1008 = vst.msk [vmem:[#allocation2 + $0xe0] sm:$0xff] %vm859_vm4, %v957_v8  ;;  %1306 = vrot.lane.b32.xlu1 %v8053_v46, %s7157_s17  ;;  %v8080_v8 = vld [vmem:[%s7330_s11 + $0x1c1] sm:$0xff] }
 0x11e   : > { %1304 = vrot.lane.b32.xlu0 %v11318_v16, %s7157_s17 }
 0x11f   : > { %v963_v5 = vpop.permute.xlu1 %962 }
 0x120   : > { %1011 = vst.msk [vmem:[#allocation2 + $0xf8] sm:$0xff] %vm859_vm4, %v963_v5  ;;  %v961_v20 = vpop.permute.xlu0 %960 }
 0x121   : > { %1010 = vst.msk [vmem:[#allocation2 + $0xf0] sm:$0xff] %vm859_vm4, %v961_v20  ;;  %1310 = vrot.lane.b32.xlu1 %v11319_v15, %s7157_s17  ;;  %vm3603_vm4 = vcmask 556544  }
 0x122   : > { %1308 = vrot.lane.b32.xlu0 %v11320_v45, %s7157_s17 }
 0x123   : > { %v1016_v19 = vpop.permute.xlu1 %1015 }
 0x124   : > { %1039 = vst.msk [vmem:[#allocation2 + $0x8] sm:$0xff] %vm1037_vm5, %v1016_v19  ;;  %v1014_v6 = vpop.permute.xlu0 %1013  ;;  %v1373_v19 = vrot.slane %v7982_v33, 2 }
 0x125   : > { %1038 = vst.msk [vmem:[#allocation2] sm:$0xff] %vm1037_vm5, %v1014_v6  ;;  %1314 = vrot.lane.b32.xlu1 %v11321_v55, %s7157_s17 }
 0x126   : > { %1312 = vrot.lane.b32.xlu0 %v11322_v25, %s7157_s17 }
 0x127   : > { %v1020_v24 = vpop.permute.xlu1 %1019 }
 0x128   : > { %1041 = vst.msk [vmem:[#allocation2 + $0x18] sm:$0xff] %vm1037_vm5, %v1020_v24  ;;  %v1018_v31 = vpop.permute.xlu0 %1017 }
 0x129   : > { %1040 = vst.msk [vmem:[#allocation2 + $0x10] sm:$0xff] %vm1037_vm5, %v1018_v31  ;;  %1318 = vrot.lane.b32.xlu1 %v7691_v11, %s7157_s17 }
 0x12a   : > { %1316 = vrot.lane.b32.xlu0 %v11323_v7, %s7157_s17 }
 0x12b   : > { %v1024_v16 = vpop.permute.xlu1 %1023 }
 0x12c   : > { %1043 = vst.msk [vmem:[#allocation2 + $0x28] sm:$0xff] %vm1037_vm5, %v1024_v16  ;;  %v1022_v5 = vpop.permute.xlu0 %1021 }
 0x12d   : > { %1042 = vst.msk [vmem:[#allocation2 + $0x20] sm:$0xff] %vm1037_vm5, %v1022_v5  ;;  %1322 = vrot.lane.b32.xlu1 %v8080_v8, %s7157_s17  ;;  %v11324_v5 = vld [vmem:[#allocation26_spill] sm:$0xff] }
 0x12e   : > { %1320 = vrot.lane.b32.xlu0 %v7686_v56, %s7157_s17  ;;  %v1372_v56 = vrot.slane %v7883_v21, 2  ;;  %s7166_s17 = smov 52  }
 0x12f   : > { %v1028_v20 = vpop.permute.xlu1 %1027 }
 0x130   : > { %1045 = vst.msk [vmem:[#allocation2 + $0x38] sm:$0xff] %vm1037_vm5, %v1028_v20  ;;  %v1026_v11 = vpop.permute.xlu0 %1025  ;;  %v8109_v55 = vsel %vm810_vm2, %v1372_v56, %v1373_v19  ;;  %v11325_v20 = vld [vmem:[#allocation24_spill] sm:$0xff] }
 0x131   : > { %1044 = vst.msk [vmem:[#allocation2 + $0x30] sm:$0xff] %vm1037_vm5, %v1026_v11  ;;  %1377 = vrot.lane.b32.xlu1 %v7716_v14, %s7158_s20 }
 0x132   : > { %1375 = vrot.lane.b32.xlu0 %v7700_v35, %s7158_s20 }
 0x133   : > { %v1098_v15 = vpop.permute.xlu1 %1097 }
 0x134   : > { %1168 = vst.msk [vmem:[#allocation2 + $0x48] sm:$0xff] %vm1037_vm5, %v1098_v15  ;;  %v1096_v45 = vpop.permute.xlu0 %1095 }
 0x135   : > { %1167 = vst.msk [vmem:[#allocation2 + $0x40] sm:$0xff] %vm1037_vm5, %v1096_v45  ;;  %1381 = vrot.lane.b32.xlu1 %v7730_v42, %s7158_s20  ;;  %v8136_v45 = vld [vmem:[%s7330_s11 + $0x82] sm:$0xff] }
 0x136   : > { %1379 = vrot.lane.b32.xlu0 %v7711_v12, %s7158_s20 }
 0x137   : > { %v1102_v6 = vpop.permute.xlu1 %1101 }
 0x138   : > { %1170 = vst.msk [vmem:[#allocation2 + $0x58] sm:$0xff] %vm1037_vm5, %v1102_v6  ;;  %v1100_v35 = vpop.permute.xlu0 %1099  ;;  %v11328_v6 = vld [vmem:[#allocation27_spill] sm:$0xff] }
 0x139   : > { %1169 = vst.msk [vmem:[#allocation2 + $0x50] sm:$0xff] %vm1037_vm5, %v1100_v35  ;;  %1385 = vrot.lane.b32.xlu1 %v7742_v47, %s7158_s20 }
 0x13a   : > { %1383 = vrot.lane.b32.xlu0 %v7725_v29, %s7158_s20 }
 0x13b   : > { %v1106_v25 = vpop.permute.xlu1 %1105 }
 0x13c   : > { %1172 = vst.msk [vmem:[#allocation2 + $0x68] sm:$0xff] %vm1037_vm5, %v1106_v25  ;;  %v1104_v24 = vpop.permute.xlu0 %1103 }
 0x13d   : > { %1171 = vst.msk [vmem:[#allocation2 + $0x60] sm:$0xff] %vm1037_vm5, %v1104_v24  ;;  %1389 = vrot.lane.b32.xlu1 %v8109_v55, %s7158_s20  ;;  %v11329_v24 = vld [vmem:[#allocation31_spill] sm:$0xff] }
 0x13e   : > { %1387 = vrot.lane.b32.xlu0 %v7739_v27, %s7158_s20 }
 0x13f   : > { %v1110_v33 = vpop.permute.xlu1 %1109 }
 0x140   : > { %1174 = vst.msk [vmem:[#allocation2 + $0x78] sm:$0xff] %vm1037_vm5, %v1110_v33  ;;  %v1108_v31 = vpop.permute.xlu0 %1107  ;;  %v11330_v33 = vld [vmem:[#allocation29_spill] sm:$0xff] }
 0x141   : > { %1173 = vst.msk [vmem:[#allocation2 + $0x70] sm:$0xff] %vm1037_vm5, %v1108_v31  ;;  %1458 = vrot.lane.b32.xlu1 %v7759_v53, %s7158_s20  ;;  %v11327_v53 = vld [vmem:[#allocation25_spill] sm:$0xff] }
 0x142   : > { %1456 = vrot.lane.b32.xlu0 %v7749_v50, %s7158_s20  ;;  %v11326_v50 = vld [vmem:[#allocation28_spill] sm:$0xff] }
 0x143   : > { %v1114_v7 = vpop.permute.xlu1 %1113 }
 0x144   : > { %1176 = vst.msk [vmem:[#allocation2 + $0x88] sm:$0xff] %vm1037_vm5, %v1114_v7  ;;  %v1112_v16 = vpop.permute.xlu0 %1111 }
 0x145   : > { %1175 = vst.msk [vmem:[#allocation2 + $0x80] sm:$0xff] %vm1037_vm5, %v1112_v16  ;;  %1462 = vrot.lane.b32.xlu1 %v11324_v5, %s7158_s20  ;;  %v11331_v16 = vld [vmem:[#allocation33_spill] sm:$0xff]  ;;  %v11332_v5 = vld [vmem:[#allocation30_spill] sm:$0xff] }
 0x146   : > { %1460 = vrot.lane.b32.xlu0 %v11325_v20, %s7158_s20 }
 0x147   : > { %v1118_v11 = vpop.permute.xlu1 %1117 }
 0x148   : > { %1178 = vst.msk [vmem:[#allocation2 + $0x98] sm:$0xff] %vm1037_vm5, %v1118_v11  ;;  %v1116_v15 = vpop.permute.xlu0 %1115 }
 0x149   : > { %1177 = vst.msk [vmem:[#allocation2 + $0x90] sm:$0xff] %vm1037_vm5, %v1116_v15  ;;  %1466 = vrot.lane.b32.xlu1 %v11326_v50, %s7158_s20  ;;  %v11333_v15 = vld [vmem:[#allocation35_spill] sm:$0xff]  ;;  %v11334_v50 = vld [vmem:[#allocation32_spill] sm:$0xff] }
 0x14a   : > { %1464 = vrot.lane.b32.xlu0 %v11327_v53, %s7158_s20  ;;  %v8163_v53 = vld [vmem:[%s7330_s11 + $0x122] sm:$0xff] }
 0x14b   : > { %v1122_v56 = vpop.permute.xlu1 %1121 }
 0x14c   : > { %1180 = vst.msk [vmem:[#allocation2 + $0xa8] sm:$0xff] %vm1037_vm5, %v1122_v56  ;;  %v1120_v19 = vpop.permute.xlu0 %1119 }
 0x14d   : > { %1179 = vst.msk [vmem:[#allocation2 + $0xa0] sm:$0xff] %vm1037_vm5, %v1120_v19  ;;  %1470 = vrot.lane.b32.xlu1 %v8136_v45, %s7158_s20 }
 0x14e   : > { %1468 = vrot.lane.b32.xlu0 %v11328_v6, %s7158_s20  ;;  %v11335_v6 = vld [vmem:[#allocation34_spill] sm:$0xff] }
 0x14f   : > { %v1126_v35 = vpop.permute.xlu1 %1125 }
 0x150   : > { %1182 = vst.msk [vmem:[#allocation2 + $0xb8] sm:$0xff] %vm1037_vm5, %v1126_v35  ;;  %v1124_v25 = vpop.permute.xlu0 %1123 }
 0x151   : > { %1181 = vst.msk [vmem:[#allocation2 + $0xb0] sm:$0xff] %vm1037_vm5, %v1124_v25  ;;  %1474 = vrot.lane.b32.xlu1 %v11329_v24, %s7158_s20  ;;  %v11336_v24 = vld [vmem:[#allocation38_spill] sm:$0xff] }
 0x152   : > { %1472 = vrot.lane.b32.xlu0 %v11330_v33, %s7158_s20  ;;  %v11337_v33 = vld [vmem:[#allocation36_spill] sm:$0xff] }
 0x153   : > { %v1130_v31 = vpop.permute.xlu1 %1129 }
 0x154   : > { %1184 = vst.msk [vmem:[#allocation2 + $0xc8] sm:$0xff] %vm1037_vm5, %v1130_v31  ;;  %v1128_v7 = vpop.permute.xlu0 %1127 }
 0x155   : > { %1183 = vst.msk [vmem:[#allocation2 + $0xc0] sm:$0xff] %vm1037_vm5, %v1128_v7  ;;  %1478 = vrot.lane.b32.xlu1 %v11331_v16, %s7158_s20  ;;  %v11338_v16 = vld [vmem:[#allocation37_spill] sm:$0xff] }
 0x156   : > { %1476 = vrot.lane.b32.xlu0 %v11332_v5, %s7158_s20 }
 0x157   : > { %v1134_v20 = vpop.permute.xlu1 %1133 }
 0x158   : > { %1186 = vst.msk [vmem:[#allocation2 + $0xd8] sm:$0xff] %vm1037_vm5, %v1134_v20  ;;  %v1132_v11 = vpop.permute.xlu0 %1131 }
 0x159   : > { %1185 = vst.msk [vmem:[#allocation2 + $0xd0] sm:$0xff] %vm1037_vm5, %v1132_v11  ;;  %1482 = vrot.lane.b32.xlu1 %v11333_v15, %s7158_s20  ;;  %v8190_v11 = vld [vmem:[%s7330_s11 + $0x1c2] sm:$0xff] }
 0x15a   : > { %1480 = vrot.lane.b32.xlu0 %v11334_v50, %s7158_s20 }
 0x15b   : > { %v1138_v56 = vpop.permute.xlu1 %1137 }
 0x15c   : > { %1188 = vst.msk [vmem:[#allocation2 + $0xe8] sm:$0xff] %vm1037_vm5, %v1138_v56  ;;  %v1136_v19 = vpop.permute.xlu0 %1135 }
 0x15d   : > { %1187 = vst.msk [vmem:[#allocation2 + $0xe0] sm:$0xff] %vm1037_vm5, %v1136_v19  ;;  %1486 = vrot.lane.b32.xlu1 %v8163_v53, %s7158_s20 }
 0x15e   : > { %1484 = vrot.lane.b32.xlu0 %v11335_v6, %s7158_s20 }
 0x15f   : > { %v1142_v35 = vpop.permute.xlu1 %1141 }
 0x160   : > { %1190 = vst.msk [vmem:[#allocation2 + $0xf8] sm:$0xff] %vm1037_vm5, %v1142_v35  ;;  %v1140_v25 = vpop.permute.xlu0 %1139 }
 0x161   : > { %1189 = vst.msk [vmem:[#allocation2 + $0xf0] sm:$0xff] %vm1037_vm5, %v1140_v25  ;;  %1490 = vrot.lane.b32.xlu1 %v11336_v24, %s7158_s20  ;;  %vm3796_vm5 = vcmask 589344  }
 0x162   : > { %1488 = vrot.lane.b32.xlu0 %v11337_v33, %s7158_s20 }
 0x163   : > { %v1198_v31 = vpop.permute.xlu1 %1197 }
 0x164   : > { %1221 = vst.msk [vmem:[#allocation2 + $0x8] sm:$0xff] %vm1219_vm6, %v1198_v31  ;;  %v1196_v7 = vpop.permute.xlu0 %1195 }
 0x165   : > { %1220 = vst.msk [vmem:[#allocation2] sm:$0xff] %vm1219_vm6, %v1196_v7  ;;  %1494 = vrot.lane.b32.xlu1 %v7845_v38, %s7158_s20 }
 0x166   : > { %1492 = vrot.lane.b32.xlu0 %v11338_v16, %s7158_s20 }
 0x167   : > { %v1202_v5 = vpop.permute.xlu1 %1201 }
 0x168   : > { %1223 = vst.msk [vmem:[#allocation2 + $0x18] sm:$0xff] %vm1219_vm6, %v1202_v5  ;;  %v1200_v20 = vpop.permute.xlu0 %1199 }
 0x169   : > { %1222 = vst.msk [vmem:[#allocation2 + $0x10] sm:$0xff] %vm1219_vm6, %v1200_v20  ;;  %1498 = vrot.lane.b32.xlu1 %v7857_v43, %s7158_s20 }
 0x16a   : > { %1496 = vrot.lane.b32.xlu0 %v7842_v9, %s7158_s20  ;;  %v11339_v9 = vld [vmem:[#allocation12_spill] sm:$0xff] }
 0x16b   : > { %v1206_v15 = vpop.permute.xlu1 %1205 }
 0x16c   : > { %1225 = vst.msk [vmem:[#allocation2 + $0x28] sm:$0xff] %vm1219_vm6, %v1206_v15  ;;  %v1204_v38 = vpop.permute.xlu0 %1203  ;;  %v466_v15 = vld [vmem:[%s7345_s0 + $0x98] sm:$0x3] }
 0x16d   : > { %1224 = vst.msk [vmem:[#allocation2 + $0x20] sm:$0xff] %vm1219_vm6, %v1204_v38  ;;  %1502 = vrot.lane.b32.xlu1 %v8190_v11, %s7158_s20 }
 0x16e   : > { %1500 = vrot.lane.b32.xlu0 %v7854_v36, %s7158_s20  ;;  %v465_v36 = vld [vmem:[%s7345_s0 + $0x90] sm:$0xff]  ;;  %s7161_s0 = smov 32   ;;  %s7167_s20 = smov 56  }
 0x16f   : > { %v1210_v50 = vpop.permute.xlu1 %1209  ;;  %v8216_v35 = vmul.f32 %v7340_v2, %v465_v36  ;;  %v8329_v36 = vld [vmem:[%s7330_s11 + $0x31] sm:$0xff] }
 0x170   : > { %1227 = vst.msk [vmem:[#allocation2 + $0x38] sm:$0xff] %vm1219_vm6, %v1210_v50  ;;  %v1208_v43 = vpop.permute.xlu0 %1207 }
 0x171   : > { %1226 = vst.msk [vmem:[#allocation2 + $0x30] sm:$0xff] %vm1219_vm6, %v1208_v43  ;;  %1555 = vrot.lane.b32.xlu1 %v7366_v13, %s7159_s21  ;;  %v11341_v43 = vld [vmem:[#allocation13_spill] sm:$0xff] }
 0x172   : > { %1553 = vrot.lane.b32.xlu0 %v11339_v9, %s7159_s21 }
 0x173   : > { %v1279_v56 = vpop.permute.xlu1 %1278 }
 0x174   : > { %1349 = vst.msk [vmem:[#allocation2 + $0x48] sm:$0xff] %vm1219_vm6, %v1279_v56  ;;  %v1277_v19 = vpop.permute.xlu0 %1276 }
 0x175   : > { %1348 = vst.msk [vmem:[#allocation2 + $0x40] sm:$0xff] %vm1219_vm6, %v1277_v19  ;;  %1559 = vrot.lane.b32.xlu1 %v7401_v32, %s7159_s21 }
 0x176   : > { %1557 = vrot.lane.b32.xlu0 %v7418_v39, %s7159_s21 }
 0x177   : > { %v1283_v6 = vpop.permute.xlu1 %1282 }
 0x178   : > { %1351 = vst.msk [vmem:[#allocation2 + $0x58] sm:$0xff] %vm1219_vm6, %v1283_v6  ;;  %v1281_v13 = vpop.permute.xlu0 %1280 }
 0x179   : > { %1350 = vst.msk [vmem:[#allocation2 + $0x50] sm:$0xff] %vm1219_vm6, %v1281_v13  ;;  %1563 = vrot.lane.b32.xlu1 %v7428_v44, %s7159_s21  ;;  %v8341_v13 = vld [vmem:[%s7330_s11 + $0x51] sm:$0xff] }
 0x17a   : > { %1561 = vrot.lane.b32.xlu0 %v7440_v48, %s7159_s21 }
 0x17b   : > { %v1287_v32 = vpop.permute.xlu1 %1286 }
 0x17c   : > { %1353 = vst.msk [vmem:[#allocation2 + $0x68] sm:$0xff] %vm1219_vm6, %v1287_v32  ;;  %v1285_v39 = vpop.permute.xlu0 %1284  ;;  %v8344_v32 = vld [vmem:[%s7330_s11 + $0x41] sm:$0xff] }
 0x17d   : > { %1352 = vst.msk [vmem:[#allocation2 + $0x60] sm:$0xff] %vm1219_vm6, %v1285_v39  ;;  %1567 = vrot.lane.b32.xlu1 %v8216_v35, %s7159_s21 }
 0x17e   : > { %1565 = vrot.lane.b32.xlu0 %v7883_v21, %s7159_s21 }
 0x17f   : > { %v1291_v25 = vpop.permute.xlu1 %1290 }
 0x180   : > { %1355 = vst.msk [vmem:[#allocation2 + $0x78] sm:$0xff] %vm1219_vm6, %v1291_v25  ;;  %v1289_v44 = vpop.permute.xlu0 %1288  ;;  %v8353_v25 = vld [vmem:[%s7330_s11 + $0x71] sm:$0xff] }
 0x181   : > { %1354 = vst.msk [vmem:[#allocation2 + $0x70] sm:$0xff] %vm1219_vm6, %v1289_v44  ;;  %1637 = vrot.lane.b32.xlu1 %v7476_v59, %s7159_s21  ;;  %v6309_v59 = vld [vmem:[%s7330_s11 + $0x90] sm:$0xff] }
 0x182   : > { %1635 = vrot.lane.b32.xlu0 %v7479_v60, %s7159_s21 }
 0x183   : > { %v1295_v48 = vpop.permute.xlu1 %1294 }
 0x184   : > { %1357 = vst.msk [vmem:[#allocation2 + $0x88] sm:$0xff] %vm1219_vm6, %v1295_v48  ;;  %v1293_v24 = vpop.permute.xlu0 %1292  ;;  %v8356_v48 = vld [vmem:[%s7330_s11 + $0x61] sm:$0xff] }
 0x185   : > { %1356 = vst.msk [vmem:[#allocation2 + $0x80] sm:$0xff] %vm1219_vm6, %v1293_v24  ;;  %1641 = vrot.lane.b32.xlu1 %v7491_v62, %s7159_s21 }
 0x186   : > { %1639 = vrot.lane.b32.xlu0 %v7494_v63, %s7159_s21 }
 0x187   : > { %v1299_v21 = vpop.permute.xlu1 %1298 }
 0x188   : > { %1359 = vst.msk [vmem:[#allocation2 + $0x98] sm:$0xff] %vm1219_vm6, %v1299_v21  ;;  %v1297_v33 = vpop.permute.xlu0 %1296  ;;  %v6333_v21 = vld [vmem:[%s7330_s11 + $0x91] sm:$0xff] }
 0x189   : > { %1358 = vst.msk [vmem:[#allocation2 + $0x90] sm:$0xff] %vm1219_vm6, %v1297_v33  ;;  %1645 = vrot.lane.b32.xlu1 %v7504_v3, %s7159_s21 }
 0x18a   : > { %1643 = vrot.lane.b32.xlu0 %v7507_v4, %s7159_s21 }
 0x18b   : > { %v1303_v60 = vpop.permute.xlu1 %1302 }
 0x18c   : > { %1361 = vst.msk [vmem:[#allocation2 + $0xa8] sm:$0xff] %vm1219_vm6, %v1303_v60  ;;  %v1301_v62 = vpop.permute.xlu0 %1300  ;;  %v8371_v60 = vld [vmem:[%s7330_s11 + $0xd1] sm:$0xff] }
 0x18d   : > { %1360 = vst.msk [vmem:[#allocation2 + $0xa0] sm:$0xff] %vm1219_vm6, %v1301_v62  ;;  %1649 = vrot.lane.b32.xlu1 %v6309_v59, %s7159_s21 }
 0x18e   : > { %1647 = vrot.lane.b32.xlu0 %v7912_v54, %s7159_s21 }
 0x18f   : > { %v1307_v63 = vpop.permute.xlu1 %1306 }
 0x190   : > { %1363 = vst.msk [vmem:[#allocation2 + $0xb8] sm:$0xff] %vm1219_vm6, %v1307_v63  ;;  %v1305_v31 = vpop.permute.xlu0 %1304  ;;  %v8374_v63 = vld [vmem:[%s7330_s11 + $0xc1] sm:$0xff] }
 0x191   : > { %1362 = vst.msk [vmem:[#allocation2 + $0xb0] sm:$0xff] %vm1219_vm6, %v1305_v31  ;;  %1653 = vrot.lane.b32.xlu1 %v7541_v17, %s7159_s21  ;;  %v6317_v17 = vld [vmem:[%s7330_s11 + $0x130] sm:$0xff] }
 0x192   : > { %1651 = vrot.lane.b32.xlu0 %v7544_v18, %s7159_s21 }
 0x193   : > { %v1311_v3 = vpop.permute.xlu1 %1310 }
 0x194   : > { %1365 = vst.msk [vmem:[#allocation2 + $0xc8] sm:$0xff] %vm1219_vm6, %v1311_v3  ;;  %v1309_v4 = vpop.permute.xlu0 %1308  ;;  %v8383_v3 = vld [vmem:[%s7330_s11 + $0xf1] sm:$0xff] }
 0x195   : > { %1364 = vst.msk [vmem:[#allocation2 + $0xc0] sm:$0xff] %vm1219_vm6, %v1309_v4  ;;  %1657 = vrot.lane.b32.xlu1 %v7561_v22, %s7159_s21  ;;  %v8386_v4 = vld [vmem:[%s7330_s11 + $0xe1] sm:$0xff] }
 0x196   : > { %1655 = vrot.lane.b32.xlu0 %v7564_v23, %s7159_s21 }
 0x197   : > { %v1315_v54 = vpop.permute.xlu1 %1314 }
 0x198   : > { %1367 = vst.msk [vmem:[#allocation2 + $0xd8] sm:$0xff] %vm1219_vm6, %v1315_v54  ;;  %v1313_v7 = vpop.permute.xlu0 %1312 }
 0x199   : > { %1366 = vst.msk [vmem:[#allocation2 + $0xd0] sm:$0xff] %vm1219_vm6, %v1313_v7  ;;  %1661 = vrot.lane.b32.xlu1 %v7579_v26, %s7159_s21  ;;  %v8395_v7 = vld [vmem:[%s7330_s11 + $0x111] sm:$0xff] }
 0x19a   : > { %1659 = vrot.lane.b32.xlu0 %v7582_v28, %s7159_s21 }
 0x19b   : > { %v1319_v18 = vpop.permute.xlu1 %1318 }
 0x19c   : > { %1369 = vst.msk [vmem:[#allocation2 + $0xe8] sm:$0xff] %vm1219_vm6, %v1319_v18  ;;  %v1317_v22 = vpop.permute.xlu0 %1316  ;;  %v8398_v18 = vld [vmem:[%s7330_s11 + $0x101] sm:$0xff] }
 0x19d   : > { %1368 = vst.msk [vmem:[#allocation2 + $0xe0] sm:$0xff] %vm1219_vm6, %v1317_v22  ;;  %1665 = vrot.lane.b32.xlu1 %v6317_v17, %s7159_s21 }
 0x19e   : > { %1663 = vrot.lane.b32.xlu0 %v7939_v10, %s7159_s21 }
 0x19f   : > { %v1323_v23 = vpop.permute.xlu1 %1322 }
 0x1a0   : > { %1371 = vst.msk [vmem:[#allocation2 + $0xf8] sm:$0xff] %vm1219_vm6, %v1323_v23  ;;  %v1321_v16 = vpop.permute.xlu0 %1320  ;;  %v6341_v23 = vld [vmem:[%s7330_s11 + $0x131] sm:$0xff] }
 0x1a1   : > { %1370 = vst.msk [vmem:[#allocation2 + $0xf0] sm:$0xff] %vm1219_vm6, %v1321_v16  ;;  %1669 = vrot.lane.b32.xlu1 %v7615_v40, %s7159_s21  ;;  %vm3950_vm6 = vcmask 622144  }
 0x1a2   : > { %1667 = vrot.lane.b32.xlu0 %v7618_v41, %s7159_s21  ;;  %v6325_v41 = vld [vmem:[%s7330_s11 + $0x1d0] sm:$0xff] }
 0x1a3   : > { %v1378_v26 = vpop.permute.xlu1 %1377 }
 0x1a4   : > { %1401 = vst.msk [vmem:[#allocation2 + $0x8] sm:$0xff] %vm1399_vm7, %v1378_v26  ;;  %v1376_v28 = vpop.permute.xlu0 %1375 }
 0x1a5   : > { %1400 = vst.msk [vmem:[#allocation2] sm:$0xff] %vm1399_vm7, %v1376_v28  ;;  %1673 = vrot.lane.b32.xlu1 %v7635_v49, %s7159_s21  ;;  %v8413_v28 = vld [vmem:[%s7330_s11 + $0x171] sm:$0xff] }
 0x1a6   : > { %1671 = vrot.lane.b32.xlu0 %v7638_v52, %s7159_s21  ;;  %v11340_v52 = vld [vmem:[#allocation39_spill] sm:$0xff] }
 0x1a7   : > { %v1382_v10 = vpop.permute.xlu1 %1381 }
 0x1a8   : > { %1403 = vst.msk [vmem:[#allocation2 + $0x18] sm:$0xff] %vm1399_vm7, %v1382_v10  ;;  %v1380_v40 = vpop.permute.xlu0 %1379 }
 0x1a9   : > { %1402 = vst.msk [vmem:[#allocation2 + $0x10] sm:$0xff] %vm1399_vm7, %v1380_v40  ;;  %1677 = vrot.lane.b32.xlu1 %v7653_v57, %s7159_s21  ;;  %v8416_v40 = vld [vmem:[%s7330_s11 + $0x161] sm:$0xff] }
 0x1aa   : > { %1675 = vrot.lane.b32.xlu0 %v7656_v58, %s7159_s21  ;;  %v8306_v58 = vmul.f32 %v7340_v2, %v466_v15 }
 0x1ab   : > { %v1386_v5 = vpop.permute.xlu1 %1385 }
 0x1ac   : > { %1405 = vst.msk [vmem:[#allocation2 + $0x28] sm:$0xff] %vm1399_vm7, %v1386_v5  ;;  %v1384_v49 = vpop.permute.xlu0 %1383 }
 0x1ad   : > { %1404 = vst.msk [vmem:[#allocation2 + $0x20] sm:$0xff] %vm1399_vm7, %v1384_v49  ;;  %1681 = vrot.lane.b32.xlu1 %v6325_v41, %s7159_s21  ;;  %v8428_v49 = vld [vmem:[%s7330_s11 + $0x181] sm:$0xff] }
 0x1ae   : > { %1679 = vrot.lane.b32.xlu0 %v11340_v52, %s7159_s21  ;;  %s7168_s21 = smov 60  }
 0x1af   : > { %v1390_v20 = vpop.permute.xlu1 %1389 }
 0x1b0   : > { %1407 = vst.msk [vmem:[#allocation2 + $0x38] sm:$0xff] %vm1399_vm7, %v1390_v20  ;;  %v1388_v57 = vpop.permute.xlu0 %1387  ;;  %v8437_v20 = vld [vmem:[%s7330_s11 + $0x1b1] sm:$0xff] }
 0x1b1   : > { %1406 = vst.msk [vmem:[#allocation2 + $0x30] sm:$0xff] %vm1399_vm7, %v1388_v57  ;;  %1737 = vrot.lane.b32.xlu1 %v7414_v37, %s7160_s23  ;;  %v1732_v37 = vrot.slane %v8216_v35, 1  ;;  %v8440_v57 = vld [vmem:[%s7330_s11 + $0x1a1] sm:$0xff] }
 0x1b2   : > { %1735 = vrot.lane.b32.xlu0 %v7397_v30, %s7160_s23  ;;  %v1733_v30 = vrot.slane %v8306_v58, 1 }
 0x1b3   : > { %v1459_v38 = vpop.permute.xlu1 %1458 }
 0x1b4   : > { %1529 = vst.msk [vmem:[#allocation2 + $0x48] sm:$0xff] %vm1399_vm7, %v1459_v38  ;;  %v1457_v50 = vpop.permute.xlu0 %1456 }
 0x1b5   : > { %1528 = vst.msk [vmem:[#allocation2 + $0x40] sm:$0xff] %vm1399_vm7, %v1457_v50  ;;  %1741 = vrot.lane.b32.xlu1 %v7457_v51, %s7160_s23  ;;  %v1734_v51 = vsel %vm608_vm0, %v1732_v37, %v1733_v30  ;;  %v6349_v50 = vld [vmem:[%s7330_s11 + $0x1d1] sm:$0xff] }
 0x1b6   : > { %1739 = vrot.lane.b32.xlu0 %v11341_v43, %s7160_s23 }
 0x1b7   : > { %v1463_v2 = vpop.permute.xlu1 %1462 }
 0x1b8   : > { %1531 = vst.msk [vmem:[#allocation2 + $0x58] sm:$0xff] %vm1399_vm7, %v1463_v2  ;;  %v1461_v9 = vpop.permute.xlu0 %1460 }
 0x1b9   : > { %1530 = vst.msk [vmem:[#allocation2 + $0x50] sm:$0xff] %vm1399_vm7, %v1461_v9  ;;  %1745 = vrot.lane.b32.xlu1 %v7484_v61, %s7160_s23 }
 0x1ba   : > { %1743 = vrot.lane.b32.xlu0 %v7497_v1, %s7160_s23  ;;  %v8332_v1 = vld [vmem:[%s7330_s11 + $0x21] sm:$0xff] }
 0x1bb   : > { %v1467_v56 = vpop.permute.xlu1 %1466 }
 0x1bc   : > { %1533 = vst.msk [vmem:[#allocation2 + $0x68] sm:$0xff] %vm1399_vm7, %v1467_v56  ;;  %v1465_v19 = vpop.permute.xlu0 %1464 }
 0x1bd   : > { %1532 = vst.msk [vmem:[#allocation2 + $0x60] sm:$0xff] %vm1399_vm7, %v1465_v19  ;;  %1749 = vrot.lane.b32.xlu1 %v1734_v51, %s7160_s23 }
 0x1be   : > { %1747 = vrot.lane.b32.xlu0 %v7999_v34, %s7160_s23 }
 0x1bf   : > { %v1471_v61 = vpop.permute.xlu1 %1470 }
 0x1c0   : > { %1535 = vst.msk [vmem:[#allocation2 + $0x78] sm:$0xff] %vm1399_vm7, %v1471_v61  ;;  %v1469_v6 = vpop.permute.xlu0 %1468  ;;  %v8493_v61 = vld [vmem:[%s7330_s11 + $0x52] sm:$0xff] }
 0x1c1   : > { %1534 = vst.msk [vmem:[#allocation2 + $0x70] sm:$0xff] %vm1399_vm7, %v1469_v6  ;;  %1818 = vrot.lane.b32.xlu1 %v8329_v36, %s7160_s23  ;;  %v8496_v6 = vld [vmem:[%s7330_s11 + $0x42] sm:$0xff] }
 0x1c2   : > { %1816 = vrot.lane.b32.xlu0 %v8332_v1, %s7160_s23 }
 0x1c3   : > { %v1475_v34 = vpop.permute.xlu1 %1474 }
 0x1c4   : > { %1537 = vst.msk [vmem:[#allocation2 + $0x88] sm:$0xff] %vm1399_vm7, %v1475_v34  ;;  %v1473_v39 = vpop.permute.xlu0 %1472 }
 0x1c5   : > { %1536 = vst.msk [vmem:[#allocation2 + $0x80] sm:$0xff] %vm1399_vm7, %v1473_v39  ;;  %1822 = vrot.lane.b32.xlu1 %v8341_v13, %s7160_s23  ;;  %v8505_v39 = vld [vmem:[%s7330_s11 + $0x72] sm:$0xff] }
 0x1c6   : > { %1820 = vrot.lane.b32.xlu0 %v8344_v32, %s7160_s23 }
 0x1c7   : > { %v1479_v44 = vpop.permute.xlu1 %1478 }
 0x1c8   : > { %1539 = vst.msk [vmem:[#allocation2 + $0x98] sm:$0xff] %vm1399_vm7, %v1479_v44  ;;  %v1477_v24 = vpop.permute.xlu0 %1476 }
 0x1c9   : > { %1538 = vst.msk [vmem:[#allocation2 + $0x90] sm:$0xff] %vm1399_vm7, %v1477_v24  ;;  %1826 = vrot.lane.b32.xlu1 %v8353_v25, %s7160_s23  ;;  %v8508_v24 = vld [vmem:[%s7330_s11 + $0x62] sm:$0xff] }
 0x1ca   : > { %1824 = vrot.lane.b32.xlu0 %v8356_v48, %s7160_s23 }
 0x1cb   : > { %v1483_v33 = vpop.permute.xlu1 %1482 }
 0x1cc   : > { %1541 = vst.msk [vmem:[#allocation2 + $0xa8] sm:$0xff] %vm1399_vm7, %v1483_v33  ;;  %v1481_v59 = vpop.permute.xlu0 %1480  ;;  %v6357_v33 = vld [vmem:[%s7330_s11 + $0x92] sm:$0xff] }
 0x1cd   : > { %1540 = vst.msk [vmem:[#allocation2 + $0xa0] sm:$0xff] %vm1399_vm7, %v1481_v59  ;;  %1830 = vrot.lane.b32.xlu1 %v6333_v21, %s7160_s23 }
 0x1ce   : > { %1828 = vrot.lane.b32.xlu0 %v8026_v0, %s7160_s23 }
 0x1cf   : > { %v1487_v62 = vpop.permute.xlu1 %1486 }
 0x1d0   : > { %1543 = vst.msk [vmem:[#allocation2 + $0xb8] sm:$0xff] %vm1399_vm7, %v1487_v62  ;;  %v1485_v31 = vpop.permute.xlu0 %1484 }
 0x1d1   : > { %1542 = vst.msk [vmem:[#allocation2 + $0xb0] sm:$0xff] %vm1399_vm7, %v1485_v31  ;;  %1834 = vrot.lane.b32.xlu1 %v8371_v60, %s7160_s23  ;;  %v8523_v31 = vld [vmem:[%s7330_s11 + $0xd2] sm:$0xff] }
 0x1d2   : > { %1832 = vrot.lane.b32.xlu0 %v8374_v63, %s7160_s23 }
 0x1d3   : > { %v1491_v0 = vpop.permute.xlu1 %1490 }
 0x1d4   : > { %1545 = vst.msk [vmem:[#allocation2 + $0xc8] sm:$0xff] %vm1399_vm7, %v1491_v0  ;;  %v1489_v54 = vpop.permute.xlu0 %1488 }
 0x1d5   : > { %1544 = vst.msk [vmem:[#allocation2 + $0xc0] sm:$0xff] %vm1399_vm7, %v1489_v54  ;;  %1838 = vrot.lane.b32.xlu1 %v8383_v3, %s7160_s23  ;;  %v8526_v54 = vld [vmem:[%s7330_s11 + $0xc2] sm:$0xff] }
 0x1d6   : > { %1836 = vrot.lane.b32.xlu0 %v8386_v4, %s7160_s23 }
 0x1d7   : > { %v1495_v17 = vpop.permute.xlu1 %1494 }
 0x1d8   : > { %1547 = vst.msk [vmem:[#allocation2 + $0xd8] sm:$0xff] %vm1399_vm7, %v1495_v17  ;;  %v1493_v22 = vpop.permute.xlu0 %1492 }
 0x1d9   : > { %1546 = vst.msk [vmem:[#allocation2 + $0xd0] sm:$0xff] %vm1399_vm7, %v1493_v22  ;;  %1842 = vrot.lane.b32.xlu1 %v8395_v7, %s7160_s23  ;;  %v8535_v22 = vld [vmem:[%s7330_s11 + $0xf2] sm:$0xff] }
 0x1da   : > { %1840 = vrot.lane.b32.xlu0 %v8398_v18, %s7160_s23 }
 0x1db   : > { %v1499_v16 = vpop.permute.xlu1 %1498 }
 0x1dc   : > { %1549 = vst.msk [vmem:[#allocation2 + $0xe8] sm:$0xff] %vm1399_vm7, %v1499_v16  ;;  %v1497_v26 = vpop.permute.xlu0 %1496 }
 0x1dd   : > { %1548 = vst.msk [vmem:[#allocation2 + $0xe0] sm:$0xff] %vm1399_vm7, %v1497_v26  ;;  %1846 = vrot.lane.b32.xlu1 %v6341_v23, %s7160_s23  ;;  %v8538_v23 = vld [vmem:[%s7330_s11 + $0xe2] sm:$0xff]  ;;  %v8547_v26 = vld [vmem:[%s7330_s11 + $0x112] sm:$0xff] }
 0x1de   : > { %1844 = vrot.lane.b32.xlu0 %v8053_v46, %s7160_s23  ;;  %v8425_v46 = vld [vmem:[%s7330_s11 + $0x191] sm:$0xff] }
 0x1df   : > { %v1503_v10 = vpop.permute.xlu1 %1502 }
 0x1e0   : > { %1551 = vst.msk [vmem:[#allocation2 + $0xf8] sm:$0xff] %vm1399_vm7, %v1503_v10  ;;  %v1501_v41 = vpop.permute.xlu0 %1500 }
 0x1e1   : > { %1550 = vst.msk [vmem:[#allocation2 + $0xf0] sm:$0xff] %vm1399_vm7, %v1501_v41  ;;  %1850 = vrot.lane.b32.xlu1 %v8413_v28, %s7160_s23  ;;  %v8550_v41 = vld [vmem:[%s7330_s11 + $0x102] sm:$0xff]  ;;  %vm4135_vm7 = vcmask 654944  }
 0x1e2   : > { %1848 = vrot.lane.b32.xlu0 %v8416_v40, %s7160_s23 }
 0x1e3   : > { %v1556_v5 = vpop.permute.xlu1 %1555 }
 0x1e4   : > { %1579 = vst.msk [vmem:[#allocation2 + $0x8] sm:$0xff] %vm1577_vm8, %v1556_v5  ;;  %v1554_v52 = vpop.permute.xlu0 %1553 }
 0x1e5   : > { %1578 = vst.msk [vmem:[#allocation2] sm:$0xff] %vm1577_vm8, %v1554_v52  ;;  %1854 = vrot.lane.b32.xlu1 %v8425_v46, %s7160_s23  ;;  %v6365_v52 = vld [vmem:[%s7330_s11 + $0x132] sm:$0xff] }
 0x1e6   : > { %1852 = vrot.lane.b32.xlu0 %v8428_v49, %s7160_s23 }
 0x1e7   : > { %v1560_v15 = vpop.permute.xlu1 %1559 }
 0x1e8   : > { %1581 = vst.msk [vmem:[#allocation2 + $0x18] sm:$0xff] %vm1577_vm8, %v1560_v15  ;;  %v1558_v38 = vpop.permute.xlu0 %1557 }
 0x1e9   : > { %1580 = vst.msk [vmem:[#allocation2 + $0x10] sm:$0xff] %vm1577_vm8, %v1558_v38  ;;  %1858 = vrot.lane.b32.xlu1 %v8437_v20, %s7160_s23 }
 0x1ea   : > { %1856 = vrot.lane.b32.xlu0 %v8440_v57, %s7160_s23 }
 0x1eb   : > { %v1564_v43 = vpop.permute.xlu1 %1563 }
 0x1ec   : > { %1583 = vst.msk [vmem:[#allocation2 + $0x28] sm:$0xff] %vm1577_vm8, %v1564_v43  ;;  %v1562_v37 = vpop.permute.xlu0 %1561 }
 0x1ed   : > { %1582 = vst.msk [vmem:[#allocation2 + $0x20] sm:$0xff] %vm1577_vm8, %v1562_v37  ;;  %1862 = vrot.lane.b32.xlu1 %v6349_v50, %s7160_s23  ;;  %v8565_v50 = vld [vmem:[%s7330_s11 + $0x172] sm:$0xff]  ;;  %v8568_v37 = vld [vmem:[%s7330_s11 + $0x162] sm:$0xff] }
 0x1ee   : > { %1860 = vrot.lane.b32.xlu0 %v8080_v8, %s7160_s23  ;;  %v1912_v8 = vrot.slane %v8216_v35, 2  ;;  %s11276_s23 = smov 64  }
 0x1ef   : > { %v1568_v30 = vpop.permute.xlu1 %1567 }
 0x1f0   : > { %1585 = vst.msk [vmem:[#allocation2 + $0x38] sm:$0xff] %vm1577_vm8, %v1568_v30  ;;  %v1566_v2 = vpop.permute.xlu0 %1565 }
 0x1f1   : > { %1584 = vst.msk [vmem:[#allocation2 + $0x30] sm:$0xff] %vm1577_vm8, %v1566_v2  ;;  %1917 = vrot.lane.b32.xlu1 %v7711_v12, %s7161_s0  ;;  %v1913_v12 = vrot.slane %v8306_v58, 2  ;;  %v8481_v58 = vld [vmem:[%s7330_s11 + $0x32] sm:$0xff] }
 0x1f2   : > { %1915 = vrot.lane.b32.xlu0 %v7716_v14, %s7161_s0 }
 0x1f3   : > { %v1638_v9 = vpop.permute.xlu1 %1637 }
 0x1f4   : > { %1708 = vst.msk [vmem:[#allocation2 + $0x48] sm:$0xff] %vm1577_vm8, %v1638_v9  ;;  %v1636_v51 = vpop.permute.xlu0 %1635  ;;  %v8580_v9 = vld [vmem:[%s7330_s11 + $0x182] sm:$0xff] }
 0x1f5   : > { %1707 = vst.msk [vmem:[#allocation2 + $0x40] sm:$0xff] %vm1577_vm8, %v1636_v51  ;;  %1921 = vrot.lane.b32.xlu1 %v7725_v29, %s7161_s0  ;;  %v1914_v29 = vsel %vm810_vm2, %v1912_v8, %v1913_v12  ;;  %v8589_v8 = vld [vmem:[%s7330_s11 + $0x1b2] sm:$0xff] }
 0x1f6   : > { %1919 = vrot.lane.b32.xlu0 %v7730_v42, %s7161_s0 }
 0x1f7   : > { %v1642_v56 = vpop.permute.xlu1 %1641 }
 0x1f8   : > { %1710 = vst.msk [vmem:[#allocation2 + $0x58] sm:$0xff] %vm1577_vm8, %v1642_v56  ;;  %v1640_v14 = vpop.permute.xlu0 %1639  ;;  %v8592_v56 = vld [vmem:[%s7330_s11 + $0x1a2] sm:$0xff] }
 0x1f9   : > { %1709 = vst.msk [vmem:[#allocation2 + $0x50] sm:$0xff] %vm1577_vm8, %v1640_v14  ;;  %1925 = vrot.lane.b32.xlu1 %v7739_v27, %s7161_s0 }
 0x1fa   : > { %1923 = vrot.lane.b32.xlu0 %v7742_v47, %s7161_s0  ;;  %v8484_v47 = vld [vmem:[%s7330_s11 + $0x22] sm:$0xff] }
 0x1fb   : > { %v1646_v42 = vpop.permute.xlu1 %1645 }
 0x1fc   : > { %1712 = vst.msk [vmem:[#allocation2 + $0x68] sm:$0xff] %vm1577_vm8, %v1646_v42  ;;  %v1644_v35 = vpop.permute.xlu0 %1643 }
 0x1fd   : > { %1711 = vst.msk [vmem:[#allocation2 + $0x60] sm:$0xff] %vm1577_vm8, %v1644_v35  ;;  %1929 = vrot.lane.b32.xlu1 %v1914_v29, %s7161_s0  ;;  %v6373_v29 = vld [vmem:[%s7330_s11 + $0x1d2] sm:$0xff] }
 0x1fe   : > { %1927 = vrot.lane.b32.xlu0 %v8109_v55, %s7161_s0 }
 0x1ff   : > { %v1650_v27 = vpop.permute.xlu1 %1649 }
 0x200   : > { %1714 = vst.msk [vmem:[#allocation2 + $0x78] sm:$0xff] %vm1577_vm8, %v1650_v27  ;;  %v1648_v19 = vpop.permute.xlu0 %1647  ;;  %v8607_v27 = vld [vmem:[%s7330_s11 + $0x10] sm:$0xff] }
 0x201   : > { %1713 = vst.msk [vmem:[#allocation2 + $0x70] sm:$0xff] %vm1577_vm8, %v1648_v19  ;;  %1998 = vrot.lane.b32.xlu1 %v8481_v58, %s7161_s0 }
 0x202   : > { %1996 = vrot.lane.b32.xlu0 %v8484_v47, %s7161_s0 }
 0x203   : > { %v1654_v55 = vpop.permute.xlu1 %1653 }
 0x204   : > { %1716 = vst.msk [vmem:[#allocation2 + $0x88] sm:$0xff] %vm1577_vm8, %v1654_v55  ;;  %v1652_v34 = vpop.permute.xlu0 %1651  ;;  %v2092_v55 = vld [vmem:[%s7330_s11] sm:$0xff] }
 0x205   : > { %1715 = vst.msk [vmem:[#allocation2 + $0x80] sm:$0xff] %vm1577_vm8, %v1652_v34  ;;  %2002 = vrot.lane.b32.xlu1 %v8493_v61, %s7161_s0 }
 0x206   : > { %2000 = vrot.lane.b32.xlu0 %v8496_v6, %s7161_s0 }
 0x207   : > { %v1658_v44 = vpop.permute.xlu1 %1657 }
 0x208   : > { %1718 = vst.msk [vmem:[#allocation2 + $0x98] sm:$0xff] %vm1577_vm8, %v1658_v44  ;;  %v1656_v21 = vpop.permute.xlu0 %1655  ;;  %v8616_v44 = vld [vmem:[%s7330_s11 + $0x30] sm:$0xff] }
 0x209   : > { %1717 = vst.msk [vmem:[#allocation2 + $0x90] sm:$0xff] %vm1577_vm8, %v1656_v21  ;;  %2006 = vrot.lane.b32.xlu1 %v8505_v39, %s7161_s0  ;;  %v8619_v21 = vld [vmem:[%s7330_s11 + $0x20] sm:$0xff] }
 0x20a   : > { %2004 = vrot.lane.b32.xlu0 %v8508_v24, %s7161_s0 }
 0x20b   : > { %v1662_v59 = vpop.permute.xlu1 %1661 }
 0x20c   : > { %1720 = vst.msk [vmem:[#allocation2 + $0xa8] sm:$0xff] %vm1577_vm8, %v1662_v59  ;;  %v1660_v62 = vpop.permute.xlu0 %1659  ;;  %v8628_v59 = vld [vmem:[%s7330_s11 + $0x50] sm:$0xff] }
 0x20d   : > { %1719 = vst.msk [vmem:[#allocation2 + $0xa0] sm:$0xff] %vm1577_vm8, %v1660_v62  ;;  %2010 = vrot.lane.b32.xlu1 %v6357_v33, %s7161_s0 }
 0x20e   : > { %2008 = vrot.lane.b32.xlu0 %v8136_v45, %s7161_s0 }
 0x20f   : > { %v1666_v0 = vpop.permute.xlu1 %1665 }
 0x210   : > { %1722 = vst.msk [vmem:[#allocation2 + $0xb8] sm:$0xff] %vm1577_vm8, %v1666_v0  ;;  %v1664_v17 = vpop.permute.xlu0 %1663  ;;  %v8631_v0 = vld [vmem:[%s7330_s11 + $0x40] sm:$0xff] }
 0x211   : > { %1721 = vst.msk [vmem:[#allocation2 + $0xb0] sm:$0xff] %vm1577_vm8, %v1664_v17  ;;  %2014 = vrot.lane.b32.xlu1 %v8523_v31, %s7161_s0 }
 0x212   : > { %2012 = vrot.lane.b32.xlu0 %v8526_v54, %s7161_s0 }
 0x213   : > { %v1670_v45 = vpop.permute.xlu1 %1669 }
 0x214   : > { %1724 = vst.msk [vmem:[#allocation2 + $0xc8] sm:$0xff] %vm1577_vm8, %v1670_v45  ;;  %v1668_v16 = vpop.permute.xlu0 %1667  ;;  %v8640_v45 = vld [vmem:[%s7330_s11 + $0x70] sm:$0xff] }
 0x215   : > { %1723 = vst.msk [vmem:[#allocation2 + $0xc0] sm:$0xff] %vm1577_vm8, %v1668_v16  ;;  %2018 = vrot.lane.b32.xlu1 %v8535_v22, %s7161_s0 }
 0x216   : > { %2016 = vrot.lane.b32.xlu0 %v8538_v23, %s7161_s0 }
 0x217   : > { %v1674_v10 = vpop.permute.xlu1 %1673 }
 0x218   : > { %1726 = vst.msk [vmem:[#allocation2 + $0xd8] sm:$0xff] %vm1577_vm8, %v1674_v10  ;;  %v1672_v5 = vpop.permute.xlu0 %1671  ;;  %v8643_v10 = vld [vmem:[%s7330_s11 + $0x60] sm:$0xff] }
 0x219   : > { %1725 = vst.msk [vmem:[#allocation2 + $0xd0] sm:$0xff] %vm1577_vm8, %v1672_v5  ;;  %2022 = vrot.lane.b32.xlu1 %v8547_v26, %s7161_s0 }
 0x21a   : > { %2020 = vrot.lane.b32.xlu0 %v8550_v41, %s7161_s0 }
 0x21b   : > { %v1678_v15 = vpop.permute.xlu1 %1677 }
 0x21c   : > { %1728 = vst.msk [vmem:[#allocation2 + $0xe8] sm:$0xff] %vm1577_vm8, %v1678_v15  ;;  %v1676_v38 = vpop.permute.xlu0 %1675 }
 0x21d   : > { %1727 = vst.msk [vmem:[#allocation2 + $0xe0] sm:$0xff] %vm1577_vm8, %v1676_v38  ;;  %2026 = vrot.lane.b32.xlu1 %v6365_v52, %s7161_s0  ;;  %v8652_v52 = vld [vmem:[%s7330_s11 + $0xb0] sm:$0xff]  ;;  %v2100_v38 = vld [vmem:[%s7330_s11 + $0xa0] sm:$0xff] }
 0x21e   : > { %2024 = vrot.lane.b32.xlu0 %v8163_v53, %s7161_s0  ;;  %v8577_v53 = vld [vmem:[%s7330_s11 + $0x192] sm:$0xff] }
 0x21f   : > { %v1682_v43 = vpop.permute.xlu1 %1681 }
 0x220   : > { %1730 = vst.msk [vmem:[#allocation2 + $0xf8] sm:$0xff] %vm1577_vm8, %v1682_v43  ;;  %v1680_v30 = vpop.permute.xlu0 %1679 }
 0x221   : > { %1729 = vst.msk [vmem:[#allocation2 + $0xf0] sm:$0xff] %vm1577_vm8, %v1680_v30  ;;  %2030 = vrot.lane.b32.xlu1 %v8565_v50, %s7161_s0  ;;  %v8661_v30 = vld [vmem:[%s7330_s11 + $0xd0] sm:$0xff]  ;;  %vm4344_vm8 = vcmask 687744  }
 0x222   : > { %2028 = vrot.lane.b32.xlu0 %v8568_v37, %s7161_s0 }
 0x223   : > { %v1738_v2 = vpop.permute.xlu1 %1737 }
 0x224   : > { %1761 = vst.msk [vmem:[#allocation2 + $0x8] sm:$0xff] %vm1759_vm9, %v1738_v2  ;;  %v1736_v51 = vpop.permute.xlu0 %1735 }
 0x225   : > { %1760 = vst.msk [vmem:[#allocation2] sm:$0xff] %vm1759_vm9, %v1736_v51  ;;  %2034 = vrot.lane.b32.xlu1 %v8577_v53, %s7161_s0  ;;  %v8664_v51 = vld [vmem:[%s7330_s11 + $0xc0] sm:$0xff] }
 0x226   : > { %2032 = vrot.lane.b32.xlu0 %v8580_v9, %s7161_s0 }
 0x227   : > { %v1742_v12 = vpop.permute.xlu1 %1741 }
 0x228   : > { %1763 = vst.msk [vmem:[#allocation2 + $0x18] sm:$0xff] %vm1759_vm9, %v1742_v12  ;;  %v1740_v14 = vpop.permute.xlu0 %1739 }
 0x229   : > { %1762 = vst.msk [vmem:[#allocation2 + $0x10] sm:$0xff] %vm1759_vm9, %v1740_v14  ;;  %2038 = vrot.lane.b32.xlu1 %v8589_v8, %s7161_s0  ;;  %v8673_v14 = vld [vmem:[%s7330_s11 + $0xf0] sm:$0xff] }
 0x22a   : > { %2036 = vrot.lane.b32.xlu0 %v8592_v56, %s7161_s0 }
 0x22b   : > { %v1746_v42 = vpop.permute.xlu1 %1745 }
 0x22c   : > { %1765 = vst.msk [vmem:[#allocation2 + $0x28] sm:$0xff] %vm1759_vm9, %v1746_v42  ;;  %v1744_v35 = vpop.permute.xlu0 %1743  ;;  %v8676_v42 = vld [vmem:[%s7330_s11 + $0xe0] sm:$0xff] }
 0x22d   : > { %1764 = vst.msk [vmem:[#allocation2 + $0x20] sm:$0xff] %vm1759_vm9, %v1744_v35  ;;  %2042 = vrot.lane.b32.xlu1 %v6373_v29, %s7161_s0 }
 0x22e   : > { %2040 = vrot.lane.b32.xlu0 %v8190_v11, %s7161_s0  ;;  %s7170_s0 = smov 68  }
 0x22f   : > { %v1750_v19 = vpop.permute.xlu1 %1749 }
 0x230   : > { %1767 = vst.msk [vmem:[#allocation2 + $0x38] sm:$0xff] %vm1759_vm9, %v1750_v19  ;;  %v1748_v34 = vpop.permute.xlu0 %1747  ;;  %v8685_v19 = vld [vmem:[%s7330_s11 + $0x110] sm:$0xff] }
 0x231   : > { %1766 = vst.msk [vmem:[#allocation2 + $0x30] sm:$0xff] %vm1759_vm9, %v1748_v34  ;;  %2158 = vrot.lane.b32.xlu1 %v8607_v27, %s7162_s22  ;;  %v8688_v34 = vld [vmem:[%s7330_s11 + $0x100] sm:$0xff] }
 0x232   : > { %2156 = vrot.lane.b32.xlu0 %v2092_v55, %s7162_s22 }
 0x233   : > { %v1819_v11 = vpop.permute.xlu1 %1818 }
 0x234   : > { %1889 = vst.msk [vmem:[#allocation2 + $0x48] sm:$0xff] %vm1759_vm9, %v1819_v11  ;;  %v1817_v33 = vpop.permute.xlu0 %1816 }
 0x235   : > { %1888 = vst.msk [vmem:[#allocation2 + $0x40] sm:$0xff] %vm1759_vm9, %v1817_v33  ;;  %2162 = vrot.lane.b32.xlu1 %v8616_v44, %s7162_s22  ;;  %v8697_v33 = vld [vmem:[%s7330_s11 + $0x150] sm:$0xff] }
 0x236   : > { %2160 = vrot.lane.b32.xlu0 %v8619_v21, %s7162_s22 }
 0x237   : > { %v1823_v62 = vpop.permute.xlu1 %1822 }
 0x238   : > { %1891 = vst.msk [vmem:[#allocation2 + $0x58] sm:$0xff] %vm1759_vm9, %v1823_v62  ;;  %v1821_v17 = vpop.permute.xlu0 %1820 }
 0x239   : > { %1890 = vst.msk [vmem:[#allocation2 + $0x50] sm:$0xff] %vm1759_vm9, %v1821_v17  ;;  %2166 = vrot.lane.b32.xlu1 %v8628_v59, %s7162_s22  ;;  %v2108_v17 = vld [vmem:[%s7330_s11 + $0x140] sm:$0xff] }
 0x23a   : > { %2164 = vrot.lane.b32.xlu0 %v8631_v0, %s7162_s22 }
 0x23b   : > { %v1827_v16 = vpop.permute.xlu1 %1826 }
 0x23c   : > { %1893 = vst.msk [vmem:[#allocation2 + $0x68] sm:$0xff] %vm1759_vm9, %v1827_v16  ;;  %v1825_v5 = vpop.permute.xlu0 %1824 }
 0x23d   : > { %1892 = vst.msk [vmem:[#allocation2 + $0x60] sm:$0xff] %vm1759_vm9, %v1825_v5  ;;  %2170 = vrot.lane.b32.xlu1 %v8640_v45, %s7162_s22  ;;  %v8706_v5 = vld [vmem:[%s7330_s11 + $0x170] sm:$0xff] }
 0x23e   : > { %2168 = vrot.lane.b32.xlu0 %v8643_v10, %s7162_s22 }
 0x23f   : > { %v1831_v15 = vpop.permute.xlu1 %1830 }
 0x240   : > { %1895 = vst.msk [vmem:[#allocation2 + $0x78] sm:$0xff] %vm1759_vm9, %v1831_v15  ;;  %v1829_v43 = vpop.permute.xlu0 %1828 }
 0x241   : > { %1894 = vst.msk [vmem:[#allocation2 + $0x70] sm:$0xff] %vm1759_vm9, %v1829_v43  ;;  %2174 = vrot.lane.b32.xlu1 %v8652_v52, %s7162_s22 }
 0x242   : > { %2172 = vrot.lane.b32.xlu0 %v2100_v38, %s7162_s22  ;;  %v8709_v38 = vld [vmem:[%s7330_s11 + $0x160] sm:$0xff] }
 0x243   : > { %v1835_v2 = vpop.permute.xlu1 %1834 }
 0x244   : > { %1897 = vst.msk [vmem:[#allocation2 + $0x88] sm:$0xff] %vm1759_vm9, %v1835_v2  ;;  %v1833_v12 = vpop.permute.xlu0 %1832  ;;  %v8718_v2 = vld [vmem:[%s7330_s11 + $0x190] sm:$0xff] }
 0x245   : > { %1896 = vst.msk [vmem:[#allocation2 + $0x80] sm:$0xff] %vm1759_vm9, %v1833_v12  ;;  %2178 = vrot.lane.b32.xlu1 %v8661_v30, %s7162_s22 }
 0x246   : > { %2176 = vrot.lane.b32.xlu0 %v8664_v51, %s7162_s22 }
 0x247   : > { %v1839_v29 = vpop.permute.xlu1 %1838 }
 0x248   : > { %1899 = vst.msk [vmem:[#allocation2 + $0x98] sm:$0xff] %vm1759_vm9, %v1839_v29  ;;  %v1837_v35 = vpop.permute.xlu0 %1836  ;;  %v8721_v29 = vld [vmem:[%s7330_s11 + $0x180] sm:$0xff] }
 0x249   : > { %1898 = vst.msk [vmem:[#allocation2 + $0x90] sm:$0xff] %vm1759_vm9, %v1837_v35  ;;  %2182 = vrot.lane.b32.xlu1 %v8673_v14, %s7162_s22 }
 0x24a   : > { %2180 = vrot.lane.b32.xlu0 %v8676_v42, %s7162_s22 }
 0x24b   : > { %v1843_v55 = vpop.permute.xlu1 %1842 }
 0x24c   : > { %1901 = vst.msk [vmem:[#allocation2 + $0xa8] sm:$0xff] %vm1759_vm9, %v1843_v55  ;;  %v1841_v11 = vpop.permute.xlu0 %1840  ;;  %v8730_v55 = vld [vmem:[%s7330_s11 + $0x1b0] sm:$0xff] }
 0x24d   : > { %1900 = vst.msk [vmem:[#allocation2 + $0xa0] sm:$0xff] %vm1759_vm9, %v1841_v11  ;;  %2186 = vrot.lane.b32.xlu1 %v8685_v19, %s7162_s22  ;;  %11342 = vst [vmem:[#allocation16_spill] sm:$0xff] %v8730_v55 }
 0x24e   : > { %2184 = vrot.lane.b32.xlu0 %v8688_v34, %s7162_s22 }
 0x24f   : > { %v1847_v62 = vpop.permute.xlu1 %1846 }
 0x250   : > { %1903 = vst.msk [vmem:[#allocation2 + $0xb8] sm:$0xff] %vm1759_vm9, %v1847_v62  ;;  %v1845_v16 = vpop.permute.xlu0 %1844  ;;  %v8733_v62 = vld [vmem:[%s7330_s11 + $0x1a0] sm:$0xff] }
 0x251   : > { %1902 = vst.msk [vmem:[#allocation2 + $0xb0] sm:$0xff] %vm1759_vm9, %v1845_v16  ;;  %2190 = vrot.lane.b32.xlu1 %v8697_v33, %s7162_s22  ;;  %v8742_v16 = vld [vmem:[%s7330_s11 + $0x1f0] sm:$0xff] }
 0x252   : > { %2188 = vrot.lane.b32.xlu0 %v2108_v17, %s7162_s22  ;;  %11343 = vst [vmem:[#allocation14_spill] sm:$0xff] %v8742_v16 }
 0x253   : > { %v1851_v15 = vpop.permute.xlu1 %1850 }
 0x254   : > { %1905 = vst.msk [vmem:[#allocation2 + $0xc8] sm:$0xff] %vm1759_vm9, %v1851_v15  ;;  %v1849_v43 = vpop.permute.xlu0 %1848 }
 0x255   : > { %1904 = vst.msk [vmem:[#allocation2 + $0xc0] sm:$0xff] %vm1759_vm9, %v1849_v43  ;;  %2194 = vrot.lane.b32.xlu1 %v8706_v5, %s7162_s22  ;;  %v2116_v43 = vld [vmem:[%s7330_s11 + $0x1e0] sm:$0xff] }
 0x256   : > { %2192 = vrot.lane.b32.xlu0 %v8709_v38, %s7162_s22 }
 0x257   : > { %v1855_v12 = vpop.permute.xlu1 %1854 }
 0x258   : > { %1907 = vst.msk [vmem:[#allocation2 + $0xd8] sm:$0xff] %vm1759_vm9, %v1855_v12  ;;  %v1853_v35 = vpop.permute.xlu0 %1852 }
 0x259   : > { %1906 = vst.msk [vmem:[#allocation2 + $0xd0] sm:$0xff] %vm1759_vm9, %v1853_v35  ;;  %2198 = vrot.lane.b32.xlu1 %v8718_v2, %s7162_s22  ;;  %v8751_v35 = vld [vmem:[%s7330_s11 + $0x210] sm:$0xff] }
 0x25a   : > { %2196 = vrot.lane.b32.xlu0 %v8721_v29, %s7162_s22  ;;  %11344 = vst [vmem:[#allocation18_spill] sm:$0xff] %v8751_v35 }
 0x25b   : > { %v1859_v11 = vpop.permute.xlu1 %1858 }
 0x25c   : > { %1909 = vst.msk [vmem:[#allocation2 + $0xe8] sm:$0xff] %vm1759_vm9, %v1859_v11  ;;  %v1857_v17 = vpop.permute.xlu0 %1856 }
 0x25d   : > { %1908 = vst.msk [vmem:[#allocation2 + $0xe0] sm:$0xff] %vm1759_vm9, %v1857_v17  ;;  %2202 = vrot.lane.b32.xlu1 %v8730_v55, %s7162_s22  ;;  %v8754_v17 = vld [vmem:[%s7330_s11 + $0x200] sm:$0xff] }
 0x25e   : > { %2200 = vrot.lane.b32.xlu0 %v8733_v62, %s7162_s22  ;;  %11345 = vst [vmem:[#allocation15_spill] sm:$0xff] %v8754_v17 }
 0x25f   : > { %v1863_v15 = vpop.permute.xlu1 %1862 }
 0x260   : > { %1911 = vst.msk [vmem:[#allocation2 + $0xf8] sm:$0xff] %vm1759_vm9, %v1863_v15  ;;  %v1861_v12 = vpop.permute.xlu0 %1860 }
 0x261   : > { %1910 = vst.msk [vmem:[#allocation2 + $0xf0] sm:$0xff] %vm1759_vm9, %v1861_v12  ;;  %2206 = vrot.lane.b32.xlu1 %v8742_v16, %s7162_s22  ;;  %v8763_v12 = vld [vmem:[%s7330_s11 + $0x230] sm:$0xff]  ;;  %v8766_v16 = vld [vmem:[%s7330_s11 + $0x220] sm:$0xff]  ;;  %vm4546_vm9 = vcmask 720544  }
 0x262   : > { %2204 = vrot.lane.b32.xlu0 %v2116_v43, %s7162_s22  ;;  %11346 = vst [vmem:[#allocation17_spill] sm:$0xff] %v8763_v12  ;;  %11347 = vst [vmem:[#allocation21_spill] sm:$0xff] %v8766_v16 }
 0x263   : > { %v1918_v11 = vpop.permute.xlu1 %1917 }
 0x264   : > { %1941 = vst.msk [vmem:[#allocation2 + $0x8] sm:$0xff] %vm1939_vm10, %v1918_v11  ;;  %v1916_v15 = vpop.permute.xlu0 %1915  ;;  %v8775_v11 = vld [vmem:[%s7330_s11 + $0x250] sm:$0xff] }
 0x265   : > { %1940 = vst.msk [vmem:[#allocation2] sm:$0xff] %vm1939_vm10, %v1916_v15  ;;  %2210 = vrot.lane.b32.xlu1 %v8751_v35, %s7162_s22  ;;  %v8778_v35 = vld [vmem:[%s7330_s11 + $0x240] sm:$0xff] }
 0x266   : > { %2208 = vrot.lane.b32.xlu0 %v8754_v17, %s7162_s22 }
 0x267   : > { %v1922_v43 = vpop.permute.xlu1 %1921 }
 0x268   : > { %1943 = vst.msk [vmem:[#allocation2 + $0x18] sm:$0xff] %vm1939_vm10, %v1922_v43  ;;  %v1920_v55 = vpop.permute.xlu0 %1919 }
 0x269   : > { %1942 = vst.msk [vmem:[#allocation2 + $0x10] sm:$0xff] %vm1939_vm10, %v1920_v55  ;;  %2214 = vrot.lane.b32.xlu1 %v8763_v12, %s7162_s22  ;;  %v8787_v55 = vld [vmem:[%s7330_s11 + $0x11] sm:$0xff]  ;;  %v2285_v12 = vld [vmem:[%s7330_s11 + $0x1] sm:$0xff] }
 0x26a   : > { %2212 = vrot.lane.b32.xlu0 %v8766_v16, %s7162_s22 }
 0x26b   : > { %v1926_v15 = vpop.permute.xlu1 %1925 }
 0x26c   : > { %1945 = vst.msk [vmem:[#allocation2 + $0x28] sm:$0xff] %vm1939_vm10, %v1926_v15  ;;  %v1924_v17 = vpop.permute.xlu0 %1923 }
 0x26d   : > { %1944 = vst.msk [vmem:[#allocation2 + $0x20] sm:$0xff] %vm1939_vm10, %v1924_v17  ;;  %2218 = vrot.lane.b32.xlu1 %v8775_v11, %s7162_s22 }
 0x26e   : > { %2216 = vrot.lane.b32.xlu0 %v8778_v35, %s7162_s22  ;;  %s7171_s22 = smov 72  }
 0x26f   : > { %v1930_v43 = vpop.permute.xlu1 %1929 }
 0x270   : > { %1947 = vst.msk [vmem:[#allocation2 + $0x38] sm:$0xff] %vm1939_vm10, %v1930_v43  ;;  %v1928_v16 = vpop.permute.xlu0 %1927 }
 0x271   : > { %1946 = vst.msk [vmem:[#allocation2 + $0x30] sm:$0xff] %vm1939_vm10, %v1928_v16  ;;  %2351 = vrot.lane.b32.xlu1 %v8787_v55, %s7163_s12 }
 0x272   : > { %2349 = vrot.lane.b32.xlu0 %v2285_v12, %s7163_s12 }
 0x273   : > { %v1999_v17 = vpop.permute.xlu1 %1998 }
 0x274   : > { %2069 = vst.msk [vmem:[#allocation2 + $0x48] sm:$0xff] %vm1939_vm10, %v1999_v17  ;;  %v1997_v15 = vpop.permute.xlu0 %1996 }
 0x275   : > { %2068 = vst.msk [vmem:[#allocation2 + $0x40] sm:$0xff] %vm1939_vm10, %v1997_v15  ;;  %2355 = vrot.lane.b32.xlu1 %v8329_v36, %s7163_s12  ;;  %v2293_v15 = vld [vmem:[%s7330_s11 + $0xa1] sm:$0xff] }
 0x276   : > { %2353 = vrot.lane.b32.xlu0 %v8332_v1, %s7163_s12  ;;  %v8814_v1 = vld [vmem:[%s7330_s11 + $0xb1] sm:$0xff] }
 0x277   : > { %v2003_v16 = vpop.permute.xlu1 %2002 }
 0x278   : > { %2071 = vst.msk [vmem:[#allocation2 + $0x58] sm:$0xff] %vm1939_vm10, %v2003_v16  ;;  %v2001_v43 = vpop.permute.xlu0 %2000 }
 0x279   : > { %2070 = vst.msk [vmem:[#allocation2 + $0x50] sm:$0xff] %vm1939_vm10, %v2001_v43  ;;  %2359 = vrot.lane.b32.xlu1 %v8341_v13, %s7163_s12 }
 0x27a   : > { %2357 = vrot.lane.b32.xlu0 %v8344_v32, %s7163_s12 }
 0x27b   : > { %v2007_v12 = vpop.permute.xlu1 %2006 }
 0x27c   : > { %2073 = vst.msk [vmem:[#allocation2 + $0x68] sm:$0xff] %vm1939_vm10, %v2007_v12  ;;  %v2005_v36 = vpop.permute.xlu0 %2004 }
 0x27d   : > { %2072 = vst.msk [vmem:[#allocation2 + $0x60] sm:$0xff] %vm1939_vm10, %v2005_v36  ;;  %2363 = vrot.lane.b32.xlu1 %v8353_v25, %s7163_s12  ;;  %v2301_v36 = vld [vmem:[%s7330_s11 + $0x141] sm:$0xff] }
 0x27e   : > { %2361 = vrot.lane.b32.xlu0 %v8356_v48, %s7163_s12 }
 0x27f   : > { %v2011_v17 = vpop.permute.xlu1 %2010 }
 0x280   : > { %2075 = vst.msk [vmem:[#allocation2 + $0x78] sm:$0xff] %vm1939_vm10, %v2011_v17  ;;  %v2009_v13 = vpop.permute.xlu0 %2008 }
 0x281   : > { %2074 = vst.msk [vmem:[#allocation2 + $0x70] sm:$0xff] %vm1939_vm10, %v2009_v13  ;;  %2367 = vrot.lane.b32.xlu1 %v8814_v1, %s7163_s12  ;;  %v2309_v13 = vld [vmem:[%s7330_s11 + $0x1e1] sm:$0xff] }
 0x282   : > { %2365 = vrot.lane.b32.xlu0 %v2293_v15, %s7163_s12 }
 0x283   : > { %v2015_v32 = vpop.permute.xlu1 %2014 }
 0x284   : > { %2077 = vst.msk [vmem:[#allocation2 + $0x88] sm:$0xff] %vm1939_vm10, %v2015_v32  ;;  %v2013_v25 = vpop.permute.xlu0 %2012  ;;  %v8880_v32 = vld [vmem:[%s7330_s11 + $0x201] sm:$0xff] }
 0x285   : > { %2076 = vst.msk [vmem:[#allocation2 + $0x80] sm:$0xff] %vm1939_vm10, %v2013_v25  ;;  %2371 = vrot.lane.b32.xlu1 %v8371_v60, %s7163_s12 }
 0x286   : > { %2369 = vrot.lane.b32.xlu0 %v8374_v63, %s7163_s12  ;;  %v8841_v63 = vld [vmem:[%s7330_s11 + $0x151] sm:$0xff] }
 0x287   : > { %v2019_v48 = vpop.permute.xlu1 %2018 }
 0x288   : > { %2079 = vst.msk [vmem:[#allocation2 + $0x98] sm:$0xff] %vm1939_vm10, %v2019_v48  ;;  %v2017_v16 = vpop.permute.xlu0 %2016  ;;  %v8889_v48 = vld [vmem:[%s7330_s11 + $0x231] sm:$0xff] }
 0x289   : > { %2078 = vst.msk [vmem:[#allocation2 + $0x90] sm:$0xff] %vm1939_vm10, %v2017_v16  ;;  %2375 = vrot.lane.b32.xlu1 %v8383_v3, %s7163_s12 }
 0x28a   : > { %2373 = vrot.lane.b32.xlu0 %v8386_v4, %s7163_s12 }
 0x28b   : > { %v2023_v43 = vpop.permute.xlu1 %2022 }
 0x28c   : > { %2081 = vst.msk [vmem:[#allocation2 + $0xa8] sm:$0xff] %vm1939_vm10, %v2023_v43  ;;  %v2021_v60 = vpop.permute.xlu0 %2020  ;;  %v8892_v43 = vld [vmem:[%s7330_s11 + $0x221] sm:$0xff] }
 0x28d   : > { %2080 = vst.msk [vmem:[#allocation2 + $0xa0] sm:$0xff] %vm1939_vm10, %v2021_v60  ;;  %2379 = vrot.lane.b32.xlu1 %v8395_v7, %s7163_s12 }
 0x28e   : > { %2377 = vrot.lane.b32.xlu0 %v8398_v18, %s7163_s12 }
 0x28f   : > { %v2027_v12 = vpop.permute.xlu1 %2026 }
 0x290   : > { %2083 = vst.msk [vmem:[#allocation2 + $0xb8] sm:$0xff] %vm1939_vm10, %v2027_v12  ;;  %v2025_v3 = vpop.permute.xlu0 %2024  ;;  %v8901_v12 = vld [vmem:[%s7330_s11 + $0x251] sm:$0xff] }
 0x291   : > { %2082 = vst.msk [vmem:[#allocation2 + $0xb0] sm:$0xff] %vm1939_vm10, %v2025_v3  ;;  %2383 = vrot.lane.b32.xlu1 %v8841_v63, %s7163_s12  ;;  %v8904_v3 = vld [vmem:[%s7330_s11 + $0x241] sm:$0xff] }
 0x292   : > { %2381 = vrot.lane.b32.xlu0 %v2301_v36, %s7163_s12 }
 0x293   : > { %v2031_v4 = vpop.permute.xlu1 %2030 }
 0x294   : > { %2085 = vst.msk [vmem:[#allocation2 + $0xc8] sm:$0xff] %vm1939_vm10, %v2031_v4  ;;  %v2029_v7 = vpop.permute.xlu0 %2028 }
 0x295   : > { %2084 = vst.msk [vmem:[#allocation2 + $0xc0] sm:$0xff] %vm1939_vm10, %v2029_v7  ;;  %2387 = vrot.lane.b32.xlu1 %v8413_v28, %s7163_s12  ;;  %v8913_v7 = vld [vmem:[%s7330_s11 + $0x12] sm:$0xff] }
 0x296   : > { %2385 = vrot.lane.b32.xlu0 %v8416_v40, %s7163_s12  ;;  %v8868_v40 = vld [vmem:[%s7330_s11 + $0x1f1] sm:$0xff] }
 0x297   : > { %v2035_v18 = vpop.permute.xlu1 %2034 }
 0x298   : > { %2087 = vst.msk [vmem:[#allocation2 + $0xd8] sm:$0xff] %vm1939_vm10, %v2035_v18  ;;  %v2033_v17 = vpop.permute.xlu0 %2032 }
 0x299   : > { %2086 = vst.msk [vmem:[#allocation2 + $0xd0] sm:$0xff] %vm1939_vm10, %v2033_v17  ;;  %2391 = vrot.lane.b32.xlu1 %v8425_v46, %s7163_s12  ;;  %v2478_v17 = vld [vmem:[%s7330_s11 + $0x2] sm:$0xff] }
 0x29a   : > { %2389 = vrot.lane.b32.xlu0 %v8428_v49, %s7163_s12 }
 0x29b   : > { %v2039_v15 = vpop.permute.xlu1 %2038 }
 0x29c   : > { %2089 = vst.msk [vmem:[#allocation2 + $0xe8] sm:$0xff] %vm1939_vm10, %v2039_v15  ;;  %v2037_v28 = vpop.permute.xlu0 %2036 }
 0x29d   : > { %2088 = vst.msk [vmem:[#allocation2 + $0xe0] sm:$0xff] %vm1939_vm10, %v2037_v28  ;;  %2395 = vrot.lane.b32.xlu1 %v8437_v20, %s7163_s12  ;;  %v8877_v20 = vld [vmem:[%s7330_s11 + $0x211] sm:$0xff] }
 0x29e   : > { %2393 = vrot.lane.b32.xlu0 %v8440_v57, %s7163_s12 }
 0x29f   : > { %v2043_v46 = vpop.permute.xlu1 %2042 }
 0x2a0   : > { %2091 = vst.msk [vmem:[#allocation2 + $0xf8] sm:$0xff] %vm1939_vm10, %v2043_v46  ;;  %v2041_v49 = vpop.permute.xlu0 %2040 }
 0x2a1   : > { %2090 = vst.msk [vmem:[#allocation2 + $0xf0] sm:$0xff] %vm1939_vm10, %v2041_v49  ;;  %2399 = vrot.lane.b32.xlu1 %v8868_v40, %s7163_s12  ;;  %vm4724_vm10 = vcmask 753344  }
 0x2a2   : > { %2397 = vrot.lane.b32.xlu0 %v2309_v13, %s7163_s12 }
 0x2a3   : > { %v2159_v57 = vpop.permute.xlu1 %2158 }
 0x2a4   : > { %2254 = vst.msk [vmem:[#allocation2 + $0x8] sm:$0xff] %vm2252_vm11, %v2159_v57  ;;  %v2157_v25 = vpop.permute.xlu0 %2156 }
 0x2a5   : > { %2253 = vst.msk [vmem:[#allocation2] sm:$0xff] %vm2252_vm11, %v2157_v25  ;;  %2403 = vrot.lane.b32.xlu1 %v8877_v20, %s7163_s12 }
 0x2a6   : > { %2401 = vrot.lane.b32.xlu0 %v8880_v32, %s7163_s12 }
 0x2a7   : > { %v2163_v16 = vpop.permute.xlu1 %2162 }
 0x2a8   : > { %2256 = vst.msk [vmem:[#allocation2 + $0x18] sm:$0xff] %vm2252_vm11, %v2163_v16  ;;  %v2161_v60 = vpop.permute.xlu0 %2160  ;;  %v2486_v16 = vld [vmem:[%s7330_s11 + $0xa2] sm:$0xff] }
 0x2a9   : > { %2255 = vst.msk [vmem:[#allocation2 + $0x10] sm:$0xff] %vm2252_vm11, %v2161_v60  ;;  %2407 = vrot.lane.b32.xlu1 %v8889_v48, %s7163_s12 }
 0x2aa   : > { %2405 = vrot.lane.b32.xlu0 %v8892_v43, %s7163_s12 }
 0x2ab   : > { %v2167_v36 = vpop.permute.xlu1 %2166 }
 0x2ac   : > { %2258 = vst.msk [vmem:[#allocation2 + $0x28] sm:$0xff] %vm2252_vm11, %v2167_v36  ;;  %v2165_v4 = vpop.permute.xlu0 %2164 }
 0x2ad   : > { %2257 = vst.msk [vmem:[#allocation2 + $0x20] sm:$0xff] %vm2252_vm11, %v2165_v4  ;;  %2411 = vrot.lane.b32.xlu1 %v8901_v12, %s7163_s12 }
 0x2ae   : > { %2409 = vrot.lane.b32.xlu0 %v8904_v3, %s7163_s12  ;;  %s6830_s12 = sadd.s32 4, %s7316_s6 }
 0x2af   : > { %v2171_v18 = vpop.permute.xlu1 %2170  ;;  %p9884_p4 = scmp.lt.s32.totalorder %s6830_s12, 7 }
 0x2b0   : > { %2260 = vst.msk [vmem:[#allocation2 + $0x38] sm:$0xff] %vm2252_vm11, %v2171_v18  ;;  %v2169_v15 = vpop.permute.xlu0 %2168  ;;  %v2494_v18 = vld [vmem:[%s7330_s11 + $0x142] sm:$0xff] }
 0x2b1   : > { %2259 = vst.msk [vmem:[#allocation2 + $0x30] sm:$0xff] %vm2252_vm11, %v2169_v15  ;;  %2544 = vrot.lane.b32.xlu1 %v8913_v7, %s7164_s10  ;;  %s11393_s12 = smov (!%p9884_p4, %s6830_s12), 7 }
 0x2b2   : > { %2542 = vrot.lane.b32.xlu0 %v2478_v17, %s7164_s10  ;;  %s11395_s12 = smov (!%p9884_p4, %s11393_s12), 7 }
 0x2b3   : > { %v2175_v28 = vpop.permute.xlu1 %2174  ;;  %s6916_s6 = smul.u32 20, %s11395_s12 }
 0x2b4   : > { %2262 = vst.msk [vmem:[#allocation2 + $0x48] sm:$0xff] %vm2252_vm11, %v2175_v28  ;;  %v2173_v46 = vpop.permute.xlu0 %2172  ;;  %v2502_v28 = vld [vmem:[%s7330_s11 + $0x1e2] sm:$0xff] }
 0x2b5   : > { %2261 = vst.msk [vmem:[#allocation2 + $0x40] sm:$0xff] %vm2252_vm11, %v2173_v46  ;;  %2548 = vrot.lane.b32.xlu1 %v8481_v58, %s7164_s10  ;;  %v9006_v46 = vld [vmem:[%s7330_s11 + $0x202] sm:$0xff] }
 0x2b6   : > { %2546 = vrot.lane.b32.xlu0 %v8484_v47, %s7164_s10  ;;  %v8940_v47 = vld [vmem:[%s7330_s11 + $0xb2] sm:$0xff] }
 0x2b7   : > { %v2179_v13 = vpop.permute.xlu1 %2178 }
 0x2b8   : > { %2264 = vst.msk [vmem:[#allocation2 + $0x58] sm:$0xff] %vm2252_vm11, %v2179_v13  ;;  %v2177_v49 = vpop.permute.xlu0 %2176 }
 0x2b9   : > { %2263 = vst.msk [vmem:[#allocation2 + $0x50] sm:$0xff] %vm2252_vm11, %v2177_v49  ;;  %2552 = vrot.lane.b32.xlu1 %v8493_v61, %s7164_s10  ;;  %v9015_v49 = vld [vmem:[%s7330_s11 + $0x232] sm:$0xff] }
 0x2ba   : > { %2550 = vrot.lane.b32.xlu0 %v8496_v6, %s7164_s10 }
 0x2bb   : > { %v2183_v57 = vpop.permute.xlu1 %2182 }
 0x2bc   : > { %2266 = vst.msk [vmem:[#allocation2 + $0x68] sm:$0xff] %vm2252_vm11, %v2183_v57  ;;  %v2181_v58 = vpop.permute.xlu0 %2180 }
 0x2bd   : > { %2265 = vst.msk [vmem:[#allocation2 + $0x60] sm:$0xff] %vm2252_vm11, %v2181_v58  ;;  %2556 = vrot.lane.b32.xlu1 %v8505_v39, %s7164_s10  ;;  %v9018_v58 = vld [vmem:[%s7330_s11 + $0x222] sm:$0xff] }
 0x2be   : > { %2554 = vrot.lane.b32.xlu0 %v8508_v24, %s7164_s10 }
 0x2bf   : > { %v2187_v25 = vpop.permute.xlu1 %2186 }
 0x2c0   : > { %2268 = vst.msk [vmem:[#allocation2 + $0x78] sm:$0xff] %vm2252_vm11, %v2187_v25  ;;  %v2185_v61 = vpop.permute.xlu0 %2184 }
 0x2c1   : > { %2267 = vst.msk [vmem:[#allocation2 + $0x70] sm:$0xff] %vm2252_vm11, %v2185_v61  ;;  %2560 = vrot.lane.b32.xlu1 %v8940_v47, %s7164_s10 }
 0x2c2   : > { %2558 = vrot.lane.b32.xlu0 %v2486_v16, %s7164_s10  ;;  %v9027_v16 = vld [vmem:[%s7330_s11 + $0x252] sm:$0xff] }
 0x2c3   : > { %v2191_v6 = vpop.permute.xlu1 %2190 }
 0x2c4   : > { %2270 = vst.msk [vmem:[#allocation2 + $0x88] sm:$0xff] %vm2252_vm11, %v2191_v6  ;;  %v2189_v39 = vpop.permute.xlu0 %2188  ;;  %v9030_v6 = vld [vmem:[%s7330_s11 + $0x242] sm:$0xff] }
 0x2c5   : > { %2269 = vst.msk [vmem:[#allocation2 + $0x80] sm:$0xff] %vm2252_vm11, %v2189_v39  ;;  %2564 = vrot.lane.b32.xlu1 %v8523_v31, %s7164_s10 }
 0x2c6   : > { %2562 = vrot.lane.b32.xlu0 %v8526_v54, %s7164_s10  ;;  %v8967_v54 = vld [vmem:[%s7330_s11 + $0x152] sm:$0xff] }
 0x2c7   : > { %v2195_v24 = vpop.permute.xlu1 %2194 }
 0x2c8   : > { %2272 = vst.msk [vmem:[#allocation2 + $0x98] sm:$0xff] %vm2252_vm11, %v2195_v24  ;;  %v2193_v60 = vpop.permute.xlu0 %2192 }
 0x2c9   : > { %2271 = vst.msk [vmem:[#allocation2 + $0x90] sm:$0xff] %vm2252_vm11, %v2193_v60  ;;  %2568 = vrot.lane.b32.xlu1 %v8535_v22, %s7164_s10 }
 0x2ca   : > { %2566 = vrot.lane.b32.xlu0 %v8538_v23, %s7164_s10 }
 0x2cb   : > { %v2199_v36 = vpop.permute.xlu1 %2198 }
 0x2cc   : > { %2274 = vst.msk [vmem:[#allocation2 + $0xa8] sm:$0xff] %vm2252_vm11, %v2199_v36  ;;  %v2197_v31 = vpop.permute.xlu0 %2196 }
 0x2cd   : > { %2273 = vst.msk [vmem:[#allocation2 + $0xa0] sm:$0xff] %vm2252_vm11, %v2197_v31  ;;  %2572 = vrot.lane.b32.xlu1 %v8547_v26, %s7164_s10 }
 0x2ce   : > { %2570 = vrot.lane.b32.xlu0 %v8550_v41, %s7164_s10 }
 0x2cf   : > { %v2203_v4 = vpop.permute.xlu1 %2202 }
 0x2d0   : > { %2276 = vst.msk [vmem:[#allocation2 + $0xb8] sm:$0xff] %vm2252_vm11, %v2203_v4  ;;  %v2201_v22 = vpop.permute.xlu0 %2200 }
 0x2d1   : > { %2275 = vst.msk [vmem:[#allocation2 + $0xb0] sm:$0xff] %vm2252_vm11, %v2201_v22  ;;  %2576 = vrot.lane.b32.xlu1 %v8967_v54, %s7164_s10 }
 0x2d2   : > { %2574 = vrot.lane.b32.xlu0 %v2494_v18, %s7164_s10 }
 0x2d3   : > { %v2207_v23 = vpop.permute.xlu1 %2206 }
 0x2d4   : > { %2278 = vst.msk [vmem:[#allocation2 + $0xc8] sm:$0xff] %vm2252_vm11, %v2207_v23  ;;  %v2205_v26 = vpop.permute.xlu0 %2204 }
 0x2d5   : > { %2277 = vst.msk [vmem:[#allocation2 + $0xc0] sm:$0xff] %vm2252_vm11, %v2205_v26  ;;  %2580 = vrot.lane.b32.xlu1 %v8565_v50, %s7164_s10 }
 0x2d6   : > { %2578 = vrot.lane.b32.xlu0 %v8568_v37, %s7164_s10  ;;  %v8994_v37 = vld [vmem:[%s7330_s11 + $0x1f2] sm:$0xff] }
 0x2d7   : > { %v2211_v41 = vpop.permute.xlu1 %2210 }
 0x2d8   : > { %2280 = vst.msk [vmem:[#allocation2 + $0xd8] sm:$0xff] %vm2252_vm11, %v2211_v41  ;;  %v2209_v17 = vpop.permute.xlu0 %2208 }
 0x2d9   : > { %2279 = vst.msk [vmem:[#allocation2 + $0xd0] sm:$0xff] %vm2252_vm11, %v2209_v17  ;;  %2584 = vrot.lane.b32.xlu1 %v8577_v53, %s7164_s10 }
 0x2da   : > { %2582 = vrot.lane.b32.xlu0 %v8580_v9, %s7164_s10 }
 0x2db   : > { %v2215_v15 = vpop.permute.xlu1 %2214 }
 0x2dc   : > { %2282 = vst.msk [vmem:[#allocation2 + $0xe8] sm:$0xff] %vm2252_vm11, %v2215_v15  ;;  %v2213_v50 = vpop.permute.xlu0 %2212  ;;  %v11350_v15 = vld [vmem:[#allocation14_spill] sm:$0xff] }
 0x2dd   : > { %2281 = vst.msk [vmem:[#allocation2 + $0xe0] sm:$0xff] %vm2252_vm11, %v2213_v50  ;;  %2588 = vrot.lane.b32.xlu1 %v8589_v8, %s7164_s10  ;;  %v9003_v8 = vld [vmem:[%s7330_s11 + $0x212] sm:$0xff] }
 0x2de   : > { %2586 = vrot.lane.b32.xlu0 %v8592_v56, %s7164_s10 }
 0x2df   : > { %v2219_v53 = vpop.permute.xlu1 %2218 }
 0x2e0   : > { %2284 = vst.msk [vmem:[#allocation2 + $0xf8] sm:$0xff] %vm2252_vm11, %v2219_v53  ;;  %v2217_v9 = vpop.permute.xlu0 %2216 }
 0x2e1   : > { %2283 = vst.msk [vmem:[#allocation2 + $0xf0] sm:$0xff] %vm2252_vm11, %v2217_v9  ;;  %2592 = vrot.lane.b32.xlu1 %v8994_v37, %s7164_s10  ;;  %v11352_v9 = vld [vmem:[#allocation18_spill] sm:$0xff]  ;;  %vm4905_vm11 = vcmask 786144  }
 0x2e2   : > { %2590 = vrot.lane.b32.xlu0 %v2502_v28, %s7164_s10  ;;  %v11351_v28 = vld [vmem:[#allocation21_spill] sm:$0xff] }
 0x2e3   : > { %v2352_v56 = vpop.permute.xlu1 %2351 }
 0x2e4   : > { %2447 = vst.msk [vmem:[#allocation2 + $0x8] sm:$0xff] %vm2445_vm12, %v2352_v56  ;;  %v2350_v13 = vpop.permute.xlu0 %2349 }
 0x2e5   : > { %2446 = vst.msk [vmem:[#allocation2] sm:$0xff] %vm2445_vm12, %v2350_v13  ;;  %2596 = vrot.lane.b32.xlu1 %v9003_v8, %s7164_s10 }
 0x2e6   : > { %2594 = vrot.lane.b32.xlu0 %v9006_v46, %s7164_s10 }
 0x2e7   : > { %v2356_v57 = vpop.permute.xlu1 %2355 }
 0x2e8   : > { %2449 = vst.msk [vmem:[#allocation2 + $0x18] sm:$0xff] %vm2445_vm12, %v2356_v57  ;;  %v2354_v25 = vpop.permute.xlu0 %2353  ;;  %v11353_v57 = vld [vmem:[#allocation17_spill] sm:$0xff] }
 0x2e9   : > { %2448 = vst.msk [vmem:[#allocation2 + $0x10] sm:$0xff] %vm2445_vm12, %v2354_v25  ;;  %2600 = vrot.lane.b32.xlu1 %v9015_v49, %s7164_s10  ;;  %v9138_v25 = vld [vmem:[%s7330_s11 + $0x260] sm:$0xff] }
 0x2ea   : > { %2598 = vrot.lane.b32.xlu0 %v9018_v58, %s7164_s10 }
 0x2eb   : > { %v2360_v61 = vpop.permute.xlu1 %2359 }
 0x2ec   : > { %2451 = vst.msk [vmem:[#allocation2 + $0x28] sm:$0xff] %vm2445_vm12, %v2360_v61  ;;  %v2358_v39 = vpop.permute.xlu0 %2357 }
 0x2ed   : > { %2450 = vst.msk [vmem:[#allocation2 + $0x20] sm:$0xff] %vm2445_vm12, %v2358_v39  ;;  %2604 = vrot.lane.b32.xlu1 %v9027_v16, %s7164_s10 }
 0x2ee   : > { %2602 = vrot.lane.b32.xlu0 %v9030_v6, %s7164_s10  ;;  %s7172_s10 = smov 76  }
 0x2ef   : > { %v2364_v24 = vpop.permute.xlu1 %2363 }
 0x2f0   : > { %2453 = vst.msk [vmem:[#allocation2 + $0x38] sm:$0xff] %vm2445_vm12, %v2364_v24  ;;  %v2362_v60 = vpop.permute.xlu0 %2361 }
 0x2f1   : > { %2452 = vst.msk [vmem:[#allocation2 + $0x30] sm:$0xff] %vm2445_vm12, %v2362_v60  ;;  %2737 = vrot.lane.b32.xlu1 %v8619_v21, %s7165_s19 }
 0x2f2   : > { %2735 = vrot.lane.b32.xlu0 %v8607_v27, %s7165_s19  ;;  %v9057_v27 = vld [vmem:[%s7330_s11 + $0x80] sm:$0xff] }
 0x2f3   : > { %v2368_v36 = vpop.permute.xlu1 %2367 }
 0x2f4   : > { %2455 = vst.msk [vmem:[#allocation2 + $0x48] sm:$0xff] %vm2445_vm12, %v2368_v36  ;;  %v2366_v31 = vpop.permute.xlu0 %2365  ;;  %v9156_v36 = vld [vmem:[%s7330_s11 + $0x41] sm:$0xff] }
 0x2f5   : > { %2454 = vst.msk [vmem:[#allocation2 + $0x40] sm:$0xff] %vm2445_vm12, %v2366_v31  ;;  %2741 = vrot.lane.b32.xlu1 %v8631_v0, %s7165_s19  ;;  %v9159_v31 = vld [vmem:[%s7330_s11 + $0x31] sm:$0xff] }
 0x2f6   : > { %2739 = vrot.lane.b32.xlu0 %v8616_v44, %s7165_s19 }
 0x2f7   : > { %v2372_v4 = vpop.permute.xlu1 %2371 }
 0x2f8   : > { %2457 = vst.msk [vmem:[#allocation2 + $0x58] sm:$0xff] %vm2445_vm12, %v2372_v4  ;;  %v2370_v18 = vpop.permute.xlu0 %2369 }
 0x2f9   : > { %2456 = vst.msk [vmem:[#allocation2 + $0x50] sm:$0xff] %vm2445_vm12, %v2370_v18  ;;  %2745 = vrot.lane.b32.xlu1 %v8643_v10, %s7165_s19  ;;  %v9168_v18 = vld [vmem:[%s7330_s11 + $0x61] sm:$0xff] }
 0x2fa   : > { %2743 = vrot.lane.b32.xlu0 %v8628_v59, %s7165_s19 }
 0x2fb   : > { %v2376_v21 = vpop.permute.xlu1 %2375 }
 0x2fc   : > { %2459 = vst.msk [vmem:[#allocation2 + $0x68] sm:$0xff] %vm2445_vm12, %v2376_v21  ;;  %v2374_v0 = vpop.permute.xlu0 %2373  ;;  %v9171_v21 = vld [vmem:[%s7330_s11 + $0x51] sm:$0xff] }
 0x2fd   : > { %2458 = vst.msk [vmem:[#allocation2 + $0x60] sm:$0xff] %vm2445_vm12, %v2374_v0  ;;  %2749 = vrot.lane.b32.xlu1 %v9057_v27, %s7165_s19 }
 0x2fe   : > { %2747 = vrot.lane.b32.xlu0 %v8640_v45, %s7165_s19 }
 0x2ff   : > { %v2380_v44 = vpop.permute.xlu1 %2379 }
 0x300   : > { %2461 = vst.msk [vmem:[#allocation2 + $0x78] sm:$0xff] %vm2445_vm12, %v2380_v44  ;;  %v2378_v10 = vpop.permute.xlu0 %2377  ;;  %v9180_v44 = vld [vmem:[%s7330_s11 + $0x81] sm:$0xff] }
 0x301   : > { %2460 = vst.msk [vmem:[#allocation2 + $0x70] sm:$0xff] %vm2445_vm12, %v2378_v10  ;;  %2753 = vrot.lane.b32.xlu1 %v8664_v51, %s7165_s19 }
 0x302   : > { %2751 = vrot.lane.b32.xlu0 %v8652_v52, %s7165_s19  ;;  %v9084_v52 = vld [vmem:[%s7330_s11 + $0x120] sm:$0xff] }
 0x303   : > { %v2384_v59 = vpop.permute.xlu1 %2383 }
 0x304   : > { %2463 = vst.msk [vmem:[#allocation2 + $0x88] sm:$0xff] %vm2445_vm12, %v2384_v59  ;;  %v2382_v22 = vpop.permute.xlu0 %2381  ;;  %v9183_v59 = vld [vmem:[%s7330_s11 + $0x71] sm:$0xff] }
 0x305   : > { %2462 = vst.msk [vmem:[#allocation2 + $0x80] sm:$0xff] %vm2445_vm12, %v2382_v22  ;;  %2757 = vrot.lane.b32.xlu1 %v8676_v42, %s7165_s19 }
 0x306   : > { %2755 = vrot.lane.b32.xlu0 %v8661_v30, %s7165_s19 }
 0x307   : > { %v2388_v45 = vpop.permute.xlu1 %2387 }
 0x308   : > { %2465 = vst.msk [vmem:[#allocation2 + $0x98] sm:$0xff] %vm2445_vm12, %v2388_v45  ;;  %v2386_v23 = vpop.permute.xlu0 %2385  ;;  %v9192_v45 = vld [vmem:[%s7330_s11 + $0xc1] sm:$0xff] }
 0x309   : > { %2464 = vst.msk [vmem:[#allocation2 + $0x90] sm:$0xff] %vm2445_vm12, %v2386_v23  ;;  %2761 = vrot.lane.b32.xlu1 %v8688_v34, %s7165_s19 }
 0x30a   : > { %2759 = vrot.lane.b32.xlu0 %v8673_v14, %s7165_s19 }
 0x30b   : > { %v2392_v51 = vpop.permute.xlu1 %2391 }
 0x30c   : > { %2467 = vst.msk [vmem:[#allocation2 + $0xa8] sm:$0xff] %vm2445_vm12, %v2392_v51  ;;  %v2390_v42 = vpop.permute.xlu0 %2389 }
 0x30d   : > { %2466 = vst.msk [vmem:[#allocation2 + $0xa0] sm:$0xff] %vm2445_vm12, %v2390_v42  ;;  %2765 = vrot.lane.b32.xlu1 %v9084_v52, %s7165_s19  ;;  %v9201_v42 = vld [vmem:[%s7330_s11 + $0xe1] sm:$0xff] }
 0x30e   : > { %2763 = vrot.lane.b32.xlu0 %v8685_v19, %s7165_s19 }
 0x30f   : > { %v2396_v30 = vpop.permute.xlu1 %2395 }
 0x310   : > { %2469 = vst.msk [vmem:[#allocation2 + $0xb8] sm:$0xff] %vm2445_vm12, %v2396_v30  ;;  %v2394_v34 = vpop.permute.xlu0 %2393 }
 0x311   : > { %2468 = vst.msk [vmem:[#allocation2 + $0xb0] sm:$0xff] %vm2445_vm12, %v2394_v34  ;;  %2769 = vrot.lane.b32.xlu1 %v8709_v38, %s7165_s19  ;;  %v9204_v34 = vld [vmem:[%s7330_s11 + $0xd1] sm:$0xff] }
 0x312   : > { %2767 = vrot.lane.b32.xlu0 %v8697_v33, %s7165_s19  ;;  %v9111_v33 = vld [vmem:[%s7330_s11 + $0x1c0] sm:$0xff] }
 0x313   : > { %v2400_v14 = vpop.permute.xlu1 %2399 }
 0x314   : > { %2471 = vst.msk [vmem:[#allocation2 + $0xc8] sm:$0xff] %vm2445_vm12, %v2400_v14  ;;  %v2398_v26 = vpop.permute.xlu0 %2397 }
 0x315   : > { %2470 = vst.msk [vmem:[#allocation2 + $0xc0] sm:$0xff] %vm2445_vm12, %v2398_v26  ;;  %2773 = vrot.lane.b32.xlu1 %v8721_v29, %s7165_s19  ;;  %v9213_v26 = vld [vmem:[%s7330_s11 + $0x101] sm:$0xff] }
 0x316   : > { %2771 = vrot.lane.b32.xlu0 %v8706_v5, %s7165_s19  ;;  %v11348_v5 = vld [vmem:[#allocation16_spill] sm:$0xff] }
 0x317   : > { %v2404_v19 = vpop.permute.xlu1 %2403 }
 0x318   : > { %2473 = vst.msk [vmem:[#allocation2 + $0xd8] sm:$0xff] %vm2445_vm12, %v2404_v19  ;;  %v2402_v41 = vpop.permute.xlu0 %2401  ;;  %v9216_v19 = vld [vmem:[%s7330_s11 + $0xf1] sm:$0xff] }
 0x319   : > { %2472 = vst.msk [vmem:[#allocation2 + $0xd0] sm:$0xff] %vm2445_vm12, %v2402_v41  ;;  %2777 = vrot.lane.b32.xlu1 %v8733_v62, %s7165_s19 }
 0x31a   : > { %2775 = vrot.lane.b32.xlu0 %v8718_v2, %s7165_s19  ;;  %v11349_v2 = vld [vmem:[#allocation15_spill] sm:$0xff] }
 0x31b   : > { %v2408_v38 = vpop.permute.xlu1 %2407 }
 0x31c   : > { %2475 = vst.msk [vmem:[#allocation2 + $0xe8] sm:$0xff] %vm2445_vm12, %v2408_v38  ;;  %v2406_v29 = vpop.permute.xlu0 %2405  ;;  %v9225_v38 = vld [vmem:[%s7330_s11 + $0x121] sm:$0xff] }
 0x31d   : > { %2474 = vst.msk [vmem:[#allocation2 + $0xe0] sm:$0xff] %vm2445_vm12, %v2406_v29  ;;  %2781 = vrot.lane.b32.xlu1 %v9111_v33, %s7165_s19 }
 0x31e   : > { %2779 = vrot.lane.b32.xlu0 %v11348_v5, %s7165_s19  ;;  %v9228_v5 = vld [vmem:[%s7330_s11 + $0x111] sm:$0xff] }
 0x31f   : > { %v2412_v17 = vpop.permute.xlu1 %2411 }
 0x320   : > { %2477 = vst.msk [vmem:[#allocation2 + $0xf8] sm:$0xff] %vm2445_vm12, %v2412_v17  ;;  %v2410_v62 = vpop.permute.xlu0 %2409 }
 0x321   : > { %2476 = vst.msk [vmem:[#allocation2 + $0xf0] sm:$0xff] %vm2445_vm12, %v2410_v62  ;;  %2785 = vrot.lane.b32.xlu1 %v11349_v2, %s7165_s19  ;;  %v9237_v62 = vld [vmem:[%s7330_s11 + $0x161] sm:$0xff]  ;;  %vm5086_vm12 = vcmask 818944  }
 0x322   : > { %2783 = vrot.lane.b32.xlu0 %v11350_v15, %s7165_s19 }
 0x323   : > { %v2545_v50 = vpop.permute.xlu1 %2544 }
 0x324   : > { %2640 = vst.msk [vmem:[#allocation2 + $0x8] sm:$0xff] %vm2638_vm13, %v2545_v50  ;;  %v2543_v53 = vpop.permute.xlu0 %2542  ;;  %v9246_v50 = vld [vmem:[%s7330_s11 + $0x181] sm:$0xff] }
 0x325   : > { %2639 = vst.msk [vmem:[#allocation2] sm:$0xff] %vm2638_vm13, %v2543_v53  ;;  %2789 = vrot.lane.b32.xlu1 %v11351_v28, %s7165_s19  ;;  %v9249_v28 = vld [vmem:[%s7330_s11 + $0x171] sm:$0xff] }
 0x326   : > { %2787 = vrot.lane.b32.xlu0 %v11352_v9, %s7165_s19 }
 0x327   : > { %v2549_v56 = vpop.permute.xlu1 %2548 }
 0x328   : > { %2642 = vst.msk [vmem:[#allocation2 + $0x18] sm:$0xff] %vm2638_vm13, %v2549_v56  ;;  %v2547_v13 = vpop.permute.xlu0 %2546  ;;  %v9258_v56 = vld [vmem:[%s7330_s11 + $0x1a1] sm:$0xff] }
 0x329   : > { %2641 = vst.msk [vmem:[#allocation2 + $0x10] sm:$0xff] %vm2638_vm13, %v2547_v13  ;;  %2793 = vrot.lane.b32.xlu1 %v8778_v35, %s7165_s19  ;;  %v9147_v35 = vld [vmem:[%s7330_s11 + $0x21] sm:$0xff]  ;;  %v9261_v13 = vld [vmem:[%s7330_s11 + $0x191] sm:$0xff] }
 0x32a   : > { %2791 = vrot.lane.b32.xlu0 %v11353_v57, %s7165_s19 }
 0x32b   : > { %v2553_v61 = vpop.permute.xlu1 %2552 }
 0x32c   : > { %2644 = vst.msk [vmem:[#allocation2 + $0x28] sm:$0xff] %vm2638_vm13, %v2553_v61  ;;  %v2551_v39 = vpop.permute.xlu0 %2550  ;;  %v9270_v61 = vld [vmem:[%s7330_s11 + $0x1c1] sm:$0xff] }
 0x32d   : > { %2643 = vst.msk [vmem:[#allocation2 + $0x20] sm:$0xff] %vm2638_vm13, %v2551_v39  ;;  %2797 = vrot.lane.b32.xlu1 %v9138_v25, %s7165_s19 }
 0x32e   : > { %2795 = vrot.lane.b32.xlu0 %v8775_v11, %s7165_s19  ;;  %s438_s19 = sadd.s32 %s6916_s6, %s7322_s18  ;;  %s7174_s6 = smov 84  }
 0x32f   : > { %v2557_v24 = vpop.permute.xlu1 %2556 }
 0x330   : > { %2646 = vst.msk [vmem:[#allocation2 + $0x38] sm:$0xff] %vm2638_vm13, %v2557_v24  ;;  %v2555_v60 = vpop.permute.xlu0 %2554  ;;  %v9273_v24 = vld [vmem:[%s7330_s11 + $0x1b1] sm:$0xff] }
 0x331   : > { %2645 = vst.msk [vmem:[#allocation2 + $0x30] sm:$0xff] %vm2638_vm13, %v2555_v60  ;;  %2930 = vrot.lane.b32.xlu1 %v9147_v35, %s7166_s17 }
 0x332   : > { %2928 = vrot.lane.b32.xlu0 %v8787_v55, %s7166_s17 }
 0x333   : > { %v2561_v11 = vpop.permute.xlu1 %2560 }
 0x334   : > { %2648 = vst.msk [vmem:[#allocation2 + $0x48] sm:$0xff] %vm2638_vm13, %v2561_v11  ;;  %v2559_v4 = vpop.permute.xlu0 %2558 }
 0x335   : > { %2647 = vst.msk [vmem:[#allocation2 + $0x40] sm:$0xff] %vm2638_vm13, %v2559_v4  ;;  %2934 = vrot.lane.b32.xlu1 %v9156_v36, %s7166_s17 }
 0x336   : > { %2932 = vrot.lane.b32.xlu0 %v9159_v31, %s7166_s17 }
 0x337   : > { %v2565_v55 = vpop.permute.xlu1 %2564 }
 0x338   : > { %2650 = vst.msk [vmem:[#allocation2 + $0x58] sm:$0xff] %vm2638_vm13, %v2565_v55  ;;  %v2563_v0 = vpop.permute.xlu0 %2562 }
 0x339   : > { %2649 = vst.msk [vmem:[#allocation2 + $0x50] sm:$0xff] %vm2638_vm13, %v2563_v0  ;;  %2938 = vrot.lane.b32.xlu1 %v9168_v18, %s7166_s17 }
 0x33a   : > { %2936 = vrot.lane.b32.xlu0 %v9171_v21, %s7166_s17 }
 0x33b   : > { %v2569_v10 = vpop.permute.xlu1 %2568 }
 0x33c   : > { %2652 = vst.msk [vmem:[#allocation2 + $0x68] sm:$0xff] %vm2638_vm13, %v2569_v10  ;;  %v2567_v22 = vpop.permute.xlu0 %2566 }
 0x33d   : > { %2651 = vst.msk [vmem:[#allocation2 + $0x60] sm:$0xff] %vm2638_vm13, %v2567_v22  ;;  %2942 = vrot.lane.b32.xlu1 %v9180_v44, %s7166_s17 }
 0x33e   : > { %2940 = vrot.lane.b32.xlu0 %v9183_v59, %s7166_s17 }
 0x33f   : > { %v2573_v23 = vpop.permute.xlu1 %2572 }
 0x340   : > { %2654 = vst.msk [vmem:[#allocation2 + $0x78] sm:$0xff] %vm2638_vm13, %v2573_v23  ;;  %v2571_v51 = vpop.permute.xlu0 %2570  ;;  %v9318_v23 = vld [vmem:[%s7330_s11 + $0x42] sm:$0xff] }
 0x341   : > { %2653 = vst.msk [vmem:[#allocation2 + $0x70] sm:$0xff] %vm2638_vm13, %v2571_v51  ;;  %2946 = vrot.lane.b32.xlu1 %v9192_v45, %s7166_s17  ;;  %v9321_v51 = vld [vmem:[%s7330_s11 + $0x32] sm:$0xff] }
 0x342   : > { %2944 = vrot.lane.b32.xlu0 %v8814_v1, %s7166_s17 }
 0x343   : > { %v2577_v30 = vpop.permute.xlu1 %2576 }
 0x344   : > { %2656 = vst.msk [vmem:[#allocation2 + $0x88] sm:$0xff] %vm2638_vm13, %v2577_v30  ;;  %v2575_v14 = vpop.permute.xlu0 %2574 }
 0x345   : > { %2655 = vst.msk [vmem:[#allocation2 + $0x80] sm:$0xff] %vm2638_vm13, %v2575_v14  ;;  %2950 = vrot.lane.b32.xlu1 %v9201_v42, %s7166_s17  ;;  %v9330_v14 = vld [vmem:[%s7330_s11 + $0x62] sm:$0xff] }
 0x346   : > { %2948 = vrot.lane.b32.xlu0 %v9204_v34, %s7166_s17 }
 0x347   : > { %v2581_v1 = vpop.permute.xlu1 %2580 }
 0x348   : > { %2658 = vst.msk [vmem:[#allocation2 + $0x98] sm:$0xff] %vm2638_vm13, %v2581_v1  ;;  %v2579_v41 = vpop.permute.xlu0 %2578  ;;  %v9333_v1 = vld [vmem:[%s7330_s11 + $0x52] sm:$0xff] }
 0x349   : > { %2657 = vst.msk [vmem:[#allocation2 + $0x90] sm:$0xff] %vm2638_vm13, %v2579_v41  ;;  %2954 = vrot.lane.b32.xlu1 %v9213_v26, %s7166_s17 }
 0x34a   : > { %2952 = vrot.lane.b32.xlu0 %v9216_v19, %s7166_s17 }
 0x34b   : > { %v2585_v29 = vpop.permute.xlu1 %2584 }
 0x34c   : > { %2660 = vst.msk [vmem:[#allocation2 + $0xa8] sm:$0xff] %vm2638_vm13, %v2585_v29  ;;  %v2583_v17 = vpop.permute.xlu0 %2582  ;;  %v9342_v29 = vld [vmem:[%s7330_s11 + $0x82] sm:$0xff] }
 0x34d   : > { %2659 = vst.msk [vmem:[#allocation2 + $0xa0] sm:$0xff] %vm2638_vm13, %v2583_v17  ;;  %2958 = vrot.lane.b32.xlu1 %v9225_v38, %s7166_s17 }
 0x34e   : > { %2956 = vrot.lane.b32.xlu0 %v9228_v5, %s7166_s17 }
 0x34f   : > { %v2589_v2 = vpop.permute.xlu1 %2588 }
 0x350   : > { %2662 = vst.msk [vmem:[#allocation2 + $0xb8] sm:$0xff] %vm2638_vm13, %v2589_v2  ;;  %v2587_v15 = vpop.permute.xlu0 %2586  ;;  %v9345_v2 = vld [vmem:[%s7330_s11 + $0x72] sm:$0xff] }
 0x351   : > { %2661 = vst.msk [vmem:[#allocation2 + $0xb0] sm:$0xff] %vm2638_vm13, %v2587_v15  ;;  %2962 = vrot.lane.b32.xlu1 %v9237_v62, %s7166_s17 }
 0x352   : > { %2960 = vrot.lane.b32.xlu0 %v8841_v63, %s7166_s17 }
 0x353   : > { %v2593_v53 = vpop.permute.xlu1 %2592 }
 0x354   : > { %2664 = vst.msk [vmem:[#allocation2 + $0xc8] sm:$0xff] %vm2638_vm13, %v2593_v53  ;;  %v2591_v9 = vpop.permute.xlu0 %2590  ;;  %v9354_v53 = vld [vmem:[%s7330_s11 + $0xc2] sm:$0xff] }
 0x355   : > { %2663 = vst.msk [vmem:[#allocation2 + $0xc0] sm:$0xff] %vm2638_vm13, %v2591_v9  ;;  %2966 = vrot.lane.b32.xlu1 %v9246_v50, %s7166_s17 }
 0x356   : > { %2964 = vrot.lane.b32.xlu0 %v9249_v28, %s7166_s17 }
 0x357   : > { %v2597_v63 = vpop.permute.xlu1 %2596 }
 0x358   : > { %2666 = vst.msk [vmem:[#allocation2 + $0xd8] sm:$0xff] %vm2638_vm13, %v2597_v63  ;;  %v2595_v57 = vpop.permute.xlu0 %2594 }
 0x359   : > { %2665 = vst.msk [vmem:[#allocation2 + $0xd0] sm:$0xff] %vm2638_vm13, %v2595_v57  ;;  %2970 = vrot.lane.b32.xlu1 %v9258_v56, %s7166_s17  ;;  %v9363_v57 = vld [vmem:[%s7330_s11 + $0xe2] sm:$0xff] }
 0x35a   : > { %2968 = vrot.lane.b32.xlu0 %v9261_v13, %s7166_s17 }
 0x35b   : > { %v2601_v39 = vpop.permute.xlu1 %2600 }
 0x35c   : > { %2668 = vst.msk [vmem:[#allocation2 + $0xe8] sm:$0xff] %vm2638_vm13, %v2601_v39  ;;  %v2599_v60 = vpop.permute.xlu0 %2598 }
 0x35d   : > { %2667 = vst.msk [vmem:[#allocation2 + $0xe0] sm:$0xff] %vm2638_vm13, %v2599_v60  ;;  %2974 = vrot.lane.b32.xlu1 %v9270_v61, %s7166_s17  ;;  %v9366_v60 = vld [vmem:[%s7330_s11 + $0xd2] sm:$0xff] }
 0x35e   : > { %2972 = vrot.lane.b32.xlu0 %v9273_v24, %s7166_s17 }
 0x35f   : > { %v2605_v11 = vpop.permute.xlu1 %2604 }
 0x360   : > { %2670 = vst.msk [vmem:[#allocation2 + $0xf8] sm:$0xff] %vm2638_vm13, %v2605_v11  ;;  %v2603_v4 = vpop.permute.xlu0 %2602 }
 0x361   : > { %2669 = vst.msk [vmem:[#allocation2 + $0xf0] sm:$0xff] %vm2638_vm13, %v2603_v4  ;;  %2978 = vrot.lane.b32.xlu1 %v8880_v32, %s7166_s17  ;;  %v9375_v4 = vld [vmem:[%s7330_s11 + $0x102] sm:$0xff]  ;;  %vm5264_vm13 = vcmask 851744  }
 0x362   : > { %2976 = vrot.lane.b32.xlu0 %v8868_v40, %s7166_s17  ;;  %v9300_v40 = vld [vmem:[%s7330_s11 + $0x261] sm:$0xff] }
 0x363   : > { %v2738_v55 = vpop.permute.xlu1 %2737 }
 0x364   : > { %2833 = vst.msk [vmem:[#allocation2 + $0x8] sm:$0xff] %vm2831_vm14, %v2738_v55  ;;  %v2736_v0 = vpop.permute.xlu0 %2735  ;;  %v9378_v55 = vld [vmem:[%s7330_s11 + $0xf2] sm:$0xff] }
 0x365   : > { %2832 = vst.msk [vmem:[#allocation2] sm:$0xff] %vm2831_vm14, %v2736_v0  ;;  %2982 = vrot.lane.b32.xlu1 %v8892_v43, %s7166_s17  ;;  %v9309_v43 = vld [vmem:[%s7330_s11 + $0x22] sm:$0xff] }
 0x366   : > { %2980 = vrot.lane.b32.xlu0 %v8877_v20, %s7166_s17 }
 0x367   : > { %v2742_v10 = vpop.permute.xlu1 %2741 }
 0x368   : > { %2835 = vst.msk [vmem:[#allocation2 + $0x18] sm:$0xff] %vm2831_vm14, %v2742_v10  ;;  %v2740_v32 = vpop.permute.xlu0 %2739  ;;  %v9387_v10 = vld [vmem:[%s7330_s11 + $0x122] sm:$0xff] }
 0x369   : > { %2834 = vst.msk [vmem:[#allocation2 + $0x10] sm:$0xff] %vm2831_vm14, %v2740_v32  ;;  %2986 = vrot.lane.b32.xlu1 %v8904_v3, %s7166_s17 }
 0x36a   : > { %2984 = vrot.lane.b32.xlu0 %v8889_v48, %s7166_s17 }
 0x36b   : > { %v2746_v22 = vpop.permute.xlu1 %2745 }
 0x36c   : > { %2837 = vst.msk [vmem:[#allocation2 + $0x28] sm:$0xff] %vm2831_vm14, %v2746_v22  ;;  %v2744_v20 = vpop.permute.xlu0 %2743  ;;  %v9390_v22 = vld [vmem:[%s7330_s11 + $0x112] sm:$0xff] }
 0x36d   : > { %2836 = vst.msk [vmem:[#allocation2 + $0x20] sm:$0xff] %vm2831_vm14, %v2744_v20  ;;  %2990 = vrot.lane.b32.xlu1 %v9300_v40, %s7166_s17 }
 0x36e   : > { %2988 = vrot.lane.b32.xlu0 %v8901_v12, %s7166_s17  ;;  %s512_s17 = scalar_select %p511_p5, 1, 0 }
 0x36f   : > { %v2750_v48 = vpop.permute.xlu1 %2749 }
 0x370   : > { %2839 = vst.msk [vmem:[#allocation2 + $0x38] sm:$0xff] %vm2831_vm14, %v2750_v48  ;;  %v2748_v3 = vpop.permute.xlu0 %2747  ;;  %v9399_v48 = vld [vmem:[%s7330_s11 + $0x162] sm:$0xff] }
 0x371   : > { %2838 = vst.msk [vmem:[#allocation2 + $0x30] sm:$0xff] %vm2831_vm14, %v2748_v3  ;;  %3123 = vrot.lane.b32.xlu1 %v9309_v43, %s7167_s20 }
 0x372   : > { %3121 = vrot.lane.b32.xlu0 %v8913_v7, %s7167_s20 }
 0x373   : > { %v2754_v12 = vpop.permute.xlu1 %2753 }
 0x374   : > { %2841 = vst.msk [vmem:[#allocation2 + $0x48] sm:$0xff] %vm2831_vm14, %v2754_v12  ;;  %v2752_v30 = vpop.permute.xlu0 %2751 }
 0x375   : > { %2840 = vst.msk [vmem:[#allocation2 + $0x40] sm:$0xff] %vm2831_vm14, %v2752_v30  ;;  %3127 = vrot.lane.b32.xlu1 %v9318_v23, %s7167_s20  ;;  %v9408_v30 = vld [vmem:[%s7330_s11 + $0x182] sm:$0xff] }
 0x376   : > { %3125 = vrot.lane.b32.xlu0 %v9321_v51, %s7167_s20 }
 0x377   : > { %v2758_v7 = vpop.permute.xlu1 %2757 }
 0x378   : > { %2843 = vst.msk [vmem:[#allocation2 + $0x58] sm:$0xff] %vm2831_vm14, %v2758_v7  ;;  %v2756_v41 = vpop.permute.xlu0 %2755 }
 0x379   : > { %2842 = vst.msk [vmem:[#allocation2 + $0x50] sm:$0xff] %vm2831_vm14, %v2756_v41  ;;  %3131 = vrot.lane.b32.xlu1 %v9330_v14, %s7167_s20  ;;  %v9411_v41 = vld [vmem:[%s7330_s11 + $0x172] sm:$0xff] }
 0x37a   : > { %3129 = vrot.lane.b32.xlu0 %v9333_v1, %s7167_s20 }
 0x37b   : > { %v2762_v17 = vpop.permute.xlu1 %2761 }
 0x37c   : > { %2845 = vst.msk [vmem:[#allocation2 + $0x68] sm:$0xff] %vm2831_vm14, %v2762_v17  ;;  %v2760_v15 = vpop.permute.xlu0 %2759 }
 0x37d   : > { %2844 = vst.msk [vmem:[#allocation2 + $0x60] sm:$0xff] %vm2831_vm14, %v2760_v15  ;;  %3135 = vrot.lane.b32.xlu1 %v9342_v29, %s7167_s20  ;;  %v9420_v15 = vld [vmem:[%s7330_s11 + $0x1a2] sm:$0xff] }
 0x37e   : > { %3133 = vrot.lane.b32.xlu0 %v9345_v2, %s7167_s20 }
 0x37f   : > { %v2766_v9 = vpop.permute.xlu1 %2765 }
 0x380   : > { %2847 = vst.msk [vmem:[#allocation2 + $0x78] sm:$0xff] %vm2831_vm14, %v2766_v9  ;;  %v2764_v63 = vpop.permute.xlu0 %2763  ;;  %v9423_v9 = vld [vmem:[%s7330_s11 + $0x192] sm:$0xff] }
 0x381   : > { %2846 = vst.msk [vmem:[#allocation2 + $0x70] sm:$0xff] %vm2831_vm14, %v2764_v63  ;;  %3139 = vrot.lane.b32.xlu1 %v9354_v53, %s7167_s20 }
 0x382   : > { %3137 = vrot.lane.b32.xlu0 %v8940_v47, %s7167_s20 }
 0x383   : > { %v2770_v39 = vpop.permute.xlu1 %2769 }
 0x384   : > { %2849 = vst.msk [vmem:[#allocation2 + $0x88] sm:$0xff] %vm2831_vm14, %v2770_v39  ;;  %v2768_v11 = vpop.permute.xlu0 %2767  ;;  %v9432_v39 = vld [vmem:[%s7330_s11 + $0x1c2] sm:$0xff] }
 0x385   : > { %2848 = vst.msk [vmem:[#allocation2 + $0x80] sm:$0xff] %vm2831_vm14, %v2768_v11  ;;  %3143 = vrot.lane.b32.xlu1 %v9363_v57, %s7167_s20 }
 0x386   : > { %3141 = vrot.lane.b32.xlu0 %v9366_v60, %s7167_s20 }
 0x387   : > { %v2774_v47 = vpop.permute.xlu1 %2773 }
 0x388   : > { %2851 = vst.msk [vmem:[#allocation2 + $0x98] sm:$0xff] %vm2831_vm14, %v2774_v47  ;;  %v2772_v0 = vpop.permute.xlu0 %2771  ;;  %v9435_v47 = vld [vmem:[%s7330_s11 + $0x1b2] sm:$0xff] }
 0x389   : > { %2850 = vst.msk [vmem:[#allocation2 + $0x90] sm:$0xff] %vm2831_vm14, %v2772_v0  ;;  %3147 = vrot.lane.b32.xlu1 %v9375_v4, %s7167_s20 }
 0x38a   : > { %3145 = vrot.lane.b32.xlu0 %v9378_v55, %s7167_s20 }
 0x38b   : > { %v2778_v32 = vpop.permute.xlu1 %2777 }
 0x38c   : > { %2853 = vst.msk [vmem:[#allocation2 + $0xa8] sm:$0xff] %vm2831_vm14, %v2778_v32  ;;  %v2776_v20 = vpop.permute.xlu0 %2775 }
 0x38d   : > { %2852 = vst.msk [vmem:[#allocation2 + $0xa0] sm:$0xff] %vm2831_vm14, %v2776_v20  ;;  %3151 = vrot.lane.b32.xlu1 %v9387_v10, %s7167_s20 }
 0x38e   : > { %3149 = vrot.lane.b32.xlu0 %v9390_v22, %s7167_s20 }
 0x38f   : > { %v2782_v3 = vpop.permute.xlu1 %2781 }
 0x390   : > { %2855 = vst.msk [vmem:[#allocation2 + $0xb8] sm:$0xff] %vm2831_vm14, %v2782_v3  ;;  %v2780_v12 = vpop.permute.xlu0 %2779 }
 0x391   : > { %2854 = vst.msk [vmem:[#allocation2 + $0xb0] sm:$0xff] %vm2831_vm14, %v2780_v12  ;;  %3155 = vrot.lane.b32.xlu1 %v9399_v48, %s7167_s20 }
 0x392   : > { %3153 = vrot.lane.b32.xlu0 %v8967_v54, %s7167_s20 }
 0x393   : > { %v2786_v7 = vpop.permute.xlu1 %2785 }
 0x394   : > { %2857 = vst.msk [vmem:[#allocation2 + $0xc8] sm:$0xff] %vm2831_vm14, %v2786_v7  ;;  %v2784_v17 = vpop.permute.xlu0 %2783 }
 0x395   : > { %2856 = vst.msk [vmem:[#allocation2 + $0xc0] sm:$0xff] %vm2831_vm14, %v2784_v17  ;;  %3159 = vrot.lane.b32.xlu1 %v9408_v30, %s7167_s20 }
 0x396   : > { %3157 = vrot.lane.b32.xlu0 %v9411_v41, %s7167_s20 }
 0x397   : > { %v2790_v54 = vpop.permute.xlu1 %2789 }
 0x398   : > { %2859 = vst.msk [vmem:[#allocation2 + $0xd8] sm:$0xff] %vm2831_vm14, %v2790_v54  ;;  %v2788_v63 = vpop.permute.xlu0 %2787 }
 0x399   : > { %2858 = vst.msk [vmem:[#allocation2 + $0xd0] sm:$0xff] %vm2831_vm14, %v2788_v63  ;;  %3163 = vrot.lane.b32.xlu1 %v9420_v15, %s7167_s20  ;;  %v6473_v63 = vld [vmem:[%s7330_s11 + $0x50] sm:$0xff] }
 0x39a   : > { %3161 = vrot.lane.b32.xlu0 %v9423_v9, %s7167_s20 }
 0x39b   : > { %v2794_v11 = vpop.permute.xlu1 %2793 }
 0x39c   : > { %2861 = vst.msk [vmem:[#allocation2 + $0xe8] sm:$0xff] %vm2831_vm14, %v2794_v11  ;;  %v2792_v0 = vpop.permute.xlu0 %2791 }
 0x39d   : > { %2860 = vst.msk [vmem:[#allocation2 + $0xe0] sm:$0xff] %vm2831_vm14, %v2792_v0  ;;  %3167 = vrot.lane.b32.xlu1 %v9432_v39, %s7167_s20  ;;  %v6472_v0 = vld [vmem:[%s7330_s11 + $0x40] sm:$0xff] }
 0x39e   : > { %3165 = vrot.lane.b32.xlu0 %v9435_v47, %s7167_s20 }
 0x39f   : > { %v2798_v32 = vpop.permute.xlu1 %2797 }
 0x3a0   : > { %2863 = vst.msk [vmem:[#allocation2 + $0xf8] sm:$0xff] %vm2831_vm14, %v2798_v32  ;;  %v2796_v20 = vpop.permute.xlu0 %2795  ;;  %v6475_v32 = vld [vmem:[%s7330_s11 + $0x70] sm:$0xff] }
 0x3a1   : > { %2862 = vst.msk [vmem:[#allocation2 + $0xf0] sm:$0xff] %vm2831_vm14, %v2796_v20  ;;  %3171 = vrot.lane.b32.xlu1 %v9006_v46, %s7167_s20  ;;  %vm5445_vm14 = vcmask 884544  }
 0x3a2   : > { %3169 = vrot.lane.b32.xlu0 %v8994_v37, %s7167_s20  ;;  %v9462_v37 = vld [vmem:[%s7330_s11 + $0x262] sm:$0xff] }
 0x3a3   : > { %v2931_v3 = vpop.permute.xlu1 %2930 }
 0x3a4   : > { %3026 = vst.msk [vmem:[#allocation2 + $0x8] sm:$0xff] %vm3024_vm15, %v2931_v3  ;;  %v2929_v12 = vpop.permute.xlu0 %2928  ;;  %v6474_v3 = vld [vmem:[%s7330_s11 + $0x60] sm:$0xff] }
 0x3a5   : > { %3025 = vst.msk [vmem:[#allocation2] sm:$0xff] %vm3024_vm15, %v2929_v12  ;;  %3175 = vrot.lane.b32.xlu1 %v9018_v58, %s7167_s20 }
 0x3a6   : > { %3173 = vrot.lane.b32.xlu0 %v9003_v8, %s7167_s20 }
 0x3a7   : > { %v2935_v7 = vpop.permute.xlu1 %2934 }
 0x3a8   : > { %3028 = vst.msk [vmem:[#allocation2 + $0x18] sm:$0xff] %vm3024_vm15, %v2935_v7  ;;  %v2933_v46 = vpop.permute.xlu0 %2932  ;;  %v6477_v7 = vld [vmem:[%s7330_s11 + $0x90] sm:$0xff] }
 0x3a9   : > { %3027 = vst.msk [vmem:[#allocation2 + $0x10] sm:$0xff] %vm3024_vm15, %v2933_v46  ;;  %3179 = vrot.lane.b32.xlu1 %v9030_v6, %s7167_s20  ;;  %v6471_v6 = vld [vmem:[%s7330_s11 + $0x30] sm:$0xff] }
 0x3aa   : > { %3177 = vrot.lane.b32.xlu0 %v9015_v49, %s7167_s20  ;;  %v6470_v49 = vld [vmem:[%s7330_s11 + $0x20] sm:$0xff] }
 0x3ab   : > { %v2939_v58 = vpop.permute.xlu1 %2938 }
 0x3ac   : > { %3030 = vst.msk [vmem:[#allocation2 + $0x28] sm:$0xff] %vm3024_vm15, %v2939_v58  ;;  %v2937_v8 = vpop.permute.xlu0 %2936 }
 0x3ad   : > { %3029 = vst.msk [vmem:[#allocation2 + $0x20] sm:$0xff] %vm3024_vm15, %v2937_v8  ;;  %3183 = vrot.lane.b32.xlu1 %v9462_v37, %s7167_s20  ;;  %v9495_v8 = vld [vmem:[%s7330_s11 + $0xd0] sm:$0xff] }
 0x3ae   : > { %3181 = vrot.lane.b32.xlu0 %v9027_v16, %s7167_s20  ;;  %s6229_s20 = sshll.u32 %s438_s19, 3  ;;  %s7175_s19 = smov 88  }
 0x3af   : > { %v2943_v17 = vpop.permute.xlu1 %2942  ;;  %s9931_s12 = scalar_lea.vmem %s11228_s2, %s6229_s20  ;;  %s7177_s20 = smov 96  }
 0x3b0   : > { %3032 = vst.msk [vmem:[#allocation2 + $0x38] sm:$0xff] %vm3024_vm15, %v2943_v17  ;;  %v2941_v54 = vpop.permute.xlu0 %2940  ;;  %v9498_v17 = vld [vmem:[%s7330_s11 + $0xc0] sm:$0xff] }
 0x3b1   : > { %3031 = vst.msk [vmem:[#allocation2 + $0x30] sm:$0xff] %vm3024_vm15, %v2941_v54  ;;  %3316 = vrot.lane.b32.xlu1 %v6471_v6, %s7168_s21  ;;  %v9507_v54 = vld [vmem:[%s7330_s11 + $0xf0] sm:$0xff] }
 0x3b2   : > { %3314 = vrot.lane.b32.xlu0 %v6470_v49, %s7168_s21 }
 0x3b3   : > { %v2947_v11 = vpop.permute.xlu1 %2946 }
 0x3b4   : > { %3034 = vst.msk [vmem:[#allocation2 + $0x48] sm:$0xff] %vm3024_vm15, %v2947_v11  ;;  %v2945_v16 = vpop.permute.xlu0 %2944 }
 0x3b5   : > { %3033 = vst.msk [vmem:[#allocation2 + $0x40] sm:$0xff] %vm3024_vm15, %v2945_v16  ;;  %3320 = vrot.lane.b32.xlu1 %v6473_v63, %s7168_s21  ;;  %v9510_v63 = vld [vmem:[%s7330_s11 + $0xe0] sm:$0xff] }
 0x3b6   : > { %3318 = vrot.lane.b32.xlu0 %v6472_v0, %s7168_s21  ;;  %v9519_v0 = vld [vmem:[%s7330_s11 + $0x110] sm:$0xff] }
 0x3b7   : > { %v2951_v20 = vpop.permute.xlu1 %2950 }
 0x3b8   : > { %3036 = vst.msk [vmem:[#allocation2 + $0x58] sm:$0xff] %vm3024_vm15, %v2951_v20  ;;  %v2949_v12 = vpop.permute.xlu0 %2948 }
 0x3b9   : > { %3035 = vst.msk [vmem:[#allocation2 + $0x50] sm:$0xff] %vm3024_vm15, %v2949_v12  ;;  %3324 = vrot.lane.b32.xlu1 %v6475_v32, %s7168_s21  ;;  %v9522_v32 = vld [vmem:[%s7330_s11 + $0x100] sm:$0xff] }
 0x3ba   : > { %3322 = vrot.lane.b32.xlu0 %v6474_v3, %s7168_s21  ;;  %v6485_v3 = vld [vmem:[%s7330_s11 + $0x130] sm:$0xff] }
 0x3bb   : > { %v2955_v46 = vpop.permute.xlu1 %2954 }
 0x3bc   : > { %3038 = vst.msk [vmem:[#allocation2 + $0x68] sm:$0xff] %vm3024_vm15, %v2955_v46  ;;  %v2953_v58 = vpop.permute.xlu0 %2952  ;;  %v9537_v46 = vld [vmem:[%s7330_s11 + $0x170] sm:$0xff] }
 0x3bd   : > { %3037 = vst.msk [vmem:[#allocation2 + $0x60] sm:$0xff] %vm3024_vm15, %v2953_v58  ;;  %3328 = vrot.lane.b32.xlu1 %v6477_v7, %s7168_s21 }
 0x3be   : > { %3326 = vrot.lane.b32.xlu0 %v9057_v27, %s7168_s21 }
 0x3bf   : > { %v2959_v6 = vpop.permute.xlu1 %2958 }
 0x3c0   : > { %3040 = vst.msk [vmem:[#allocation2 + $0x78] sm:$0xff] %vm3024_vm15, %v2959_v6  ;;  %v2957_v49 = vpop.permute.xlu0 %2956  ;;  %v9540_v6 = vld [vmem:[%s7330_s11 + $0x160] sm:$0xff] }
 0x3c1   : > { %3039 = vst.msk [vmem:[#allocation2 + $0x70] sm:$0xff] %vm3024_vm15, %v2957_v49  ;;  %3332 = vrot.lane.b32.xlu1 %v9495_v8, %s7168_s21 }
 0x3c2   : > { %3330 = vrot.lane.b32.xlu0 %v9498_v17, %s7168_s21 }
 0x3c3   : > { %v2963_v27 = vpop.permute.xlu1 %2962 }
 0x3c4   : > { %3042 = vst.msk [vmem:[#allocation2 + $0x88] sm:$0xff] %vm3024_vm15, %v2963_v27  ;;  %v2961_v11 = vpop.permute.xlu0 %2960  ;;  %v9549_v27 = vld [vmem:[%s7330_s11 + $0x190] sm:$0xff] }
 0x3c5   : > { %3041 = vst.msk [vmem:[#allocation2 + $0x80] sm:$0xff] %vm3024_vm15, %v2961_v11  ;;  %3336 = vrot.lane.b32.xlu1 %v9507_v54, %s7168_s21  ;;  %v9552_v11 = vld [vmem:[%s7330_s11 + $0x180] sm:$0xff] }
 0x3c6   : > { %3334 = vrot.lane.b32.xlu0 %v9510_v63, %s7168_s21 }
 0x3c7   : > { %v2967_v16 = vpop.permute.xlu1 %2966 }
 0x3c8   : > { %3044 = vst.msk [vmem:[#allocation2 + $0x98] sm:$0xff] %vm3024_vm15, %v2967_v16  ;;  %v2965_v20 = vpop.permute.xlu0 %2964 }
 0x3c9   : > { %3043 = vst.msk [vmem:[#allocation2 + $0x90] sm:$0xff] %vm3024_vm15, %v2965_v20  ;;  %3340 = vrot.lane.b32.xlu1 %v9519_v0, %s7168_s21  ;;  %v9561_v20 = vld [vmem:[%s7330_s11 + $0x1b0] sm:$0xff] }
 0x3ca   : > { %3338 = vrot.lane.b32.xlu0 %v9522_v32, %s7168_s21 }
 0x3cb   : > { %v2971_v12 = vpop.permute.xlu1 %2970 }
 0x3cc   : > { %3046 = vst.msk [vmem:[#allocation2 + $0xa8] sm:$0xff] %vm3024_vm15, %v2971_v12  ;;  %v2969_v7 = vpop.permute.xlu0 %2968  ;;  %v9564_v12 = vld [vmem:[%s7330_s11 + $0x1a0] sm:$0xff] }
 0x3cd   : > { %3045 = vst.msk [vmem:[#allocation2 + $0xa0] sm:$0xff] %vm3024_vm15, %v2969_v7  ;;  %3344 = vrot.lane.b32.xlu1 %v6485_v3, %s7168_s21  ;;  %11354 = vst [vmem:[#allocation19_spill] sm:$0xff] %v9564_v12 }
 0x3ce   : > { %3342 = vrot.lane.b32.xlu0 %v9084_v52, %s7168_s21 }
 0x3cf   : > { %v2975_v58 = vpop.permute.xlu1 %2974 }
 0x3d0   : > { %3048 = vst.msk [vmem:[#allocation2 + $0xb8] sm:$0xff] %vm3024_vm15, %v2975_v58  ;;  %v2973_v49 = vpop.permute.xlu0 %2972  ;;  %v6493_v58 = vld [vmem:[%s7330_s11 + $0x1d0] sm:$0xff] }
 0x3d1   : > { %3047 = vst.msk [vmem:[#allocation2 + $0xb0] sm:$0xff] %vm3024_vm15, %v2973_v49  ;;  %3348 = vrot.lane.b32.xlu1 %v9537_v46, %s7168_s21 }
 0x3d2   : > { %3346 = vrot.lane.b32.xlu0 %v9540_v6, %s7168_s21 }
 0x3d3   : > { %v2979_v52 = vpop.permute.xlu1 %2978 }
 0x3d4   : > { %3050 = vst.msk [vmem:[#allocation2 + $0xc8] sm:$0xff] %vm3024_vm15, %v2979_v52  ;;  %v2977_v16 = vpop.permute.xlu0 %2976 }
 0x3d5   : > { %3049 = vst.msk [vmem:[#allocation2 + $0xc0] sm:$0xff] %vm3024_vm15, %v2977_v16  ;;  %3352 = vrot.lane.b32.xlu1 %v9549_v27, %s7168_s21  ;;  %v9579_v16 = vld [vmem:[%s7330_s11 + $0x210] sm:$0xff] }
 0x3d6   : > { %3350 = vrot.lane.b32.xlu0 %v9552_v11, %s7168_s21  ;;  %11355 = vst [vmem:[#allocation23_spill] sm:$0xff] %v9579_v16 }
 0x3d7   : > { %v2983_v3 = vpop.permute.xlu1 %2982 }
 0x3d8   : > { %3052 = vst.msk [vmem:[#allocation2 + $0xd8] sm:$0xff] %vm3024_vm15, %v2983_v3  ;;  %v2981_v7 = vpop.permute.xlu0 %2980 }
 0x3d9   : > { %3051 = vst.msk [vmem:[#allocation2 + $0xd0] sm:$0xff] %vm3024_vm15, %v2981_v7  ;;  %3356 = vrot.lane.b32.xlu1 %v9561_v20, %s7168_s21  ;;  %v9582_v7 = vld [vmem:[%s7330_s11 + $0x200] sm:$0xff] }
 0x3da   : > { %3354 = vrot.lane.b32.xlu0 %v9564_v12, %s7168_s21  ;;  %11356 = vst [vmem:[#allocation20_spill] sm:$0xff] %v9582_v7 }
 0x3db   : > { %v2987_v49 = vpop.permute.xlu1 %2986 }
 0x3dc   : > { %3054 = vst.msk [vmem:[#allocation2 + $0xe8] sm:$0xff] %vm3024_vm15, %v2987_v49  ;;  %v2985_v52 = vpop.permute.xlu0 %2984  ;;  %v9594_v49 = vld [vmem:[%s7330_s11 + $0x220] sm:$0xff] }
 0x3dd   : > { %3053 = vst.msk [vmem:[#allocation2 + $0xe0] sm:$0xff] %vm3024_vm15, %v2985_v52  ;;  %3360 = vrot.lane.b32.xlu1 %v6493_v58, %s7168_s21  ;;  %11357 = vst [vmem:[#allocation22_spill] sm:$0xff] %v9594_v49 }
 0x3de   : > { %3358 = vrot.lane.b32.xlu0 %v9111_v33, %s7168_s21  ;;  %v9591_v33 = vld [vmem:[%s7330_s11 + $0x230] sm:$0xff] }
 0x3df   : > { %v2991_v3 = vpop.permute.xlu1 %2990 }
 0x3e0   : > { %3056 = vst.msk [vmem:[#allocation2 + $0xf8] sm:$0xff] %vm3024_vm15, %v2991_v3  ;;  %v2989_v12 = vpop.permute.xlu0 %2988 }
 0x3e1   : > { %3055 = vst.msk [vmem:[#allocation2 + $0xf0] sm:$0xff] %vm3024_vm15, %v2989_v12  ;;  %3364 = vrot.lane.b32.xlu1 %v9579_v16, %s7168_s21  ;;  %v9603_v12 = vld [vmem:[%s7330_s11 + $0x250] sm:$0xff]  ;;  %vm5538_vm15 = vcmask 883712  }
 0x3e2   : > { %3362 = vrot.lane.b32.xlu0 %v9582_v7, %s7168_s21  ;;  %v9606_v7 = vld [vmem:[%s7330_s11 + $0x240] sm:$0xff] }
 0x3e3   : > { %v3124_v58 = vpop.permute.xlu1 %3123 }
 0x3e4   : > { %3219 = vst.msk [vmem:[#allocation2 + $0x8] sm:$0xff] %vm3217_vm1, %v3124_v58  ;;  %v3122_v52 = vpop.permute.xlu0 %3121  ;;  %v6501_v58 = vld [vmem:[%s7330_s11 + $0x270] sm:$0xff] }
 0x3e5   : > { %3218 = vst.msk [vmem:[#allocation2] sm:$0xff] %vm3217_vm1, %v3122_v52  ;;  %3368 = vrot.lane.b32.xlu1 %v9591_v33, %s7168_s21 }
 0x3e6   : > { %3366 = vrot.lane.b32.xlu0 %v9594_v49, %s7168_s21 }
 0x3e7   : > { %v3128_v3 = vpop.permute.xlu1 %3127 }
 0x3e8   : > { %3221 = vst.msk [vmem:[#allocation2 + $0x18] sm:$0xff] %vm3217_vm1, %v3128_v3  ;;  %v3126_v16 = vpop.permute.xlu0 %3125 }
 0x3e9   : > { %3220 = vst.msk [vmem:[#allocation2 + $0x10] sm:$0xff] %vm3217_vm1, %v3126_v16  ;;  %3372 = vrot.lane.b32.xlu1 %v9603_v12, %s7168_s21 }
 0x3ea   : > { %3370 = vrot.lane.b32.xlu0 %v9606_v7, %s7168_s21 }
 0x3eb   : > { %v3132_v52 = vpop.permute.xlu1 %3131 }
 0x3ec   : > { %3223 = vst.msk [vmem:[#allocation2 + $0x28] sm:$0xff] %vm3217_vm1, %v3132_v52  ;;  %v3130_v49 = vpop.permute.xlu0 %3129 }
 0x3ed   : > { %3222 = vst.msk [vmem:[#allocation2 + $0x20] sm:$0xff] %vm3217_vm1, %v3130_v49  ;;  %3376 = vrot.lane.b32.xlu1 %v6501_v58, %s7168_s21 }
 0x3ee   : > { %3374 = vrot.lane.b32.xlu0 %v9138_v25, %s7168_s21  ;;  %s513_s21 = scvt.s32.f32 %s512_s17  ;;  %s7176_s17 = smov 92  }
 0x3ef   : > { %v3136_v3 = vpop.permute.xlu1 %3135 }
 0x3f0   : > { %3225 = vst.msk [vmem:[#allocation2 + $0x38] sm:$0xff] %vm3217_vm1, %v3136_v3  ;;  %v3134_v16 = vpop.permute.xlu0 %3133 }
 0x3f1   : > { %3224 = vst.msk [vmem:[#allocation2 + $0x30] sm:$0xff] %vm3217_vm1, %v3134_v16  ;;  %3509 = vrot.lane.b32.xlu1 %v9159_v31, %s11276_s23 }
 0x3f2   : > { %3507 = vrot.lane.b32.xlu0 %v9147_v35, %s11276_s23  ;;  %v6509_v35 = vld [vmem:[%s7330_s11 + $0x91] sm:$0xff] }
 0x3f3   : > { %v3140_v49 = vpop.permute.xlu1 %3139 }
 0x3f4   : > { %3227 = vst.msk [vmem:[#allocation2 + $0x48] sm:$0xff] %vm3217_vm1, %v3140_v49  ;;  %v3138_v58 = vpop.permute.xlu0 %3137 }
 0x3f5   : > { %3226 = vst.msk [vmem:[#allocation2 + $0x40] sm:$0xff] %vm3217_vm1, %v3138_v58  ;;  %3513 = vrot.lane.b32.xlu1 %v9171_v21, %s11276_s23 }
 0x3f6   : > { %3511 = vrot.lane.b32.xlu0 %v9156_v36, %s11276_s23 }
 0x3f7   : > { %v3144_v25 = vpop.permute.xlu1 %3143 }
 0x3f8   : > { %3229 = vst.msk [vmem:[#allocation2 + $0x58] sm:$0xff] %vm3217_vm1, %v3144_v25  ;;  %v3142_v52 = vpop.permute.xlu0 %3141  ;;  %v9696_v25 = vld [vmem:[%s7330_s11 + $0x201] sm:$0xff] }
 0x3f9   : > { %3228 = vst.msk [vmem:[#allocation2 + $0x50] sm:$0xff] %vm3217_vm1, %v3142_v52  ;;  %3517 = vrot.lane.b32.xlu1 %v9183_v59, %s11276_s23 }
 0x3fa   : > { %3515 = vrot.lane.b32.xlu0 %v9168_v18, %s11276_s23 }
 0x3fb   : > { %v3148_v31 = vpop.permute.xlu1 %3147 }
 0x3fc   : > { %3231 = vst.msk [vmem:[#allocation2 + $0x68] sm:$0xff] %vm3217_vm1, %v3148_v31  ;;  %v3146_v21 = vpop.permute.xlu0 %3145 }
 0x3fd   : > { %3230 = vst.msk [vmem:[#allocation2 + $0x60] sm:$0xff] %vm3217_vm1, %v3146_v21  ;;  %3521 = vrot.lane.b32.xlu1 %v6509_v35, %s11276_s23  ;;  %v9708_v35 = vld [vmem:[%s7330_s11 + $0x221] sm:$0xff]  ;;  %v9717_v21 = vld [vmem:[%s7330_s11 + $0x251] sm:$0xff] }
 0x3fe   : > { %3519 = vrot.lane.b32.xlu0 %v9180_v44, %s11276_s23 }
 0x3ff   : > { %v3152_v36 = vpop.permute.xlu1 %3151 }
 0x400   : > { %3233 = vst.msk [vmem:[#allocation2 + $0x78] sm:$0xff] %vm3217_vm1, %v3152_v36  ;;  %v3150_v3 = vpop.permute.xlu0 %3149 }
 0x401   : > { %3232 = vst.msk [vmem:[#allocation2 + $0x70] sm:$0xff] %vm3217_vm1, %v3150_v3  ;;  %3525 = vrot.lane.b32.xlu1 %v9204_v34, %s11276_s23  ;;  %v9720_v3 = vld [vmem:[%s7330_s11 + $0x241] sm:$0xff] }
 0x402   : > { %3523 = vrot.lane.b32.xlu0 %v9192_v45, %s11276_s23  ;;  %v6517_v45 = vld [vmem:[%s7330_s11 + $0x131] sm:$0xff] }
 0x403   : > { %v3156_v18 = vpop.permute.xlu1 %3155 }
 0x404   : > { %3235 = vst.msk [vmem:[#allocation2 + $0x88] sm:$0xff] %vm3217_vm1, %v3156_v18  ;;  %v3154_v59 = vpop.permute.xlu0 %3153 }
 0x405   : > { %3234 = vst.msk [vmem:[#allocation2 + $0x80] sm:$0xff] %vm3217_vm1, %v3154_v59  ;;  %3529 = vrot.lane.b32.xlu1 %v9216_v19, %s11276_s23  ;;  %v6533_v59 = vld [vmem:[%s7330_s11 + $0x271] sm:$0xff] }
 0x406   : > { %3527 = vrot.lane.b32.xlu0 %v9201_v42, %s11276_s23 }
 0x407   : > { %v3160_v44 = vpop.permute.xlu1 %3159 }
 0x408   : > { %3237 = vst.msk [vmem:[#allocation2 + $0x98] sm:$0xff] %vm3217_vm1, %v3160_v44  ;;  %v3158_v16 = vpop.permute.xlu0 %3157 }
 0x409   : > { %3236 = vst.msk [vmem:[#allocation2 + $0x90] sm:$0xff] %vm3217_vm1, %v3158_v16  ;;  %3533 = vrot.lane.b32.xlu1 %v9228_v5, %s11276_s23 }
 0x40a   : > { %3531 = vrot.lane.b32.xlu0 %v9213_v26, %s11276_s23 }
 0x40b   : > { %v3164_v34 = vpop.permute.xlu1 %3163 }
 0x40c   : > { %3239 = vst.msk [vmem:[#allocation2 + $0xa8] sm:$0xff] %vm3217_vm1, %v3164_v34  ;;  %v3162_v19 = vpop.permute.xlu0 %3161 }
 0x40d   : > { %3238 = vst.msk [vmem:[#allocation2 + $0xa0] sm:$0xff] %vm3217_vm1, %v3162_v19  ;;  %3537 = vrot.lane.b32.xlu1 %v6517_v45, %s11276_s23 }
 0x40e   : > { %3535 = vrot.lane.b32.xlu0 %v9225_v38, %s11276_s23 }
 0x40f   : > { %v3168_v42 = vpop.permute.xlu1 %3167 }
 0x410   : > { %3241 = vst.msk [vmem:[#allocation2 + $0xb8] sm:$0xff] %vm3217_vm1, %v3168_v42  ;;  %v3166_v49 = vpop.permute.xlu0 %3165 }
 0x411   : > { %3240 = vst.msk [vmem:[#allocation2 + $0xb0] sm:$0xff] %vm3217_vm1, %v3166_v49  ;;  %3541 = vrot.lane.b32.xlu1 %v9249_v28, %s11276_s23 }
 0x412   : > { %3539 = vrot.lane.b32.xlu0 %v9237_v62, %s11276_s23  ;;  %v6525_v62 = vld [vmem:[%s7330_s11 + $0x1d1] sm:$0xff] }
 0x413   : > { %v3172_v26 = vpop.permute.xlu1 %3171 }
 0x414   : > { %3243 = vst.msk [vmem:[#allocation2 + $0xc8] sm:$0xff] %vm3217_vm1, %v3172_v26  ;;  %v3170_v5 = vpop.permute.xlu0 %3169 }
 0x415   : > { %3242 = vst.msk [vmem:[#allocation2 + $0xc0] sm:$0xff] %vm3217_vm1, %v3170_v5  ;;  %3545 = vrot.lane.b32.xlu1 %v9261_v13, %s11276_s23  ;;  %v9693_v13 = vld [vmem:[%s7330_s11 + $0x211] sm:$0xff] }
 0x416   : > { %3543 = vrot.lane.b32.xlu0 %v9246_v50, %s11276_s23 }
 0x417   : > { %v3176_v38 = vpop.permute.xlu1 %3175 }
 0x418   : > { %3245 = vst.msk [vmem:[#allocation2 + $0xd8] sm:$0xff] %vm3217_vm1, %v3176_v38  ;;  %v3174_v28 = vpop.permute.xlu0 %3173 }
 0x419   : > { %3244 = vst.msk [vmem:[#allocation2 + $0xd0] sm:$0xff] %vm3217_vm1, %v3174_v28  ;;  %3549 = vrot.lane.b32.xlu1 %v9273_v24, %s11276_s23 }
 0x41a   : > { %3547 = vrot.lane.b32.xlu0 %v9258_v56, %s11276_s23 }
 0x41b   : > { %v3180_v58 = vpop.permute.xlu1 %3179 }
 0x41c   : > { %3247 = vst.msk [vmem:[#allocation2 + $0xe8] sm:$0xff] %vm3217_vm1, %v3180_v58  ;;  %v3178_v50 = vpop.permute.xlu0 %3177 }
 0x41d   : > { %3246 = vst.msk [vmem:[#allocation2 + $0xe0] sm:$0xff] %vm3217_vm1, %v3178_v50  ;;  %3553 = vrot.lane.b32.xlu1 %v6525_v62, %s11276_s23  ;;  %v9810_v62 = vld [vmem:[%s7330_s11 + $0x202] sm:$0xff] }
 0x41e   : > { %3551 = vrot.lane.b32.xlu0 %v9270_v61, %s11276_s23  ;;  %v9705_v61 = vld [vmem:[%s7330_s11 + $0x231] sm:$0xff]  ;;  %v9822_v50 = vld [vmem:[%s7330_s11 + $0x222] sm:$0xff] }
 0x41f   : > { %v3184_v24 = vpop.permute.xlu1 %3183 }
 0x420   : > { %3249 = vst.msk [vmem:[#allocation2 + $0xf8] sm:$0xff] %vm3217_vm1, %v3184_v24  ;;  %v3182_v56 = vpop.permute.xlu0 %3181 }
 0x421   : > { %3248 = vst.msk [vmem:[#allocation2 + $0xf0] sm:$0xff] %vm3217_vm1, %v3182_v56  ;;  %3557 = vrot.lane.b32.xlu1 %v9693_v13, %s11276_s23  ;;  %v9831_v56 = vld [vmem:[%s7330_s11 + $0x252] sm:$0xff]  ;;  %vm10642_vm1 = vmpackc.low %vm5538_vm15, %vm5538_vm15 }
 0x422   : > { %3555 = vrot.lane.b32.xlu0 %v9696_v25, %s11276_s23 }
 0x423   : > { %v3317_v52 = vpop.permute.xlu1 %3316 }
 0x424   : > { %3412 = vst.msk [vmem:[#allocation2 + $0x8] sm:$0xff] %vm3410_vm3, %v3317_v52  ;;  %v3315_v31 = vpop.permute.xlu0 %3314 }
 0x425   : > { %3411 = vst.msk [vmem:[#allocation2] sm:$0xff] %vm3410_vm3, %v3315_v31  ;;  %3561 = vrot.lane.b32.xlu1 %v9705_v61, %s11276_s23  ;;  %v9834_v31 = vld [vmem:[%s7330_s11 + $0x242] sm:$0xff] }
 0x426   : > { %3559 = vrot.lane.b32.xlu0 %v9708_v35, %s11276_s23 }
 0x427   : > { %v3321_v36 = vpop.permute.xlu1 %3320 }
 0x428   : > { %3414 = vst.msk [vmem:[#allocation2 + $0x18] sm:$0xff] %vm3410_vm3, %v3321_v36  ;;  %v3319_v18 = vpop.permute.xlu0 %3318 }
 0x429   : > { %3413 = vst.msk [vmem:[#allocation2 + $0x10] sm:$0xff] %vm3410_vm3, %v3319_v18  ;;  %3565 = vrot.lane.b32.xlu1 %v9717_v21, %s11276_s23  ;;  %v6565_v18 = vld [vmem:[%s7330_s11 + $0x272] sm:$0xff] }
 0x42a   : > { %3563 = vrot.lane.b32.xlu0 %v9720_v3, %s11276_s23 }
 0x42b   : > { %v3325_v44 = vpop.permute.xlu1 %3324 }
 0x42c   : > { %3416 = vst.msk [vmem:[#allocation2 + $0x28] sm:$0xff] %vm3410_vm3, %v3325_v44  ;;  %v3323_v16 = vpop.permute.xlu0 %3322 }
 0x42d   : > { %3415 = vst.msk [vmem:[#allocation2 + $0x20] sm:$0xff] %vm3410_vm3, %v3323_v16  ;;  %3569 = vrot.lane.b32.xlu1 %v6533_v59, %s11276_s23  ;;  %v9849_v16 = vld [vmem:[%s7330_s11 + $0xb0] sm:$0xff] }
 0x42e   : > { %3567 = vrot.lane.b32.xlu0 %v9300_v40, %s11276_s23 }
 0x42f   : > { %v3329_v45 = vpop.permute.xlu1 %3328 }
 0x430   : > { %3418 = vst.msk [vmem:[#allocation2 + $0x38] sm:$0xff] %vm3410_vm3, %v3329_v45  ;;  %v3327_v34 = vpop.permute.xlu0 %3326 }
 0x431   : > { %3417 = vst.msk [vmem:[#allocation2 + $0x30] sm:$0xff] %vm3410_vm3, %v3327_v34  ;;  %3702 = vrot.lane.b32.xlu1 %v9321_v51, %s7170_s0  ;;  %v6566_v34 = vld [vmem:[%s7330_s11 + $0xa0] sm:$0xff] }
 0x432   : > { %3700 = vrot.lane.b32.xlu0 %v9309_v43, %s7170_s0  ;;  %v6541_v43 = vld [vmem:[%s7330_s11 + $0x92] sm:$0xff] }
 0x433   : > { %v3333_v19 = vpop.permute.xlu1 %3332 }
 0x434   : > { %3420 = vst.msk [vmem:[#allocation2 + $0x48] sm:$0xff] %vm3410_vm3, %v3333_v19  ;;  %v3331_v42 = vpop.permute.xlu0 %3330 }
 0x435   : > { %3419 = vst.msk [vmem:[#allocation2 + $0x40] sm:$0xff] %vm3410_vm3, %v3331_v42  ;;  %3706 = vrot.lane.b32.xlu1 %v9333_v1, %s7170_s0 }
 0x436   : > { %3704 = vrot.lane.b32.xlu0 %v9318_v23, %s7170_s0 }
 0x437   : > { %v3337_v40 = vpop.permute.xlu1 %3336 }
 0x438   : > { %3422 = vst.msk [vmem:[#allocation2 + $0x58] sm:$0xff] %vm3410_vm3, %v3337_v40  ;;  %v3335_v49 = vpop.permute.xlu0 %3334 }
 0x439   : > { %3421 = vst.msk [vmem:[#allocation2 + $0x50] sm:$0xff] %vm3410_vm3, %v3335_v49  ;;  %3710 = vrot.lane.b32.xlu1 %v9345_v2, %s7170_s0 }
 0x43a   : > { %3708 = vrot.lane.b32.xlu0 %v9330_v14, %s7170_s0 }
 0x43b   : > { %v3341_v51 = vpop.permute.xlu1 %3340 }
 0x43c   : > { %3424 = vst.msk [vmem:[#allocation2 + $0x68] sm:$0xff] %vm3410_vm3, %v3341_v51  ;;  %v3339_v1 = vpop.permute.xlu0 %3338 }
 0x43d   : > { %3423 = vst.msk [vmem:[#allocation2 + $0x60] sm:$0xff] %vm3410_vm3, %v3339_v1  ;;  %3714 = vrot.lane.b32.xlu1 %v6541_v43, %s7170_s0 }
 0x43e   : > { %3712 = vrot.lane.b32.xlu0 %v9342_v29, %s7170_s0 }
 0x43f   : > { %v3345_v23 = vpop.permute.xlu1 %3344 }
 0x440   : > { %3426 = vst.msk [vmem:[#allocation2 + $0x78] sm:$0xff] %vm3410_vm3, %v3345_v23  ;;  %v3343_v26 = vpop.permute.xlu0 %3342 }
 0x441   : > { %3425 = vst.msk [vmem:[#allocation2 + $0x70] sm:$0xff] %vm3410_vm3, %v3343_v26  ;;  %3718 = vrot.lane.b32.xlu1 %v9366_v60, %s7170_s0  ;;  %v11359_v26 = vld [vmem:[#allocation19_spill] sm:$0xff] }
 0x442   : > { %3716 = vrot.lane.b32.xlu0 %v9354_v53, %s7170_s0  ;;  %v6549_v53 = vld [vmem:[%s7330_s11 + $0x132] sm:$0xff] }
 0x443   : > { %v3349_v14 = vpop.permute.xlu1 %3348 }
 0x444   : > { %3428 = vst.msk [vmem:[#allocation2 + $0x88] sm:$0xff] %vm3410_vm3, %v3349_v14  ;;  %v3347_v2 = vpop.permute.xlu0 %3346 }
 0x445   : > { %3427 = vst.msk [vmem:[#allocation2 + $0x80] sm:$0xff] %vm3410_vm3, %v3347_v2  ;;  %3722 = vrot.lane.b32.xlu1 %v9378_v55, %s7170_s0  ;;  %v6582_v2 = vld [vmem:[%s7330_s11 + $0x1e0] sm:$0xff] }
 0x446   : > { %3720 = vrot.lane.b32.xlu0 %v9363_v57, %s7170_s0 }
 0x447   : > { %v3353_v29 = vpop.permute.xlu1 %3352 }
 0x448   : > { %3430 = vst.msk [vmem:[#allocation2 + $0x98] sm:$0xff] %vm3410_vm3, %v3353_v29  ;;  %v3351_v5 = vpop.permute.xlu0 %3350 }
 0x449   : > { %3429 = vst.msk [vmem:[#allocation2 + $0x90] sm:$0xff] %vm3410_vm3, %v3351_v5  ;;  %3726 = vrot.lane.b32.xlu1 %v9390_v22, %s7170_s0  ;;  %v11360_v5 = vld [vmem:[#allocation23_spill] sm:$0xff] }
 0x44a   : > { %3724 = vrot.lane.b32.xlu0 %v9375_v4, %s7170_s0 }
 0x44b   : > { %v3357_v60 = vpop.permute.xlu1 %3356 }
 0x44c   : > { %3432 = vst.msk [vmem:[#allocation2 + $0xa8] sm:$0xff] %vm3410_vm3, %v3357_v60  ;;  %v3355_v55 = vpop.permute.xlu0 %3354 }
 0x44d   : > { %3431 = vst.msk [vmem:[#allocation2 + $0xa0] sm:$0xff] %vm3410_vm3, %v3355_v55  ;;  %3730 = vrot.lane.b32.xlu1 %v6549_v53, %s7170_s0  ;;  %v11361_v53 = vld [vmem:[#allocation20_spill] sm:$0xff] }
 0x44e   : > { %3728 = vrot.lane.b32.xlu0 %v9387_v10, %s7170_s0 }
 0x44f   : > { %v3361_v57 = vpop.permute.xlu1 %3360 }
 0x450   : > { %3434 = vst.msk [vmem:[#allocation2 + $0xb8] sm:$0xff] %vm3410_vm3, %v3361_v57  ;;  %v3359_v38 = vpop.permute.xlu0 %3358  ;;  %v11362_v57 = vld [vmem:[#allocation22_spill] sm:$0xff] }
 0x451   : > { %3433 = vst.msk [vmem:[#allocation2 + $0xb0] sm:$0xff] %vm3410_vm3, %v3359_v38  ;;  %3734 = vrot.lane.b32.xlu1 %v9411_v41, %s7170_s0  ;;  %v493_v38 = vld [vmem:[%s9931_s12 + $0x10] sm:$0xff] }
 0x452   : > { %3732 = vrot.lane.b32.xlu0 %v9399_v48, %s7170_s0  ;;  %v6557_v48 = vld [vmem:[%s7330_s11 + $0x1d2] sm:$0xff] }
 0x453   : > { %v3365_v4 = vpop.permute.xlu1 %3364 }
 0x454   : > { %3436 = vst.msk [vmem:[#allocation2 + $0xc8] sm:$0xff] %vm3410_vm3, %v3365_v4  ;;  %v3363_v22 = vpop.permute.xlu0 %3362  ;;  %v9940_v4 = vstv %s513_s21  ;;  %s7178_s21 = smov 100  }
 0x455   : > { %3435 = vst.msk [vmem:[#allocation2 + $0xc0] sm:$0xff] %vm3410_vm3, %v3363_v22  ;;  %3738 = vrot.lane.b32.xlu1 %v9423_v9, %s7170_s0  ;;  %v9807_v9 = vld [vmem:[%s7330_s11 + $0x212] sm:$0xff] }
 0x456   : > { %3736 = vrot.lane.b32.xlu0 %v9408_v30, %s7170_s0 }
 0x457   : > { %v3369_v10 = vpop.permute.xlu1 %3368 }
 0x458   : > { %3438 = vst.msk [vmem:[#allocation2 + $0xd8] sm:$0xff] %vm3410_vm3, %v3369_v10  ;;  %v3367_v41 = vpop.permute.xlu0 %3366  ;;  %v491_v10 = vld [vmem:[%s9931_s12] sm:$0xff] }
 0x459   : > { %3437 = vst.msk [vmem:[#allocation2 + $0xd0] sm:$0xff] %vm3410_vm3, %v3367_v41  ;;  %3742 = vrot.lane.b32.xlu1 %v9435_v47, %s7170_s0 }
 0x45a   : > { %3740 = vrot.lane.b32.xlu0 %v9420_v15, %s7170_s0 }
 0x45b   : > { %v3373_v28 = vpop.permute.xlu1 %3372 }
 0x45c   : > { %3440 = vst.msk [vmem:[#allocation2 + $0xe8] sm:$0xff] %vm3410_vm3, %v3373_v28  ;;  %v3371_v30 = vpop.permute.xlu0 %3370  ;;  %v497_v28 = vld [vmem:[%s9931_s12 + $0x30] sm:$0xff] }
 0x45d   : > { %3439 = vst.msk [vmem:[#allocation2 + $0xe0] sm:$0xff] %vm3410_vm3, %v3371_v30  ;;  %3746 = vrot.lane.b32.xlu1 %v6557_v48, %s7170_s0  ;;  %v9948_v48 = vmul.f32 %v9940_v4, %v493_v38  ;;  %v6600_v38 = vld [vmem:[%s7330_s11 + $0x161] sm:$0xff] }
 0x45e   : > { %3744 = vrot.lane.b32.xlu0 %v9432_v39, %s7170_s0  ;;  %v9819_v39 = vld [vmem:[%s7330_s11 + $0x232] sm:$0xff] }
 0x45f   : > { %v3377_v47 = vpop.permute.xlu1 %3376 }
 0x460   : > { %3442 = vst.msk [vmem:[#allocation2 + $0xf8] sm:$0xff] %vm3410_vm3, %v3377_v47  ;;  %v3375_v15 = vpop.permute.xlu0 %3374  ;;  %v495_v47 = vld [vmem:[%s9931_s12 + $0x20] sm:$0xff] }
 0x461   : > { %3441 = vst.msk [vmem:[#allocation2 + $0xf0] sm:$0xff] %vm3410_vm3, %v3375_v15  ;;  %3750 = vrot.lane.b32.xlu1 %v9807_v9, %s7170_s0 }
 0x462   : > { %3748 = vrot.lane.b32.xlu0 %v9810_v62, %s7170_s0 }
 0x463   : > { %v3510_v58 = vpop.permute.xlu1 %3509 }
 0x464   : > { %3605 = vst.msk [vmem:[#allocation2 + $0x8] sm:$0xff] %vm3603_vm4, %v3510_v58  ;;  %v3508_v24 = vpop.permute.xlu0 %3507  ;;  %v501_v58 = vld [vmem:[%s9931_s12 + $0x50] sm:$0xff] }
 0x465   : > { %3604 = vst.msk [vmem:[#allocation2] sm:$0xff] %vm3603_vm4, %v3508_v24  ;;  %3754 = vrot.lane.b32.xlu1 %v9819_v39, %s7170_s0 }
 0x466   : > { %3752 = vrot.lane.b32.xlu0 %v9822_v50, %s7170_s0 }
 0x467   : > { %v3514_v52 = vpop.permute.xlu1 %3513 }
 0x468   : > { %3607 = vst.msk [vmem:[#allocation2 + $0x18] sm:$0xff] %vm3603_vm4, %v3514_v52  ;;  %v3512_v36 = vpop.permute.xlu0 %3511  ;;  %v499_v52 = vld [vmem:[%s9931_s12 + $0x40] sm:$0xff] }
 0x469   : > { %3606 = vst.msk [vmem:[#allocation2 + $0x10] sm:$0xff] %vm3603_vm4, %v3512_v36  ;;  %3758 = vrot.lane.b32.xlu1 %v9831_v56, %s7170_s0 }
 0x46a   : > { %3756 = vrot.lane.b32.xlu0 %v9834_v31, %s7170_s0 }
 0x46b   : > { %v3518_v59 = vpop.permute.xlu1 %3517 }
 0x46c   : > { %3609 = vst.msk [vmem:[#allocation2 + $0x28] sm:$0xff] %vm3603_vm4, %v3518_v59  ;;  %v3516_v44 = vpop.permute.xlu0 %3515  ;;  %v9981_v59 = vmul.f32 %v9940_v4, %v499_v52  ;;  %v10064_v52 = vld [vmem:[%s7330_s11 + $0x1f1] sm:$0xff] }
 0x46d   : > { %3608 = vst.msk [vmem:[#allocation2 + $0x20] sm:$0xff] %vm3603_vm4, %v3516_v44  ;;  %3762 = vrot.lane.b32.xlu1 %v6565_v18, %s7170_s0  ;;  %v9976_v18 = vmul.f32 %v9940_v4, %v501_v58  ;;  %v505_v44 = vld [vmem:[%s9931_s12 + $0x70] sm:$0xff]  ;;  %v6604_v58 = vld [vmem:[%s7330_s11 + $0x1a1] sm:$0xff] }
 0x46e   : > { %3760 = vrot.lane.b32.xlu0 %v9462_v37, %s7170_s0  ;;  %s397_s0 = sand.u32 1, %s7120_s25  }
 0x46f   : > { %v3522_v45 = vpop.permute.xlu1 %3521  ;;  %s10471_s18 = sshll.u32 %s397_s0, 5 }
 0x470   : > { %3611 = vst.msk [vmem:[#allocation2 + $0x38] sm:$0xff] %vm3603_vm4, %v3522_v45  ;;  %v3520_v19 = vpop.permute.xlu0 %3519 }
 0x471   : > { %3610 = vst.msk [vmem:[#allocation2 + $0x30] sm:$0xff] %vm3603_vm4, %v3520_v19  ;;  %3880 = vrot.lane.b32.xlu1 %v9849_v16, %s7171_s22 }
 0x472   : > { %3878 = vrot.lane.b32.xlu0 %v6566_v34, %s7171_s22  ;;  %v503_v34 = vld [vmem:[%s9931_s12 + $0x60] sm:$0xff] }
 0x473   : > { %v3526_v42 = vpop.permute.xlu1 %3525 }
 0x474   : > { %3613 = vst.msk [vmem:[#allocation2 + $0x48] sm:$0xff] %vm3603_vm4, %v3526_v42  ;;  %v3524_v40 = vpop.permute.xlu0 %3523  ;;  %v9990_v42 = vmul.f32 %v9940_v4, %v505_v44  ;;  %v6606_v44 = vld [vmem:[%s7330_s11 + $0x1e1] sm:$0xff] }
 0x475   : > { %3612 = vst.msk [vmem:[#allocation2 + $0x40] sm:$0xff] %vm3603_vm4, %v3524_v40  ;;  %3884 = vrot.lane.b32.xlu1 %v9495_v8, %s7171_s22  ;;  %v9995_v40 = vmul.f32 %v9940_v4, %v503_v34 }
 0x476   : > { %3882 = vrot.lane.b32.xlu0 %v9498_v17, %s7171_s22  ;;  %v9876_v17 = vld [vmem:[%s7330_s11 + $0x150] sm:$0xff] }
 0x477   : > { %v3530_v37 = vpop.permute.xlu1 %3529 }
 0x478   : > { %3615 = vst.msk [vmem:[#allocation2 + $0x58] sm:$0xff] %vm3603_vm4, %v3530_v37  ;;  %v3528_v49 = vpop.permute.xlu0 %3527 }
 0x479   : > { %3614 = vst.msk [vmem:[#allocation2 + $0x50] sm:$0xff] %vm3603_vm4, %v3528_v49  ;;  %3888 = vrot.lane.b32.xlu1 %v9507_v54, %s7171_s22  ;;  %v6574_v54 = vld [vmem:[%s7330_s11 + $0x140] sm:$0xff] }
 0x47a   : > { %3886 = vrot.lane.b32.xlu0 %v9510_v63, %s7171_s22 }
 0x47b   : > { %v3534_v43 = vpop.permute.xlu1 %3533 }
 0x47c   : > { %3617 = vst.msk [vmem:[#allocation2 + $0x68] sm:$0xff] %vm3603_vm4, %v3534_v43  ;;  %v3532_v8 = vpop.permute.xlu0 %3531  ;;  %v10004_v43 = vld [vmem:[%s7330_s11 + $0xb1] sm:$0xff] }
 0x47d   : > { %3616 = vst.msk [vmem:[#allocation2 + $0x60] sm:$0xff] %vm3603_vm4, %v3532_v8  ;;  %3892 = vrot.lane.b32.xlu1 %v9519_v0, %s7171_s22 }
 0x47e   : > { %3890 = vrot.lane.b32.xlu0 %v9522_v32, %s7171_s22 }
 0x47f   : > { %v3538_v51 = vpop.permute.xlu1 %3537 }
 0x480   : > { %3619 = vst.msk [vmem:[#allocation2 + $0x78] sm:$0xff] %vm3603_vm4, %v3538_v51  ;;  %v3536_v63 = vpop.permute.xlu0 %3535  ;;  %v6590_v51 = vld [vmem:[%s7330_s11 + $0xa1] sm:$0xff] }
 0x481   : > { %3618 = vst.msk [vmem:[#allocation2 + $0x70] sm:$0xff] %vm3603_vm4, %v3536_v63  ;;  %3896 = vrot.lane.b32.xlu1 %v9876_v17, %s7171_s22  ;;  %v10013_v63 = vld [vmem:[%s7330_s11 + $0xd1] sm:$0xff] }
 0x482   : > { %3894 = vrot.lane.b32.xlu0 %v6574_v54, %s7171_s22 }
 0x483   : > { %v3542_v0 = vpop.permute.xlu1 %3541 }
 0x484   : > { %3621 = vst.msk [vmem:[#allocation2 + $0x88] sm:$0xff] %vm3603_vm4, %v3542_v0  ;;  %v3540_v32 = vpop.permute.xlu0 %3539 }
 0x485   : > { %3620 = vst.msk [vmem:[#allocation2 + $0x80] sm:$0xff] %vm3603_vm4, %v3540_v32  ;;  %3900 = vrot.lane.b32.xlu1 %v9537_v46, %s7171_s22  ;;  %v10016_v32 = vld [vmem:[%s7330_s11 + $0xc1] sm:$0xff] }
 0x486   : > { %3898 = vrot.lane.b32.xlu0 %v9540_v6, %s7171_s22 }
 0x487   : > { %v3546_v1 = vpop.permute.xlu1 %3545 }
 0x488   : > { %3623 = vst.msk [vmem:[#allocation2 + $0x98] sm:$0xff] %vm3603_vm4, %v3546_v1  ;;  %v3544_v23 = vpop.permute.xlu0 %3543 }
 0x489   : > { %3622 = vst.msk [vmem:[#allocation2 + $0x90] sm:$0xff] %vm3603_vm4, %v3544_v23  ;;  %3904 = vrot.lane.b32.xlu1 %v9549_v27, %s7171_s22  ;;  %v9912_v27 = vld [vmem:[%s7330_s11 + $0x1f0] sm:$0xff] }
 0x48a   : > { %3902 = vrot.lane.b32.xlu0 %v9552_v11, %s7171_s22  ;;  %v6595_v23 = vld [vmem:[%s7330_s11 + $0xf1] sm:$0xff] }
 0x48b   : > { %v3550_v46 = vpop.permute.xlu1 %3549 }
 0x48c   : > { %3625 = vst.msk [vmem:[#allocation2 + $0xa8] sm:$0xff] %vm3603_vm4, %v3550_v46  ;;  %v3548_v6 = vpop.permute.xlu0 %3547 }
 0x48d   : > { %3624 = vst.msk [vmem:[#allocation2 + $0xa0] sm:$0xff] %vm3603_vm4, %v3548_v6  ;;  %3908 = vrot.lane.b32.xlu1 %v9561_v20, %s7171_s22  ;;  %v10026_v6 = vld [vmem:[%s7330_s11 + $0xe1] sm:$0xff] }
 0x48e   : > { %3906 = vrot.lane.b32.xlu0 %v11359_v26, %s7171_s22 }
 0x48f   : > { %v3554_v14 = vpop.permute.xlu1 %3553 }
 0x490   : > { %3627 = vst.msk [vmem:[#allocation2 + $0xb8] sm:$0xff] %vm3603_vm4, %v3554_v14  ;;  %v3552_v11 = vpop.permute.xlu0 %3551  ;;  %v6597_v14 = vld [vmem:[%s7330_s11 + $0x111] sm:$0xff] }
 0x491   : > { %3626 = vst.msk [vmem:[#allocation2 + $0xb0] sm:$0xff] %vm3603_vm4, %v3552_v11  ;;  %3912 = vrot.lane.b32.xlu1 %v9912_v27, %s7171_s22  ;;  %v6596_v11 = vld [vmem:[%s7330_s11 + $0x101] sm:$0xff] }
 0x492   : > { %3910 = vrot.lane.b32.xlu0 %v6582_v2, %s7171_s22 }
 0x493   : > { %v3558_v20 = vpop.permute.xlu1 %3557 }
 0x494   : > { %3629 = vst.msk [vmem:[#allocation2 + $0xc8] sm:$0xff] %vm3603_vm4, %v3558_v20  ;;  %v3556_v29 = vpop.permute.xlu0 %3555 }
 0x495   : > { %3628 = vst.msk [vmem:[#allocation2 + $0xc0] sm:$0xff] %vm3603_vm4, %v3556_v29  ;;  %3916 = vrot.lane.b32.xlu1 %v11360_v5, %s7171_s22  ;;  %v6599_v29 = vld [vmem:[%s7330_s11 + $0x151] sm:$0xff] }
 0x496   : > { %3914 = vrot.lane.b32.xlu0 %v11361_v53, %s7171_s22  ;;  %v6598_v53 = vld [vmem:[%s7330_s11 + $0x141] sm:$0xff] }
 0x497   : > { %v3562_v60 = vpop.permute.xlu1 %3561 }
 0x498   : > { %3631 = vst.msk [vmem:[#allocation2 + $0xd8] sm:$0xff] %vm3603_vm4, %v3562_v60  ;;  %v3560_v55 = vpop.permute.xlu0 %3559 }
 0x499   : > { %3630 = vst.msk [vmem:[#allocation2 + $0xd0] sm:$0xff] %vm3603_vm4, %v3560_v55  ;;  %3920 = vrot.lane.b32.xlu1 %v9591_v33, %s7171_s22  ;;  %v9953_v33 = vmul.f32 %v9940_v4, %v491_v10  ;;  %v6601_v55 = vld [vmem:[%s7330_s11 + $0x171] sm:$0xff] }
 0x49a   : > { %3918 = vrot.lane.b32.xlu0 %v11362_v57, %s7171_s22  ;;  %v6603_v10 = vld [vmem:[%s7330_s11 + $0x191] sm:$0xff] }
 0x49b   : > { %v3566_v22 = vpop.permute.xlu1 %3565 }
 0x49c   : > { %3633 = vst.msk [vmem:[#allocation2 + $0xe8] sm:$0xff] %vm3603_vm4, %v3566_v22  ;;  %v3564_v41 = vpop.permute.xlu0 %3563 }
 0x49d   : > { %3632 = vst.msk [vmem:[#allocation2 + $0xe0] sm:$0xff] %vm3603_vm4, %v3564_v41  ;;  %3924 = vrot.lane.b32.xlu1 %v9603_v12, %s7171_s22  ;;  %v9962_v12 = vmul.f32 %v9940_v4, %v497_v28  ;;  %v6602_v28 = vld [vmem:[%s7330_s11 + $0x181] sm:$0xff] }
 0x49e   : > { %3922 = vrot.lane.b32.xlu0 %v9606_v7, %s7171_s22  ;;  %v9967_v7 = vmul.f32 %v9940_v4, %v495_v47  ;;  %v6605_v47 = vld [vmem:[%s7330_s11 + $0x1b1] sm:$0xff] }
 0x49f   : > { %v3570_v30 = vpop.permute.xlu1 %3569 }
 0x4a0   : > { %3635 = vst.msk [vmem:[#allocation2 + $0xf8] sm:$0xff] %vm3603_vm4, %v3570_v30  ;;  %v3568_v15 = vpop.permute.xlu0 %3567 }
 0x4a1   : > { %3634 = vst.msk [vmem:[#allocation2 + $0xf0] sm:$0xff] %vm3603_vm4, %v3568_v15  ;;  %3985 = vrot.lane.b32.xlu1 %v9948_v48, %s7171_s22 }
 0x4a2   : > { %3983 = vrot.lane.b32.xlu0 %v9953_v33, %s7171_s22 }
 0x4a3   : > { %v3703_v24 = vpop.permute.xlu1 %3702 }
 0x4a4   : > { %3798 = vst.msk [vmem:[#allocation2 + $0x8] sm:$0xff] %vm3796_vm5, %v3703_v24  ;;  %v3701_v36 = vpop.permute.xlu0 %3700 }
 0x4a5   : > { %3797 = vst.msk [vmem:[#allocation2] sm:$0xff] %vm3796_vm5, %v3701_v36  ;;  %3989 = vrot.lane.b32.xlu1 %v9962_v12, %s7171_s22 }
 0x4a6   : > { %3987 = vrot.lane.b32.xlu0 %v9967_v7, %s7171_s22 }
 0x4a7   : > { %v3707_v45 = vpop.permute.xlu1 %3706 }
 0x4a8   : > { %3800 = vst.msk [vmem:[#allocation2 + $0x18] sm:$0xff] %vm3796_vm5, %v3707_v45  ;;  %v3705_v19 = vpop.permute.xlu0 %3704 }
 0x4a9   : > { %3799 = vst.msk [vmem:[#allocation2 + $0x10] sm:$0xff] %vm3796_vm5, %v3705_v19  ;;  %3993 = vrot.lane.b32.xlu1 %v9976_v18, %s7171_s22  ;;  %v494_v19 = vld [vmem:[%s9931_s12 + $0x18] sm:$0x3] }
 0x4aa   : > { %3991 = vrot.lane.b32.xlu0 %v9981_v59, %s7171_s22 }
 0x4ab   : > { %v3711_v37 = vpop.permute.xlu1 %3710 }
 0x4ac   : > { %3802 = vst.msk [vmem:[#allocation2 + $0x28] sm:$0xff] %vm3796_vm5, %v3711_v37  ;;  %v3709_v49 = vpop.permute.xlu0 %3708 }
 0x4ad   : > { %3801 = vst.msk [vmem:[#allocation2 + $0x20] sm:$0xff] %vm3796_vm5, %v3709_v49  ;;  %3997 = vrot.lane.b32.xlu1 %v9990_v42, %s7171_s22  ;;  %v492_v49 = vld [vmem:[%s9931_s12 + $0x8] sm:$0x3] }
 0x4ae   : > { %3995 = vrot.lane.b32.xlu0 %v9995_v40, %s7171_s22  ;;  %s7173_s22 = smov 80  }
 0x4af   : > { %v3715_v8 = vpop.permute.xlu1 %3714 }
 0x4b0   : > { %3804 = vst.msk [vmem:[#allocation2 + $0x38] sm:$0xff] %vm3796_vm5, %v3715_v8  ;;  %v3713_v54 = vpop.permute.xlu0 %3712  ;;  %v10081_v8 = vmul.f32 %v9940_v4, %v494_v19 }
 0x4b1   : > { %3803 = vst.msk [vmem:[#allocation2 + $0x30] sm:$0xff] %vm3796_vm5, %v3713_v54  ;;  %4065 = vrot.lane.b32.xlu1 %v10004_v43, %s7172_s10  ;;  %v10084_v54 = vmul.f32 %v9940_v4, %v492_v49 }
 0x4b2   : > { %4063 = vrot.lane.b32.xlu0 %v6590_v51, %s7172_s10 }
 0x4b3   : > { %v3719_v0 = vpop.permute.xlu1 %3718 }
 0x4b4   : > { %3806 = vst.msk [vmem:[#allocation2 + $0x48] sm:$0xff] %vm3796_vm5, %v3719_v0  ;;  %v3717_v1 = vpop.permute.xlu0 %3716  ;;  %v498_v0 = vld [vmem:[%s9931_s12 + $0x38] sm:$0x3] }
 0x4b5   : > { %3805 = vst.msk [vmem:[#allocation2 + $0x40] sm:$0xff] %vm3796_vm5, %v3717_v1  ;;  %4069 = vrot.lane.b32.xlu1 %v10013_v63, %s7172_s10 }
 0x4b6   : > { %4067 = vrot.lane.b32.xlu0 %v10016_v32, %s7172_s10 }
 0x4b7   : > { %v3723_v46 = vpop.permute.xlu1 %3722 }
 0x4b8   : > { %3808 = vst.msk [vmem:[#allocation2 + $0x58] sm:$0xff] %vm3796_vm5, %v3723_v46  ;;  %v3721_v26 = vpop.permute.xlu0 %3720  ;;  %v10097_v46 = vmul.f32 %v9940_v4, %v498_v0 }
 0x4b9   : > { %3807 = vst.msk [vmem:[#allocation2 + $0x50] sm:$0xff] %vm3796_vm5, %v3721_v26  ;;  %4073 = vrot.lane.b32.xlu1 %v6595_v23, %s7172_s10  ;;  %v496_v23 = vld [vmem:[%s9931_s12 + $0x28] sm:$0x3] }
 0x4ba   : > { %4071 = vrot.lane.b32.xlu0 %v10026_v6, %s7172_s10 }
 0x4bb   : > { %v3727_v2 = vpop.permute.xlu1 %3726 }
 0x4bc   : > { %3810 = vst.msk [vmem:[#allocation2 + $0x68] sm:$0xff] %vm3796_vm5, %v3727_v2  ;;  %v3725_v20 = vpop.permute.xlu0 %3724  ;;  %v4169_v2 = vrot.slane %v10084_v54, 1 }
 0x4bd   : > { %3809 = vst.msk [vmem:[#allocation2 + $0x60] sm:$0xff] %vm3796_vm5, %v3725_v20  ;;  %4077 = vrot.lane.b32.xlu1 %v6597_v14, %s7172_s10  ;;  %v4168_v14 = vrot.slane %v9953_v33, 1  ;;  %v502_v20 = vld [vmem:[%s9931_s12 + $0x58] sm:$0x3] }
 0x4be   : > { %4075 = vrot.lane.b32.xlu0 %v6596_v11, %s7172_s10  ;;  %v10102_v11 = vmul.f32 %v9940_v4, %v496_v23 }
 0x4bf   : > { %v3731_v5 = vpop.permute.xlu1 %3730 }
 0x4c0   : > { %3812 = vst.msk [vmem:[#allocation2 + $0x78] sm:$0xff] %vm3796_vm5, %v3731_v5  ;;  %v3729_v60 = vpop.permute.xlu0 %3728  ;;  %v4177_v5 = vrot.slane %v9962_v12, 1 }
 0x4c1   : > { %3811 = vst.msk [vmem:[#allocation2 + $0x70] sm:$0xff] %vm3796_vm5, %v3729_v60  ;;  %4081 = vrot.lane.b32.xlu1 %v6599_v29, %s7172_s10  ;;  %v10118_v60 = vmul.f32 %v9940_v4, %v502_v20  ;;  %v10184_v20 = vld [vmem:[%s7330_s11 + $0xb2] sm:$0xff] }
 0x4c2   : > { %4079 = vrot.lane.b32.xlu0 %v6598_v53, %s7172_s10  ;;  %v4178_v53 = vrot.slane %v10097_v46, 1 }
 0x4c3   : > { %v3735_v57 = vpop.permute.xlu1 %3734 }
 0x4c4   : > { %3814 = vst.msk [vmem:[#allocation2 + $0x88] sm:$0xff] %vm3796_vm5, %v3735_v57  ;;  %v3733_v22 = vpop.permute.xlu0 %3732  ;;  %v4170_v57 = vsel %vm608_vm0, %v4168_v14, %v4169_v2 }
 0x4c5   : > { %3813 = vst.msk [vmem:[#allocation2 + $0x80] sm:$0xff] %vm3796_vm5, %v3733_v22  ;;  %4085 = vrot.lane.b32.xlu1 %v6601_v55, %s7172_s10 }
 0x4c6   : > { %4083 = vrot.lane.b32.xlu0 %v6600_v38, %s7172_s10  ;;  %v4174_v38 = vrot.slane %v9967_v7, 1 }
 0x4c7   : > { %v3739_v41 = vpop.permute.xlu1 %3738 }
 0x4c8   : > { %3816 = vst.msk [vmem:[#allocation2 + $0x98] sm:$0xff] %vm3796_vm5, %v3739_v41  ;;  %v3737_v30 = vpop.permute.xlu0 %3736  ;;  %v504_v41 = vld [vmem:[%s9931_s12 + $0x68] sm:$0x3] }
 0x4c9   : > { %3815 = vst.msk [vmem:[#allocation2 + $0x90] sm:$0xff] %vm3796_vm5, %v3737_v30  ;;  %4089 = vrot.lane.b32.xlu1 %v6603_v10, %s7172_s10  ;;  %v4183_v30 = vrot.slane %v9976_v18, 1 }
 0x4ca   : > { %4087 = vrot.lane.b32.xlu0 %v6602_v28, %s7172_s10  ;;  %v10134_v28 = vsel %vm608_vm0, %v4177_v5, %v4178_v53  ;;  %v10193_v53 = vld [vmem:[%s7330_s11 + $0xd2] sm:$0xff] }
 0x4cb   : > { %v3743_v15 = vpop.permute.xlu1 %3742 }
 0x4cc   : > { %3818 = vst.msk [vmem:[#allocation2 + $0xa8] sm:$0xff] %vm3796_vm5, %v3743_v15  ;;  %v3741_v24 = vpop.permute.xlu0 %3740 }
 0x4cd   : > { %3817 = vst.msk [vmem:[#allocation2 + $0xa0] sm:$0xff] %vm3796_vm5, %v3741_v24  ;;  %4093 = vrot.lane.b32.xlu1 %v6605_v47, %s7172_s10  ;;  %v4184_v47 = vrot.slane %v10118_v60, 1 }
 0x4ce   : > { %4091 = vrot.lane.b32.xlu0 %v6604_v58, %s7172_s10 }
 0x4cf   : > { %v3747_v36 = vpop.permute.xlu1 %3746  ;;  %v10156_v19 = vsel %vm608_vm0, %v4183_v30, %v4184_v47  ;;  %v10217_v30 = vld [vmem:[%s7330_s11 + $0x112] sm:$0xff] }
 0x4d0   : > { %3820 = vst.msk [vmem:[#allocation2 + $0xb8] sm:$0xff] %vm3796_vm5, %v3747_v36  ;;  %v3745_v45 = vpop.permute.xlu0 %3744  ;;  %v4180_v36 = vrot.slane %v9981_v59, 1 }
 0x4d1   : > { %3819 = vst.msk [vmem:[#allocation2 + $0xb0] sm:$0xff] %vm3796_vm5, %v3745_v45  ;;  %4097 = vrot.lane.b32.xlu1 %v10064_v52, %s7172_s10  ;;  %v10147_v45 = vmul.f32 %v9940_v4, %v504_v41 }
 0x4d2   : > { %4095 = vrot.lane.b32.xlu0 %v6606_v44, %s7172_s10 }
 0x4d3   : > { %v3751_v34 = vpop.permute.xlu1 %3750  ;;  %v4187_v23 = vrot.slane %v10147_v45, 1 }
 0x4d4   : > { %3822 = vst.msk [vmem:[#allocation2 + $0xc8] sm:$0xff] %vm3796_vm5, %v3751_v34  ;;  %v3749_v37 = vpop.permute.xlu0 %3748 }
 0x4d5   : > { %3821 = vst.msk [vmem:[#allocation2 + $0xc0] sm:$0xff] %vm3796_vm5, %v3749_v37  ;;  %4101 = vrot.lane.b32.xlu1 %v9693_v13, %s7172_s10  ;;  %v4171_v13 = vrot.slane %v9948_v48, 1  ;;  %v4189_v37 = vrot.slane %v9990_v42, 1 }
 0x4d6   : > { %4099 = vrot.lane.b32.xlu0 %v9696_v25, %s7172_s10  ;;  %v4172_v25 = vrot.slane %v10081_v8, 1 }
 0x4d7   : > { %v3755_v51 = vpop.permute.xlu1 %3754 }
 0x4d8   : > { %3824 = vst.msk [vmem:[#allocation2 + $0xd8] sm:$0xff] %vm3796_vm5, %v3755_v51  ;;  %v3753_v1 = vpop.permute.xlu0 %3752  ;;  %v10113_v29 = vsel %vm608_vm0, %v4171_v13, %v4172_v25 }
 0x4d9   : > { %3823 = vst.msk [vmem:[#allocation2 + $0xd0] sm:$0xff] %vm3796_vm5, %v3753_v1  ;;  %4105 = vrot.lane.b32.xlu1 %v9705_v61, %s7172_s10  ;;  %v4186_v1 = vrot.slane %v9995_v40, 1 }
 0x4da   : > { %4103 = vrot.lane.b32.xlu0 %v9708_v35, %s7172_s10  ;;  %v500_v35 = vld [vmem:[%s9931_s12 + $0x48] sm:$0x3] }
 0x4db   : > { %v3759_v26 = vpop.permute.xlu1 %3758  ;;  %v10124_v22 = vmul.f32 %v9940_v4, %v500_v35  ;;  %v10175_v14 = vsel %vm608_vm0, %v4186_v1, %v4187_v23  ;;  %v6614_v35 = vld [vmem:[%s7330_s11 + $0xa2] sm:$0xff] }
 0x4dc   : > { %3826 = vst.msk [vmem:[#allocation2 + $0xe8] sm:$0xff] %vm3796_vm5, %v3759_v26  ;;  %v3757_v61 = vpop.permute.xlu0 %3756  ;;  %v6624_v23 = vld [vmem:[%s7330_s11 + $0x162] sm:$0xff] }
 0x4dd   : > { %3825 = vst.msk [vmem:[#allocation2 + $0xe0] sm:$0xff] %vm3796_vm5, %v3757_v61  ;;  %4109 = vrot.lane.b32.xlu1 %v9717_v21, %s7172_s10  ;;  %v4175_v21 = vrot.slane %v10102_v11, 1  ;;  %v4181_v44 = vrot.slane %v10124_v22, 1 }
 0x4de   : > { %4107 = vrot.lane.b32.xlu0 %v9720_v3, %s7172_s10  ;;  %v506_v3 = vld [vmem:[%s9931_s12 + $0x78] sm:$0x3] }
 0x4df   : > { %v3763_v55 = vpop.permute.xlu1 %3762  ;;  %v10139_v15 = vmul.f32 %v9940_v4, %v506_v3  ;;  %v10142_v24 = vsel %vm608_vm0, %v4174_v38, %v4175_v21  ;;  %v10161_v0 = vsel %vm608_vm0, %v4180_v36, %v4181_v44  ;;  %v10205_v21 = vld [vmem:[%s7330_s11 + $0xf2] sm:$0xff] }
 0x4e0   : > { %3828 = vst.msk [vmem:[#allocation2 + $0xf8] sm:$0xff] %vm3796_vm5, %v3763_v55  ;;  %v3761_v10 = vpop.permute.xlu0 %3760  ;;  %v6623_v44 = vld [vmem:[%s7330_s11 + $0x152] sm:$0xff] }
 0x4e1   : > { %3827 = vst.msk [vmem:[#allocation2 + $0xf0] sm:$0xff] %vm3796_vm5, %v3761_v10  ;;  %4194 = vrot.lane.b32.xlu1 %v10113_v29, %s7172_s10  ;;  %v4190_v49 = vrot.slane %v10139_v15, 1  ;;  %v10208_v10 = vld [vmem:[%s7330_s11 + $0xe2] sm:$0xff] }
 0x4e2   : > { %4192 = vrot.lane.b32.xlu0 %v4170_v57, %s7172_s10  ;;  %v10196_v57 = vld [vmem:[%s7330_s11 + $0xc2] sm:$0xff] }
 0x4e3   : > { %v3881_v58 = vpop.permute.xlu1 %3880  ;;  %v10172_v25 = vsel %vm608_vm0, %v4189_v37, %v4190_v49  ;;  %v6622_v37 = vld [vmem:[%s7330_s11 + $0x142] sm:$0xff] }
 0x4e4   : > { %3952 = vst.msk [vmem:[#allocation2 + $0x8] sm:$0xff] %vm3950_vm6, %v3881_v58  ;;  %v3879_v34 = vpop.permute.xlu0 %3878  ;;  %v10220_v58 = vld [vmem:[%s7330_s11 + $0x102] sm:$0xff] }
 0x4e5   : > { %3951 = vst.msk [vmem:[#allocation2] sm:$0xff] %vm3950_vm6, %v3879_v34  ;;  %4198 = vrot.lane.b32.xlu1 %v10134_v28, %s7172_s10 }
 0x4e6   : > { %4196 = vrot.lane.b32.xlu0 %v10142_v24, %s7172_s10 }
 0x4e7   : > { %v3885_v51 = vpop.permute.xlu1 %3884 }
 0x4e8   : > { %3954 = vst.msk [vmem:[#allocation2 + $0x18] sm:$0xff] %vm3950_vm6, %v3885_v51  ;;  %v3883_v13 = vpop.permute.xlu0 %3882  ;;  %v6625_v51 = vld [vmem:[%s7330_s11 + $0x172] sm:$0xff] }
 0x4e9   : > { %3953 = vst.msk [vmem:[#allocation2 + $0x10] sm:$0xff] %vm3950_vm6, %v3883_v13  ;;  %4202 = vrot.lane.b32.xlu1 %v10156_v19, %s7172_s10 }
 0x4ea   : > { %4200 = vrot.lane.b32.xlu0 %v10161_v0, %s7172_s10 }
 0x4eb   : > { %v3889_v26 = vpop.permute.xlu1 %3888 }
 0x4ec   : > { %3956 = vst.msk [vmem:[#allocation2 + $0x28] sm:$0xff] %vm3950_vm6, %v3889_v26  ;;  %v3887_v2 = vpop.permute.xlu0 %3886  ;;  %v6627_v26 = vld [vmem:[%s7330_s11 + $0x192] sm:$0xff] }
 0x4ed   : > { %3955 = vst.msk [vmem:[#allocation2 + $0x20] sm:$0xff] %vm3950_vm6, %v3887_v2  ;;  %4206 = vrot.lane.b32.xlu1 %v10172_v25, %s7172_s10 }
 0x4ee   : > { %4204 = vrot.lane.b32.xlu0 %v10175_v14, %s7172_s10  ;;  %s7179_s10 = smov 104  }
 0x4ef   : > { %v3893_v61 = vpop.permute.xlu1 %3892 }
 0x4f0   : > { %3958 = vst.msk [vmem:[#allocation2 + $0x38] sm:$0xff] %vm3950_vm6, %v3893_v61  ;;  %v3891_v5 = vpop.permute.xlu0 %3890  ;;  %v6626_v61 = vld [vmem:[%s7330_s11 + $0x182] sm:$0xff] }
 0x4f1   : > { %3957 = vst.msk [vmem:[#allocation2 + $0x30] sm:$0xff] %vm3950_vm6, %v3891_v5  ;;  %4274 = vrot.lane.b32.xlu1 %v10184_v20, %s7173_s22  ;;  %v6629_v5 = vld [vmem:[%s7330_s11 + $0x1b2] sm:$0xff] }
 0x4f2   : > { %4272 = vrot.lane.b32.xlu0 %v6614_v35, %s7173_s22 }
 0x4f3   : > { %v3897_v55 = vpop.permute.xlu1 %3896 }
 0x4f4   : > { %3960 = vst.msk [vmem:[#allocation2 + $0x48] sm:$0xff] %vm3950_vm6, %v3897_v55  ;;  %v3895_v38 = vpop.permute.xlu0 %3894 }
 0x4f5   : > { %3959 = vst.msk [vmem:[#allocation2 + $0x40] sm:$0xff] %vm3950_vm6, %v3895_v38  ;;  %4278 = vrot.lane.b32.xlu1 %v10193_v53, %s7173_s22  ;;  %v6628_v38 = vld [vmem:[%s7330_s11 + $0x1a2] sm:$0xff] }
 0x4f6   : > { %4276 = vrot.lane.b32.xlu0 %v10196_v57, %s7173_s22 }
 0x4f7   : > { %v3901_v3 = vpop.permute.xlu1 %3900 }
 0x4f8   : > { %3962 = vst.msk [vmem:[#allocation2 + $0x58] sm:$0xff] %vm3950_vm6, %v3901_v3  ;;  %v3899_v41 = vpop.permute.xlu0 %3898 }
 0x4f9   : > { %3961 = vst.msk [vmem:[#allocation2 + $0x50] sm:$0xff] %vm3950_vm6, %v3899_v41  ;;  %4282 = vrot.lane.b32.xlu1 %v10205_v21, %s7173_s22  ;;  %v10253_v41 = vld [vmem:[%s7330_s11 + $0x1f2] sm:$0xff] }
 0x4fa   : > { %4280 = vrot.lane.b32.xlu0 %v10208_v10, %s7173_s22 }
 0x4fb   : > { %v3905_v47 = vpop.permute.xlu1 %3904 }
 0x4fc   : > { %3964 = vst.msk [vmem:[#allocation2 + $0x68] sm:$0xff] %vm3950_vm6, %v3905_v47  ;;  %v3903_v36 = vpop.permute.xlu0 %3902 }
 0x4fd   : > { %3963 = vst.msk [vmem:[#allocation2 + $0x60] sm:$0xff] %vm3950_vm6, %v3903_v36  ;;  %4286 = vrot.lane.b32.xlu1 %v10217_v30, %s7173_s22  ;;  %v6630_v36 = vld [vmem:[%s7330_s11 + $0x1e2] sm:$0xff] }
 0x4fe   : > { %4284 = vrot.lane.b32.xlu0 %v10220_v58, %s7173_s22 }
 0x4ff   : > { %v3909_v34 = vpop.permute.xlu1 %3908 }
 0x500   : > { %3966 = vst.msk [vmem:[#allocation2 + $0x78] sm:$0xff] %vm3950_vm6, %v3909_v34  ;;  %v3907_v49 = vpop.permute.xlu0 %3906 }
 0x501   : > { %3965 = vst.msk [vmem:[#allocation2 + $0x70] sm:$0xff] %vm3950_vm6, %v3907_v49  ;;  %4290 = vrot.lane.b32.xlu1 %v6623_v44, %s7173_s22 }
 0x502   : > { %4288 = vrot.lane.b32.xlu0 %v6622_v37, %s7173_s22 }
 0x503   : > { %v3913_v1 = vpop.permute.xlu1 %3912 }
 0x504   : > { %3968 = vst.msk [vmem:[#allocation2 + $0x88] sm:$0xff] %vm3950_vm6, %v3913_v1  ;;  %v3911_v13 = vpop.permute.xlu0 %3910  ;;  %v4372_v1 = vrot.slane %v9948_v48, 2 }
 0x505   : > { %3967 = vst.msk [vmem:[#allocation2 + $0x80] sm:$0xff] %vm3950_vm6, %v3911_v13  ;;  %4294 = vrot.lane.b32.xlu1 %v6625_v51, %s7173_s22  ;;  %v4369_v13 = vrot.slane %v9953_v33, 2  ;;  %v4379_v33 = vrot.slane %v10097_v46, 2  ;;  %v4384_v46 = vrot.slane %v9976_v18, 2 }
 0x506   : > { %4292 = vrot.lane.b32.xlu0 %v6624_v23, %s7173_s22  ;;  %v4373_v23 = vrot.slane %v10081_v8, 2 }
 0x507   : > { %v3917_v2 = vpop.permute.xlu1 %3916 }
 0x508   : > { %3970 = vst.msk [vmem:[#allocation2 + $0x98] sm:$0xff] %vm3950_vm6, %v3917_v2  ;;  %v3915_v35 = vpop.permute.xlu0 %3914  ;;  %v4375_v2 = vrot.slane %v9967_v7, 2 }
 0x509   : > { %3969 = vst.msk [vmem:[#allocation2 + $0x90] sm:$0xff] %vm3950_vm6, %v3915_v35  ;;  %4298 = vrot.lane.b32.xlu1 %v6627_v26, %s7173_s22  ;;  %v4385_v35 = vrot.slane %v10118_v60, 2 }
 0x50a   : > { %4296 = vrot.lane.b32.xlu0 %v6626_v61, %s7173_s22  ;;  %v4376_v61 = vrot.slane %v10102_v11, 2 }
 0x50b   : > { %v3921_v55 = vpop.permute.xlu1 %3920  ;;  %v10313_v60 = vsel %vm810_vm2, %v4384_v46, %v4385_v35  ;;  %v10377_v46 = vld [vmem:[%s7330_s11 + $0x110] sm:$0xff] }
 0x50c   : > { %3972 = vst.msk [vmem:[#allocation2 + $0xa8] sm:$0xff] %vm3950_vm6, %v3921_v55  ;;  %v3919_v3 = vpop.permute.xlu0 %3918  ;;  %v10302_v11 = vsel %vm810_vm2, %v4375_v2, %v4376_v61  ;;  %v4381_v55 = vrot.slane %v9981_v59, 2  ;;  %v10374_v61 = vld [vmem:[%s7330_s11 + $0x120] sm:$0xff] }
 0x50d   : > { %3971 = vst.msk [vmem:[#allocation2 + $0xa0] sm:$0xff] %vm3950_vm6, %v3919_v3  ;;  %4302 = vrot.lane.b32.xlu1 %v6629_v5, %s7173_s22 }
 0x50e   : > { %4300 = vrot.lane.b32.xlu0 %v6628_v38, %s7173_s22  ;;  %v4382_v38 = vrot.slane %v10124_v22, 2 }
 0x50f   : > { %v3925_v47 = vpop.permute.xlu1 %3924 }
 0x510   : > { %3974 = vst.msk [vmem:[#allocation2 + $0xb8] sm:$0xff] %vm3950_vm6, %v3925_v47  ;;  %v3923_v44 = vpop.permute.xlu0 %3922  ;;  %v4390_v47 = vrot.slane %v9990_v42, 2  ;;  %v10318_v22 = vsel %vm810_vm2, %v4381_v55, %v4382_v38 }
 0x511   : > { %3973 = vst.msk [vmem:[#allocation2 + $0xb0] sm:$0xff] %vm3950_vm6, %v3923_v44  ;;  %4306 = vrot.lane.b32.xlu1 %v10253_v41, %s7173_s22 }
 0x512   : > { %4304 = vrot.lane.b32.xlu0 %v6630_v36, %s7173_s22  ;;  %v4391_v36 = vrot.slane %v10139_v15, 2 }
 0x513   : > { %v3986_v34 = vpop.permute.xlu1 %3985 }
 0x514   : > { %4008 = vst.msk [vmem:[#allocation2 + $0xc8] sm:$0xff] %vm3950_vm6, %v3986_v34  ;;  %v3984_v37 = vpop.permute.xlu0 %3983  ;;  %v4387_v34 = vrot.slane %v9995_v40, 2  ;;  %v10329_v15 = vsel %vm810_vm2, %v4390_v47, %v4391_v36  ;;  %v10396_v36 = vld [vmem:[%s7330_s11 + $0x170] sm:$0xff] }
 0x515   : > { %4007 = vst.msk [vmem:[#allocation2 + $0xc0] sm:$0xff] %vm3950_vm6, %v3984_v37  ;;  %4310 = vrot.lane.b32.xlu1 %v9807_v9, %s7173_s22  ;;  %v4388_v37 = vrot.slane %v10147_v45, 2 }
 0x516   : > { %4308 = vrot.lane.b32.xlu0 %v9810_v62, %s7173_s22  ;;  %v4370_v62 = vrot.slane %v10084_v54, 2 }
 0x517   : > { %v3990_v49 = vpop.permute.xlu1 %3989 }
 0x518   : > { %4010 = vst.msk [vmem:[#allocation2 + $0xd8] sm:$0xff] %vm3950_vm6, %v3990_v49  ;;  %v3988_v51 = vpop.permute.xlu0 %3987  ;;  %v4371_v54 = vsel %vm810_vm2, %v4369_v13, %v4370_v62  ;;  %v10350_v62 = vld [vmem:[%s7330_s11 + $0xe0] sm:$0xff] }
 0x519   : > { %4009 = vst.msk [vmem:[#allocation2 + $0xd0] sm:$0xff] %vm3950_vm6, %v3988_v51  ;;  %4314 = vrot.lane.b32.xlu1 %v9819_v39, %s7173_s22  ;;  %v10284_v39 = vsel %vm810_vm2, %v4372_v1, %v4373_v23  ;;  %v10332_v1 = vsel %vm810_vm2, %v4387_v34, %v4388_v37  ;;  %v10341_v23 = vld [vmem:[%s7330_s11 + $0xc0] sm:$0xff] }
 0x51a   : > { %4312 = vrot.lane.b32.xlu0 %v9822_v50, %s7173_s22  ;;  %v4378_v50 = vrot.slane %v9962_v12, 2  ;;  %v6651_v34 = vld [vmem:[%s7330_s11 + $0x1a0] sm:$0xff] }
 0x51b   : > { %v3994_v9 = vpop.permute.xlu1 %3993 }
 0x51c   : > { %4012 = vst.msk [vmem:[#allocation2 + $0xe8] sm:$0xff] %vm3950_vm6, %v3994_v9  ;;  %v3992_v26 = vpop.permute.xlu0 %3991 }
 0x51d   : > { %4011 = vst.msk [vmem:[#allocation2 + $0xe0] sm:$0xff] %vm3950_vm6, %v3992_v26  ;;  %4318 = vrot.lane.b32.xlu1 %v9831_v56, %s7173_s22 }
 0x51e   : > { %4316 = vrot.lane.b32.xlu0 %v9834_v31, %s7173_s22  ;;  %v10297_v31 = vsel %vm810_vm2, %v4378_v50, %v4379_v33  ;;  %v10353_v50 = vld [vmem:[%s7330_s11 + $0xd0] sm:$0xff] }
 0x51f   : > { %v3998_v8 = vpop.permute.xlu1 %3997 }
 0x520   : > { %4014 = vst.msk [vmem:[#allocation2 + $0xf8] sm:$0xff] %vm3950_vm6, %v3998_v8  ;;  %v3996_v56 = vpop.permute.xlu0 %3995  ;;  %v10362_v8 = vld [vmem:[%s7330_s11 + $0x100] sm:$0xff] }
 0x521   : > { %4013 = vst.msk [vmem:[#allocation2 + $0xf0] sm:$0xff] %vm3950_vm6, %v3996_v56  ;;  %4395 = vrot.lane.b32.xlu1 %v10284_v39, %s7173_s22 }
 0x522   : > { %4393 = vrot.lane.b32.xlu0 %v4371_v54, %s7173_s22  ;;  %v10365_v54 = vld [vmem:[%s7330_s11 + $0xf0] sm:$0xff] }
 0x523   : > { %v4066_v5 = vpop.permute.xlu1 %4065 }
 0x524   : > { %4137 = vst.msk [vmem:[#allocation2 + $0x8] sm:$0xff] %vm4135_vm7, %v4066_v5  ;;  %v4064_v3 = vpop.permute.xlu0 %4063  ;;  %v10386_v5 = vld [vmem:[%s7330_s11 + $0x160] sm:$0xff] }
 0x525   : > { %4136 = vst.msk [vmem:[#allocation2] sm:$0xff] %vm4135_vm7, %v4064_v3  ;;  %4399 = vrot.lane.b32.xlu1 %v10297_v31, %s7173_s22  ;;  %v6649_v3 = vld [vmem:[%s7330_s11 + $0x180] sm:$0xff] }
 0x526   : > { %4397 = vrot.lane.b32.xlu0 %v10302_v11, %s7173_s22 }
 0x527   : > { %v4070_v44 = vpop.permute.xlu1 %4069 }
 0x528   : > { %4139 = vst.msk [vmem:[#allocation2 + $0x18] sm:$0xff] %vm4135_vm7, %v4070_v44  ;;  %v4068_v49 = vpop.permute.xlu0 %4067 }
 0x529   : > { %4138 = vst.msk [vmem:[#allocation2 + $0x10] sm:$0xff] %vm4135_vm7, %v4068_v49  ;;  %4403 = vrot.lane.b32.xlu1 %v10313_v60, %s7173_s22 }
 0x52a   : > { %4401 = vrot.lane.b32.xlu0 %v10318_v22, %s7173_s22 }
 0x52b   : > { %v4074_v51 = vpop.permute.xlu1 %4073 }
 0x52c   : > { %4141 = vst.msk [vmem:[#allocation2 + $0x28] sm:$0xff] %vm4135_vm7, %v4074_v51  ;;  %v4072_v45 = vpop.permute.xlu0 %4071  ;;  %v6653_v51 = vld [vmem:[%s7330_s11 + $0x1c0] sm:$0xff] }
 0x52d   : > { %4140 = vst.msk [vmem:[#allocation2 + $0x20] sm:$0xff] %vm4135_vm7, %v4072_v45  ;;  %4407 = vrot.lane.b32.xlu1 %v10329_v15, %s7173_s22 }
 0x52e   : > { %4405 = vrot.lane.b32.xlu0 %v10332_v1, %s7173_s22 }
 0x52f   : > { %v4078_v9 = vpop.permute.xlu1 %4077 }
 0x530   : > { %4143 = vst.msk [vmem:[#allocation2 + $0x38] sm:$0xff] %vm4135_vm7, %v4078_v9  ;;  %v4076_v13 = vpop.permute.xlu0 %4075  ;;  %v6652_v9 = vld [vmem:[%s7330_s11 + $0x1b0] sm:$0xff] }
 0x531   : > { %4142 = vst.msk [vmem:[#allocation2 + $0x30] sm:$0xff] %vm4135_vm7, %v4076_v13  ;;  %4476 = vrot.lane.b32.xlu1 %v10341_v23, %s7174_s6 }
 0x532   : > { %4474 = vrot.lane.b32.xlu0 %v9849_v16, %s7174_s6 }
 0x533   : > { %v4082_v26 = vpop.permute.xlu1 %4081 }
 0x534   : > { %4145 = vst.msk [vmem:[#allocation2 + $0x48] sm:$0xff] %vm4135_vm7, %v4082_v26  ;;  %v4080_v33 = vpop.permute.xlu0 %4079  ;;  %v6655_v26 = vld [vmem:[%s7330_s11 + $0x200] sm:$0xff] }
 0x535   : > { %4144 = vst.msk [vmem:[#allocation2 + $0x40] sm:$0xff] %vm4135_vm7, %v4080_v33  ;;  %4480 = vrot.lane.b32.xlu1 %v10350_v62, %s7174_s6 }
 0x536   : > { %4478 = vrot.lane.b32.xlu0 %v10353_v50, %s7174_s6 }
 0x537   : > { %v4086_v16 = vpop.permute.xlu1 %4085 }
 0x538   : > { %4147 = vst.msk [vmem:[#allocation2 + $0x58] sm:$0xff] %vm4135_vm7, %v4086_v16  ;;  %v4084_v2 = vpop.permute.xlu0 %4083 }
 0x539   : > { %4146 = vst.msk [vmem:[#allocation2 + $0x50] sm:$0xff] %vm4135_vm7, %v4084_v2  ;;  %4484 = vrot.lane.b32.xlu1 %v10362_v8, %s7174_s6  ;;  %v6679_v2 = vld [vmem:[%s7330_s11 + $0x201] sm:$0xff] }
 0x53a   : > { %4482 = vrot.lane.b32.xlu0 %v10365_v54, %s7174_s6 }
 0x53b   : > { %v4090_v56 = vpop.permute.xlu1 %4089 }
 0x53c   : > { %4149 = vst.msk [vmem:[#allocation2 + $0x68] sm:$0xff] %vm4135_vm7, %v4090_v56  ;;  %v4088_v35 = vpop.permute.xlu0 %4087 }
 0x53d   : > { %4148 = vst.msk [vmem:[#allocation2 + $0x60] sm:$0xff] %vm4135_vm7, %v4088_v35  ;;  %4488 = vrot.lane.b32.xlu1 %v10374_v61, %s7174_s6 }
 0x53e   : > { %4486 = vrot.lane.b32.xlu0 %v10377_v46, %s7174_s6 }
 0x53f   : > { %v4094_v55 = vpop.permute.xlu1 %4093 }
 0x540   : > { %4151 = vst.msk [vmem:[#allocation2 + $0x78] sm:$0xff] %vm4135_vm7, %v4094_v55  ;;  %v4092_v38 = vpop.permute.xlu0 %4091 }
 0x541   : > { %4150 = vst.msk [vmem:[#allocation2 + $0x70] sm:$0xff] %vm4135_vm7, %v4092_v38  ;;  %4492 = vrot.lane.b32.xlu1 %v10386_v5, %s7174_s6 }
 0x542   : > { %4490 = vrot.lane.b32.xlu0 %v9876_v17, %s7174_s6  ;;  %v6650_v17 = vld [vmem:[%s7330_s11 + $0x190] sm:$0xff] }
 0x543   : > { %v4098_v47 = vpop.permute.xlu1 %4097 }
 0x544   : > { %4153 = vst.msk [vmem:[#allocation2 + $0x88] sm:$0xff] %vm4135_vm7, %v4098_v47  ;;  %v4096_v44 = vpop.permute.xlu0 %4095 }
 0x545   : > { %4152 = vst.msk [vmem:[#allocation2 + $0x80] sm:$0xff] %vm4135_vm7, %v4096_v44  ;;  %4496 = vrot.lane.b32.xlu1 %v6649_v3, %s7174_s6 }
 0x546   : > { %4494 = vrot.lane.b32.xlu0 %v10396_v36, %s7174_s6 }
 0x547   : > { %v4102_v37 = vpop.permute.xlu1 %4101 }
 0x548   : > { %4155 = vst.msk [vmem:[#allocation2 + $0x98] sm:$0xff] %vm4135_vm7, %v4102_v37  ;;  %v4100_v49 = vpop.permute.xlu0 %4099 }
 0x549   : > { %4154 = vst.msk [vmem:[#allocation2 + $0x90] sm:$0xff] %vm4135_vm7, %v4100_v49  ;;  %4500 = vrot.lane.b32.xlu1 %v6651_v34, %s7174_s6 }
 0x54a   : > { %4498 = vrot.lane.b32.xlu0 %v6650_v17, %s7174_s6 }
 0x54b   : > { %v4106_v45 = vpop.permute.xlu1 %4105 }
 0x54c   : > { %4157 = vst.msk [vmem:[#allocation2 + $0xa8] sm:$0xff] %vm4135_vm7, %v4106_v45  ;;  %v4104_v13 = vpop.permute.xlu0 %4103 }
 0x54d   : > { %4156 = vst.msk [vmem:[#allocation2 + $0xa0] sm:$0xff] %vm4135_vm7, %v4104_v13  ;;  %4504 = vrot.lane.b32.xlu1 %v6653_v51, %s7174_s6 }
 0x54e   : > { %4502 = vrot.lane.b32.xlu0 %v6652_v9, %s7174_s6 }
 0x54f   : > { %v4110_v33 = vpop.permute.xlu1 %4109 }
 0x550   : > { %4159 = vst.msk [vmem:[#allocation2 + $0xb8] sm:$0xff] %vm4135_vm7, %v4110_v33  ;;  %v4108_v16 = vpop.permute.xlu0 %4107  ;;  %v6657_v33 = vld [vmem:[%s7330_s11 + $0x220] sm:$0xff] }
 0x551   : > { %4158 = vst.msk [vmem:[#allocation2 + $0xb0] sm:$0xff] %vm4135_vm7, %v4108_v16  ;;  %4508 = vrot.lane.b32.xlu1 %v6655_v26, %s7174_s6 }
 0x552   : > { %4506 = vrot.lane.b32.xlu0 %v9912_v27, %s7174_s6  ;;  %v6703_v27 = vld [vmem:[%s7330_s11 + $0x202] sm:$0xff] }
 0x553   : > { %v4195_v56 = vpop.permute.xlu1 %4194 }
 0x554   : > { %4217 = vst.msk [vmem:[#allocation2 + $0xc8] sm:$0xff] %vm4135_vm7, %v4195_v56  ;;  %v4193_v35 = vpop.permute.xlu0 %4192  ;;  %v6681_v56 = vld [vmem:[%s7330_s11 + $0x221] sm:$0xff] }
 0x555   : > { %4216 = vst.msk [vmem:[#allocation2 + $0xc0] sm:$0xff] %vm4135_vm7, %v4193_v35  ;;  %4686 = vrot.lane.b32.xlu1 %v6679_v2, %s7175_s19 }
 0x556   : > { %4684 = vrot.lane.b32.xlu0 %v10064_v52, %s7175_s19 }
 0x557   : > { %v4199_v55 = vpop.permute.xlu1 %4198 }
 0x558   : > { %4219 = vst.msk [vmem:[#allocation2 + $0xd8] sm:$0xff] %vm4135_vm7, %v4199_v55  ;;  %v4197_v38 = vpop.permute.xlu0 %4196 }
 0x559   : > { %4218 = vst.msk [vmem:[#allocation2 + $0xd0] sm:$0xff] %vm4135_vm7, %v4197_v38  ;;  %4654 = vrot.lane.b32.xlu1 %v10016_v32, %s7175_s19 }
 0x55a   : > { %4652 = vrot.lane.b32.xlu0 %v10004_v43, %s7175_s19  ;;  %v6727_v43 = vld [vmem:[%s7330_s11 + $0x210] sm:$0xff] }
 0x55b   : > { %v4203_v3 = vpop.permute.xlu1 %4202 }
 0x55c   : > { %4221 = vst.msk [vmem:[#allocation2 + $0xe8] sm:$0xff] %vm4135_vm7, %v4203_v3  ;;  %v4201_v47 = vpop.permute.xlu0 %4200 }
 0x55d   : > { %4220 = vst.msk [vmem:[#allocation2 + $0xe0] sm:$0xff] %vm4135_vm7, %v4201_v47  ;;  %4867 = vrot.lane.b32.xlu1 %v6703_v27, %s7176_s17 }
 0x55e   : > { %4865 = vrot.lane.b32.xlu0 %v10253_v41, %s7176_s17 }
 0x55f   : > { %v4207_v52 = vpop.permute.xlu1 %4206 }
 0x560   : > { %4223 = vst.msk [vmem:[#allocation2 + $0xf8] sm:$0xff] %vm4135_vm7, %v4207_v52  ;;  %v4205_v44 = vpop.permute.xlu0 %4204 }
 0x561   : > { %4222 = vst.msk [vmem:[#allocation2 + $0xf0] sm:$0xff] %vm4135_vm7, %v4205_v44  ;;  %4835 = vrot.lane.b32.xlu1 %v10196_v57, %s7176_s17 }
 0x562   : > { %4833 = vrot.lane.b32.xlu0 %v10184_v20, %s7176_s17  ;;  %v6751_v20 = vld [vmem:[%s7330_s11 + $0x211] sm:$0xff] }
 0x563   : > { %v4275_v34 = vpop.permute.xlu1 %4274 }
 0x564   : > { %4346 = vst.msk [vmem:[#allocation2 + $0x8] sm:$0xff] %vm4344_vm8, %v4275_v34  ;;  %v4273_v37 = vpop.permute.xlu0 %4272 }
 0x565   : > { %4345 = vst.msk [vmem:[#allocation2] sm:$0xff] %vm4344_vm8, %v4273_v37  ;;  %5048 = vrot.lane.b32.xlu1 %v6727_v43, %s7177_s20 }
 0x566   : > { %5046 = vrot.lane.b32.xlu0 %v6655_v26, %s7177_s20 }
 0x567   : > { %v4279_v41 = vpop.permute.xlu1 %4278 }
 0x568   : > { %4348 = vst.msk [vmem:[#allocation2 + $0x18] sm:$0xff] %vm4344_vm8, %v4279_v41  ;;  %v4277_v17 = vpop.permute.xlu0 %4276 }
 0x569   : > { %4347 = vst.msk [vmem:[#allocation2 + $0x10] sm:$0xff] %vm4344_vm8, %v4277_v17  ;;  %5016 = vrot.lane.b32.xlu1 %v10353_v50, %s7177_s20 }
 0x56a   : > { %5014 = vrot.lane.b32.xlu0 %v10341_v23, %s7177_s20  ;;  %v6775_v23 = vld [vmem:[%s7330_s11 + $0x212] sm:$0xff] }
 0x56b   : > { %v4283_v49 = vpop.permute.xlu1 %4282 }
 0x56c   : > { %4350 = vst.msk [vmem:[#allocation2 + $0x28] sm:$0xff] %vm4344_vm8, %v4283_v49  ;;  %v4281_v51 = vpop.permute.xlu0 %4280 }
 0x56d   : > { %4349 = vst.msk [vmem:[#allocation2 + $0x20] sm:$0xff] %vm4344_vm8, %v4281_v51  ;;  %5226 = vrot.lane.b32.xlu1 %v6751_v20, %s7178_s21  ;;  %v6736_v51 = vld [vmem:[%s7330_s11 + $0xe1] sm:$0xff] }
 0x56e   : > { %5224 = vrot.lane.b32.xlu0 %v6679_v2, %s7178_s21 }
 0x56f   : > { %v4287_v45 = vpop.permute.xlu1 %4286 }
 0x570   : > { %4352 = vst.msk [vmem:[#allocation2 + $0x38] sm:$0xff] %vm4344_vm8, %v4287_v45  ;;  %v4285_v50 = vpop.permute.xlu0 %4284 }
 0x571   : > { %4351 = vst.msk [vmem:[#allocation2 + $0x30] sm:$0xff] %vm4344_vm8, %v4285_v50  ;;  %5194 = vrot.lane.b32.xlu1 %v10013_v63, %s7178_s21 }
 0x572   : > { %5192 = vrot.lane.b32.xlu0 %v10016_v32, %s7178_s21 }
 0x573   : > { %v4291_v9 = vpop.permute.xlu1 %4290 }
 0x574   : > { %4354 = vst.msk [vmem:[#allocation2 + $0x48] sm:$0xff] %vm4344_vm8, %v4291_v9  ;;  %v4289_v13 = vpop.permute.xlu0 %4288 }
 0x575   : > { %4353 = vst.msk [vmem:[#allocation2 + $0x40] sm:$0xff] %vm4344_vm8, %v4289_v13  ;;  %5407 = vrot.lane.b32.xlu1 %v6775_v23, %s7179_s10  ;;  %v6659_v13 = vld [vmem:[%s7330_s11 + $0x240] sm:$0xff] }
 0x576   : > { %5405 = vrot.lane.b32.xlu0 %v6703_v27, %s7179_s10  ;;  %v6705_v27 = vld [vmem:[%s7330_s11 + $0x222] sm:$0xff] }
 0x577   : > { %v4295_v26 = vpop.permute.xlu1 %4294 }
 0x578   : > { %4356 = vst.msk [vmem:[#allocation2 + $0x58] sm:$0xff] %vm4344_vm8, %v4295_v26  ;;  %v4293_v32 = vpop.permute.xlu0 %4292 }
 0x579   : > { %4355 = vst.msk [vmem:[#allocation2 + $0x50] sm:$0xff] %vm4344_vm8, %v4293_v32  ;;  %5375 = vrot.lane.b32.xlu1 %v10193_v53, %s7179_s10 }
 0x57a   : > { %5373 = vrot.lane.b32.xlu0 %v10196_v57, %s7179_s10 }
 0x57b   : > { %v4299_v16 = vpop.permute.xlu1 %4298 }
 0x57c   : > { %4358 = vst.msk [vmem:[#allocation2 + $0x68] sm:$0xff] %vm4344_vm8, %v4299_v16  ;;  %v4297_v2 = vpop.permute.xlu0 %4296 }
 0x57d   : > { %4357 = vst.msk [vmem:[#allocation2 + $0x60] sm:$0xff] %vm4344_vm8, %v4297_v2  ;;  %4512 = vrot.lane.b32.xlu1 %v6657_v33, %s7174_s6 }
 0x57e   : > { %4510 = vrot.lane.b32.xlu0 %v6727_v43, %s7174_s6 }
 0x57f   : > { %v4303_v35 = vpop.permute.xlu1 %4302 }
 0x580   : > { %4360 = vst.msk [vmem:[#allocation2 + $0x78] sm:$0xff] %vm4344_vm8, %v4303_v35  ;;  %v4301_v55 = vpop.permute.xlu0 %4300 }
 0x581   : > { %4359 = vst.msk [vmem:[#allocation2 + $0x70] sm:$0xff] %vm4344_vm8, %v4301_v55  ;;  %4690 = vrot.lane.b32.xlu1 %v6681_v56, %s7175_s19  ;;  %v6707_v55 = vld [vmem:[%s7330_s11 + $0x242] sm:$0xff] }
 0x582   : > { %4688 = vrot.lane.b32.xlu0 %v6751_v20, %s7175_s19  ;;  %v6737_v20 = vld [vmem:[%s7330_s11 + $0xf1] sm:$0xff] }
 0x583   : > { %v4307_v57 = vpop.permute.xlu1 %4306 }
 0x584   : > { %4362 = vst.msk [vmem:[#allocation2 + $0x88] sm:$0xff] %vm4344_vm8, %v4307_v57  ;;  %v4305_v38 = vpop.permute.xlu0 %4304 }
 0x585   : > { %4361 = vst.msk [vmem:[#allocation2 + $0x80] sm:$0xff] %vm4344_vm8, %v4305_v38  ;;  %4658 = vrot.lane.b32.xlu1 %v10026_v6, %s7175_s19 }
 0x586   : > { %4656 = vrot.lane.b32.xlu0 %v10013_v63, %s7175_s19  ;;  %v6729_v63 = vld [vmem:[%s7330_s11 + $0x230] sm:$0xff] }
 0x587   : > { %v4311_v3 = vpop.permute.xlu1 %4310 }
 0x588   : > { %4364 = vst.msk [vmem:[#allocation2 + $0x98] sm:$0xff] %vm4344_vm8, %v4311_v3  ;;  %v4309_v47 = vpop.permute.xlu0 %4308 }
 0x589   : > { %4363 = vst.msk [vmem:[#allocation2 + $0x90] sm:$0xff] %vm4344_vm8, %v4309_v47  ;;  %4871 = vrot.lane.b32.xlu1 %v6705_v27, %s7176_s17  ;;  %v6731_v47 = vld [vmem:[%s7330_s11 + $0x250] sm:$0xff] }
 0x58a   : > { %4869 = vrot.lane.b32.xlu0 %v6775_v23, %s7176_s17 }
 0x58b   : > { %v4315_v52 = vpop.permute.xlu1 %4314 }
 0x58c   : > { %4366 = vst.msk [vmem:[#allocation2 + $0xa8] sm:$0xff] %vm4344_vm8, %v4315_v52  ;;  %v4313_v44 = vpop.permute.xlu0 %4312 }
 0x58d   : > { %4365 = vst.msk [vmem:[#allocation2 + $0xa0] sm:$0xff] %vm4344_vm8, %v4313_v44  ;;  %4839 = vrot.lane.b32.xlu1 %v10208_v10, %s7176_s17 }
 0x58e   : > { %4837 = vrot.lane.b32.xlu0 %v10193_v53, %s7176_s17  ;;  %v6753_v53 = vld [vmem:[%s7330_s11 + $0x231] sm:$0xff] }
 0x58f   : > { %v4319_v6 = vpop.permute.xlu1 %4318 }
 0x590   : > { %4368 = vst.msk [vmem:[#allocation2 + $0xb8] sm:$0xff] %vm4344_vm8, %v4319_v6  ;;  %v4317_v43 = vpop.permute.xlu0 %4316 }
 0x591   : > { %4367 = vst.msk [vmem:[#allocation2 + $0xb0] sm:$0xff] %vm4344_vm8, %v4317_v43  ;;  %5052 = vrot.lane.b32.xlu1 %v6729_v63, %s7177_s20 }
 0x592   : > { %5050 = vrot.lane.b32.xlu0 %v6657_v33, %s7177_s20  ;;  %v6683_v33 = vld [vmem:[%s7330_s11 + $0x241] sm:$0xff] }
 0x593   : > { %v4396_v34 = vpop.permute.xlu1 %4395 }
 0x594   : > { %4418 = vst.msk [vmem:[#allocation2 + $0xc8] sm:$0xff] %vm4344_vm8, %v4396_v34  ;;  %v4394_v37 = vpop.permute.xlu0 %4393 }
 0x595   : > { %4417 = vst.msk [vmem:[#allocation2 + $0xc0] sm:$0xff] %vm4344_vm8, %v4394_v37  ;;  %5020 = vrot.lane.b32.xlu1 %v10365_v54, %s7177_s20  ;;  %v6739_v37 = vld [vmem:[%s7330_s11 + $0x111] sm:$0xff] }
 0x596   : > { %5018 = vrot.lane.b32.xlu0 %v10350_v62, %s7177_s20  ;;  %v6777_v62 = vld [vmem:[%s7330_s11 + $0x232] sm:$0xff] }
 0x597   : > { %v4400_v41 = vpop.permute.xlu1 %4399 }
 0x598   : > { %4420 = vst.msk [vmem:[#allocation2 + $0xd8] sm:$0xff] %vm4344_vm8, %v4400_v41  ;;  %v4398_v17 = vpop.permute.xlu0 %4397 }
 0x599   : > { %4419 = vst.msk [vmem:[#allocation2 + $0xd0] sm:$0xff] %vm4344_vm8, %v4398_v17  ;;  %5230 = vrot.lane.b32.xlu1 %v6753_v53, %s7178_s21 }
 0x59a   : > { %5228 = vrot.lane.b32.xlu0 %v6681_v56, %s7178_s21 }
 0x59b   : > { %v4404_v49 = vpop.permute.xlu1 %4403 }
 0x59c   : > { %4422 = vst.msk [vmem:[#allocation2 + $0xe8] sm:$0xff] %vm4344_vm8, %v4404_v49  ;;  %v4402_v54 = vpop.permute.xlu0 %4401 }
 0x59d   : > { %4421 = vst.msk [vmem:[#allocation2 + $0xe0] sm:$0xff] %vm4344_vm8, %v4402_v54  ;;  %5198 = vrot.lane.b32.xlu1 %v6737_v20, %s7178_s21 }
 0x59e   : > { %5196 = vrot.lane.b32.xlu0 %v6736_v51, %s7178_s21  ;;  %v6661_v51 = vld [vmem:[%s7330_s11 + $0x260] sm:$0xff] }
 0x59f   : > { %v4408_v45 = vpop.permute.xlu1 %4407 }
 0x5a0   : > { %4424 = vst.msk [vmem:[#allocation2 + $0xf8] sm:$0xff] %vm4344_vm8, %v4408_v45  ;;  %v4406_v50 = vpop.permute.xlu0 %4405  ;;  %v6685_v45 = vld [vmem:[%s7330_s11 + $0x261] sm:$0xff] }
 0x5a1   : > { %4423 = vst.msk [vmem:[#allocation2 + $0xf0] sm:$0xff] %vm4344_vm8, %v4406_v50  ;;  %5411 = vrot.lane.b32.xlu1 %v6777_v62, %s7179_s10 }
 0x5a2   : > { %5409 = vrot.lane.b32.xlu0 %v6705_v27, %s7179_s10 }
 0x5a3   : > { %v4477_v23 = vpop.permute.xlu1 %4476 }
 0x5a4   : > { %4548 = vst.msk [vmem:[#allocation2 + $0x8] sm:$0xff] %vm4546_vm9, %v4477_v23  ;;  %v4475_v9 = vpop.permute.xlu0 %4474 }
 0x5a5   : > { %4547 = vst.msk [vmem:[#allocation2] sm:$0xff] %vm4546_vm9, %v4475_v9  ;;  %5379 = vrot.lane.b32.xlu1 %v10205_v21, %s7179_s10 }
 0x5a6   : > { %5377 = vrot.lane.b32.xlu0 %v10208_v10, %s7179_s10  ;;  %v6667_v10 = vld [vmem:[%s7330_s11 + $0x101] sm:$0xff] }
 0x5a7   : > { %v4481_v26 = vpop.permute.xlu1 %4480 }
 0x5a8   : > { %4550 = vst.msk [vmem:[#allocation2 + $0x18] sm:$0xff] %vm4546_vm9, %v4481_v26  ;;  %v4479_v32 = vpop.permute.xlu0 %4478  ;;  %v6709_v26 = vld [vmem:[%s7330_s11 + $0x262] sm:$0xff] }
 0x5a9   : > { %4549 = vst.msk [vmem:[#allocation2 + $0x10] sm:$0xff] %vm4546_vm9, %v4479_v32  ;;  %4516 = vrot.lane.b32.xlu1 %v6659_v13, %s7174_s6 }
 0x5aa   : > { %4514 = vrot.lane.b32.xlu0 %v6729_v63, %s7174_s6 }
 0x5ab   : > { %v4485_v16 = vpop.permute.xlu1 %4484 }
 0x5ac   : > { %4552 = vst.msk [vmem:[#allocation2 + $0x28] sm:$0xff] %vm4546_vm9, %v4485_v16  ;;  %v4483_v2 = vpop.permute.xlu0 %4482  ;;  %v6693_v16 = vld [vmem:[%s7330_s11 + $0x122] sm:$0xff] }
 0x5ad   : > { %4551 = vst.msk [vmem:[#allocation2 + $0x20] sm:$0xff] %vm4546_vm9, %v4483_v2  ;;  %4694 = vrot.lane.b32.xlu1 %v6683_v33, %s7175_s19 }
 0x5ae   : > { %4692 = vrot.lane.b32.xlu0 %v6753_v53, %s7175_s19 }
 0x5af   : > { %v4489_v56 = vpop.permute.xlu1 %4488 }
 0x5b0   : > { %4554 = vst.msk [vmem:[#allocation2 + $0x38] sm:$0xff] %vm4546_vm9, %v4489_v56  ;;  %v4487_v35 = vpop.permute.xlu0 %4486  ;;  %v6733_v56 = vld [vmem:[%s7330_s11 + $0x270] sm:$0xff] }
 0x5b1   : > { %4553 = vst.msk [vmem:[#allocation2 + $0x30] sm:$0xff] %vm4546_vm9, %v4487_v35  ;;  %4662 = vrot.lane.b32.xlu1 %v6667_v10, %s7175_s19 }
 0x5b2   : > { %4660 = vrot.lane.b32.xlu0 %v6737_v20, %s7175_s19 }
 0x5b3   : > { %v4493_v57 = vpop.permute.xlu1 %4492 }
 0x5b4   : > { %4556 = vst.msk [vmem:[#allocation2 + $0x48] sm:$0xff] %vm4546_vm9, %v4493_v57  ;;  %v4491_v38 = vpop.permute.xlu0 %4490  ;;  %v6717_v57 = vld [vmem:[%s7330_s11 + $0x130] sm:$0xff] }
 0x5b5   : > { %4555 = vst.msk [vmem:[#allocation2 + $0x40] sm:$0xff] %vm4546_vm9, %v4491_v38  ;;  %4875 = vrot.lane.b32.xlu1 %v6707_v55, %s7176_s17 }
 0x5b6   : > { %4873 = vrot.lane.b32.xlu0 %v6777_v62, %s7176_s17 }
 0x5b7   : > { %v4497_v27 = vpop.permute.xlu1 %4496 }
 0x5b8   : > { %4558 = vst.msk [vmem:[#allocation2 + $0x58] sm:$0xff] %vm4546_vm9, %v4497_v27  ;;  %v4495_v3 = vpop.permute.xlu0 %4494 }
 0x5b9   : > { %4557 = vst.msk [vmem:[#allocation2 + $0x50] sm:$0xff] %vm4546_vm9, %v4495_v3  ;;  %4843 = vrot.lane.b32.xlu1 %v10220_v58, %s7176_s17 }
 0x5ba   : > { %4841 = vrot.lane.b32.xlu0 %v10205_v21, %s7176_s17  ;;  %v6755_v21 = vld [vmem:[%s7330_s11 + $0x251] sm:$0xff] }
 0x5bb   : > { %v4501_v52 = vpop.permute.xlu1 %4500 }
 0x5bc   : > { %4560 = vst.msk [vmem:[#allocation2 + $0x68] sm:$0xff] %vm4546_vm9, %v4501_v52  ;;  %v4499_v44 = vpop.permute.xlu0 %4498 }
 0x5bd   : > { %4559 = vst.msk [vmem:[#allocation2 + $0x60] sm:$0xff] %vm4546_vm9, %v4499_v44  ;;  %5056 = vrot.lane.b32.xlu1 %v6731_v47, %s7177_s20 }
 0x5be   : > { %5054 = vrot.lane.b32.xlu0 %v6659_v13, %s7177_s20 }
 0x5bf   : > { %v4505_v63 = vpop.permute.xlu1 %4504 }
 0x5c0   : > { %4562 = vst.msk [vmem:[#allocation2 + $0x78] sm:$0xff] %vm4546_vm9, %v4505_v63  ;;  %v4503_v6 = vpop.permute.xlu0 %4502 }
 0x5c1   : > { %4561 = vst.msk [vmem:[#allocation2 + $0x70] sm:$0xff] %vm4546_vm9, %v4503_v6  ;;  %5024 = vrot.lane.b32.xlu1 %v10377_v46, %s7177_s20 }
 0x5c2   : > { %5022 = vrot.lane.b32.xlu0 %v10362_v8, %s7177_s20  ;;  %v6779_v8 = vld [vmem:[%s7330_s11 + $0x252] sm:$0xff] }
 0x5c3   : > { %v4509_v43 = vpop.permute.xlu1 %4508 }
 0x5c4   : > { %4564 = vst.msk [vmem:[#allocation2 + $0x88] sm:$0xff] %vm4546_vm9, %v4509_v43  ;;  %v4507_v34 = vpop.permute.xlu0 %4506 }
 0x5c5   : > { %4563 = vst.msk [vmem:[#allocation2 + $0x80] sm:$0xff] %vm4546_vm9, %v4507_v34  ;;  %5234 = vrot.lane.b32.xlu1 %v6755_v21, %s7178_s21 }
 0x5c6   : > { %5232 = vrot.lane.b32.xlu0 %v6683_v33, %s7178_s21 }
 0x5c7   : > { %v4687_v53 = vpop.permute.xlu1 %4686 }
 0x5c8   : > { %4742 = vst.msk [vmem:[#allocation2 + $0x88] sm:$0xff] %vm4724_vm10, %v4687_v53  ;;  %v4685_v46 = vpop.permute.xlu0 %4684 }
 0x5c9   : > { %4741 = vst.msk [vmem:[#allocation2 + $0x80] sm:$0xff] %vm4724_vm10, %v4685_v46  ;;  %5202 = vrot.lane.b32.xlu1 %v6739_v37, %s7178_s21  ;;  %v6781_v46 = vld [vmem:[%s7330_s11 + $0x272] sm:$0xff] }
 0x5ca   : > { %5200 = vrot.lane.b32.xlu0 %v6667_v10, %s7178_s21 }
 0x5cb   : > { %v4655_v41 = vpop.permute.xlu1 %4654 }
 0x5cc   : > { %4726 = vst.msk [vmem:[#allocation2 + $0x8] sm:$0xff] %vm4724_vm10, %v4655_v41  ;;  %v4653_v17 = vpop.permute.xlu0 %4652 }
 0x5cd   : > { %4725 = vst.msk [vmem:[#allocation2] sm:$0xff] %vm4724_vm10, %v4653_v17  ;;  %5415 = vrot.lane.b32.xlu1 %v6779_v8, %s7179_s10  ;;  %v6765_v17 = vld [vmem:[%s7330_s11 + $0x132] sm:$0xff] }
 0x5ce   : > { %5413 = vrot.lane.b32.xlu0 %v6707_v55, %s7179_s10 }
 0x5cf   : > { %v4868_v20 = vpop.permute.xlu1 %4867 }
 0x5d0   : > { %4923 = vst.msk [vmem:[#allocation2 + $0x88] sm:$0xff] %vm4905_vm11, %v4868_v20  ;;  %v4866_v49 = vpop.permute.xlu0 %4865 }
 0x5d1   : > { %4922 = vst.msk [vmem:[#allocation2 + $0x80] sm:$0xff] %vm4905_vm11, %v4866_v49  ;;  %5383 = vrot.lane.b32.xlu1 %v10217_v30, %s7179_s10 }
 0x5d2   : > { %5381 = vrot.lane.b32.xlu0 %v10220_v58, %s7179_s10  ;;  %v6669_v58 = vld [vmem:[%s7330_s11 + $0x121] sm:$0xff] }
 0x5d3   : > { %v4836_v54 = vpop.permute.xlu1 %4835 }
 0x5d4   : > { %4907 = vst.msk [vmem:[#allocation2 + $0x8] sm:$0xff] %vm4905_vm11, %v4836_v54  ;;  %v4834_v62 = vpop.permute.xlu0 %4833 }
 0x5d5   : > { %4906 = vst.msk [vmem:[#allocation2] sm:$0xff] %vm4905_vm11, %v4834_v62  ;;  %4520 = vrot.lane.b32.xlu1 %v6661_v51, %s7174_s6 }
 0x5d6   : > { %4518 = vrot.lane.b32.xlu0 %v6731_v47, %s7174_s6 }
 0x5d7   : > { %v5049_v50 = vpop.permute.xlu1 %5048 }
 0x5d8   : > { %5104 = vst.msk [vmem:[#allocation2 + $0x88] sm:$0xff] %vm5086_vm12, %v5049_v50  ;;  %v5047_v23 = vpop.permute.xlu0 %5046  ;;  %v6671_v50 = vld [vmem:[%s7330_s11 + $0x161] sm:$0xff] }
 0x5d9   : > { %5103 = vst.msk [vmem:[#allocation2 + $0x80] sm:$0xff] %vm5086_vm12, %v5047_v23  ;;  %4698 = vrot.lane.b32.xlu1 %v6685_v45, %s7175_s19 }
 0x5da   : > { %4696 = vrot.lane.b32.xlu0 %v6755_v21, %s7175_s19 }
 0x5db   : > { %v5017_v9 = vpop.permute.xlu1 %5016 }
 0x5dc   : > { %5088 = vst.msk [vmem:[#allocation2 + $0x8] sm:$0xff] %vm5086_vm12, %v5017_v9  ;;  %v5015_v13 = vpop.permute.xlu0 %5014 }
 0x5dd   : > { %5087 = vst.msk [vmem:[#allocation2] sm:$0xff] %vm5086_vm12, %v5015_v13  ;;  %4666 = vrot.lane.b32.xlu1 %v6669_v58, %s7175_s19 }
 0x5de   : > { %4664 = vrot.lane.b32.xlu0 %v6739_v37, %s7175_s19 }
 0x5df   : > { %v5227_v32 = vpop.permute.xlu1 %5226 }
 0x5e0   : > { %5282 = vst.msk [vmem:[#allocation2 + $0x88] sm:$0xff] %vm5264_vm13, %v5227_v32  ;;  %v5225_v33 = vpop.permute.xlu0 %5224  ;;  %v6694_v32 = vld [vmem:[%s7330_s11 + $0x152] sm:$0xff] }
 0x5e1   : > { %5281 = vst.msk [vmem:[#allocation2 + $0x80] sm:$0xff] %vm5264_vm13, %v5225_v33  ;;  %4879 = vrot.lane.b32.xlu1 %v6709_v26, %s7176_s17 }
 0x5e2   : > { %4877 = vrot.lane.b32.xlu0 %v6779_v8, %s7176_s17 }
 0x5e3   : > { %v5195_v2 = vpop.permute.xlu1 %5194 }
 0x5e4   : > { %5266 = vst.msk [vmem:[#allocation2 + $0x8] sm:$0xff] %vm5264_vm13, %v5195_v2  ;;  %v5193_v10 = vpop.permute.xlu0 %5192 }
 0x5e5   : > { %5265 = vst.msk [vmem:[#allocation2] sm:$0xff] %vm5264_vm13, %v5193_v10  ;;  %4847 = vrot.lane.b32.xlu1 %v6693_v16, %s7176_s17 }
 0x5e6   : > { %4845 = vrot.lane.b32.xlu0 %v10217_v30, %s7176_s17  ;;  %v6757_v30 = vld [vmem:[%s7330_s11 + $0x271] sm:$0xff] }
 0x5e7   : > { %v5408_v35 = vpop.permute.xlu1 %5407 }
 0x5e8   : > { %5463 = vst.msk [vmem:[#allocation2 + $0x88] sm:$0xff] %vm5445_vm14, %v5408_v35  ;;  %v5406_v55 = vpop.permute.xlu0 %5405 }
 0x5e9   : > { %5462 = vst.msk [vmem:[#allocation2 + $0x80] sm:$0xff] %vm5445_vm14, %v5406_v55  ;;  %5060 = vrot.lane.b32.xlu1 %v6733_v56, %s7177_s20 }
 0x5ea   : > { %5058 = vrot.lane.b32.xlu0 %v6661_v51, %s7177_s20 }
 0x5eb   : > { %v5376_v38 = vpop.permute.xlu1 %5375 }
 0x5ec   : > { %5447 = vst.msk [vmem:[#allocation2 + $0x8] sm:$0xff] %vm5445_vm14, %v5376_v38  ;;  %v5374_v27 = vpop.permute.xlu0 %5373  ;;  %v6743_v38 = vld [vmem:[%s7330_s11 + $0x171] sm:$0xff] }
 0x5ed   : > { %5446 = vst.msk [vmem:[#allocation2] sm:$0xff] %vm5445_vm14, %v5374_v27  ;;  %5028 = vrot.lane.b32.xlu1 %v6717_v57, %s7177_s20 }
 0x5ee   : > { %5026 = vrot.lane.b32.xlu0 %v10374_v61, %s7177_s20  ;;  %v6741_v61 = vld [vmem:[%s7330_s11 + $0x131] sm:$0xff] }
 0x5ef   : > { %v4513_v3 = vpop.permute.xlu1 %4512  ;;  %v5523_v47 = vld [vmem:[#allocation2 + $0x88] sm:$0xff] }
 0x5f0   : > { %4566 = vst.msk [vmem:[#allocation2 + $0x98] sm:$0xff] %vm4546_vm9, %v4513_v3  ;;  %v4511_v52 = vpop.permute.xlu0 %4510  ;;  %v5522_v44 = vld [vmem:[#allocation2 + $0x80] sm:$0xff] }
 0x5f1   : > { %4565 = vst.msk [vmem:[#allocation2 + $0x90] sm:$0xff] %vm4546_vm9, %v4511_v52  ;;  %5238 = vrot.lane.b32.xlu1 %v6757_v30, %s7178_s21  ;;  %v6865_v6 = vpack.c.bf16 %v5523_v47, %v5522_v44  ;;  %v6767_v52 = vld [vmem:[%s7330_s11 + $0x172] sm:$0xff] }
 0x5f2   : > { %5236 = vrot.lane.b32.xlu0 %v6685_v45, %s7178_s21 }
 0x5f3   : > { %6867 = vmatprep.subr.msk.bf16.mxu0 %vm10642_vm1, %v6865_v6  ;;  %v4691_v21 = vpop.permute.xlu1 %4690  ;;  %v5507_v43 = vld [vmem:[#allocation2 + $0x8] sm:$0xff] }
 0x5f4   : > { %4744 = vst.msk [vmem:[#allocation2 + $0x98] sm:$0xff] %vm4724_vm10, %v4691_v21  ;;  %v4689_v34 = vpop.permute.xlu0 %4688  ;;  %v5506_v37 = vld [vmem:[#allocation2] sm:$0xff] }
 0x5f5   : > { %4743 = vst.msk [vmem:[#allocation2 + $0x90] sm:$0xff] %vm4724_vm10, %v4689_v34  ;;  %5206 = vrot.lane.b32.xlu1 %v6741_v61, %s7178_s21  ;;  %v6868_v53 = vpack.c.bf16 %v5507_v43, %v5506_v37  ;;  %v6673_v34 = vld [vmem:[%s7330_s11 + $0x181] sm:$0xff] }
 0x5f6   : > { %5204 = vrot.lane.b32.xlu0 %v6669_v58, %s7178_s21  ;;  %v6670_v58 = vld [vmem:[%s7330_s11 + $0x151] sm:$0xff] }
 0x5f7   : > { %6870 = vmatpush3.bf16.xpose.msk.msra.mxu0 %vm10642_vm1, %v6868_v53  ;;  %v4659_v8 = vpop.permute.xlu1 %4658 }
 0x5f8   : > { %4728 = vst.msk [vmem:[#allocation2 + $0x18] sm:$0xff] %vm4724_vm10, %v4659_v8  ;;  %v4657_v41 = vpop.permute.xlu0 %4656 }
 0x5f9   : > { %4727 = vst.msk [vmem:[#allocation2 + $0x10] sm:$0xff] %vm4724_vm10, %v4657_v41  ;;  %5419 = vrot.lane.b32.xlu1 %v6781_v46, %s7179_s10 }
 0x5fa   : > { %5417 = vrot.lane.b32.xlu0 %v6709_v26, %s7179_s10 }
 0x5fb   : > { %v4872_v20 = vpop.permute.xlu1 %4871 }
 0x5fc   : > { %4925 = vst.msk [vmem:[#allocation2 + $0x98] sm:$0xff] %vm4905_vm11, %v4872_v20  ;;  %v4870_v49 = vpop.permute.xlu0 %4869 }
 0x5fd   : > { %4924 = vst.msk [vmem:[#allocation2 + $0x90] sm:$0xff] %vm4905_vm11, %v4870_v49  ;;  %5387 = vrot.lane.b32.xlu1 %v6765_v17, %s7179_s10 }
 0x5fe   : > { %5385 = vrot.lane.b32.xlu0 %v6693_v16, %s7179_s10 }
 0x5ff   : > { %v4840_v51 = vpop.permute.xlu1 %4839 }
 0x600   : > { %4909 = vst.msk [vmem:[#allocation2 + $0x18] sm:$0xff] %vm4905_vm11, %v4840_v51  ;;  %v4838_v54 = vpop.permute.xlu0 %4837  ;;  %v6720_v51 = vld [vmem:[%s7330_s11 + $0x180] sm:$0xff] }
 0x601   : > { %4908 = vst.msk [vmem:[#allocation2 + $0x10] sm:$0xff] %vm4905_vm11, %v4838_v54  ;;  %4574 = vrot.lane.b32.xlu1 %v9967_v7, %s7174_s6 }
 0x602   : > { %4572 = vrot.lane.b32.xlu0 %v9948_v48, %s7174_s6 }
 0x603   : > { %v5053_v62 = vpop.permute.xlu1 %5052 }
 0x604   : > { %5106 = vst.msk [vmem:[#allocation2 + $0x98] sm:$0xff] %vm5086_vm12, %v5053_v62  ;;  %v5051_v45 = vpop.permute.xlu0 %5050 }
 0x605   : > { %5105 = vst.msk [vmem:[#allocation2 + $0x90] sm:$0xff] %vm5086_vm12, %v5051_v45  ;;  %4755 = vrot.lane.b32.xlu1 %v10142_v24, %s7175_s19 }
 0x606   : > { %4753 = vrot.lane.b32.xlu0 %v10113_v29, %s7175_s19  ;;  %v6695_v29 = vld [vmem:[%s7330_s11 + $0x162] sm:$0xff] }
 0x607   : > { %v5021_v23 = vpop.permute.xlu1 %5020 }
 0x608   : > { %5090 = vst.msk [vmem:[#allocation2 + $0x18] sm:$0xff] %vm5086_vm12, %v5021_v23  ;;  %v5019_v48 = vpop.permute.xlu0 %5018 }
 0x609   : > { %5089 = vst.msk [vmem:[#allocation2 + $0x10] sm:$0xff] %vm5086_vm12, %v5019_v48  ;;  %4670 = vrot.lane.b32.xlu1 %v6671_v50, %s7175_s19 }
 0x60a   : > { %4668 = vrot.lane.b32.xlu0 %v6670_v58, %s7175_s19  ;;  %v6745_v58 = vld [vmem:[%s7330_s11 + $0x191] sm:$0xff] }
 0x60b   : > { %v5231_v9 = vpop.permute.xlu1 %5230 }
 0x60c   : > { %5284 = vst.msk [vmem:[#allocation2 + $0x98] sm:$0xff] %vm5264_vm13, %v5231_v9  ;;  %v5229_v13 = vpop.permute.xlu0 %5228 }
 0x60d   : > { %5283 = vst.msk [vmem:[#allocation2 + $0x90] sm:$0xff] %vm5264_vm13, %v5229_v13  ;;  %4935 = vrot.lane.b32.xlu1 %v10302_v11, %s7176_s17 }
 0x60e   : > { %4933 = vrot.lane.b32.xlu0 %v10284_v39, %s7176_s17 }
 0x60f   : > { %v5199_v26 = vpop.permute.xlu1 %5198 }
 0x610   : > { %5268 = vst.msk [vmem:[#allocation2 + $0x18] sm:$0xff] %vm5264_vm13, %v5199_v26  ;;  %v5197_v33 = vpop.permute.xlu0 %5196 }
 0x611   : > { %5267 = vst.msk [vmem:[#allocation2 + $0x10] sm:$0xff] %vm5264_vm13, %v5197_v33  ;;  %4851 = vrot.lane.b32.xlu1 %v6695_v29, %s7176_s17  ;;  %v6769_v33 = vld [vmem:[%s7330_s11 + $0x192] sm:$0xff] }
 0x612   : > { %4849 = vrot.lane.b32.xlu0 %v6694_v32, %s7176_s17 }
 0x613   : > { %v5412_v16 = vpop.permute.xlu1 %5411 }
 0x614   : > { %5465 = vst.msk [vmem:[#allocation2 + $0x98] sm:$0xff] %vm5445_vm14, %v5412_v16  ;;  %v5410_v2 = vpop.permute.xlu0 %5409 }
 0x615   : > { %5464 = vst.msk [vmem:[#allocation2 + $0x90] sm:$0xff] %vm5445_vm14, %v5410_v2  ;;  %5114 = vrot.lane.b32.xlu1 %v9962_v12, %s7177_s20 }
 0x616   : > { %5112 = vrot.lane.b32.xlu0 %v9967_v7, %s7177_s20 }
 0x617   : > { %v5380_v39 = vpop.permute.xlu1 %5379 }
 0x618   : > { %5449 = vst.msk [vmem:[#allocation2 + $0x18] sm:$0xff] %vm5445_vm14, %v5380_v39  ;;  %v5378_v10 = vpop.permute.xlu0 %5377 }
 0x619   : > { %5448 = vst.msk [vmem:[#allocation2 + $0x10] sm:$0xff] %vm5445_vm14, %v5378_v10  ;;  %5032 = vrot.lane.b32.xlu1 %v10396_v36, %s7177_s20 }
 0x61a   : > { %5030 = vrot.lane.b32.xlu0 %v10386_v5, %s7177_s20 }
 0x61b   : > { %v4517_v56 = vpop.permute.xlu1 %4516  ;;  %v5525_v35 = vld [vmem:[#allocation2 + $0x98] sm:$0xff] }
 0x61c   : > { %4568 = vst.msk [vmem:[#allocation2 + $0xa8] sm:$0xff] %vm4546_vm9, %v4517_v56  ;;  %v4515_v55 = vpop.permute.xlu0 %4514  ;;  %v5524_v57 = vld [vmem:[#allocation2 + $0x90] sm:$0xff] }
 0x61d   : > { %4567 = vst.msk [vmem:[#allocation2 + $0xa0] sm:$0xff] %vm4546_vm9, %v4515_v55  ;;  %5295 = vrot.lane.b32.xlu1 %v10134_v28, %s7178_s21  ;;  %v6871_v7 = vpack.c.bf16 %v5525_v35, %v5524_v57  ;;  %v6675_v35 = vld [vmem:[%s7330_s11 + $0x1a1] sm:$0xff] }
 0x61e   : > { %5293 = vrot.lane.b32.xlu0 %v10142_v24, %s7178_s21 }
 0x61f   : > { %6873 = vmatprep.subr.msk.bf16.mxu0 %vm10642_vm1, %v6871_v7  ;;  %v4695_v5 = vpop.permute.xlu1 %4694  ;;  %v5509_v36 = vld [vmem:[#allocation2 + $0x18] sm:$0xff] }
 0x620   : > { %4746 = vst.msk [vmem:[#allocation2 + $0xa8] sm:$0xff] %vm4724_vm10, %v4695_v5  ;;  %v4693_v27 = vpop.permute.xlu0 %4692  ;;  %v5508_v30 = vld [vmem:[#allocation2 + $0x10] sm:$0xff] }
 0x621   : > { %4745 = vst.msk [vmem:[#allocation2 + $0xa0] sm:$0xff] %vm4724_vm10, %v4693_v27  ;;  %5210 = vrot.lane.b32.xlu1 %v6743_v38, %s7178_s21  ;;  %v6874_v3 = vpack.c.bf16 %v5509_v36, %v5508_v30 }
 0x622   : > { %5208 = vrot.lane.b32.xlu0 %v6671_v50, %s7178_s21 }
 0x623   : > { %6876 = vmatpush3.bf16.xpose.msk.msra.mxu0 %vm10642_vm1, %v6874_v3  ;;  %v4663_v24 = vpop.permute.xlu1 %4662  ;;  %v6722_v3 = vld [vmem:[%s7330_s11 + $0x1a0] sm:$0xff] }
 0x624   : > { %4730 = vst.msk [vmem:[#allocation2 + $0x28] sm:$0xff] %vm4724_vm10, %v4663_v24  ;;  %v4661_v47 = vpop.permute.xlu0 %4660 }
 0x625   : > { %4729 = vst.msk [vmem:[#allocation2 + $0x20] sm:$0xff] %vm4724_vm10, %v4661_v47  ;;  %5475 = vrot.lane.b32.xlu1 %v10297_v31, %s7179_s10 }
 0x626   : > { %5473 = vrot.lane.b32.xlu0 %v10302_v11, %s7179_s10 }
 0x627   : > { %v4876_v44 = vpop.permute.xlu1 %4875 }
 0x628   : > { %4927 = vst.msk [vmem:[#allocation2 + $0xa8] sm:$0xff] %vm4905_vm11, %v4876_v44  ;;  %v4874_v6 = vpop.permute.xlu0 %4873 }
 0x629   : > { %4926 = vst.msk [vmem:[#allocation2 + $0xa0] sm:$0xff] %vm4905_vm11, %v4874_v6  ;;  %5391 = vrot.lane.b32.xlu1 %v6767_v52, %s7179_s10 }
 0x62a   : > { %5389 = vrot.lane.b32.xlu0 %v6695_v29, %s7179_s10 }
 0x62b   : > { %v4844_v61 = vpop.permute.xlu1 %4843 }
 0x62c   : > { %4911 = vst.msk [vmem:[#allocation2 + $0x28] sm:$0xff] %vm4905_vm11, %v4844_v61  ;;  %v4842_v21 = vpop.permute.xlu0 %4841  ;;  %v6747_v61 = vld [vmem:[%s7330_s11 + $0x1b1] sm:$0xff] }
 0x62d   : > { %4910 = vst.msk [vmem:[#allocation2 + $0x20] sm:$0xff] %vm4905_vm11, %v4842_v21  ;;  %4578 = vrot.lane.b32.xlu1 %v9981_v59, %s7174_s6 }
 0x62e   : > { %4576 = vrot.lane.b32.xlu0 %v9962_v12, %s7174_s6 }
 0x62f   : > { %v5057_v11 = vpop.permute.xlu1 %5056 }
 0x630   : > { %5108 = vst.msk [vmem:[#allocation2 + $0xa8] sm:$0xff] %vm5086_vm12, %v5057_v11  ;;  %v5055_v43 = vpop.permute.xlu0 %5054 }
 0x631   : > { %5107 = vst.msk [vmem:[#allocation2 + $0xa0] sm:$0xff] %vm5086_vm12, %v5055_v43  ;;  %4759 = vrot.lane.b32.xlu1 %v10161_v0, %s7175_s19 }
 0x632   : > { %4757 = vrot.lane.b32.xlu0 %v10134_v28, %s7175_s19  ;;  %v6697_v28 = vld [vmem:[%s7330_s11 + $0x182] sm:$0xff] }
 0x633   : > { %v5025_v37 = vpop.permute.xlu1 %5024 }
 0x634   : > { %5092 = vst.msk [vmem:[#allocation2 + $0x28] sm:$0xff] %vm5086_vm12, %v5025_v37  ;;  %v5023_v53 = vpop.permute.xlu0 %5022 }
 0x635   : > { %5091 = vst.msk [vmem:[#allocation2 + $0x20] sm:$0xff] %vm5086_vm12, %v5023_v53  ;;  %4674 = vrot.lane.b32.xlu1 %v6673_v34, %s7175_s19  ;;  %v507_v53 = vld [vmem:[%s9931_s12 + $0x80] sm:$0xff] }
 0x636   : > { %4672 = vrot.lane.b32.xlu0 %v6743_v38, %s7175_s19 }
 0x637   : > { %v5235_v12 = vpop.permute.xlu1 %5234 }
 0x638   : > { %5286 = vst.msk [vmem:[#allocation2 + $0xa8] sm:$0xff] %vm5264_vm13, %v5235_v12  ;;  %v5233_v46 = vpop.permute.xlu0 %5232  ;;  %v508_v12 = vld [vmem:[%s9931_s12 + $0x88] sm:$0x3] }
 0x639   : > { %5285 = vst.msk [vmem:[#allocation2 + $0xa0] sm:$0xff] %vm5264_vm13, %v5233_v46  ;;  %4939 = vrot.lane.b32.xlu1 %v10318_v22, %s7176_s17 }
 0x63a   : > { %4937 = vrot.lane.b32.xlu0 %v10297_v31, %s7176_s17  ;;  %v6721_v31 = vld [vmem:[%s7330_s11 + $0x190] sm:$0xff] }
 0x63b   : > { %v5203_v8 = vpop.permute.xlu1 %5202 }
 0x63c   : > { %5270 = vst.msk [vmem:[#allocation2 + $0x28] sm:$0xff] %vm5264_vm13, %v5203_v8  ;;  %v5201_v41 = vpop.permute.xlu0 %5200  ;;  %v531_v8 = vmul.f32 %v9940_v4, %v507_v53 }
 0x63d   : > { %5269 = vst.msk [vmem:[#allocation2 + $0x20] sm:$0xff] %vm5264_vm13, %v5201_v41  ;;  %4855 = vrot.lane.b32.xlu1 %v6697_v28, %s7176_s17  ;;  %v532_v41 = vmul.f32 %v9940_v4, %v508_v12 }
 0x63e   : > { %4853 = vrot.lane.b32.xlu0 %v6767_v52, %s7176_s17 }
 0x63f   : > { %v5416_v17 = vpop.permute.xlu1 %5415 }
 0x640   : > { %5467 = vst.msk [vmem:[#allocation2 + $0xa8] sm:$0xff] %vm5445_vm14, %v5416_v17  ;;  %v5414_v20 = vpop.permute.xlu0 %5413 }
 0x641   : > { %5466 = vst.msk [vmem:[#allocation2 + $0xa0] sm:$0xff] %vm5445_vm14, %v5414_v20  ;;  %5118 = vrot.lane.b32.xlu1 %v9976_v18, %s7177_s20 }
 0x642   : > { %5116 = vrot.lane.b32.xlu0 %v9981_v59, %s7177_s20 }
 0x643   : > { %v5384_v49 = vpop.permute.xlu1 %5383 }
 0x644   : > { %5451 = vst.msk [vmem:[#allocation2 + $0x28] sm:$0xff] %vm5445_vm14, %v5384_v49  ;;  %v5382_v54 = vpop.permute.xlu0 %5381  ;;  %v4751_v49 = vrot.slane %v532_v41, 1 }
 0x645   : > { %5450 = vst.msk [vmem:[#allocation2 + $0x20] sm:$0xff] %vm5445_vm14, %v5382_v54  ;;  %5036 = vrot.lane.b32.xlu1 %v6721_v31, %s7177_s20  ;;  %v4750_v31 = vrot.slane %v531_v8, 1 }
 0x646   : > { %5034 = vrot.lane.b32.xlu0 %v6720_v51, %s7177_s20 }
 0x647   : > { %v4521_v62 = vpop.permute.xlu1 %4520  ;;  %v5527_v45 = vld [vmem:[#allocation2 + $0xa8] sm:$0xff]  ;;  %v4752_v54 = vsel %vm608_vm0, %v4750_v31, %v4751_v49 }
 0x648   : > { %4570 = vst.msk [vmem:[#allocation2 + $0xb8] sm:$0xff] %vm4546_vm9, %v4521_v62  ;;  %v4519_v50 = vpop.permute.xlu0 %4518  ;;  %v5526_v23 = vld [vmem:[#allocation2 + $0xa0] sm:$0xff] }
 0x649   : > { %4569 = vst.msk [vmem:[#allocation2 + $0xb0] sm:$0xff] %vm4546_vm9, %v4519_v50  ;;  %5299 = vrot.lane.b32.xlu1 %v10156_v19, %s7178_s21  ;;  %v6877_v59 = vpack.c.bf16 %v5527_v45, %v5526_v23  ;;  %v10884_v50 = vld [vmem:[%s7330_s11 + $0x1c1] sm:$0xff]  ;;  %v4930_v23 = vrot.slane %v531_v8, 2 }
 0x64a   : > { %5297 = vrot.lane.b32.xlu0 %v10161_v0, %s7178_s21 }
 0x64b   : > { %6879 = vmatprep.subr.msk.bf16.mxu0 %vm10642_vm1, %v6877_v59  ;;  %v4699_v48 = vpop.permute.xlu1 %4698  ;;  %v5511_v9 = vld [vmem:[#allocation2 + $0x28] sm:$0xff]  ;;  %v4931_v59 = vrot.slane %v532_v41, 2 }
 0x64c   : > { %4748 = vst.msk [vmem:[#allocation2 + $0xb8] sm:$0xff] %vm4724_vm10, %v4699_v48  ;;  %v4697_v13 = vpop.permute.xlu0 %4696  ;;  %v5510_v29 = vld [vmem:[#allocation2 + $0x20] sm:$0xff] }
 0x64d   : > { %4747 = vst.msk [vmem:[#allocation2 + $0xb0] sm:$0xff] %vm4724_vm10, %v4697_v13  ;;  %5214 = vrot.lane.b32.xlu1 %v6745_v58, %s7178_s21  ;;  %v6880_v26 = vpack.c.bf16 %v5511_v9, %v5510_v29  ;;  %v10901_v13 = vld [vmem:[%s7330_s11 + $0x1c2] sm:$0xff]  ;;  %v509_v29 = vld [vmem:[%s9931_s12 + $0x90] sm:$0xff] }
 0x64e   : > { %5212 = vrot.lane.b32.xlu0 %v6673_v34, %s7178_s21 }
 0x64f   : > { %6882 = vmatpush3.bf16.xpose.msk.msra.mxu0 %vm10642_vm1, %v6880_v26  ;;  %v4667_v0 = vpop.permute.xlu1 %4666 }
 0x650   : > { %4732 = vst.msk [vmem:[#allocation2 + $0x38] sm:$0xff] %vm4724_vm10, %v4667_v0  ;;  %v4665_v32 = vpop.permute.xlu0 %4664  ;;  %v510_v0 = vld [vmem:[%s9931_s12 + $0x98] sm:$0x3] }
 0x651   : > { %4731 = vst.msk [vmem:[#allocation2 + $0x30] sm:$0xff] %vm4724_vm10, %v4665_v32  ;;  %5479 = vrot.lane.b32.xlu1 %v10313_v60, %s7179_s10 }
 0x652   : > { %5477 = vrot.lane.b32.xlu0 %v10318_v22, %s7179_s10 }
 0x653   : > { %v4880_v16 = vpop.permute.xlu1 %4879 }
 0x654   : > { %4929 = vst.msk [vmem:[#allocation2 + $0xb8] sm:$0xff] %vm4905_vm11, %v4880_v16  ;;  %v4878_v2 = vpop.permute.xlu0 %4877 }
 0x655   : > { %4928 = vst.msk [vmem:[#allocation2 + $0xb0] sm:$0xff] %vm4905_vm11, %v4878_v2  ;;  %5395 = vrot.lane.b32.xlu1 %v6769_v33, %s7179_s10 }
 0x656   : > { %5393 = vrot.lane.b32.xlu0 %v6697_v28, %s7179_s10  ;;  %v6771_v28 = vld [vmem:[%s7330_s11 + $0x1b2] sm:$0xff] }
 0x657   : > { %v4848_v39 = vpop.permute.xlu1 %4847 }
 0x658   : > { %4913 = vst.msk [vmem:[#allocation2 + $0x38] sm:$0xff] %vm4905_vm11, %v4848_v39  ;;  %v4846_v10 = vpop.permute.xlu0 %4845  ;;  %v6725_v39 = vld [vmem:[%s7330_s11 + $0x1d0] sm:$0xff] }
 0x659   : > { %4912 = vst.msk [vmem:[#allocation2 + $0x30] sm:$0xff] %vm4905_vm11, %v4846_v10  ;;  %4582 = vrot.lane.b32.xlu1 %v9995_v40, %s7174_s6 }
 0x65a   : > { %4580 = vrot.lane.b32.xlu0 %v9976_v18, %s7174_s6 }
 0x65b   : > { %v5061_v22 = vpop.permute.xlu1 %5060 }
 0x65c   : > { %5110 = vst.msk [vmem:[#allocation2 + $0xb8] sm:$0xff] %vm5086_vm12, %v5061_v22  ;;  %v5059_v56 = vpop.permute.xlu0 %5058 }
 0x65d   : > { %5109 = vst.msk [vmem:[#allocation2 + $0xb0] sm:$0xff] %vm5086_vm12, %v5059_v56  ;;  %4763 = vrot.lane.b32.xlu1 %v10175_v14, %s7175_s19 }
 0x65e   : > { %4761 = vrot.lane.b32.xlu0 %v10156_v19, %s7175_s19  ;;  %v6699_v19 = vld [vmem:[%s7330_s11 + $0x1a2] sm:$0xff] }
 0x65f   : > { %v5029_v55 = vpop.permute.xlu1 %5028 }
 0x660   : > { %5094 = vst.msk [vmem:[#allocation2 + $0x38] sm:$0xff] %vm5086_vm12, %v5029_v55  ;;  %v5027_v57 = vpop.permute.xlu0 %5026 }
 0x661   : > { %5093 = vst.msk [vmem:[#allocation2 + $0x30] sm:$0xff] %vm5086_vm12, %v5027_v57  ;;  %4678 = vrot.lane.b32.xlu1 %v6675_v35, %s7175_s19 }
 0x662   : > { %4676 = vrot.lane.b32.xlu0 %v6745_v58, %s7175_s19 }
 0x663   : > { %v5239_v18 = vpop.permute.xlu1 %5238 }
 0x664   : > { %5288 = vst.msk [vmem:[#allocation2 + $0xb8] sm:$0xff] %vm5264_vm13, %v5239_v18  ;;  %v5237_v7 = vpop.permute.xlu0 %5236 }
 0x665   : > { %5287 = vst.msk [vmem:[#allocation2 + $0xb0] sm:$0xff] %vm5264_vm13, %v5237_v7  ;;  %4943 = vrot.lane.b32.xlu1 %v10332_v1, %s7176_s17 }
 0x666   : > { %4941 = vrot.lane.b32.xlu0 %v10313_v60, %s7176_s17  ;;  %v6723_v60 = vld [vmem:[%s7330_s11 + $0x1b0] sm:$0xff] }
 0x667   : > { %v5207_v38 = vpop.permute.xlu1 %5206 }
 0x668   : > { %5272 = vst.msk [vmem:[#allocation2 + $0x38] sm:$0xff] %vm5264_vm13, %v5207_v38  ;;  %v5205_v5 = vpop.permute.xlu0 %5204 }
 0x669   : > { %5271 = vst.msk [vmem:[#allocation2 + $0x30] sm:$0xff] %vm5264_vm13, %v5205_v5  ;;  %4859 = vrot.lane.b32.xlu1 %v6699_v19, %s7176_s17  ;;  %v6749_v5 = vld [vmem:[%s7330_s11 + $0x1d1] sm:$0xff] }
 0x66a   : > { %4857 = vrot.lane.b32.xlu0 %v6769_v33, %s7176_s17  ;;  %v533_v33 = vmul.f32 %v9940_v4, %v509_v29 }
 0x66b   : > { %v5420_v36 = vpop.permute.xlu1 %5419 }
 0x66c   : > { %5469 = vst.msk [vmem:[#allocation2 + $0xb8] sm:$0xff] %vm5445_vm14, %v5420_v36  ;;  %v5418_v27 = vpop.permute.xlu0 %5417  ;;  %v5290_v10 = vrot.slane %v533_v33, 1  ;;  %v5470_v36 = vrot.slane %v533_v33, 2 }
 0x66d   : > { %5468 = vst.msk [vmem:[#allocation2 + $0xb0] sm:$0xff] %vm5445_vm14, %v5418_v27  ;;  %5122 = vrot.lane.b32.xlu1 %v9990_v42, %s7177_s20 }
 0x66e   : > { %5120 = vrot.lane.b32.xlu0 %v9995_v40, %s7177_s20 }
 0x66f   : > { %v5388_v30 = vpop.permute.xlu1 %5387 }
 0x670   : > { %5453 = vst.msk [vmem:[#allocation2 + $0x38] sm:$0xff] %vm5445_vm14, %v5388_v30  ;;  %v5386_v24 = vpop.permute.xlu0 %5385 }
 0x671   : > { %5452 = vst.msk [vmem:[#allocation2 + $0x30] sm:$0xff] %vm5445_vm14, %v5386_v24  ;;  %5040 = vrot.lane.b32.xlu1 %v6723_v60, %s7177_s20 }
 0x672   : > { %5038 = vrot.lane.b32.xlu0 %v6722_v3, %s7177_s20 }
 0x673   : > { %v4575_v47 = vpop.permute.xlu1 %4574  ;;  %v5529_v52 = vld [vmem:[#allocation2 + $0xb8] sm:$0xff] }
 0x674   : > { %4597 = vst.msk [vmem:[#allocation2 + $0xc8] sm:$0xff] %vm4546_vm9, %v4575_v47  ;;  %v4573_v44 = vpop.permute.xlu0 %4572  ;;  %v5528_v6 = vld [vmem:[#allocation2 + $0xb0] sm:$0xff] }
 0x675   : > { %4596 = vst.msk [vmem:[#allocation2 + $0xc0] sm:$0xff] %vm4546_vm9, %v4573_v44  ;;  %5303 = vrot.lane.b32.xlu1 %v10172_v25, %s7178_s21  ;;  %v6883_v40 = vpack.c.bf16 %v5529_v52, %v5528_v6 }
 0x676   : > { %5301 = vrot.lane.b32.xlu0 %v10175_v14, %s7178_s21 }
 0x677   : > { %6885 = vmatprep.subr.msk.bf16.mxu0 %vm10642_vm1, %v6883_v40  ;;  %v4756_v21 = vpop.permute.xlu1 %4755  ;;  %v5513_v11 = vld [vmem:[#allocation2 + $0x38] sm:$0xff] }
 0x678   : > { %4778 = vst.msk [vmem:[#allocation2 + $0xc8] sm:$0xff] %vm4724_vm10, %v4756_v21  ;;  %v4754_v43 = vpop.permute.xlu0 %4753  ;;  %v5512_v34 = vld [vmem:[#allocation2 + $0x30] sm:$0xff]  ;;  %v10947_v21 = vld [vmem:[%s11229_s3] sm:$0xff] }
 0x679   : > { %4777 = vst.msk [vmem:[#allocation2 + $0xc0] sm:$0xff] %vm4724_vm10, %v4754_v43  ;;  %5218 = vrot.lane.b32.xlu1 %v6747_v61, %s7178_s21  ;;  %v6886_v37 = vpack.c.bf16 %v5513_v11, %v5512_v34  ;;  %v6773_v40 = vld [vmem:[%s7330_s11 + $0x1d2] sm:$0xff]  ;;  %6863 = vmatprep.mubr.msk.f32.mxu0 %vm5538_vm15, %v10947_v21 }
 0x67a   : > { %5216 = vrot.lane.b32.xlu0 %v6675_v35, %s7178_s21  ;;  %v6724_v35 = vld [vmem:[%s7330_s11 + $0x1c0] sm:$0xff]  ;;  %s11036_s11 = scalar_lea.vmem [#allocation5], %s10471_s18 }
 0x67b   : > { %6888 = vmatpush3.bf16.xpose.msk.msra.mxu0 %vm10642_vm1, %v6886_v37  ;;  %v4671_v14 = vpop.permute.xlu1 %4670 }
 0x67c   : > { %4734 = vst.msk [vmem:[#allocation2 + $0x48] sm:$0xff] %vm4724_vm10, %v4671_v14  ;;  %v4669_v46 = vpop.permute.xlu0 %4668 }
 0x67d   : > { %4733 = vst.msk [vmem:[#allocation2 + $0x40] sm:$0xff] %vm4724_vm10, %v4669_v46  ;;  %5483 = vrot.lane.b32.xlu1 %v10329_v15, %s7179_s10 }
 0x67e   : > { %5481 = vrot.lane.b32.xlu0 %v10332_v1, %s7179_s10 }
 0x67f   : > { %v4936_v17 = vpop.permute.xlu1 %4935 }
 0x680   : > { %4958 = vst.msk [vmem:[#allocation2 + $0xc8] sm:$0xff] %vm4905_vm11, %v4936_v17  ;;  %v4934_v20 = vpop.permute.xlu0 %4933 }
 0x681   : > { %4957 = vst.msk [vmem:[#allocation2 + $0xc0] sm:$0xff] %vm4905_vm11, %v4934_v20  ;;  %5399 = vrot.lane.b32.xlu1 %v6771_v28, %s7179_s10 }
 0x682   : > { %5397 = vrot.lane.b32.xlu0 %v6699_v19, %s7179_s10 }
 0x683   : > { %v4852_v51 = vpop.permute.xlu1 %4851 }
 0x684   : > { %4915 = vst.msk [vmem:[#allocation2 + $0x48] sm:$0xff] %vm4905_vm11, %v4852_v51  ;;  %v4850_v1 = vpop.permute.xlu0 %4849 }
 0x685   : > { %4914 = vst.msk [vmem:[#allocation2 + $0x40] sm:$0xff] %vm4905_vm11, %v4850_v1  ;;  %4586 = vrot.lane.b32.xlu1 %v531_v8, %s7174_s6 }
 0x686   : > { %4584 = vrot.lane.b32.xlu0 %v9990_v42, %s7174_s6 }
 0x687   : > { %v5115_v62 = vpop.permute.xlu1 %5114 }
 0x688   : > { %5137 = vst.msk [vmem:[#allocation2 + $0xc8] sm:$0xff] %vm5086_vm12, %v5115_v62  ;;  %v5113_v45 = vpop.permute.xlu0 %5112 }
 0x689   : > { %5136 = vst.msk [vmem:[#allocation2 + $0xc0] sm:$0xff] %vm5086_vm12, %v5113_v45  ;;  %4767 = vrot.lane.b32.xlu1 %v4752_v54, %s7175_s19 }
 0x68a   : > { %4765 = vrot.lane.b32.xlu0 %v10172_v25, %s7175_s19  ;;  %v10892_v25 = vsel %vm810_vm2, %v4930_v23, %v4931_v59 }
 0x68b   : > { %v5033_v42 = vpop.permute.xlu1 %5032 }
 0x68c   : > { %5096 = vst.msk [vmem:[#allocation2 + $0x48] sm:$0xff] %vm5086_vm12, %v5033_v42  ;;  %v5031_v58 = vpop.permute.xlu0 %5030 }
 0x68d   : > { %5095 = vst.msk [vmem:[#allocation2 + $0x40] sm:$0xff] %vm5086_vm12, %v5031_v58  ;;  %4682 = vrot.lane.b32.xlu1 %v10884_v50, %s7175_s19 }
 0x68e   : > { %4680 = vrot.lane.b32.xlu0 %v6747_v61, %s7175_s19 }
 0x68f   : > { %v5296_v48 = vpop.permute.xlu1 %5295 }
 0x690   : > { %5318 = vst.msk [vmem:[#allocation2 + $0xc8] sm:$0xff] %vm5264_vm13, %v5296_v48  ;;  %v5294_v9 = vpop.permute.xlu0 %5293 }
 0x691   : > { %5317 = vst.msk [vmem:[#allocation2 + $0xc0] sm:$0xff] %vm5264_vm13, %v5294_v9  ;;  %4947 = vrot.lane.b32.xlu1 %v10892_v25, %s7176_s17 }
 0x692   : > { %4945 = vrot.lane.b32.xlu0 %v10329_v15, %s7176_s17  ;;  %v534_v15 = vmul.f32 %v9940_v4, %v510_v0 }
 0x693   : > { %v5211_v26 = vpop.permute.xlu1 %5210 }
 0x694   : > { %5274 = vst.msk [vmem:[#allocation2 + $0x48] sm:$0xff] %vm5264_vm13, %v5211_v26  ;;  %v5209_v32 = vpop.permute.xlu0 %5208  ;;  %v5291_v22 = vrot.slane %v534_v15, 1  ;;  %v5471_v27 = vrot.slane %v534_v15, 2 }
 0x695   : > { %5273 = vst.msk [vmem:[#allocation2 + $0x40] sm:$0xff] %vm5264_vm13, %v5209_v32  ;;  %4863 = vrot.lane.b32.xlu1 %v10901_v13, %s7176_s17 }
 0x696   : > { %4861 = vrot.lane.b32.xlu0 %v6771_v28, %s7176_s17  ;;  %v5292_v4 = vsel %vm608_vm0, %v5290_v10, %v5291_v22  ;;  %v5472_v52 = vsel %vm810_vm2, %v5470_v36, %v5471_v27  ;;  %vm5718_vm0 = vcmask (!%p5714_p13), 7168  }
 0x697   : > { %v5476_v16 = vpop.permute.xlu1 %5475 }
 0x698   : > { %5498 = vst.msk [vmem:[#allocation2 + $0xc8] sm:$0xff] %vm5445_vm14, %v5476_v16  ;;  %v5474_v2 = vpop.permute.xlu0 %5473 }
 0x699   : > { %5497 = vst.msk [vmem:[#allocation2 + $0xc0] sm:$0xff] %vm5445_vm14, %v5474_v2  ;;  %5126 = vrot.lane.b32.xlu1 %v533_v33, %s7177_s20 }
 0x69a   : > { %5124 = vrot.lane.b32.xlu0 %v531_v8, %s7177_s20 }
 0x69b   : > { %v5392_v56 = vpop.permute.xlu1 %5391 }
 0x69c   : > { %5455 = vst.msk [vmem:[#allocation2 + $0x48] sm:$0xff] %vm5445_vm14, %v5392_v56  ;;  %v5390_v55 = vpop.permute.xlu0 %5389 }
 0x69d   : > { %5454 = vst.msk [vmem:[#allocation2 + $0x40] sm:$0xff] %vm5445_vm14, %v5390_v55  ;;  %5044 = vrot.lane.b32.xlu1 %v6725_v39, %s7177_s20 }
 0x69e   : > { %5042 = vrot.lane.b32.xlu0 %v6724_v35, %s7177_s20 }
 0x69f   : > { %v4579_v57 = vpop.permute.xlu1 %4578  ;;  %v5531_v18 = vld [vmem:[#allocation2 + $0xc8] sm:$0xff] }
 0x6a0   : > { %4599 = vst.msk [vmem:[#allocation2 + $0xd8] sm:$0xff] %vm4546_vm9, %v4579_v57  ;;  %v4577_v7 = vpop.permute.xlu0 %4576  ;;  %v5530_v19 = vld [vmem:[#allocation2 + $0xc0] sm:$0xff] }
 0x6a1   : > { %4598 = vst.msk [vmem:[#allocation2 + $0xd0] sm:$0xff] %vm4546_vm9, %v4577_v7  ;;  %5307 = vrot.lane.b32.xlu1 %v5292_v4, %s7178_s21  ;;  %v6889_v38 = vpack.c.bf16 %v5531_v18, %v5530_v19 }
 0x6a2   : > { %5305 = vrot.lane.b32.xlu0 %v4752_v54, %s7178_s21 }
 0x6a3   : > { %6891 = vmatprep.subr.msk.bf16.mxu0 %vm10642_vm1, %v6889_v38  ;;  %v4760_v60 = vpop.permute.xlu1 %4759  ;;  %v5515_v30 = vld [vmem:[#allocation2 + $0x48] sm:$0xff] }
 0x6a4   : > { %4780 = vst.msk [vmem:[#allocation2 + $0xd8] sm:$0xff] %vm4724_vm10, %v4760_v60  ;;  %v4758_v3 = vpop.permute.xlu0 %4757  ;;  %v5514_v24 = vld [vmem:[#allocation2 + $0x40] sm:$0xff] }
 0x6a5   : > { %4779 = vst.msk [vmem:[#allocation2 + $0xd0] sm:$0xff] %vm4724_vm10, %v4758_v3  ;;  %5222 = vrot.lane.b32.xlu1 %v6749_v5, %s7178_s21  ;;  %v6892_v47 = vpack.c.bf16 %v5515_v30, %v5514_v24 }
 0x6a6   : > { %5220 = vrot.lane.b32.xlu0 %v10884_v50, %s7178_s21 }
 0x6a7   : > { %6894 = vmatpush3.bf16.xpose.msk.msra.mxu0 %vm10642_vm1, %v6892_v47  ;;  %v4675_v44 = vpop.permute.xlu1 %4674 }
 0x6a8   : > { %4736 = vst.msk [vmem:[#allocation2 + $0x58] sm:$0xff] %vm4724_vm10, %v4675_v44  ;;  %v4673_v6 = vpop.permute.xlu0 %4672 }
 0x6a9   : > { %4735 = vst.msk [vmem:[#allocation2 + $0x50] sm:$0xff] %vm4724_vm10, %v4673_v6  ;;  %5487 = vrot.lane.b32.xlu1 %v5472_v52, %s7179_s10 }
 0x6aa   : > { %5485 = vrot.lane.b32.xlu0 %v10892_v25, %s7179_s10 }
 0x6ab   : > { %v4940_v61 = vpop.permute.xlu1 %4939 }
 0x6ac   : > { %4960 = vst.msk [vmem:[#allocation2 + $0xd8] sm:$0xff] %vm4905_vm11, %v4940_v61  ;;  %v4938_v11 = vpop.permute.xlu0 %4937 }
 0x6ad   : > { %4959 = vst.msk [vmem:[#allocation2 + $0xd0] sm:$0xff] %vm4905_vm11, %v4938_v11  ;;  %5403 = vrot.lane.b32.xlu1 %v6773_v40, %s7179_s10 }
 0x6ae   : > { %5401 = vrot.lane.b32.xlu0 %v10901_v13, %s7179_s10 }
 0x6af   : > { %v4856_v43 = vpop.permute.xlu1 %4855 }
 0x6b0   : > { %4917 = vst.msk [vmem:[#allocation2 + $0x58] sm:$0xff] %vm4905_vm11, %v4856_v43  ;;  %v4854_v34 = vpop.permute.xlu0 %4853 }
 0x6b1   : > { %4916 = vst.msk [vmem:[#allocation2 + $0x50] sm:$0xff] %vm4905_vm11, %v4854_v34 }
 0x6b3   : > { %v5119_v37 = vpop.permute.xlu1 %5118 }
 0x6b4   : > { %5139 = vst.msk [vmem:[#allocation2 + $0xd8] sm:$0xff] %vm5086_vm12, %v5119_v37  ;;  %v5117_v14 = vpop.permute.xlu0 %5116 }
 0x6b5   : > { %5138 = vst.msk [vmem:[#allocation2 + $0xd0] sm:$0xff] %vm5086_vm12, %v5117_v14 }
 0x6b7   : > { %v5037_v53 = vpop.permute.xlu1 %5036 }
 0x6b8   : > { %5098 = vst.msk [vmem:[#allocation2 + $0x58] sm:$0xff] %vm5086_vm12, %v5037_v53  ;;  %v5035_v12 = vpop.permute.xlu0 %5034 }
 0x6b9   : > { %5097 = vst.msk [vmem:[#allocation2 + $0x50] sm:$0xff] %vm5086_vm12, %v5035_v12 }
 0x6bb   : > { %v5300_v46 = vpop.permute.xlu1 %5299 }
 0x6bc   : > { %5320 = vst.msk [vmem:[#allocation2 + $0xd8] sm:$0xff] %vm5264_vm13, %v5300_v46  ;;  %v5298_v28 = vpop.permute.xlu0 %5297 }
 0x6bd   : > { %5319 = vst.msk [vmem:[#allocation2 + $0xd0] sm:$0xff] %vm5264_vm13, %v5298_v28 }
 0x6bf   : > { %v5215_v8 = vpop.permute.xlu1 %5214 }
 0x6c0   : > { %5276 = vst.msk [vmem:[#allocation2 + $0x58] sm:$0xff] %vm5264_vm13, %v5215_v8  ;;  %v5213_v41 = vpop.permute.xlu0 %5212 }
 0x6c1   : > { %5275 = vst.msk [vmem:[#allocation2 + $0x50] sm:$0xff] %vm5264_vm13, %v5213_v41 }
 0x6c3   : > { %v5480_v17 = vpop.permute.xlu1 %5479 }
 0x6c4   : > { %5500 = vst.msk [vmem:[#allocation2 + $0xd8] sm:$0xff] %vm5445_vm14, %v5480_v17  ;;  %v5478_v20 = vpop.permute.xlu0 %5477 }
 0x6c5   : > { %5499 = vst.msk [vmem:[#allocation2 + $0xd0] sm:$0xff] %vm5445_vm14, %v5478_v20 }
 0x6c7   : > { %v5396_v31 = vpop.permute.xlu1 %5395 }
 0x6c8   : > { %5457 = vst.msk [vmem:[#allocation2 + $0x58] sm:$0xff] %vm5445_vm14, %v5396_v31  ;;  %v5394_v49 = vpop.permute.xlu0 %5393 }
 0x6c9   : > { %5456 = vst.msk [vmem:[#allocation2 + $0x50] sm:$0xff] %vm5445_vm14, %v5394_v49 }
 0x6cb   : > { %v4583_v51 = vpop.permute.xlu1 %4582  ;;  %v5533_v1 = vld [vmem:[#allocation2 + $0xd8] sm:$0xff] }
 0x6cc   : > { %4601 = vst.msk [vmem:[#allocation2 + $0xe8] sm:$0xff] %vm4546_vm9, %v4583_v51  ;;  %v4581_v54 = vpop.permute.xlu0 %4580  ;;  %v5532_v62 = vld [vmem:[#allocation2 + $0xd0] sm:$0xff] }
 0x6cd   : > { %4600 = vst.msk [vmem:[#allocation2 + $0xe0] sm:$0xff] %vm4546_vm9, %v4581_v54  ;;  %v6895_v45 = vpack.c.bf16 %v5533_v1, %v5532_v62  ;;  %v7180_v54 = vmov (!%p5714_p13), 0.0  }
 0x6ce   : > { %5719 = vst.msk [vmem:[#allocation3] sm:$0xff] (!%p5714_p13), %vm5718_vm0, %v7180_v54  ;;  %5720 = vst.msk [vmem:[#allocation4] sm:$0xff] (!%p5714_p13), %vm5718_vm0, %v7180_v54 }
 0x6cf   : > { %6897 = vmatprep.subr.msk.bf16.mxu0 %vm10642_vm1, %v6895_v45  ;;  %v4764_v50 = vpop.permute.xlu1 %4763  ;;  %v5517_v23 = vld [vmem:[#allocation2 + $0x58] sm:$0xff] }
 0x6d0   : > { %4782 = vst.msk [vmem:[#allocation2 + $0xe8] sm:$0xff] %vm4724_vm10, %v4764_v50  ;;  %v4762_v59 = vpop.permute.xlu0 %4761  ;;  %v5516_v42 = vld [vmem:[#allocation2 + $0x50] sm:$0xff] }
 0x6d1   : > { %4781 = vst.msk [vmem:[#allocation2 + $0xe0] sm:$0xff] %vm4724_vm10, %v4762_v59  ;;  %v6898_v58 = vpack.c.bf16 %v5517_v23, %v5516_v42 }
 0x6d3   : > { %6900 = vmatpush3.bf16.xpose.msk.msra.mxu0 %vm10642_vm1, %v6898_v58  ;;  %v4679_v25 = vpop.permute.xlu1 %4678 }
 0x6d4   : > { %4738 = vst.msk [vmem:[#allocation2 + $0x68] sm:$0xff] %vm4724_vm10, %v4679_v25  ;;  %v4677_v48 = vpop.permute.xlu0 %4676 }
 0x6d5   : > { %4737 = vst.msk [vmem:[#allocation2 + $0x60] sm:$0xff] %vm4724_vm10, %v4677_v48 }
 0x6d7   : > { %v4944_v9 = vpop.permute.xlu1 %4943 }
 0x6d8   : > { %4962 = vst.msk [vmem:[#allocation2 + $0xe8] sm:$0xff] %vm4905_vm11, %v4944_v9  ;;  %v4942_v13 = vpop.permute.xlu0 %4941 }
 0x6d9   : > { %4961 = vst.msk [vmem:[#allocation2 + $0xe0] sm:$0xff] %vm4905_vm11, %v4942_v13 }
 0x6db   : > { %v4860_v29 = vpop.permute.xlu1 %4859 }
 0x6dc   : > { %4919 = vst.msk [vmem:[#allocation2 + $0x68] sm:$0xff] %vm4905_vm11, %v4860_v29  ;;  %v4858_v26 = vpop.permute.xlu0 %4857 }
 0x6dd   : > { %4918 = vst.msk [vmem:[#allocation2 + $0x60] sm:$0xff] %vm4905_vm11, %v4858_v26 }
 0x6df   : > { %v5123_v0 = vpop.permute.xlu1 %5122 }
 0x6e0   : > { %5141 = vst.msk [vmem:[#allocation2 + $0xe8] sm:$0xff] %vm5086_vm12, %v5123_v0  ;;  %v5121_v32 = vpop.permute.xlu0 %5120 }
 0x6e1   : > { %5140 = vst.msk [vmem:[#allocation2 + $0xe0] sm:$0xff] %vm5086_vm12, %v5121_v32 }
 0x6e3   : > { %v5041_v33 = vpop.permute.xlu1 %5040 }
 0x6e4   : > { %5100 = vst.msk [vmem:[#allocation2 + $0x68] sm:$0xff] %vm5086_vm12, %v5041_v33  ;;  %v5039_v15 = vpop.permute.xlu0 %5038 }
 0x6e5   : > { %5099 = vst.msk [vmem:[#allocation2 + $0x60] sm:$0xff] %vm5086_vm12, %v5039_v15 }
 0x6e7   : > { %v5304_v16 = vpop.permute.xlu1 %5303 }
 0x6e8   : > { %5322 = vst.msk [vmem:[#allocation2 + $0xe8] sm:$0xff] %vm5264_vm13, %v5304_v16  ;;  %v5302_v2 = vpop.permute.xlu0 %5301 }
 0x6e9   : > { %5321 = vst.msk [vmem:[#allocation2 + $0xe0] sm:$0xff] %vm5264_vm13, %v5302_v2 }
 0x6eb   : > { %v5219_v39 = vpop.permute.xlu1 %5218 }
 0x6ec   : > { %5278 = vst.msk [vmem:[#allocation2 + $0x68] sm:$0xff] %vm5264_vm13, %v5219_v39  ;;  %v5217_v10 = vpop.permute.xlu0 %5216 }
 0x6ed   : > { %5277 = vst.msk [vmem:[#allocation2 + $0x60] sm:$0xff] %vm5264_vm13, %v5217_v10 }
 0x6ef   : > { %v5484_v22 = vpop.permute.xlu1 %5483 }
 0x6f0   : > { %5502 = vst.msk [vmem:[#allocation2 + $0xe8] sm:$0xff] %vm5445_vm14, %v5484_v22  ;;  %v5482_v56 = vpop.permute.xlu0 %5481 }
 0x6f1   : > { %5501 = vst.msk [vmem:[#allocation2 + $0xe0] sm:$0xff] %vm5445_vm14, %v5482_v56 }
 0x6f3   : > { %v5400_v35 = vpop.permute.xlu1 %5399 }
 0x6f4   : > { %5459 = vst.msk [vmem:[#allocation2 + $0x68] sm:$0xff] %vm5445_vm14, %v5400_v35  ;;  %v5398_v55 = vpop.permute.xlu0 %5397 }
 0x6f5   : > { %5458 = vst.msk [vmem:[#allocation2 + $0x60] sm:$0xff] %vm5445_vm14, %v5398_v55 }
 0x6f7   : > { %v4587_v4 = vpop.permute.xlu1 %4586  ;;  %v5535_v57 = vld [vmem:[#allocation2 + $0xe8] sm:$0xff] }
 0x6f8   : > { %4603 = vst.msk [vmem:[#allocation2 + $0xf8] sm:$0xff] %vm4546_vm9, %v4587_v4  ;;  %v4585_v18 = vpop.permute.xlu0 %4584  ;;  %v5534_v7 = vld [vmem:[#allocation2 + $0xe0] sm:$0xff] }
 0x6f9   : > { %4602 = vst.msk [vmem:[#allocation2 + $0xf0] sm:$0xff] %vm4546_vm9, %v4585_v18  ;;  %v6901_v19 = vpack.c.bf16 %v5535_v57, %v5534_v7 }
 0x6fb   : > { %6903 = vmatprep.subr.msk.bf16.mxu0 %vm10642_vm1, %v6901_v19  ;;  %v4768_v38 = vpop.permute.xlu1 %4767  ;;  %v5519_v5 = vld [vmem:[#allocation2 + $0x68] sm:$0xff] }
 0x6fc   : > { %4784 = vst.msk [vmem:[#allocation2 + $0xf8] sm:$0xff] %vm4724_vm10, %v4768_v38  ;;  %v4766_v36 = vpop.permute.xlu0 %4765  ;;  %v5518_v27 = vld [vmem:[#allocation2 + $0x60] sm:$0xff] }
 0x6fd   : > { %4783 = vst.msk [vmem:[#allocation2 + $0xf0] sm:$0xff] %vm4724_vm10, %v4766_v36  ;;  %v6904_v60 = vpack.c.bf16 %v5519_v5, %v5518_v27 }
 0x6ff   : > { %6906 = vmatpush3.bf16.xpose.msk.msra.mxu0 %vm10642_vm1, %v6904_v60  ;;  %v4683_v30 = vpop.permute.xlu1 %4682 }
 0x700   : > { %4740 = vst.msk [vmem:[#allocation2 + $0x78] sm:$0xff] %vm4724_vm10, %v4683_v30  ;;  %v4681_v3 = vpop.permute.xlu0 %4680 }
 0x701   : > { %4739 = vst.msk [vmem:[#allocation2 + $0x70] sm:$0xff] %vm4724_vm10, %v4681_v3 }
 0x703   : > { %v4948_v24 = vpop.permute.xlu1 %4947 }
 0x704   : > { %4964 = vst.msk [vmem:[#allocation2 + $0xf8] sm:$0xff] %vm4905_vm11, %v4948_v24  ;;  %v4946_v47 = vpop.permute.xlu0 %4945 }
 0x705   : > { %4963 = vst.msk [vmem:[#allocation2 + $0xf0] sm:$0xff] %vm4905_vm11, %v4946_v47 }
 0x707   : > { %v4864_v52 = vpop.permute.xlu1 %4863 }
 0x708   : > { %4921 = vst.msk [vmem:[#allocation2 + $0x78] sm:$0xff] %vm4905_vm11, %v4864_v52  ;;  %v4862_v44 = vpop.permute.xlu0 %4861 }
 0x709   : > { %4920 = vst.msk [vmem:[#allocation2 + $0x70] sm:$0xff] %vm4905_vm11, %v4862_v44 }
 0x70b   : > { %v5127_v6 = vpop.permute.xlu1 %5126 }
 0x70c   : > { %5143 = vst.msk [vmem:[#allocation2 + $0xf8] sm:$0xff] %vm5086_vm12, %v5127_v6  ;;  %v5125_v40 = vpop.permute.xlu0 %5124 }
 0x70d   : > { %5142 = vst.msk [vmem:[#allocation2 + $0xf0] sm:$0xff] %vm5086_vm12, %v5125_v40 }
 0x70f   : > { %v5045_v61 = vpop.permute.xlu1 %5044 }
 0x710   : > { %5102 = vst.msk [vmem:[#allocation2 + $0x78] sm:$0xff] %vm5086_vm12, %v5045_v61  ;;  %v5043_v11 = vpop.permute.xlu0 %5042 }
 0x711   : > { %5101 = vst.msk [vmem:[#allocation2 + $0x70] sm:$0xff] %vm5086_vm12, %v5043_v11 }
 0x713   : > { %v5308_v43 = vpop.permute.xlu1 %5307 }
 0x714   : > { %5324 = vst.msk [vmem:[#allocation2 + $0xf8] sm:$0xff] %vm5264_vm13, %v5308_v43  ;;  %v5306_v34 = vpop.permute.xlu0 %5305 }
 0x715   : > { %5323 = vst.msk [vmem:[#allocation2 + $0xf0] sm:$0xff] %vm5264_vm13, %v5306_v34 }
 0x717   : > { %v5223_v37 = vpop.permute.xlu1 %5222 }
 0x718   : > { %5280 = vst.msk [vmem:[#allocation2 + $0x78] sm:$0xff] %vm5264_vm13, %v5223_v37  ;;  %v5221_v14 = vpop.permute.xlu0 %5220 }
 0x719   : > { %5279 = vst.msk [vmem:[#allocation2 + $0x70] sm:$0xff] %vm5264_vm13, %v5221_v14 }
 0x71b   : > { %v5488_v53 = vpop.permute.xlu1 %5487 }
 0x71c   : > { %5504 = vst.msk [vmem:[#allocation2 + $0xf8] sm:$0xff] %vm5445_vm14, %v5488_v53  ;;  %v5486_v12 = vpop.permute.xlu0 %5485 }
 0x71d   : > { %5503 = vst.msk [vmem:[#allocation2 + $0xf0] sm:$0xff] %vm5445_vm14, %v5486_v12 }
 0x71f   : > { %v5404_v46 = vpop.permute.xlu1 %5403 }
 0x720   : > { %5461 = vst.msk [vmem:[#allocation2 + $0x78] sm:$0xff] %vm5445_vm14, %v5404_v46  ;;  %v5402_v28 = vpop.permute.xlu0 %5401 }
 0x721   : > { %5460 = vst.msk [vmem:[#allocation2 + $0x70] sm:$0xff] %vm5445_vm14, %v5402_v28 }
 0x723   : > { %v5537_v8 = vld [vmem:[#allocation2 + $0xf8] sm:$0xff] }
 0x724   : > { %v5536_v41 = vld [vmem:[#allocation2 + $0xf0] sm:$0xff] }
 0x725   : > { %v6907_v17 = vpack.c.bf16 %v5537_v8, %v5536_v41 }
 0x727   : > { %6909 = vmatprep.subr.msk.bf16.mxu0 %vm10642_vm1, %v6907_v17  ;;  %v5521_v20 = vld [vmem:[#allocation2 + $0x78] sm:$0xff] }
 0x728   : > { %v5520_v31 = vld [vmem:[#allocation2 + $0x70] sm:$0xff] }
 0x729   : > { %v6910_v49 = vpack.c.bf16 %v5521_v20, %v5520_v31 }
 0x72b   : > { %6912 = vmatpush3.bf16.xpose.msk.msra.mxu0 %vm10642_vm1, %v6910_v49 }
 0x732   : > { %6864 = vmatmul.mubr.msk.f32.vlgmr.msra.gmra.mrb[0].mxu0 %vm5538_vm15, %v10947_v21 }
 0x800   : > { %5717 = sbr.rel (%p5714_p13) target bundleno = 2055 (0x807), region = 52 }
 0x805   : > { %v11031_v51 = vpop.f32.mrb[0].mxu0 }
 0x806   : > { %v11033_v1 = vpop.f32.mrb[1].mxu0 }
 0x807 PF: > { %p6815_p0 = scmp.ne.s32.totalorder %s7136_s29, 0 }
 0x808   : > { %v5724_v63 = vadd.f32 (!%p6815_p0), %v11033_v1, %v11031_v51  ;;  %s6816_s6 = sshll.u32 (!%p6815_p0), %s7132_s28, 1  ;;  %v5740_v50 = vld [vmem:[#allocation3] sm:$0xff] (!%p6815_p0)  ;;  %vm5749_vm2 = vcmask (!%p6815_p0), 7168   ;;  %v5751_v15 = vld [vmem:[#allocation4] sm:$0xff] (!%p6815_p0) }
 0x809   : > { %5723 = sbr.rel (%p6815_p0) target bundleno = 2355 (0x933), region = 56  ;;  %s5736_s19 = sadd.s32 (!%p6815_p0), %s7128_s27, %s6816_s6 }
 0x80a   : > { %5725 = vadd.xlane.f32.xlu0 (!%p6815_p0), %v5724_v63  ;;  %s5737_s17 = scvt.s32.f32 (!%p6815_p0), %s5736_s19 }
 0x80c   : > { %s5738_s20 = smul.f32 (!%p6815_p0), 256.0, %s5737_s17 }
 0x80e   : > { %s5739_s21 = sadd.f32 (!%p6815_p0), 256.0, %s5738_s20  ;;  %s5754_s18 = smul.f32 (!%p6815_p0), 256.0, %s5738_s20 }
 0x810   : > { %v5742_v21 = vstv %s5739_s21 }
 0x811   : > { %7037 = vrcp.f32 %v5742_v21 }
 0x81b   : > { %v7038_v62 = vpop.eup %7037 }
 0x81c   : > { %6917 = vpush %v7038_v62 }
 0x84d   : > { %s6918_s10 = spop %6917 }
 0x84e   : > { %s5758_s12 = smul.f32 %s6918_s10, %s5754_s18 }
 0x84f   : > { %s5745_s22 = smul.f32 256.0, %s6918_s10 }
 0x850   : > { %v5759_v48 = vstv %s5758_s12 }
 0x851   : > { %v5746_v59 = vstv %s5745_s22 }
 0x897   : > { %v5726_v45 = vpop.xlane.xlu0 %5725 }
 0x898   : > { %v5727_v23 = vmul.f32 0.00390625, %v5726_v45 }
 0x89a   : > { %v5741_v42 = vsub.f32 %v5727_v23, %v5740_v50  ;;  %v5728_v58 = vsub.f32 %v11031_v51, %v5727_v23  ;;  %v5729_v25 = vsub.f32 %v11033_v1, %v5727_v23 }
 0x89c   : > { %v5747_v9 = vmul.f32 %v5746_v59, %v5741_v42  ;;  %v5753_v13 = vmul.f32 %v5741_v42, %v5741_v42  ;;  %v5730_v29 = vmul.f32 %v5728_v58, %v5728_v58  ;;  %v5731_v26 = vmul.f32 %v5729_v25, %v5729_v25 }
 0x89e   : > { %v5748_v0 = vadd.f32 %v5747_v9, %v5740_v50  ;;  %v5760_v32 = vmul.f32 %v5759_v48, %v5753_v13  ;;  %v5732_v33 = vadd.f32 %v5731_v26, %v5730_v29 }
 0x8a0   : > { %5733 = vadd.xlane.f32.xlu0 %v5732_v33  ;;  %5750 = vst.msk [vmem:[#allocation3] sm:$0xff] %vm5749_vm2, %v5748_v0 }
 0x92d   : > { %v5734_v16 = vpop.xlane.xlu0 %5733 }
 0x92e   : > { %v5752_v2 = vadd.f32 %v5751_v15, %v5734_v16 }
 0x930   : > { %v5761_v39 = vadd.f32 %v5760_v32, %v5752_v2 }
 0x932   : > { %5762 = vst.msk [vmem:[#allocation4] sm:$0xff] %vm5749_vm2, %v5761_v39 }
 0x933 PF: > { %p6817_p1 = scmp.ne.s32.totalorder %s7136_s29, 1 }
 0x934   : > { %v7181_v22 = vmov (!%p6817_p1), 0   ;;  %v5769_v55 = vld [vmem:[%s11230_s4] sm:$0xff] (!%p6817_p1)  ;;  %v7182_v5 = vmov (!%p6817_p1), 1966171168   ;;  %v5798_v27 = vlaneseq (!%p6817_p1)  ;;  %vm5851_vm3 = vcmask (!%p6817_p1), 516096   ;;  %s7183_s21 = smov (!%p6817_p1), 64  }
 0x935   : > { %5766 = sbr.rel (%p6817_p1) target bundleno = 2670 (0xa6e), region = 60  ;;  %7039 = vset.pattern.permute.xlu0 (!%p6817_p1), %v7181_v22  ;;  %v5774_v57 = vld [vmem:[#allocation3] sm:$0xff] (!%p6817_p1)  ;;  %v5796_v36 = vunpack.c.l.s4 (!%p6817_p1), %v7182_v5 }
 0x936   : > { %v5773_v7 = vld [vmem:[%s11231_s5] sm:$0xff] (!%p6817_p1)  ;;  %v5799_v3 = vshrl.u32 (!%p6817_p1), %v5798_v27, 7 }
 0x937   : > { %v5797_v30 = vunpack.c.0.s8 (!%p6817_p1), %v5796_v36 }
 0x938   : > { %v11054_v53 = vsub.s32 (!%p6817_p1), 0, %v5799_v3 }
 0x939   : > { %v5767_v10 = vld [vmem:[#allocation4] sm:$0xff] (!%p6817_p1)  ;;  %v5800_v44 = vsub.s32 (!%p6817_p1), %v5797_v30, %v5799_v3 }
 0x93a   : > { %v5768_v56 = vmul.f32 (!%p6817_p1), 0.0009765625, %v5767_v10 }
 0x93c   : > { %v5770_v35 = vadd.f32 1e-05, %v5768_v56 }
 0x93e   : > { %7040 = vrsqrt.f32 %v5770_v35 }
 0x948   : > { %v7041_v4 = vpop.eup %7040 }
 0x949   : > { %v5772_v18 = vmul.f32 %v7041_v4, %v5769_v55 }
 0x94b   : > { %5779 = vperm.xlu0 %7039, %v5772_v18   ;;  %v5775_v19 = vmul.f32 %v5774_v57, %v5772_v18 }
 0x94d   : > { %v5776_v38 = vsub.f32 %v5773_v7, %v5775_v19 }
 0x94f   : > { %5786 = vperm.xlu0 %7039, %v5776_v38  }
 0x9ca   : > { %v5780_v60 = vpop.permute.xlu0 %5779 }
 0x9cb   : > { %v5782_v24 = vmul.f32 %v5780_v60, %v11031_v51  ;;  %v5783_v47 = vmul.f32 %v5780_v60, %v11033_v1 }
 0x9ce   : > { %v5787_v52 = vpop.permute.xlu0 %5786 }
 0x9cf   : > { %v5789_v6 = vadd.f32 %v5787_v52, %v5782_v24  ;;  %v5790_v40 = vadd.f32 %v5787_v52, %v5783_v47 }
 0x9d1   : > { %v5791_v61 = vmax.f32 %v5789_v6, 0.0  ;;  %v5792_v11 = vmax.f32 %v5790_v40, 0.0 }
 0x9d3   : > { %v5794_v43 = vcombine.high %v5791_v61, %v5791_v61  ;;  %v5801_v34 = vrot.slane %v5791_v61, %v5800_v44  ;;  %v5925_v37 = vcombine.high %v5792_v11, %v5792_v11  ;;  %v5932_v14 = vrot.slane %v5792_v11, %v5800_v44 }
 0x9d5   : > { %v5808_v12 = vrot.slane %v5794_v43, %v5800_v44  ;;  %v5809_v46 = vcombine.high %v5801_v34, %v5801_v34  ;;  %v5939_v28 = vrot.slane %v5925_v37, %v5800_v44  ;;  %v5940_v8 = vcombine.high %v5932_v14, %v5932_v14 }
 0x9d6   : > { %v5948_v41 = vrot.slane %v5932_v14, %v5800_v44  ;;  %v5817_v17 = vrot.slane %v5801_v34, %v5800_v44 }
 0x9d7   : > { %v5810_v20 = vcombine.high %v5808_v12, %v5808_v12  ;;  %v5824_v31 = vrot.slane %v5808_v12, %v5800_v44  ;;  %v5831_v49 = vrot.slane %v5809_v46, %v5800_v44  ;;  %v5941_v51 = vcombine.high %v5939_v28, %v5939_v28 }
 0x9d8   : > { %v5955_v1 = vrot.slane %v5939_v28, %v5800_v44  ;;  %v5962_v54 = vrot.slane %v5940_v8, %v5800_v44  ;;  %5982 = vst.msk [vmem:[%s11036_s11 + $0x2] sm:$0x1] %vm5851_vm3, %v5948_v41  ;;  %v5993_v63 = vrot.slane %v5948_v41, %v11054_v53  ;;  %v5863_v21 = vrot.slane %v5817_v17, %v11054_v53 }
 0x9d9   : > { %5852 = vst.msk [vmem:[%s11036_s11] sm:$0x1] %vm5851_vm3, %v5817_v17  ;;  %5853 = vst.msk [vmem:[%s11036_s11 + $0x4] sm:$0x1] %vm5851_vm3, %v5831_v49  ;;  %v5839_v62 = vcombine.high %v5817_v17, %v5817_v17  ;;  %v5841_v45 = vcombine.high %v5831_v49, %v5831_v49  ;;  %v5970_v50 = vcombine.high %v5948_v41, %v5948_v41 }
 0x9da   : > { %5856 = vst.msk [vmem:[%s11036_s11 + $0x10] sm:$0x1] %vm5851_vm3, %v5824_v31  ;;  %5983 = vst.msk [vmem:[%s11036_s11 + $0x6] sm:$0x1] %vm5851_vm3, %v5962_v54  ;;  %6022 = vrot.lane.b32.xlu0 %v5993_v63, %s7183_s21  ;;  %5892 = vrot.lane.b32.xlu1 %v5863_v21, %s7183_s21  ;;  %v5867_v23 = vrot.slane %v5831_v49, %v11054_v53  ;;  %v5838_v59 = vrot.slane %v5810_v20, %v5800_v44 }
 0x9db   : > { %5986 = vst.msk [vmem:[%s11036_s11 + $0x12] sm:$0x1] %vm5851_vm3, %v5955_v1  ;;  %5854 = vst.msk [vmem:[%s11036_s11 + $0x8] sm:$0x1] %vm5851_vm3, %v5839_v62  ;;  %v5840_v42 = vcombine.high %v5824_v31, %v5824_v31  ;;  %v5871_v58 = vrot.slane %v5839_v62, %v11054_v53  ;;  %v5972_v25 = vcombine.high %v5962_v54, %v5962_v54 }
 0x9dc   : > { %5855 = vst.msk [vmem:[%s11036_s11 + $0xc] sm:$0x1] %vm5851_vm3, %v5841_v45  ;;  %5984 = vst.msk [vmem:[%s11036_s11 + $0xa] sm:$0x1] %vm5851_vm3, %v5970_v50  ;;  %v5971_v48 = vcombine.high %v5955_v1, %v5955_v1  ;;  %v5969_v9 = vrot.slane %v5941_v51, %v5800_v44  ;;  %v5842_v13 = vcombine.high %v5838_v59, %v5838_v59 }
 0x9dd   : > { %5857 = vst.msk [vmem:[%s11036_s11 + $0x14] sm:$0x1] %vm5851_vm3, %v5838_v59  ;;  %5858 = vst.msk [vmem:[%s11036_s11 + $0x18] sm:$0x1] %vm5851_vm3, %v5840_v42  ;;  %v5997_v26 = vrot.slane %v5962_v54, %v11054_v53  ;;  %v5879_v0 = vrot.slane %v5824_v31, %v11054_v53  ;;  %v5875_v32 = vrot.slane %v5841_v45, %v11054_v53 }
 0x9de   : > { %5896 = vrot.lane.b32.xlu0 %v5871_v58, %s7183_s21  ;;  %5894 = vrot.lane.b32.xlu1 %v5867_v23, %s7183_s21  ;;  %5985 = vst.msk [vmem:[%s11036_s11 + $0xe] sm:$0x1] %vm5851_vm3, %v5972_v25  ;;  %5988 = vst.msk [vmem:[%s11036_s11 + $0x1a] sm:$0x1] %vm5851_vm3, %v5971_v48  ;;  %v5973_v29 = vcombine.high %v5969_v9, %v5969_v9  ;;  %v6001_v33 = vrot.slane %v5970_v50, %v11054_v53 }
 0x9df   : > { %5987 = vst.msk [vmem:[%s11036_s11 + $0x16] sm:$0x1] %vm5851_vm3, %v5969_v9  ;;  %5859 = vst.msk [vmem:[%s11036_s11 + $0x1c] sm:$0x1] %vm5851_vm3, %v5842_v13  ;;  %v6009_v15 = vrot.slane %v5955_v1, %v11054_v53  ;;  %v5883_v16 = vrot.slane %v5838_v59, %v11054_v53  ;;  %v5887_v2 = vrot.slane %v5840_v42, %v11054_v53 }
 0x9e0   : > { %5989 = vst.msk [vmem:[%s11036_s11 + $0x1e] sm:$0x1] %vm5851_vm3, %v5973_v29  ;;  %v6005_v39 = vrot.slane %v5972_v25, %v11054_v53  ;;  %v6017_v10 = vrot.slane %v5971_v48, %v11054_v53  ;;  %v6013_v22 = vrot.slane %v5969_v9, %v11054_v53  ;;  %v5891_v56 = vrot.slane %v5842_v13, %v11054_v53 }
 0x9e1   : > { %v6021_v35 = vrot.slane %v5973_v29, %v11054_v53 }
 0x9e2   : > { %6024 = vrot.lane.b32.xlu1 %v5997_v26, %s7183_s21  ;;  %5900 = vrot.lane.b32.xlu0 %v5879_v0, %s7183_s21 }
 0x9e6   : > { %5898 = vrot.lane.b32.xlu1 %v5875_v32, %s7183_s21  ;;  %6026 = vrot.lane.b32.xlu0 %v6001_v33, %s7183_s21 }
 0x9ea   : > { %6030 = vrot.lane.b32.xlu0 %v6009_v15, %s7183_s21  ;;  %5902 = vrot.lane.b32.xlu1 %v5883_v16, %s7183_s21 }
 0x9ee   : > { %5904 = vrot.lane.b32.xlu0 %v5887_v2, %s7183_s21  ;;  %6028 = vrot.lane.b32.xlu1 %v6005_v39, %s7183_s21 }
 0x9f2   : > { %6034 = vrot.lane.b32.xlu0 %v6017_v10, %s7183_s21  ;;  %6032 = vrot.lane.b32.xlu1 %v6013_v22, %s7183_s21 }
 0x9f6   : > { %5906 = vrot.lane.b32.xlu1 %v5891_v56, %s7183_s21 }
 0x9fa   : > { %6036 = vrot.lane.b32.xlu1 %v6021_v35, %s7183_s21 }
 0xa4c   : > { %v6023_v55 = vpop.permute.xlu0 %6022  ;;  %v5893_v4 = vpop.permute.xlu1 %5892 }
 0xa4d   : > { %6046 = vst.msk [vmem:[%s11036_s11 + $0x3] sm:$0x1] %vm5851_vm3, %v6023_v55  ;;  %5916 = vst.msk [vmem:[%s11036_s11 + $0x1] sm:$0x1] %vm5851_vm3, %v5893_v4 }
 0xa50   : > { %v5897_v57 = vpop.permute.xlu0 %5896  ;;  %v5895_v18 = vpop.permute.xlu1 %5894 }
 0xa51   : > { %5918 = vst.msk [vmem:[%s11036_s11 + $0x9] sm:$0x1] %vm5851_vm3, %v5897_v57  ;;  %5917 = vst.msk [vmem:[%s11036_s11 + $0x5] sm:$0x1] %vm5851_vm3, %v5895_v18 }
 0xa54   : > { %v6025_v7 = vpop.permute.xlu1 %6024  ;;  %v5901_v19 = vpop.permute.xlu0 %5900 }
 0xa55   : > { %6047 = vst.msk [vmem:[%s11036_s11 + $0x7] sm:$0x1] %vm5851_vm3, %v6025_v7  ;;  %5920 = vst.msk [vmem:[%s11036_s11 + $0x11] sm:$0x1] %vm5851_vm3, %v5901_v19 }
 0xa58   : > { %v5899_v38 = vpop.permute.xlu1 %5898  ;;  %v6027_v5 = vpop.permute.xlu0 %6026 }
 0xa59   : > { %5919 = vst.msk [vmem:[%s11036_s11 + $0xd] sm:$0x1] %vm5851_vm3, %v5899_v38  ;;  %6048 = vst.msk [vmem:[%s11036_s11 + $0xb] sm:$0x1] %vm5851_vm3, %v6027_v5 }
 0xa5c   : > { %v6031_v36 = vpop.permute.xlu0 %6030  ;;  %v5903_v27 = vpop.permute.xlu1 %5902 }
 0xa5d   : > { %6050 = vst.msk [vmem:[%s11036_s11 + $0x13] sm:$0x1] %vm5851_vm3, %v6031_v36  ;;  %5921 = vst.msk [vmem:[%s11036_s11 + $0x15] sm:$0x1] %vm5851_vm3, %v5903_v27 }
 0xa60   : > { %v5905_v60 = vpop.permute.xlu0 %5904  ;;  %v6029_v30 = vpop.permute.xlu1 %6028 }
 0xa61   : > { %5922 = vst.msk [vmem:[%s11036_s11 + $0x19] sm:$0x1] %vm5851_vm3, %v5905_v60  ;;  %6049 = vst.msk [vmem:[%s11036_s11 + $0xf] sm:$0x1] %vm5851_vm3, %v6029_v30 }
 0xa64   : > { %v6035_v3 = vpop.permute.xlu0 %6034  ;;  %v6033_v24 = vpop.permute.xlu1 %6032 }
 0xa65   : > { %6052 = vst.msk [vmem:[%s11036_s11 + $0x1b] sm:$0x1] %vm5851_vm3, %v6035_v3  ;;  %6051 = vst.msk [vmem:[%s11036_s11 + $0x17] sm:$0x1] %vm5851_vm3, %v6033_v24 }
 0xa68   : > { %v5907_v47 = vpop.permute.xlu1 %5906 }
 0xa69   : > { %5923 = vst.msk [vmem:[%s11036_s11 + $0x1d] sm:$0x1] %vm5851_vm3, %v5907_v47 }
 0xa6c   : > { %v6037_v52 = vpop.permute.xlu1 %6036 }
 0xa6d   : > { %6053 = vst.msk [vmem:[%s11036_s11 + $0x1f] sm:$0x1] %vm5851_vm3, %v6037_v52 }
 0xa6e PF: > { %s6062_s18 = smul.u32 %s7132_s28, %s7136_s29  ;;  %s6071_s12 = sshll.u32 %s11036_s11, 4  ;;  %s11157_s12 = int_to_ptr.vmem [resolvable:$true] %s6071_s12 }
 0xa6f   : > { %s6063_s10 = smul.u32 %s7128_s27, %s7136_s29  ;;  %s11166_s23 = scalar_lea.sflag [#allocation6], %s397_s0 }
 0xa70   : > { %s6819_s22 = sshll.u32 %s6062_s18, 4  ;;  %s7042_s14 = scalar_lea.vmem %s11157_s12, 512 }
 0xa71   : > { %s6068_s6 = sadd.s32 %s6819_s22, %s6063_s10  ;;  %p7043_p2 = scmp.ne.s32.totalorder %s11157_s12, %s7042_s14 }
 0xa72   : > { %s6820_s19 = sshll.u32 %s6068_s6, 6  ;;  %s7184_s27 = smov [#allocation5]  }
 0xa73   : > { %s11162_s21 = scalar_lea.hbm %s11233_s7, %s6820_s19  ;;  %p7044_p3 = pnand %p7043_p2, %p7291_p6 }
 0xa74   : > { %s7046_s28 = sshll.u32 %s7184_s27, 4  ;;  %s7047_s28 = int_to_ptr.vmem [resolvable:$false] %s7046_s28 }
 0xa75   : > { %p7045_p4 = pneg %p7044_p3  ;;  %s7048_s29 = scalar_lea.vmem %s7047_s28, 1024 }
 0xa76   : > { %p7049_p5 = scmp.lt.s32.totalorder %s11157_s12, %s7047_s28  ;;  %p7050_p8 = scmp.lt.s32.totalorder %s7048_s29, %s7042_s14 }
 0xa78   : > { %p7051_p9 = por %p7050_p8, %p7049_p5 }
 0xa7a   : > { %p7052_p10 = pnand %p7051_p9, %p7045_p4 }
 0xa7c   : > { %7055 = shalt.err (!%p7052_p10)
}
 0xa7d   : > { %s7056_s0 = scalar_lea.hbm %s11162_s21, 512  ;;  %s7060_s10 = scalar_lea.hbm %s11233_s7, 2048 }
 0xa7e   : > { %p7057_p11 = scmp.ne.s32.totalorder %s11162_s21, %s7056_s0  ;;  %p7061_p0 = scmp.lt.u32.totalorder %s11162_s21, %s11233_s7 }
 0xa7f   : > { %p7062_p1 = scmp.lt.u32.totalorder %s7060_s10, %s7056_s0  ;;  %p7064_p3 = scmp.lt.u32.totalorder %s7056_s0, %s11162_s21 }
 0xa80   : > { %p7058_p12 = pnand %p7057_p11, %p7291_p6 }
 0xa81   : > { %p7063_p2 = por %p7062_p1, %p7061_p0 }
 0xa82   : > { %p7059_p13 = pneg %p7058_p12 }
 0xa83   : > { %p7065_p4 = por %p7064_p3, %p7063_p2 }
 0xa85   : > { %p7066_p5 = pnand %p7065_p4, %p7059_p13 }
 0xa87   : > { %7069 = shalt.err (!%p7066_p5)
}
 0xa88   : > { %s7185_s14 = smov 128   ;;  %s11365_s19 = smov 4  }
 0xa89   : > { %s11366_s17 = smov 64  }
 0xa8a   : > { %6919 = dma.vmem_to_hbm [thread:$0]  (%p7291_p6), %s11157_s12, 512, %s11162_s21, %s11166_s23, %s11366_s17, %s7185_s14, %s11365_s19  }
 0xa8b PF: > { %p6925_p8 = scmp.ge.s32.totalorder %s7152_s9, 2  ;;  %s6086_s20 = sand.u32 1, %s7116_s24  }
 0xa8c   : > { %s6087_s27 = scalar_lea.sflag [#allocation6], %s6086_s20 }
 0xa8d   : > { %p6922_p9 = pnand %p6925_p8, %p7295_p7 }
 0xa8f   : > { %7111 = dma.done.wait (!%p6922_p9), %s6087_s27, 512  }
 0xa90   : > { %7113 = vsyncadd (!%p6922_p9), %s6087_s27, 4294966784  ;;  %s20_s9 = sadd.s32 1, %s7152_s9   ;;  %s11367_s28 = sld [smem:[#allocation8_spill]] }
 0xa91   : > { %p17_p10 = scmp.ge.s32.totalorder %s20_s9, 10   ;;  %s11368_s15 = sld [smem:[#allocation9_spill]] }
 0xa92   : > { %s11369_s6 = sld [smem:[#allocation10_spill]]  ;;  %s11370_s23 = sld [smem:[#allocation11_spill]] }
 0xa93   : > { %s11371_s24 = smov %s7120_s25  ;;  %s11372_s25 = smov %s7124_s26 }
 0xa94   : > { %s11373_s26 = smov %s7313_s13  ;;  %s11374_s27 = smov %s7140_s30 }
 0xa95   : > { %s11375_s29 = smov %s7148_s8  ;;  %19 = sbr.rel (!%p17_p10) target bundleno = 8 (0x8), region = 106 }
 0xa97   : > { %s11376_s30 = smov %s11368_s15 }
 0xa98   : > { %s11377_s8 = smov %s11370_s23 }
 0xa9c   :  { %6092 = vsyncpa [#allocation6], 1 }
 0xa9d   :  { %6094 = vsyncpa [#allocation6 + $0x1], 1 }

</bundles_post_ra>
